<compile_context>
chip_gen: v7x
topology: tpu7x:2x2x1
jax: 0.10.0
libtpu: 0.0.40
codegen_flags: <defaults>
</compile_context>

<pallas_src>
import functools
import numpy as np
import jax
import jax.numpy as jnp
from jax.experimental import pallas as pl
from jax.experimental.pallas import tpu as pltpu

L = 34                 # tile axis, fixed by nn.Linear(32 * 34, 1024)
IN_CHANNELS = 8        # synthetic obs_shape(version=1)[0]
CONV_CHANNELS = 32
NUM_BLOCKS = 2
CA_RATIO = 16
BN_EPS = 1e-5
LATENT = 1024
HIDDEN = 512


# ----------------------------------------------------------------------------
# Pallas kernel (B batch samples per grid step, L-major flat layout)
# ----------------------------------------------------------------------------
def _conv1d_same_fused(x, w_packed_bf16, block_b):
    """'same' Conv1d (kernel=3, padding=1) as ONE bf16 matmul.

    x: (L*B, Cin) with row = l*B + b.  w_packed_bf16: (3*Cin, Cout) bf16, rows
    ordered [tap l-1 | tap l | tap l+1].  Shift by +/-B rows and zero the
    first/last B rows to realize per-sample 'same' padding, then one MXU dot
    with an f32 accumulator.
    """
    lb, cin = x.shape
    xb = x.astype(jnp.bfloat16)
    zpad = jnp.zeros((block_b, cin), jnp.bfloat16)
    x_prev = jnp.concatenate([zpad, xb[: lb - block_b, :]], axis=0)
    x_next = jnp.concatenate([xb[block_b:, :], zpad], axis=0)
    xcat = jnp.concatenate([x_prev, xb, x_next], axis=1)            # (L*B, 3*Cin) bf16
    return jnp.dot(xcat, w_packed_bf16, preferred_element_type=jnp.float32)


def brain_kernel(obs_ref,
                 w_stem_ref, s_stem_ref, b_stem_ref,
                 blk_w1_ref, blk_s1_ref, blk_b1_ref,
                 blk_w2_ref, blk_s2_ref, blk_b2_ref,
                 blk_caw1_ref, blk_cab1_ref, blk_caw2_ref, blk_cab2_ref,
                 w_last_ref, b_last_ref,
                 w_fc_ref, b_fc_ref,
                 w_lat_ref, b_lat_ref,
                 w_head_ref, b_head_ref,
                 mu_ref, logsig_ref, *, block_b):
    B = block_b
    C = CONV_CHANNELS

    x = obs_ref[...]                                               # (L*B, Cin) f32

    # ---- ResNet stem: Conv1d -> BN(folded) -> ReLU ----
    x = _conv1d_same_fused(x, w_stem_ref[...], B)
    x = jnp.maximum(x * s_stem_ref[...] + b_stem_ref[...], 0.0)

    # ---- ResBlocks (version=1 -> pre_actv=False, ReLU) ----
    for blk in range(NUM_BLOCKS):
        res = x
        out = _conv1d_same_fused(x, blk_w1_ref[blk], B)
        out = jnp.maximum(out * blk_s1_ref[blk] + blk_b1_ref[blk], 0.0)
        out = _conv1d_same_fused(out, blk_w2_ref[blk], B)
        out = out * blk_s2_ref[blk] + blk_b2_ref[blk]              # (L*B, C) f32

        # ChannelAttention: per-sample mean/max over L via a layout-free
        # (L, B, C) leading-dim split; shared MLP runs ONCE on [avg; max].
        out3 = out.reshape(L, B, C)
        avg = jnp.sum(out3, axis=0) * (1.0 / L)                    # (B, C)
        mx = jnp.max(out3, axis=0)                                 # (B, C)
        stacked = jnp.concatenate([avg, mx], axis=0)               # (2B, C)
        h = jnp.dot(stacked, blk_caw1_ref[blk],
                    preferred_element_type=jnp.float32) + blk_cab1_ref[blk]
        h = jnp.maximum(h, 0.0)
        lg = jnp.dot(h, blk_caw2_ref[blk],
                     preferred_element_type=jnp.float32) + blk_cab2_ref[blk]
        logit = lg[0:B, :] + lg[B:2 * B, :]                        # (B, C)
        gate = pl.reciprocal(1.0 + jnp.exp(-logit), approx=True)   # sigmoid (EUP)

        res3 = res.reshape(L, B, C)
        x = jnp.maximum(out3 * gate[None, :, :] + res3, 0.0)       # gated + residual + ReLU
        x = x.reshape(L * B, C)

    # ---- final Conv1d(conv_channels -> 32, bias=True) + ReLU ----
    y = _conv1d_same_fused(x, w_last_ref[...], B) + b_last_ref[...]
    y = jnp.maximum(y, 0.0).astype(jnp.bfloat16)                   # (L*B, 32) bf16

    # ---- Flatten + Linear(32*34 -> 1024): assemble a lane-dense (B, 1088)
    # bf16 matrix from 34 aligned (B, 32) slices, then ONE big-K bf16 matmul
    # (weight rows pre-packed in the matching l*32 + c order).
    y3 = y.reshape(L, B, 32)
    y2d = jnp.concatenate([y3[l] for l in range(L)], axis=1)       # (B, 1088) bf16
    phi = jnp.dot(y2d, w_fc_ref[...],
                  preferred_element_type=jnp.float32) + b_fc_ref[...]   # (B, 1024)

    # ---- version == 1 heads: latent_net -> fused [mu | logsig] matmul ----
    lat = jnp.dot(phi.astype(jnp.bfloat16), w_lat_ref[...],
                  preferred_element_type=jnp.float32) + b_lat_ref[...]
    lat = jnp.maximum(lat, 0.0).astype(jnp.bfloat16)               # (B, 512)
    heads = jnp.dot(lat, w_head_ref[...],
                    preferred_element_type=jnp.float32) + b_head_ref[...]  # (B, 1024)
    mu_ref[...] = heads[:, :HIDDEN]
    logsig_ref[...] = heads[:, HIDDEN:]


PARAM_ORDER = [
    "w_stem", "s_stem", "b_stem",
    "blk_w1", "blk_s1", "blk_b1", "blk_w2", "blk_s2", "blk_b2",
    "blk_caw1", "blk_cab1", "blk_caw2", "blk_cab2",
    "w_last", "b_last", "w_fc", "b_fc",
    "w_lat", "b_lat", "w_head", "b_head",
]


def _round_up(v, m):
    return ((v + m - 1) // m) * m


def _pick_block(n, block_batch):
    """Block batch: multiple of 8, as large as useful, >=2 grid steps when cheap."""
    b = _round_up(max(int(block_batch), 8), 8)
    b = min(b, _round_up(n, 8))
    # Prefer >=2 grid steps (v7x has two TensorCores; "parallel" grid axes shard
    # across them) as long as each step still keeps the MXU M-dim >= 64.
    half = _round_up(-(-n // 2), 8)
    if _round_up(n, 8) <= b and half >= 64:
        b = min(b, half)
    return b


def brain_forward(obs_ncl, params, *, block_batch=256):
    """obs_ncl: (N, IN_CHANNELS, 34) float32 (PyTorch NCL). Returns (mu, logsig)."""
    n = obs_ncl.shape[0]
    b = _pick_block(n, block_batch)
    nb = -(-n // b)
    npad = nb * b

    obs = jnp.transpose(obs_ncl, (0, 2, 1)).astype(jnp.float32)    # (N, L, Cin)
    if npad != n:
        obs = jnp.pad(obs, ((0, npad - n), (0, 0), (0, 0)))
    # L-major flat layout per block: row = block*(L*b) + l*b + sample_in_block.
    obs_flat = (obs.reshape(nb, b, L, IN_CHANNELS)
                   .transpose(0, 2, 1, 3)
                   .reshape(nb * L * b, IN_CHANNELS))

    weights = [params[k] for k in PARAM_ORDER]

    def full_spec(arr):
        nd = arr.ndim
        return pl.BlockSpec(arr.shape, lambda i, _n=nd: (0,) * _n)

    in_specs = [pl.BlockSpec((L * b, IN_CHANNELS), lambda i: (i, 0))]
    in_specs += [full_spec(w) for w in weights]
    out_specs = (pl.BlockSpec((b, HIDDEN), lambda i: (i, 0)),
                 pl.BlockSpec((b, HIDDEN), lambda i: (i, 0)))

    mu_pad, ls_pad = pl.pallas_call(
        functools.partial(brain_kernel, block_b=b),
        grid=(nb,),
        out_shape=(jax.ShapeDtypeStruct((npad, HIDDEN), jnp.float32),
                   jax.ShapeDtypeStruct((npad, HIDDEN), jnp.float32)),
        in_specs=in_specs,
        out_specs=out_specs,
        compiler_params=pltpu.CompilerParams(
            dimension_semantics=("parallel",),
            vmem_limit_bytes=40 * 1024 * 1024),
    )(obs_flat, *weights)
    return mu_pad[:n], ls_pad[:n]


# ----------------------------------------------------------------------------
# Deterministic parameter construction (BatchNorm folded, eval mode)
# ----------------------------------------------------------------------------
def make_params(key):
    keys = iter(jax.random.split(key, 128))

    def rnd(shape, scale=0.05):
        return (scale * jax.random.normal(next(keys), shape)).astype(jnp.float32)

    C, H = CONV_CHANNELS, CONV_CHANNELS // CA_RATIO

    def pack_conv(w_torch):                      # (Cout, Cin, 3) -> (3*Cin, Cout) bf16
        cout, cin, _k = w_torch.shape
        return (jnp.transpose(w_torch, (2, 1, 0))
                .reshape(3 * cin, cout).astype(jnp.bfloat16))

    def folded_bn():
        gamma = 1.0 + rnd((C,), 0.02)
        beta = rnd((C,), 0.02)
        mean = rnd((C,), 0.02)
        var = 1.0 + jnp.abs(rnd((C,), 0.02))
        scale = gamma / jnp.sqrt(var + BN_EPS)
        return scale[None, :], (beta - mean * scale)[None, :]      # (1, C) each, f32

    p = {}
    p["w_stem"] = pack_conv(rnd((C, IN_CHANNELS, 3)))
    p["s_stem"], p["b_stem"] = folded_bn()

    w1s, s1s, b1s, w2s, s2s, b2s = [], [], [], [], [], []
    caw1s, cab1s, caw2s, cab2s = [], [], [], []
    for _ in range(NUM_BLOCKS):
        w1s.append(pack_conv(rnd((C, C, 3))))
        s, sh = folded_bn(); s1s.append(s); b1s.append(sh)
        w2s.append(pack_conv(rnd((C, C, 3))))
        s, sh = folded_bn(); s2s.append(s); b2s.append(sh)
        caw1s.append(jnp.transpose(rnd((H, C), 0.1), (1, 0)))      # (C, H) f32
        cab1s.append(jnp.zeros((1, H), jnp.float32))               # bias init 0
        caw2s.append(jnp.transpose(rnd((C, H), 0.1), (1, 0)))      # (H, C) f32
        cab2s.append(jnp.zeros((1, C), jnp.float32))
    p["blk_w1"], p["blk_s1"], p["blk_b1"] = map(jnp.stack, (w1s, s1s, b1s))
    p["blk_w2"], p["blk_s2"], p["blk_b2"] = map(jnp.stack, (w2s, s2s, b2s))
    p["blk_caw1"], p["blk_cab1"] = jnp.stack(caw1s), jnp.stack(cab1s)
    p["blk_caw2"], p["blk_cab2"] = jnp.stack(caw2s), jnp.stack(cab2s)

    p["w_last"] = pack_conv(rnd((32, C, 3)))                       # (3*C, 32) bf16
    p["b_last"] = rnd((1, 32))

    # Linear(32*34, 1024): torch weight (1024, 1088), flatten index = c*34 + l.
    # Re-pack to (1088, 1024) with row index = l*32 + c (bf16 on the MXU).
    w_fc_t = rnd((LATENT, 32 * L), 0.02)
    p["w_fc"] = (jnp.transpose(w_fc_t.reshape(LATENT, 32, L), (2, 1, 0))
                 .reshape(L * 32, LATENT).astype(jnp.bfloat16))
    p["b_fc"] = rnd((1, LATENT), 0.02)
    p["w_lat"] = jnp.transpose(rnd((HIDDEN, LATENT), 0.02), (1, 0)).astype(jnp.bfloat16)
    p["b_lat"] = rnd((1, HIDDEN), 0.02)

    # Fused [mu | logsig] head: (512, 1024) bf16 weight + (1, 1024) f32 bias.
    w_mu = jnp.transpose(rnd((HIDDEN, HIDDEN), 0.02), (1, 0))
    w_ls = jnp.transpose(rnd((HIDDEN, HIDDEN), 0.02), (1, 0))
    p["w_head"] = jnp.concatenate([w_mu, w_ls], axis=1).astype(jnp.bfloat16)
    p["b_head"] = jnp.concatenate([rnd((1, HIDDEN), 0.02), rnd((1, HIDDEN), 0.02)], axis=1)
    return p


# ----------------------------------------------------------------------------
# Pure-JAX reference (f32 math, same packed params) for validation
# ----------------------------------------------------------------------------
def _conv1d_ref(x, w_packed):            # x: (N, L, Cin), w_packed: (3*Cin, Cout)
    n, l, cin = x.shape
    w = w_packed.astype(jnp.float32).reshape(3, cin, -1)
    zeros = jnp.zeros((n, 1, cin), x.dtype)
    xp = jnp.concatenate([zeros, x, zeros], axis=1)
    ein = functools.partial(jnp.einsum, "nlc,cd->nld",
                            preferred_element_type=jnp.float32)
    return ein(xp[:, 0:l], w[0]) + ein(xp[:, 1:l + 1], w[1]) + ein(xp[:, 2:l + 2], w[2])


def reference_forward(obs_ncl, p):
    x = jnp.transpose(obs_ncl, (0, 2, 1)).astype(jnp.float32)
    x = jnp.maximum(_conv1d_ref(x, p["w_stem"]) * p["s_stem"][:, None, :]
                    + p["b_stem"][:, None, :], 0.0)
    for b in range(NUM_BLOCKS):
        res = x
        out = _conv1d_ref(x, p["blk_w1"][b]) * p["blk_s1"][b][:, None, :] \
            + p["blk_b1"][b][:, None, :]
        out = jnp.maximum(out, 0.0)
        out = _conv1d_ref(out, p["blk_w2"][b]) * p["blk_s2"][b][:, None, :] \
            + p["blk_b2"][b][:, None, :]

        def mlp(v):
            h = jnp.maximum(v @ p["blk_caw1"][b] + p["blk_cab1"][b], 0.0)
            return h @ p["blk_caw2"][b] + p["blk_cab2"][b]

        weight = jax.nn.sigmoid(mlp(jnp.mean(out, axis=1)) + mlp(jnp.max(out, axis=1)))
        out = weight[:, None, :] * out
        x = jnp.maximum(out + res, 0.0)
    y = jnp.maximum(_conv1d_ref(x, p["w_last"]) + p["b_last"][:, None, :], 0.0)
    w_fc = p["w_fc"].astype(jnp.float32).reshape(L, 32, LATENT)
    phi = jnp.einsum("nlc,lco->no", y, w_fc) + p["b_fc"]
    lat = jnp.maximum(phi @ p["w_lat"].astype(jnp.float32) + p["b_lat"], 0.0)
    w_head = p["w_head"].astype(jnp.float32)
    mu = lat @ w_head[:, :HIDDEN] + p["b_head"][:, :HIDDEN]
    logsig = lat @ w_head[:, HIDDEN:] + p["b_head"][:, HIDDEN:]
    return mu, logsig


if __name__ == "__main__":
    key = jax.random.PRNGKey(0)
    pkey, okey = jax.random.split(key)
    params = make_params(pkey)
    obs = jax.random.normal(okey, (2, IN_CHANNELS, L), jnp.float32)   # PyTorch NCL

    mu, logsig = brain_forward(obs, params)
    jax.block_until_ready((mu, logsig))

    ref_mu, ref_ls = reference_forward(obs, params)
    jax.block_until_ready((ref_mu, ref_ls))

    assert mu.shape == (2, HIDDEN) and logsig.shape == (2, HIDDEN)
    assert np.allclose(np.asarray(mu), np.asarray(ref_mu), rtol=2e-2, atol=2e-2)
    assert np.allclose(np.asarray(logsig), np.asarray(ref_ls), rtol=2e-2, atol=2e-2)
    print("KERNEL_OK")
</pallas_src>

<mosaic_0001>
module attributes {stable_mosaic.version = 11 : i64} {
  func.func @brain_kernel(%arg0: i32, %arg1: memref<272x8xf32, #tpu.memory_space<vmem>>, %arg2: memref<24x32xbf16, #tpu.memory_space<vmem>>, %arg3: memref<1x32xf32, #tpu.memory_space<vmem>>, %arg4: memref<1x32xf32, #tpu.memory_space<vmem>>, %arg5: memref<2x96x32xbf16, #tpu.memory_space<vmem>>, %arg6: memref<2x1x32xf32, #tpu.memory_space<vmem>>, %arg7: memref<2x1x32xf32, #tpu.memory_space<vmem>>, %arg8: memref<2x96x32xbf16, #tpu.memory_space<vmem>>, %arg9: memref<2x1x32xf32, #tpu.memory_space<vmem>>, %arg10: memref<2x1x32xf32, #tpu.memory_space<vmem>>, %arg11: memref<2x32x2xf32, #tpu.memory_space<vmem>>, %arg12: memref<2x1x2xf32, #tpu.memory_space<vmem>>, %arg13: memref<2x2x32xf32, #tpu.memory_space<vmem>>, %arg14: memref<2x1x32xf32, #tpu.memory_space<vmem>>, %arg15: memref<96x32xbf16, #tpu.memory_space<vmem>>, %arg16: memref<1x32xf32, #tpu.memory_space<vmem>>, %arg17: memref<1088x1024xbf16, #tpu.memory_space<vmem>>, %arg18: memref<1x1024xf32, #tpu.memory_space<vmem>>, %arg19: memref<1024x512xbf16, #tpu.memory_space<vmem>>, %arg20: memref<1x512xf32, #tpu.memory_space<vmem>>, %arg21: memref<512x1024xbf16, #tpu.memory_space<vmem>>, %arg22: memref<1x1024xf32, #tpu.memory_space<vmem>>, %arg23: memref<8x512xf32, #tpu.memory_space<vmem>>, %arg24: memref<8x512xf32, #tpu.memory_space<vmem>>) attributes {dimension_semantics = [#tpu.dimension_semantics<parallel>], iteration_bounds = array<i64: 1>, scalar_prefetch = 0 : i64, scratch_operands = 0 : i64, tpu.core_type = #tpu.core_type<tc>, window_params = [{transform_indices = @transform_0, window_bounds = array<i64: 272, 8>}, {pipeline_mode = #tpu.pipeline_mode<synchronous>, transform_indices = @transform_1, window_bounds = array<i64: 24, 32>}, {pipeline_mode = #tpu.pipeline_mode<synchronous>, transform_indices = @transform_2, window_bounds = array<i64: 1, 32>}, {pipeline_mode = #tpu.pipeline_mode<synchronous>, transform_indices = @transform_3, window_bounds = array<i64: 1, 32>}, {pipeline_mode = #tpu.pipeline_mode<synchronous>, transform_indices = @transform_4, window_bounds = array<i64: 2, 96, 32>}, {pipeline_mode = #tpu.pipeline_mode<synchronous>, transform_indices = @transform_5, window_bounds = array<i64: 2, 1, 32>}, {pipeline_mode = #tpu.pipeline_mode<synchronous>, transform_indices = @transform_6, window_bounds = array<i64: 2, 1, 32>}, {pipeline_mode = #tpu.pipeline_mode<synchronous>, transform_indices = @transform_7, window_bounds = array<i64: 2, 96, 32>}, {pipeline_mode = #tpu.pipeline_mode<synchronous>, transform_indices = @transform_8, window_bounds = array<i64: 2, 1, 32>}, {pipeline_mode = #tpu.pipeline_mode<synchronous>, transform_indices = @transform_9, window_bounds = array<i64: 2, 1, 32>}, {pipeline_mode = #tpu.pipeline_mode<synchronous>, transform_indices = @transform_10, window_bounds = array<i64: 2, 32, 2>}, {pipeline_mode = #tpu.pipeline_mode<synchronous>, transform_indices = @transform_11, window_bounds = array<i64: 2, 1, 2>}, {pipeline_mode = #tpu.pipeline_mode<synchronous>, transform_indices = @transform_12, window_bounds = array<i64: 2, 2, 32>}, {pipeline_mode = #tpu.pipeline_mode<synchronous>, transform_indices = @transform_13, window_bounds = array<i64: 2, 1, 32>}, {pipeline_mode = #tpu.pipeline_mode<synchronous>, transform_indices = @transform_14, window_bounds = array<i64: 96, 32>}, {pipeline_mode = #tpu.pipeline_mode<synchronous>, transform_indices = @transform_15, window_bounds = array<i64: 1, 32>}, {pipeline_mode = #tpu.pipeline_mode<synchronous>, transform_indices = @transform_16, window_bounds = array<i64: 1088, 1024>}, {pipeline_mode = #tpu.pipeline_mode<synchronous>, transform_indices = @transform_17, window_bounds = array<i64: 1, 1024>}, {pipeline_mode = #tpu.pipeline_mode<synchronous>, transform_indices = @transform_18, window_bounds = array<i64: 1024, 512>}, {pipeline_mode = #tpu.pipeline_mode<synchronous>, transform_indices = @transform_19, window_bounds = array<i64: 1, 512>}, {pipeline_mode = #tpu.pipeline_mode<synchronous>, transform_indices = @transform_20, window_bounds = array<i64: 512, 1024>}, {pipeline_mode = #tpu.pipeline_mode<synchronous>, transform_indices = @transform_21, window_bounds = array<i64: 1, 1024>}, {transform_indices = @transform_22, window_bounds = array<i64: 8, 512>}, {transform_indices = @transform_23, window_bounds = array<i64: 8, 512>}]} {
    %c0 = arith.constant 0 : index
    %c0_0 = arith.constant 0 : index
    %0 = vector.load %arg1[%c0, %c0_0] : memref<272x8xf32, #tpu.memory_space<vmem>>, vector<272x8xf32>
    %c0_1 = arith.constant 0 : index
    %c0_2 = arith.constant 0 : index
    %1 = vector.load %arg2[%c0_1, %c0_2] : memref<24x32xbf16, #tpu.memory_space<vmem>>, vector<24x32xbf16>
    %2 = arith.truncf %0 : vector<272x8xf32> to vector<272x8xbf16>
    %cst = arith.constant 0.000000e+00 : bf16
    %3 = vector.broadcast %cst : bf16 to vector<8x8xbf16>
    %4 = vector.extract_strided_slice %2 {offsets = [0, 0], sizes = [264, 8], strides = [1, 1]} : vector<272x8xbf16> to vector<264x8xbf16>
    %5 = tpu.concatenate %3, %4 in 0 : vector<8x8xbf16>, vector<264x8xbf16> -> vector<272x8xbf16>
    %6 = vector.extract_strided_slice %2 {offsets = [8, 0], sizes = [264, 8], strides = [1, 1]} : vector<272x8xbf16> to vector<264x8xbf16>
    %7 = tpu.concatenate %6, %3 in 0 : vector<264x8xbf16>, vector<8x8xbf16> -> vector<272x8xbf16>
    %8 = tpu.concatenate %5, %2, %7 in 1 : vector<272x8xbf16>, vector<272x8xbf16>, vector<272x8xbf16> -> vector<272x24xbf16>
    %cst_3 = arith.constant dense<0.000000e+00> : vector<272x32xf32>
    %9 = tpu.matmul %8, %1, %cst_3 {dimension_numbers = #tpu.dot_dimension_numbers<[1], [0], [0], [1], [0, 0, 1, 1], [], []>} : vector<272x24xbf16>, vector<24x32xbf16>, vector<272x32xf32> -> vector<272x32xf32>
    %c0_4 = arith.constant 0 : index
    %c0_5 = arith.constant 0 : index
    %10 = vector.load %arg3[%c0_4, %c0_5] : memref<1x32xf32, #tpu.memory_space<vmem>>, vector<1x32xf32>
    %11 = vector.broadcast %10 : vector<1x32xf32> to vector<272x32xf32>
    %12 = arith.mulf %9, %11 : vector<272x32xf32>
    %c0_6 = arith.constant 0 : index
    %c0_7 = arith.constant 0 : index
    %13 = vector.load %arg4[%c0_6, %c0_7] : memref<1x32xf32, #tpu.memory_space<vmem>>, vector<1x32xf32>
    %14 = vector.broadcast %13 : vector<1x32xf32> to vector<272x32xf32>
    %15 = arith.addf %12, %14 : vector<272x32xf32>
    %cst_8 = arith.constant 0.000000e+00 : f32
    %16 = vector.broadcast %cst_8 : f32 to vector<272x32xf32>
    %17 = arith.maximumf %15, %16 : vector<272x32xf32>
    %c0_9 = arith.constant 0 : index
    %c0_10 = arith.constant 0 : index
    %c0_11 = arith.constant 0 : index
    %18 = vector.load %arg5[%c0_9, %c0_10, %c0_11] : memref<2x96x32xbf16, #tpu.memory_space<vmem>>, vector<1x96x32xbf16>
    %19 = vector.shape_cast %18 : vector<1x96x32xbf16> to vector<96x32xbf16>
    %20 = arith.truncf %17 : vector<272x32xf32> to vector<272x32xbf16>
    %cst_12 = arith.constant 0.000000e+00 : bf16
    %21 = vector.broadcast %cst_12 : bf16 to vector<8x32xbf16>
    %22 = vector.extract_strided_slice %20 {offsets = [0, 0], sizes = [264, 32], strides = [1, 1]} : vector<272x32xbf16> to vector<264x32xbf16>
    %23 = tpu.concatenate %21, %22 in 0 : vector<8x32xbf16>, vector<264x32xbf16> -> vector<272x32xbf16>
    %24 = vector.extract_strided_slice %20 {offsets = [8, 0], sizes = [264, 32], strides = [1, 1]} : vector<272x32xbf16> to vector<264x32xbf16>
    %25 = tpu.concatenate %24, %21 in 0 : vector<264x32xbf16>, vector<8x32xbf16> -> vector<272x32xbf16>
    %26 = tpu.concatenate %23, %20, %25 in 1 : vector<272x32xbf16>, vector<272x32xbf16>, vector<272x32xbf16> -> vector<272x96xbf16>
    %cst_13 = arith.constant dense<0.000000e+00> : vector<272x32xf32>
    %27 = tpu.matmul %26, %19, %cst_13 {dimension_numbers = #tpu.dot_dimension_numbers<[1], [0], [0], [1], [0, 0, 1, 1], [], []>} : vector<272x96xbf16>, vector<96x32xbf16>, vector<272x32xf32> -> vector<272x32xf32>
    %c0_14 = arith.constant 0 : index
    %c0_15 = arith.constant 0 : index
    %c0_16 = arith.constant 0 : index
    %28 = vector.load %arg6[%c0_14, %c0_15, %c0_16] : memref<2x1x32xf32, #tpu.memory_space<vmem>>, vector<1x1x32xf32>
    %29 = vector.shape_cast %28 : vector<1x1x32xf32> to vector<1x32xf32>
    %30 = vector.broadcast %29 : vector<1x32xf32> to vector<272x32xf32>
    %31 = arith.mulf %27, %30 : vector<272x32xf32>
    %c0_17 = arith.constant 0 : index
    %c0_18 = arith.constant 0 : index
    %c0_19 = arith.constant 0 : index
    %32 = vector.load %arg7[%c0_17, %c0_18, %c0_19] : memref<2x1x32xf32, #tpu.memory_space<vmem>>, vector<1x1x32xf32>
    %33 = vector.shape_cast %32 : vector<1x1x32xf32> to vector<1x32xf32>
    %34 = vector.broadcast %33 : vector<1x32xf32> to vector<272x32xf32>
    %35 = arith.addf %31, %34 : vector<272x32xf32>
    %cst_20 = arith.constant 0.000000e+00 : f32
    %36 = vector.broadcast %cst_20 : f32 to vector<272x32xf32>
    %37 = arith.maximumf %35, %36 : vector<272x32xf32>
    %c0_21 = arith.constant 0 : index
    %c0_22 = arith.constant 0 : index
    %c0_23 = arith.constant 0 : index
    %38 = vector.load %arg8[%c0_21, %c0_22, %c0_23] : memref<2x96x32xbf16, #tpu.memory_space<vmem>>, vector<1x96x32xbf16>
    %39 = vector.shape_cast %38 : vector<1x96x32xbf16> to vector<96x32xbf16>
    %40 = arith.truncf %37 : vector<272x32xf32> to vector<272x32xbf16>
    %cst_24 = arith.constant 0.000000e+00 : bf16
    %41 = vector.broadcast %cst_24 : bf16 to vector<8x32xbf16>
    %42 = vector.extract_strided_slice %40 {offsets = [0, 0], sizes = [264, 32], strides = [1, 1]} : vector<272x32xbf16> to vector<264x32xbf16>
    %43 = tpu.concatenate %41, %42 in 0 : vector<8x32xbf16>, vector<264x32xbf16> -> vector<272x32xbf16>
    %44 = vector.extract_strided_slice %40 {offsets = [8, 0], sizes = [264, 32], strides = [1, 1]} : vector<272x32xbf16> to vector<264x32xbf16>
    %45 = tpu.concatenate %44, %41 in 0 : vector<264x32xbf16>, vector<8x32xbf16> -> vector<272x32xbf16>
    %46 = tpu.concatenate %43, %40, %45 in 1 : vector<272x32xbf16>, vector<272x32xbf16>, vector<272x32xbf16> -> vector<272x96xbf16>
    %cst_25 = arith.constant dense<0.000000e+00> : vector<272x32xf32>
    %47 = tpu.matmul %46, %39, %cst_25 {dimension_numbers = #tpu.dot_dimension_numbers<[1], [0], [0], [1], [0, 0, 1, 1], [], []>} : vector<272x96xbf16>, vector<96x32xbf16>, vector<272x32xf32> -> vector<272x32xf32>
    %c0_26 = arith.constant 0 : index
    %c0_27 = arith.constant 0 : index
    %c0_28 = arith.constant 0 : index
    %48 = vector.load %arg9[%c0_26, %c0_27, %c0_28] : memref<2x1x32xf32, #tpu.memory_space<vmem>>, vector<1x1x32xf32>
    %49 = vector.shape_cast %48 : vector<1x1x32xf32> to vector<1x32xf32>
    %50 = vector.broadcast %49 : vector<1x32xf32> to vector<272x32xf32>
    %51 = arith.mulf %47, %50 : vector<272x32xf32>
    %c0_29 = arith.constant 0 : index
    %c0_30 = arith.constant 0 : index
    %c0_31 = arith.constant 0 : index
    %52 = vector.load %arg10[%c0_29, %c0_30, %c0_31] : memref<2x1x32xf32, #tpu.memory_space<vmem>>, vector<1x1x32xf32>
    %53 = vector.shape_cast %52 : vector<1x1x32xf32> to vector<1x32xf32>
    %54 = vector.broadcast %53 : vector<1x32xf32> to vector<272x32xf32>
    %55 = arith.addf %51, %54 : vector<272x32xf32>
    %56 = vector.shape_cast %55 : vector<272x32xf32> to vector<34x8x32xf32>
    %cst_32 = arith.constant dense<0.000000e+00> : vector<8x32xf32>
    %57 = vector.multi_reduction <add>, %56, %cst_32 [0] : vector<34x8x32xf32> to vector<8x32xf32>
    %cst_33 = arith.constant 0.0294117648 : f32
    %58 = vector.broadcast %cst_33 : f32 to vector<8x32xf32>
    %59 = arith.mulf %57, %58 : vector<8x32xf32>
    %cst_34 = arith.constant dense<0xFF800000> : vector<8x32xf32>
    %60 = vector.multi_reduction <maximumf>, %56, %cst_34 [0] : vector<34x8x32xf32> to vector<8x32xf32>
    %61 = tpu.concatenate %59, %60 in 0 : vector<8x32xf32>, vector<8x32xf32> -> vector<16x32xf32>
    %c0_35 = arith.constant 0 : index
    %c0_36 = arith.constant 0 : index
    %c0_37 = arith.constant 0 : index
    %62 = vector.load %arg11[%c0_35, %c0_36, %c0_37] : memref<2x32x2xf32, #tpu.memory_space<vmem>>, vector<1x32x2xf32>
    %63 = vector.shape_cast %62 : vector<1x32x2xf32> to vector<32x2xf32>
    %cst_38 = arith.constant dense<0.000000e+00> : vector<16x2xf32>
    %64 = tpu.matmul %61, %63, %cst_38 {dimension_numbers = #tpu.dot_dimension_numbers<[1], [0], [0], [1], [0, 0, 1, 1], [], []>} : vector<16x32xf32>, vector<32x2xf32>, vector<16x2xf32> -> vector<16x2xf32>
    %c0_39 = arith.constant 0 : index
    %c0_40 = arith.constant 0 : index
    %c0_41 = arith.constant 0 : index
    %65 = vector.load %arg12[%c0_39, %c0_40, %c0_41] : memref<2x1x2xf32, #tpu.memory_space<vmem>>, vector<1x1x2xf32>
    %66 = vector.shape_cast %65 : vector<1x1x2xf32> to vector<1x2xf32>
    %67 = vector.broadcast %66 : vector<1x2xf32> to vector<16x2xf32>
    %68 = arith.addf %64, %67 : vector<16x2xf32>
    %cst_42 = arith.constant 0.000000e+00 : f32
    %69 = vector.broadcast %cst_42 : f32 to vector<16x2xf32>
    %70 = arith.maximumf %68, %69 : vector<16x2xf32>
    %c0_43 = arith.constant 0 : index
    %c0_44 = arith.constant 0 : index
    %c0_45 = arith.constant 0 : index
    %71 = vector.load %arg13[%c0_43, %c0_44, %c0_45] : memref<2x2x32xf32, #tpu.memory_space<vmem>>, vector<1x2x32xf32>
    %72 = vector.shape_cast %71 : vector<1x2x32xf32> to vector<2x32xf32>
    %cst_46 = arith.constant dense<0.000000e+00> : vector<16x32xf32>
    %73 = tpu.matmul %70, %72, %cst_46 {dimension_numbers = #tpu.dot_dimension_numbers<[1], [0], [0], [1], [0, 0, 1, 1], [], []>} : vector<16x2xf32>, vector<2x32xf32>, vector<16x32xf32> -> vector<16x32xf32>
    %c0_47 = arith.constant 0 : index
    %c0_48 = arith.constant 0 : index
    %c0_49 = arith.constant 0 : index
    %74 = vector.load %arg14[%c0_47, %c0_48, %c0_49] : memref<2x1x32xf32, #tpu.memory_space<vmem>>, vector<1x1x32xf32>
    %75 = vector.shape_cast %74 : vector<1x1x32xf32> to vector<1x32xf32>
    %76 = vector.broadcast %75 : vector<1x32xf32> to vector<16x32xf32>
    %77 = arith.addf %73, %76 : vector<16x32xf32>
    %78 = vector.extract_strided_slice %77 {offsets = [0, 0], sizes = [8, 32], strides = [1, 1]} : vector<16x32xf32> to vector<8x32xf32>
    %79 = vector.extract_strided_slice %77 {offsets = [8, 0], sizes = [8, 32], strides = [1, 1]} : vector<16x32xf32> to vector<8x32xf32>
    %80 = arith.addf %78, %79 : vector<8x32xf32>
    %cst_50 = arith.constant 0.000000e+00 : f32
    %81 = vector.broadcast %cst_50 : f32 to vector<8x32xf32>
    %82 = arith.subf %81, %80 : vector<8x32xf32>
    %83 = math.exp %82 : vector<8x32xf32>
    %cst_51 = arith.constant 1.000000e+00 : f32
    %84 = vector.broadcast %cst_51 : f32 to vector<8x32xf32>
    %85 = arith.addf %84, %83 : vector<8x32xf32>
    %86 = tpu.reciprocal %85 {approx = true} : vector<8x32xf32> -> vector<8x32xf32>
    %87 = vector.shape_cast %17 : vector<272x32xf32> to vector<34x8x32xf32>
    %88 = vector.shape_cast %86 : vector<8x32xf32> to vector<1x8x32xf32>
    %89 = vector.broadcast %88 : vector<1x8x32xf32> to vector<34x8x32xf32>
    %90 = arith.mulf %56, %89 : vector<34x8x32xf32>
    %91 = arith.addf %90, %87 : vector<34x8x32xf32>
    %cst_52 = arith.constant 0.000000e+00 : f32
    %92 = vector.broadcast %cst_52 : f32 to vector<34x8x32xf32>
    %93 = arith.maximumf %91, %92 : vector<34x8x32xf32>
    %94 = vector.shape_cast %93 : vector<34x8x32xf32> to vector<272x32xf32>
    %c1 = arith.constant 1 : index
    %c0_53 = arith.constant 0 : index
    %c0_54 = arith.constant 0 : index
    %95 = vector.load %arg5[%c1, %c0_53, %c0_54] : memref<2x96x32xbf16, #tpu.memory_space<vmem>>, vector<1x96x32xbf16>
    %96 = vector.shape_cast %95 : vector<1x96x32xbf16> to vector<96x32xbf16>
    %97 = arith.truncf %94 : vector<272x32xf32> to vector<272x32xbf16>
    %cst_55 = arith.constant 0.000000e+00 : bf16
    %98 = vector.broadcast %cst_55 : bf16 to vector<8x32xbf16>
    %99 = vector.extract_strided_slice %97 {offsets = [0, 0], sizes = [264, 32], strides = [1, 1]} : vector<272x32xbf16> to vector<264x32xbf16>
    %100 = tpu.concatenate %98, %99 in 0 : vector<8x32xbf16>, vector<264x32xbf16> -> vector<272x32xbf16>
    %101 = vector.extract_strided_slice %97 {offsets = [8, 0], sizes = [264, 32], strides = [1, 1]} : vector<272x32xbf16> to vector<264x32xbf16>
    %102 = tpu.concatenate %101, %98 in 0 : vector<264x32xbf16>, vector<8x32xbf16> -> vector<272x32xbf16>
    %103 = tpu.concatenate %100, %97, %102 in 1 : vector<272x32xbf16>, vector<272x32xbf16>, vector<272x32xbf16> -> vector<272x96xbf16>
    %cst_56 = arith.constant dense<0.000000e+00> : vector<272x32xf32>
    %104 = tpu.matmul %103, %96, %cst_56 {dimension_numbers = #tpu.dot_dimension_numbers<[1], [0], [0], [1], [0, 0, 1, 1], [], []>} : vector<272x96xbf16>, vector<96x32xbf16>, vector<272x32xf32> -> vector<272x32xf32>
    %c1_57 = arith.constant 1 : index
    %c0_58 = arith.constant 0 : index
    %c0_59 = arith.constant 0 : index
    %105 = vector.load %arg6[%c1_57, %c0_58, %c0_59] : memref<2x1x32xf32, #tpu.memory_space<vmem>>, vector<1x1x32xf32>
    %106 = vector.shape_cast %105 : vector<1x1x32xf32> to vector<1x32xf32>
    %107 = vector.broadcast %106 : vector<1x32xf32> to vector<272x32xf32>
    %108 = arith.mulf %104, %107 : vector<272x32xf32>
    %c1_60 = arith.constant 1 : index
    %c0_61 = arith.constant 0 : index
    %c0_62 = arith.constant 0 : index
    %109 = vector.load %arg7[%c1_60, %c0_61, %c0_62] : memref<2x1x32xf32, #tpu.memory_space<vmem>>, vector<1x1x32xf32>
    %110 = vector.shape_cast %109 : vector<1x1x32xf32> to vector<1x32xf32>
    %111 = vector.broadcast %110 : vector<1x32xf32> to vector<272x32xf32>
    %112 = arith.addf %108, %111 : vector<272x32xf32>
    %cst_63 = arith.constant 0.000000e+00 : f32
    %113 = vector.broadcast %cst_63 : f32 to vector<272x32xf32>
    %114 = arith.maximumf %112, %113 : vector<272x32xf32>
    %c1_64 = arith.constant 1 : index
    %c0_65 = arith.constant 0 : index
    %c0_66 = arith.constant 0 : index
    %115 = vector.load %arg8[%c1_64, %c0_65, %c0_66] : memref<2x96x32xbf16, #tpu.memory_space<vmem>>, vector<1x96x32xbf16>
    %116 = vector.shape_cast %115 : vector<1x96x32xbf16> to vector<96x32xbf16>
    %117 = arith.truncf %114 : vector<272x32xf32> to vector<272x32xbf16>
    %cst_67 = arith.constant 0.000000e+00 : bf16
    %118 = vector.broadcast %cst_67 : bf16 to vector<8x32xbf16>
    %119 = vector.extract_strided_slice %117 {offsets = [0, 0], sizes = [264, 32], strides = [1, 1]} : vector<272x32xbf16> to vector<264x32xbf16>
    %120 = tpu.concatenate %118, %119 in 0 : vector<8x32xbf16>, vector<264x32xbf16> -> vector<272x32xbf16>
    %121 = vector.extract_strided_slice %117 {offsets = [8, 0], sizes = [264, 32], strides = [1, 1]} : vector<272x32xbf16> to vector<264x32xbf16>
    %122 = tpu.concatenate %121, %118 in 0 : vector<264x32xbf16>, vector<8x32xbf16> -> vector<272x32xbf16>
    %123 = tpu.concatenate %120, %117, %122 in 1 : vector<272x32xbf16>, vector<272x32xbf16>, vector<272x32xbf16> -> vector<272x96xbf16>
    %cst_68 = arith.constant dense<0.000000e+00> : vector<272x32xf32>
    %124 = tpu.matmul %123, %116, %cst_68 {dimension_numbers = #tpu.dot_dimension_numbers<[1], [0], [0], [1], [0, 0, 1, 1], [], []>} : vector<272x96xbf16>, vector<96x32xbf16>, vector<272x32xf32> -> vector<272x32xf32>
    %c1_69 = arith.constant 1 : index
    %c0_70 = arith.constant 0 : index
    %c0_71 = arith.constant 0 : index
    %125 = vector.load %arg9[%c1_69, %c0_70, %c0_71] : memref<2x1x32xf32, #tpu.memory_space<vmem>>, vector<1x1x32xf32>
    %126 = vector.shape_cast %125 : vector<1x1x32xf32> to vector<1x32xf32>
    %127 = vector.broadcast %126 : vector<1x32xf32> to vector<272x32xf32>
    %128 = arith.mulf %124, %127 : vector<272x32xf32>
    %c1_72 = arith.constant 1 : index
    %c0_73 = arith.constant 0 : index
    %c0_74 = arith.constant 0 : index
    %129 = vector.load %arg10[%c1_72, %c0_73, %c0_74] : memref<2x1x32xf32, #tpu.memory_space<vmem>>, vector<1x1x32xf32>
    %130 = vector.shape_cast %129 : vector<1x1x32xf32> to vector<1x32xf32>
    %131 = vector.broadcast %130 : vector<1x32xf32> to vector<272x32xf32>
    %132 = arith.addf %128, %131 : vector<272x32xf32>
    %133 = vector.shape_cast %132 : vector<272x32xf32> to vector<34x8x32xf32>
    %cst_75 = arith.constant dense<0.000000e+00> : vector<8x32xf32>
    %134 = vector.multi_reduction <add>, %133, %cst_75 [0] : vector<34x8x32xf32> to vector<8x32xf32>
    %cst_76 = arith.constant 0.0294117648 : f32
    %135 = vector.broadcast %cst_76 : f32 to vector<8x32xf32>
    %136 = arith.mulf %134, %135 : vector<8x32xf32>
    %cst_77 = arith.constant dense<0xFF800000> : vector<8x32xf32>
    %137 = vector.multi_reduction <maximumf>, %133, %cst_77 [0] : vector<34x8x32xf32> to vector<8x32xf32>
    %138 = tpu.concatenate %136, %137 in 0 : vector<8x32xf32>, vector<8x32xf32> -> vector<16x32xf32>
    %c1_78 = arith.constant 1 : index
    %c0_79 = arith.constant 0 : index
    %c0_80 = arith.constant 0 : index
    %139 = vector.load %arg11[%c1_78, %c0_79, %c0_80] : memref<2x32x2xf32, #tpu.memory_space<vmem>>, vector<1x32x2xf32>
    %140 = vector.shape_cast %139 : vector<1x32x2xf32> to vector<32x2xf32>
    %cst_81 = arith.constant dense<0.000000e+00> : vector<16x2xf32>
    %141 = tpu.matmul %138, %140, %cst_81 {dimension_numbers = #tpu.dot_dimension_numbers<[1], [0], [0], [1], [0, 0, 1, 1], [], []>} : vector<16x32xf32>, vector<32x2xf32>, vector<16x2xf32> -> vector<16x2xf32>
    %c1_82 = arith.constant 1 : index
    %c0_83 = arith.constant 0 : index
    %c0_84 = arith.constant 0 : index
    %142 = vector.load %arg12[%c1_82, %c0_83, %c0_84] : memref<2x1x2xf32, #tpu.memory_space<vmem>>, vector<1x1x2xf32>
    %143 = vector.shape_cast %142 : vector<1x1x2xf32> to vector<1x2xf32>
    %144 = vector.broadcast %143 : vector<1x2xf32> to vector<16x2xf32>
    %145 = arith.addf %141, %144 : vector<16x2xf32>
    %cst_85 = arith.constant 0.000000e+00 : f32
    %146 = vector.broadcast %cst_85 : f32 to vector<16x2xf32>
    %147 = arith.maximumf %145, %146 : vector<16x2xf32>
    %c1_86 = arith.constant 1 : index
    %c0_87 = arith.constant 0 : index
    %c0_88 = arith.constant 0 : index
    %148 = vector.load %arg13[%c1_86, %c0_87, %c0_88] : memref<2x2x32xf32, #tpu.memory_space<vmem>>, vector<1x2x32xf32>
    %149 = vector.shape_cast %148 : vector<1x2x32xf32> to vector<2x32xf32>
    %cst_89 = arith.constant dense<0.000000e+00> : vector<16x32xf32>
    %150 = tpu.matmul %147, %149, %cst_89 {dimension_numbers = #tpu.dot_dimension_numbers<[1], [0], [0], [1], [0, 0, 1, 1], [], []>} : vector<16x2xf32>, vector<2x32xf32>, vector<16x32xf32> -> vector<16x32xf32>
    %c1_90 = arith.constant 1 : index
    %c0_91 = arith.constant 0 : index
    %c0_92 = arith.constant 0 : index
    %151 = vector.load %arg14[%c1_90, %c0_91, %c0_92] : memref<2x1x32xf32, #tpu.memory_space<vmem>>, vector<1x1x32xf32>
    %152 = vector.shape_cast %151 : vector<1x1x32xf32> to vector<1x32xf32>
    %153 = vector.broadcast %152 : vector<1x32xf32> to vector<16x32xf32>
    %154 = arith.addf %150, %153 : vector<16x32xf32>
    %155 = vector.extract_strided_slice %154 {offsets = [0, 0], sizes = [8, 32], strides = [1, 1]} : vector<16x32xf32> to vector<8x32xf32>
    %156 = vector.extract_strided_slice %154 {offsets = [8, 0], sizes = [8, 32], strides = [1, 1]} : vector<16x32xf32> to vector<8x32xf32>
    %157 = arith.addf %155, %156 : vector<8x32xf32>
    %cst_93 = arith.constant 0.000000e+00 : f32
    %158 = vector.broadcast %cst_93 : f32 to vector<8x32xf32>
    %159 = arith.subf %158, %157 : vector<8x32xf32>
    %160 = math.exp %159 : vector<8x32xf32>
    %cst_94 = arith.constant 1.000000e+00 : f32
    %161 = vector.broadcast %cst_94 : f32 to vector<8x32xf32>
    %162 = arith.addf %161, %160 : vector<8x32xf32>
    %163 = tpu.reciprocal %162 {approx = true} : vector<8x32xf32> -> vector<8x32xf32>
    %164 = vector.shape_cast %94 : vector<272x32xf32> to vector<34x8x32xf32>
    %165 = vector.shape_cast %163 : vector<8x32xf32> to vector<1x8x32xf32>
    %166 = vector.broadcast %165 : vector<1x8x32xf32> to vector<34x8x32xf32>
    %167 = arith.mulf %133, %166 : vector<34x8x32xf32>
    %168 = arith.addf %167, %164 : vector<34x8x32xf32>
    %cst_95 = arith.constant 0.000000e+00 : f32
    %169 = vector.broadcast %cst_95 : f32 to vector<34x8x32xf32>
    %170 = arith.maximumf %168, %169 : vector<34x8x32xf32>
    %171 = vector.shape_cast %170 : vector<34x8x32xf32> to vector<272x32xf32>
    %c0_96 = arith.constant 0 : index
    %c0_97 = arith.constant 0 : index
    %172 = vector.load %arg15[%c0_96, %c0_97] : memref<96x32xbf16, #tpu.memory_space<vmem>>, vector<96x32xbf16>
    %173 = arith.truncf %171 : vector<272x32xf32> to vector<272x32xbf16>
    %cst_98 = arith.constant 0.000000e+00 : bf16
    %174 = vector.broadcast %cst_98 : bf16 to vector<8x32xbf16>
    %175 = vector.extract_strided_slice %173 {offsets = [0, 0], sizes = [264, 32], strides = [1, 1]} : vector<272x32xbf16> to vector<264x32xbf16>
    %176 = tpu.concatenate %174, %175 in 0 : vector<8x32xbf16>, vector<264x32xbf16> -> vector<272x32xbf16>
    %177 = vector.extract_strided_slice %173 {offsets = [8, 0], sizes = [264, 32], strides = [1, 1]} : vector<272x32xbf16> to vector<264x32xbf16>
    %178 = tpu.concatenate %177, %174 in 0 : vector<264x32xbf16>, vector<8x32xbf16> -> vector<272x32xbf16>
    %179 = tpu.concatenate %176, %173, %178 in 1 : vector<272x32xbf16>, vector<272x32xbf16>, vector<272x32xbf16> -> vector<272x96xbf16>
    %cst_99 = arith.constant dense<0.000000e+00> : vector<272x32xf32>
    %180 = tpu.matmul %179, %172, %cst_99 {dimension_numbers = #tpu.dot_dimension_numbers<[1], [0], [0], [1], [0, 0, 1, 1], [], []>} : vector<272x96xbf16>, vector<96x32xbf16>, vector<272x32xf32> -> vector<272x32xf32>
    %c0_100 = arith.constant 0 : index
    %c0_101 = arith.constant 0 : index
    %181 = vector.load %arg16[%c0_100, %c0_101] : memref<1x32xf32, #tpu.memory_space<vmem>>, vector<1x32xf32>
    %182 = vector.broadcast %181 : vector<1x32xf32> to vector<272x32xf32>
    %183 = arith.addf %180, %182 : vector<272x32xf32>
    %cst_102 = arith.constant 0.000000e+00 : f32
    %184 = vector.broadcast %cst_102 : f32 to vector<272x32xf32>
    %185 = arith.maximumf %183, %184 : vector<272x32xf32>
    %186 = arith.truncf %185 : vector<272x32xf32> to vector<272x32xbf16>
    %187 = vector.shape_cast %186 : vector<272x32xbf16> to vector<34x8x32xbf16>
    %188 = vector.extract_strided_slice %187 {offsets = [0, 0, 0], sizes = [1, 8, 32], strides = [1, 1, 1]} : vector<34x8x32xbf16> to vector<1x8x32xbf16>
    %189 = vector.shape_cast %188 : vector<1x8x32xbf16> to vector<8x32xbf16>
    %190 = vector.extract_strided_slice %187 {offsets = [1, 0, 0], sizes = [1, 8, 32], strides = [1, 1, 1]} : vector<34x8x32xbf16> to vector<1x8x32xbf16>
    %191 = vector.shape_cast %190 : vector<1x8x32xbf16> to vector<8x32xbf16>
    %192 = vector.extract_strided_slice %187 {offsets = [2, 0, 0], sizes = [1, 8, 32], strides = [1, 1, 1]} : vector<34x8x32xbf16> to vector<1x8x32xbf16>
    %193 = vector.shape_cast %192 : vector<1x8x32xbf16> to vector<8x32xbf16>
    %194 = vector.extract_strided_slice %187 {offsets = [3, 0, 0], sizes = [1, 8, 32], strides = [1, 1, 1]} : vector<34x8x32xbf16> to vector<1x8x32xbf16>
    %195 = vector.shape_cast %194 : vector<1x8x32xbf16> to vector<8x32xbf16>
    %196 = vector.extract_strided_slice %187 {offsets = [4, 0, 0], sizes = [1, 8, 32], strides = [1, 1, 1]} : vector<34x8x32xbf16> to vector<1x8x32xbf16>
    %197 = vector.shape_cast %196 : vector<1x8x32xbf16> to vector<8x32xbf16>
    %198 = vector.extract_strided_slice %187 {offsets = [5, 0, 0], sizes = [1, 8, 32], strides = [1, 1, 1]} : vector<34x8x32xbf16> to vector<1x8x32xbf16>
    %199 = vector.shape_cast %198 : vector<1x8x32xbf16> to vector<8x32xbf16>
    %200 = vector.extract_strided_slice %187 {offsets = [6, 0, 0], sizes = [1, 8, 32], strides = [1, 1, 1]} : vector<34x8x32xbf16> to vector<1x8x32xbf16>
    %201 = vector.shape_cast %200 : vector<1x8x32xbf16> to vector<8x32xbf16>
    %202 = vector.extract_strided_slice %187 {offsets = [7, 0, 0], sizes = [1, 8, 32], strides = [1, 1, 1]} : vector<34x8x32xbf16> to vector<1x8x32xbf16>
    %203 = vector.shape_cast %202 : vector<1x8x32xbf16> to vector<8x32xbf16>
    %204 = vector.extract_strided_slice %187 {offsets = [8, 0, 0], sizes = [1, 8, 32], strides = [1, 1, 1]} : vector<34x8x32xbf16> to vector<1x8x32xbf16>
    %205 = vector.shape_cast %204 : vector<1x8x32xbf16> to vector<8x32xbf16>
    %206 = vector.extract_strided_slice %187 {offsets = [9, 0, 0], sizes = [1, 8, 32], strides = [1, 1, 1]} : vector<34x8x32xbf16> to vector<1x8x32xbf16>
    %207 = vector.shape_cast %206 : vector<1x8x32xbf16> to vector<8x32xbf16>
    %208 = vector.extract_strided_slice %187 {offsets = [10, 0, 0], sizes = [1, 8, 32], strides = [1, 1, 1]} : vector<34x8x32xbf16> to vector<1x8x32xbf16>
    %209 = vector.shape_cast %208 : vector<1x8x32xbf16> to vector<8x32xbf16>
    %210 = vector.extract_strided_slice %187 {offsets = [11, 0, 0], sizes = [1, 8, 32], strides = [1, 1, 1]} : vector<34x8x32xbf16> to vector<1x8x32xbf16>
    %211 = vector.shape_cast %210 : vector<1x8x32xbf16> to vector<8x32xbf16>
    %212 = vector.extract_strided_slice %187 {offsets = [12, 0, 0], sizes = [1, 8, 32], strides = [1, 1, 1]} : vector<34x8x32xbf16> to vector<1x8x32xbf16>
    %213 = vector.shape_cast %212 : vector<1x8x32xbf16> to vector<8x32xbf16>
    %214 = vector.extract_strided_slice %187 {offsets = [13, 0, 0], sizes = [1, 8, 32], strides = [1, 1, 1]} : vector<34x8x32xbf16> to vector<1x8x32xbf16>
    %215 = vector.shape_cast %214 : vector<1x8x32xbf16> to vector<8x32xbf16>
    %216 = vector.extract_strided_slice %187 {offsets = [14, 0, 0], sizes = [1, 8, 32], strides = [1, 1, 1]} : vector<34x8x32xbf16> to vector<1x8x32xbf16>
    %217 = vector.shape_cast %216 : vector<1x8x32xbf16> to vector<8x32xbf16>
    %218 = vector.extract_strided_slice %187 {offsets = [15, 0, 0], sizes = [1, 8, 32], strides = [1, 1, 1]} : vector<34x8x32xbf16> to vector<1x8x32xbf16>
    %219 = vector.shape_cast %218 : vector<1x8x32xbf16> to vector<8x32xbf16>
    %220 = vector.extract_strided_slice %187 {offsets = [16, 0, 0], sizes = [1, 8, 32], strides = [1, 1, 1]} : vector<34x8x32xbf16> to vector<1x8x32xbf16>
    %221 = vector.shape_cast %220 : vector<1x8x32xbf16> to vector<8x32xbf16>
    %222 = vector.extract_strided_slice %187 {offsets = [17, 0, 0], sizes = [1, 8, 32], strides = [1, 1, 1]} : vector<34x8x32xbf16> to vector<1x8x32xbf16>
    %223 = vector.shape_cast %222 : vector<1x8x32xbf16> to vector<8x32xbf16>
    %224 = vector.extract_strided_slice %187 {offsets = [18, 0, 0], sizes = [1, 8, 32], strides = [1, 1, 1]} : vector<34x8x32xbf16> to vector<1x8x32xbf16>
    %225 = vector.shape_cast %224 : vector<1x8x32xbf16> to vector<8x32xbf16>
    %226 = vector.extract_strided_slice %187 {offsets = [19, 0, 0], sizes = [1, 8, 32], strides = [1, 1, 1]} : vector<34x8x32xbf16> to vector<1x8x32xbf16>
    %227 = vector.shape_cast %226 : vector<1x8x32xbf16> to vector<8x32xbf16>
    %228 = vector.extract_strided_slice %187 {offsets = [20, 0, 0], sizes = [1, 8, 32], strides = [1, 1, 1]} : vector<34x8x32xbf16> to vector<1x8x32xbf16>
    %229 = vector.shape_cast %228 : vector<1x8x32xbf16> to vector<8x32xbf16>
    %230 = vector.extract_strided_slice %187 {offsets = [21, 0, 0], sizes = [1, 8, 32], strides = [1, 1, 1]} : vector<34x8x32xbf16> to vector<1x8x32xbf16>
    %231 = vector.shape_cast %230 : vector<1x8x32xbf16> to vector<8x32xbf16>
    %232 = vector.extract_strided_slice %187 {offsets = [22, 0, 0], sizes = [1, 8, 32], strides = [1, 1, 1]} : vector<34x8x32xbf16> to vector<1x8x32xbf16>
    %233 = vector.shape_cast %232 : vector<1x8x32xbf16> to vector<8x32xbf16>
    %234 = vector.extract_strided_slice %187 {offsets = [23, 0, 0], sizes = [1, 8, 32], strides = [1, 1, 1]} : vector<34x8x32xbf16> to vector<1x8x32xbf16>
    %235 = vector.shape_cast %234 : vector<1x8x32xbf16> to vector<8x32xbf16>
    %236 = vector.extract_strided_slice %187 {offsets = [24, 0, 0], sizes = [1, 8, 32], strides = [1, 1, 1]} : vector<34x8x32xbf16> to vector<1x8x32xbf16>
    %237 = vector.shape_cast %236 : vector<1x8x32xbf16> to vector<8x32xbf16>
    %238 = vector.extract_strided_slice %187 {offsets = [25, 0, 0], sizes = [1, 8, 32], strides = [1, 1, 1]} : vector<34x8x32xbf16> to vector<1x8x32xbf16>
    %239 = vector.shape_cast %238 : vector<1x8x32xbf16> to vector<8x32xbf16>
    %240 = vector.extract_strided_slice %187 {offsets = [26, 0, 0], sizes = [1, 8, 32], strides = [1, 1, 1]} : vector<34x8x32xbf16> to vector<1x8x32xbf16>
    %241 = vector.shape_cast %240 : vector<1x8x32xbf16> to vector<8x32xbf16>
    %242 = vector.extract_strided_slice %187 {offsets = [27, 0, 0], sizes = [1, 8, 32], strides = [1, 1, 1]} : vector<34x8x32xbf16> to vector<1x8x32xbf16>
    %243 = vector.shape_cast %242 : vector<1x8x32xbf16> to vector<8x32xbf16>
    %244 = vector.extract_strided_slice %187 {offsets = [28, 0, 0], sizes = [1, 8, 32], strides = [1, 1, 1]} : vector<34x8x32xbf16> to vector<1x8x32xbf16>
    %245 = vector.shape_cast %244 : vector<1x8x32xbf16> to vector<8x32xbf16>
    %246 = vector.extract_strided_slice %187 {offsets = [29, 0, 0], sizes = [1, 8, 32], strides = [1, 1, 1]} : vector<34x8x32xbf16> to vector<1x8x32xbf16>
    %247 = vector.shape_cast %246 : vector<1x8x32xbf16> to vector<8x32xbf16>
    %248 = vector.extract_strided_slice %187 {offsets = [30, 0, 0], sizes = [1, 8, 32], strides = [1, 1, 1]} : vector<34x8x32xbf16> to vector<1x8x32xbf16>
    %249 = vector.shape_cast %248 : vector<1x8x32xbf16> to vector<8x32xbf16>
    %250 = vector.extract_strided_slice %187 {offsets = [31, 0, 0], sizes = [1, 8, 32], strides = [1, 1, 1]} : vector<34x8x32xbf16> to vector<1x8x32xbf16>
    %251 = vector.shape_cast %250 : vector<1x8x32xbf16> to vector<8x32xbf16>
    %252 = vector.extract_strided_slice %187 {offsets = [32, 0, 0], sizes = [1, 8, 32], strides = [1, 1, 1]} : vector<34x8x32xbf16> to vector<1x8x32xbf16>
    %253 = vector.shape_cast %252 : vector<1x8x32xbf16> to vector<8x32xbf16>
    %254 = vector.extract_strided_slice %187 {offsets = [33, 0, 0], sizes = [1, 8, 32], strides = [1, 1, 1]} : vector<34x8x32xbf16> to vector<1x8x32xbf16>
    %255 = vector.shape_cast %254 : vector<1x8x32xbf16> to vector<8x32xbf16>
    %256 = tpu.concatenate %189, %191, %193, %195, %197, %199, %201, %203, %205, %207, %209, %211, %213, %215, %217, %219 in 1 : vector<8x32xbf16>, vector<8x32xbf16>, vector<8x32xbf16>, vector<8x32xbf16>, vector<8x32xbf16>, vector<8x32xbf16>, vector<8x32xbf16>, vector<8x32xbf16>, vector<8x32xbf16>, vector<8x32xbf16>, vector<8x32xbf16>, vector<8x32xbf16>, vector<8x32xbf16>, vector<8x32xbf16>, vector<8x32xbf16>, vector<8x32xbf16> -> vector<8x512xbf16>
    %257 = tpu.concatenate %221, %223, %225, %227, %229, %231, %233, %235, %237, %239, %241, %243, %245, %247, %249, %251 in 1 : vector<8x32xbf16>, vector<8x32xbf16>, vector<8x32xbf16>, vector<8x32xbf16>, vector<8x32xbf16>, vector<8x32xbf16>, vector<8x32xbf16>, vector<8x32xbf16>, vector<8x32xbf16>, vector<8x32xbf16>, vector<8x32xbf16>, vector<8x32xbf16>, vector<8x32xbf16>, vector<8x32xbf16>, vector<8x32xbf16>, vector<8x32xbf16> -> vector<8x512xbf16>
    %258 = tpu.concatenate %253, %255 in 1 : vector<8x32xbf16>, vector<8x32xbf16> -> vector<8x64xbf16>
    %259 = tpu.concatenate %256, %257, %258 in 1 : vector<8x512xbf16>, vector<8x512xbf16>, vector<8x64xbf16> -> vector<8x1088xbf16>
    %c0_103 = arith.constant 0 : index
    %c0_104 = arith.constant 0 : index
    %260 = vector.load %arg17[%c0_103, %c0_104] : memref<1088x1024xbf16, #tpu.memory_space<vmem>>, vector<1088x1024xbf16>
    %cst_105 = arith.constant dense<0.000000e+00> : vector<8x1024xf32>
    %261 = tpu.matmul %259, %260, %cst_105 {dimension_numbers = #tpu.dot_dimension_numbers<[1], [0], [0], [1], [0, 0, 1, 1], [], []>} : vector<8x1088xbf16>, vector<1088x1024xbf16>, vector<8x1024xf32> -> vector<8x1024xf32>
    %c0_106 = arith.constant 0 : index
    %c0_107 = arith.constant 0 : index
    %262 = vector.load %arg18[%c0_106, %c0_107] : memref<1x1024xf32, #tpu.memory_space<vmem>>, vector<1x1024xf32>
    %263 = vector.broadcast %262 : vector<1x1024xf32> to vector<8x1024xf32>
    %264 = arith.addf %261, %263 : vector<8x1024xf32>
    %265 = arith.truncf %264 : vector<8x1024xf32> to vector<8x1024xbf16>
    %c0_108 = arith.constant 0 : index
    %c0_109 = arith.constant 0 : index
    %266 = vector.load %arg19[%c0_108, %c0_109] : memref<1024x512xbf16, #tpu.memory_space<vmem>>, vector<1024x512xbf16>
    %cst_110 = arith.constant dense<0.000000e+00> : vector<8x512xf32>
    %267 = tpu.matmul %265, %266, %cst_110 {dimension_numbers = #tpu.dot_dimension_numbers<[1], [0], [0], [1], [0, 0, 1, 1], [], []>} : vector<8x1024xbf16>, vector<1024x512xbf16>, vector<8x512xf32> -> vector<8x512xf32>
    %c0_111 = arith.constant 0 : index
    %c0_112 = arith.constant 0 : index
    %268 = vector.load %arg20[%c0_111, %c0_112] : memref<1x512xf32, #tpu.memory_space<vmem>>, vector<1x512xf32>
    %269 = vector.broadcast %268 : vector<1x512xf32> to vector<8x512xf32>
    %270 = arith.addf %267, %269 : vector<8x512xf32>
    %cst_113 = arith.constant 0.000000e+00 : f32
    %271 = vector.broadcast %cst_113 : f32 to vector<8x512xf32>
    %272 = arith.maximumf %270, %271 : vector<8x512xf32>
    %273 = arith.truncf %272 : vector<8x512xf32> to vector<8x512xbf16>
    %c0_114 = arith.constant 0 : index
    %c0_115 = arith.constant 0 : index
    %274 = vector.load %arg21[%c0_114, %c0_115] : memref<512x1024xbf16, #tpu.memory_space<vmem>>, vector<512x1024xbf16>
    %cst_116 = arith.constant dense<0.000000e+00> : vector<8x1024xf32>
    %275 = tpu.matmul %273, %274, %cst_116 {dimension_numbers = #tpu.dot_dimension_numbers<[1], [0], [0], [1], [0, 0, 1, 1], [], []>} : vector<8x512xbf16>, vector<512x1024xbf16>, vector<8x1024xf32> -> vector<8x1024xf32>
    %c0_117 = arith.constant 0 : index
    %c0_118 = arith.constant 0 : index
    %276 = vector.load %arg22[%c0_117, %c0_118] : memref<1x1024xf32, #tpu.memory_space<vmem>>, vector<1x1024xf32>
    %277 = vector.broadcast %276 : vector<1x1024xf32> to vector<8x1024xf32>
    %278 = arith.addf %275, %277 : vector<8x1024xf32>
    %279 = vector.extract_strided_slice %278 {offsets = [0, 0], sizes = [8, 512], strides = [1, 1]} : vector<8x1024xf32> to vector<8x512xf32>
    %c0_119 = arith.constant 0 : index
    %c0_120 = arith.constant 0 : index
    %280 = vector.load %arg23[%c0_119, %c0_120] : memref<8x512xf32, #tpu.memory_space<vmem>>, vector<8x512xf32>
    tpu.vector_store %arg23[%c0_119, %c0_120], %279 {strides = array<i32>} : memref<8x512xf32, #tpu.memory_space<vmem>>, vector<8x512xf32>,
    %281 = vector.extract_strided_slice %278 {offsets = [0, 512], sizes = [8, 512], strides = [1, 1]} : vector<8x1024xf32> to vector<8x512xf32>
    %c0_121 = arith.constant 0 : index
    %c0_122 = arith.constant 0 : index
    %282 = vector.load %arg24[%c0_121, %c0_122] : memref<8x512xf32, #tpu.memory_space<vmem>>, vector<8x512xf32>
    tpu.vector_store %arg24[%c0_121, %c0_122], %281 {strides = array<i32>} : memref<8x512xf32, #tpu.memory_space<vmem>>, vector<8x512xf32>,
    return
  }
  func.func @transform_0(%arg0: i32) -> (i32, i32) {
    %c0_i32 = arith.constant 0 : i32
    %c0_i32_0 = arith.constant 0 : i32
    return %arg0, %c0_i32 : i32, i32
  }
  func.func @transform_1(%arg0: i32) -> (i32, i32) {
    %c0_i32 = arith.constant 0 : i32
    %c0_i32_0 = arith.constant 0 : i32
    %c0_i32_1 = arith.constant 0 : i32
    return %c0_i32, %c0_i32_0 : i32, i32
  }
  func.func @transform_2(%arg0: i32) -> (i32, i32) {
    %c0_i32 = arith.constant 0 : i32
    %c0_i32_0 = arith.constant 0 : i32
    %c0_i32_1 = arith.constant 0 : i32
    return %c0_i32, %c0_i32_0 : i32, i32
  }
  func.func @transform_3(%arg0: i32) -> (i32, i32) {
    %c0_i32 = arith.constant 0 : i32
    %c0_i32_0 = arith.constant 0 : i32
    %c0_i32_1 = arith.constant 0 : i32
    return %c0_i32, %c0_i32_0 : i32, i32
  }
  func.func @transform_4(%arg0: i32) -> (i32, i32, i32) {
    %c0_i32 = arith.constant 0 : i32
    %c0_i32_0 = arith.constant 0 : i32
    %c0_i32_1 = arith.constant 0 : i32
    %c0_i32_2 = arith.constant 0 : i32
    return %c0_i32, %c0_i32_0, %c0_i32_1 : i32, i32, i32
  }
  func.func @transform_5(%arg0: i32) -> (i32, i32, i32) {
    %c0_i32 = arith.constant 0 : i32
    %c0_i32_0 = arith.constant 0 : i32
    %c0_i32_1 = arith.constant 0 : i32
    %c0_i32_2 = arith.constant 0 : i32
    return %c0_i32, %c0_i32_0, %c0_i32_1 : i32, i32, i32
  }
  func.func @transform_6(%arg0: i32) -> (i32, i32, i32) {
    %c0_i32 = arith.constant 0 : i32
    %c0_i32_0 = arith.constant 0 : i32
    %c0_i32_1 = arith.constant 0 : i32
    %c0_i32_2 = arith.constant 0 : i32
    return %c0_i32, %c0_i32_0, %c0_i32_1 : i32, i32, i32
  }
  func.func @transform_7(%arg0: i32) -> (i32, i32, i32) {
    %c0_i32 = arith.constant 0 : i32
    %c0_i32_0 = arith.constant 0 : i32
    %c0_i32_1 = arith.constant 0 : i32
    %c0_i32_2 = arith.constant 0 : i32
    return %c0_i32, %c0_i32_0, %c0_i32_1 : i32, i32, i32
  }
  func.func @transform_8(%arg0: i32) -> (i32, i32, i32) {
    %c0_i32 = arith.constant 0 : i32
    %c0_i32_0 = arith.constant 0 : i32
    %c0_i32_1 = arith.constant 0 : i32
    %c0_i32_2 = arith.constant 0 : i32
    return %c0_i32, %c0_i32_0, %c0_i32_1 : i32, i32, i32
  }
  func.func @transform_9(%arg0: i32) -> (i32, i32, i32) {
    %c0_i32 = arith.constant 0 : i32
    %c0_i32_0 = arith.constant 0 : i32
    %c0_i32_1 = arith.constant 0 : i32
    %c0_i32_2 = arith.constant 0 : i32
    return %c0_i32, %c0_i32_0, %c0_i32_1 : i32, i32, i32
  }
  func.func @transform_10(%arg0: i32) -> (i32, i32, i32) {
    %c0_i32 = arith.constant 0 : i32
    %c0_i32_0 = arith.constant 0 : i32
    %c0_i32_1 = arith.constant 0 : i32
    %c0_i32_2 = arith.constant 0 : i32
    return %c0_i32, %c0_i32_0, %c0_i32_1 : i32, i32, i32
  }
  func.func @transform_11(%arg0: i32) -> (i32, i32, i32) {
    %c0_i32 = arith.constant 0 : i32
    %c0_i32_0 = arith.constant 0 : i32
    %c0_i32_1 = arith.constant 0 : i32
    %c0_i32_2 = arith.constant 0 : i32
    return %c0_i32, %c0_i32_0, %c0_i32_1 : i32, i32, i32
  }
  func.func @transform_12(%arg0: i32) -> (i32, i32, i32) {
    %c0_i32 = arith.constant 0 : i32
    %c0_i32_0 = arith.constant 0 : i32
    %c0_i32_1 = arith.constant 0 : i32
    %c0_i32_2 = arith.constant 0 : i32
    return %c0_i32, %c0_i32_0, %c0_i32_1 : i32, i32, i32
  }
  func.func @transform_13(%arg0: i32) -> (i32, i32, i32) {
    %c0_i32 = arith.constant 0 : i32
    %c0_i32_0 = arith.constant 0 : i32
    %c0_i32_1 = arith.constant 0 : i32
    %c0_i32_2 = arith.constant 0 : i32
    return %c0_i32, %c0_i32_0, %c0_i32_1 : i32, i32, i32
  }
  func.func @transform_14(%arg0: i32) -> (i32, i32) {
    %c0_i32 = arith.constant 0 : i32
    %c0_i32_0 = arith.constant 0 : i32
    %c0_i32_1 = arith.constant 0 : i32
    return %c0_i32, %c0_i32_0 : i32, i32
  }
  func.func @transform_15(%arg0: i32) -> (i32, i32) {
    %c0_i32 = arith.constant 0 : i32
    %c0_i32_0 = arith.constant 0 : i32
    %c0_i32_1 = arith.constant 0 : i32
    return %c0_i32, %c0_i32_0 : i32, i32
  }
  func.func @transform_16(%arg0: i32) -> (i32, i32) {
    %c0_i32 = arith.constant 0 : i32
    %c0_i32_0 = arith.constant 0 : i32
    %c0_i32_1 = arith.constant 0 : i32
    return %c0_i32, %c0_i32_0 : i32, i32
  }
  func.func @transform_17(%arg0: i32) -> (i32, i32) {
    %c0_i32 = arith.constant 0 : i32
    %c0_i32_0 = arith.constant 0 : i32
    %c0_i32_1 = arith.constant 0 : i32
    return %c0_i32, %c0_i32_0 : i32, i32
  }
  func.func @transform_18(%arg0: i32) -> (i32, i32) {
    %c0_i32 = arith.constant 0 : i32
    %c0_i32_0 = arith.constant 0 : i32
    %c0_i32_1 = arith.constant 0 : i32
    return %c0_i32, %c0_i32_0 : i32, i32
  }
  func.func @transform_19(%arg0: i32) -> (i32, i32) {
    %c0_i32 = arith.constant 0 : i32
    %c0_i32_0 = arith.constant 0 : i32
    %c0_i32_1 = arith.constant 0 : i32
    return %c0_i32, %c0_i32_0 : i32, i32
  }
  func.func @transform_20(%arg0: i32) -> (i32, i32) {
    %c0_i32 = arith.constant 0 : i32
    %c0_i32_0 = arith.constant 0 : i32
    %c0_i32_1 = arith.constant 0 : i32
    return %c0_i32, %c0_i32_0 : i32, i32
  }
  func.func @transform_21(%arg0: i32) -> (i32, i32) {
    %c0_i32 = arith.constant 0 : i32
    %c0_i32_0 = arith.constant 0 : i32
    %c0_i32_1 = arith.constant 0 : i32
    return %c0_i32, %c0_i32_0 : i32, i32
  }
  func.func @transform_22(%arg0: i32) -> (i32, i32) {
    %c0_i32 = arith.constant 0 : i32
    %c0_i32_0 = arith.constant 0 : i32
    return %arg0, %c0_i32 : i32, i32
  }
  func.func @transform_23(%arg0: i32) -> (i32, i32) {
    %c0_i32 = arith.constant 0 : i32
    %c0_i32_0 = arith.constant 0 : i32
    return %arg0, %c0_i32 : i32, i32
  }
}

</mosaic_0001>

<bundles_post_ra>
// kernel: tpu_custom_call.1
= control target key start
LH: loop header
LB: loop body
LE: loop exit
PB: predicated region body
PF: predicated region fallthrough
CT: control target
= control target key end

     0   :  { %s19458_s0 = inlined_call_operand.vmem [shape: f32[272,8], index: 0, kind: input, shape index: {}]   ;;  %s19459_s1 = inlined_call_operand.hbm [shape: bf16[24,32], index: 1, kind: input, shape index: {}]   ;;  %s19460_s2 = inlined_call_operand.hbm [shape: f32[1,32], index: 2, kind: input, shape index: {}]   ;;  %s19461_s3 = inlined_call_operand.hbm [shape: f32[1,32], index: 3, kind: input, shape index: {}]   ;;  %s19462_s4 = inlined_call_operand.vmem [shape: bf16[2,96,32], index: 4, kind: input, shape index: {}]   ;;  %s19463_s5 = inlined_call_operand.hbm [shape: f32[2,1,32], index: 5, kind: input, shape index: {}]   ;;  %s19464_s6 = inlined_call_operand.hbm [shape: f32[2,1,32], index: 6, kind: input, shape index: {}]   ;;  %s19465_s7 = inlined_call_operand.vmem [shape: bf16[2,96,32], index: 7, kind: input, shape index: {}]   ;;  %s19466_s8 = inlined_call_operand.hbm [shape: f32[2,1,32], index: 8, kind: input, shape index: {}]   ;;  %s19467_s9 = inlined_call_operand.hbm [shape: f32[2,1,32], index: 9, kind: input, shape index: {}]   ;;  %s19468_s10 = inlined_call_operand.vmem [shape: f32[2,32,2], index: 10, kind: input, shape index: {}]   ;;  %s19469_s11 = inlined_call_operand.hbm [shape: f32[2,1,2], index: 11, kind: input, shape index: {}]   ;;  %s19470_s12 = inlined_call_operand.hbm [shape: f32[2,2,32], index: 12, kind: input, shape index: {}]   ;;  %s19471_s13 = inlined_call_operand.hbm [shape: f32[2,1,32], index: 13, kind: input, shape index: {}]   ;;  %s19472_s14 = inlined_call_operand.vmem [shape: bf16[96,32], index: 14, kind: input, shape index: {}]   ;;  %s19473_s15 = inlined_call_operand.hbm [shape: f32[1,32], index: 15, kind: input, shape index: {}]   ;;  %s19474_s16 = inlined_call_operand.hbm [shape: bf16[1088,1024], index: 16, kind: input, shape index: {}]   ;;  %s19475_s17 = inlined_call_operand.hbm [shape: f32[1,1024], index: 17, kind: input, shape index: {}]   ;;  %s19476_s18 = inlined_call_operand.hbm [shape: bf16[1024,512], index: 18, kind: input, shape index: {}]   ;;  %s19477_s19 = inlined_call_operand.hbm [shape: f32[1,512], index: 19, kind: input, shape index: {}]   ;;  %s19478_s20 = inlined_call_operand.hbm [shape: bf16[512,1024], index: 20, kind: input, shape index: {}]   ;;  %s19479_s21 = inlined_call_operand.hbm [shape: f32[1,1024], index: 21, kind: input, shape index: {}]   ;;  %s19480_s22 = inlined_call_operand.hbm [shape: f32[8,512], index: 22, kind: output, shape index: {0}]   ;;  %s19481_s23 = inlined_call_operand.hbm [shape: f32[8,512], index: 23, kind: output, shape index: {1}]  }
   0x1   :  { %19629 = sst [smem:[#allocation76_spill]] %s19458_s0 }
   0x2   :  { %19630 = sst [smem:[#allocation77_spill]] %s19459_s1 }
   0x3   :  { %19631 = sst [smem:[#allocation78_spill]] %s19460_s2 }
   0x4   :  { %19632 = sst [smem:[#allocation79_spill]] %s19461_s3 }
   0x5   :  { %19633 = sst [smem:[#allocation80_spill]] %s19462_s4 }
   0x6   :  { %19634 = sst [smem:[#allocation81_spill]] %s19463_s5 }
   0x7   :  { %19635 = sst [smem:[#allocation82_spill]] %s19464_s6 }
   0x8   :  { %19636 = sst [smem:[#allocation83_spill]] %s19465_s7 }
   0x9   :  { %19637 = sst [smem:[#allocation84_spill]] %s19480_s22 }
   0xa   :  { %19638 = sst [smem:[#allocation85_spill]] %s19481_s23 }
   0xb   :  { %29 = vsyncpa [#allocation3], 0 }
   0xc   :  { %30 = vsyncpa [#allocation6], 0 }
   0xd   :  { %31 = vsyncpa [#allocation9], 0 }
   0xe   :  { %32 = vsyncpa [#allocation12], 0 }
   0xf   :  { %33 = vsyncpa [#allocation15], 0 }
  0x10   :  { %34 = vsyncpa [#allocation18], 0 }
  0x11   :  { %35 = vsyncpa [#allocation21], 0 }
  0x12   :  { %36 = vsyncpa [#allocation24], 0 }
  0x13   :  { %37 = vsyncpa [#allocation27], 0 }
  0x14   :  { %38 = vsyncpa [#allocation4], 0 }
  0x15   :  { %39 = vsyncpa [#allocation31], 0  ;;  %s15798_s4 = smov [#allocation5]   ;;  %s15799_s24 = smov [#allocation8]  }
  0x16   :  { %s60_s30 = sshll.u32 %s15798_s4, 4  ;;  %s81_s25 = sshll.u32 %s15799_s24, 4  ;;  %s61_s30 = int_to_ptr.vmem [resolvable:$true] %s60_s30  ;;  %s15950_s25 = int_to_ptr.vmem [resolvable:$true] %s81_s25 }
  0x17   :  { %s19639_s26 = sld [smem:[#allocation78_spill]] }
  0x1d   :  { %s15358_s2 = scalar_lea.hbm %s19639_s26, 16 }
  0x1e   :  { %p15359_p0 = scmp.ne.s32.totalorder %s19639_s26, %s15358_s2  ;;  %p15362_p1 = scmp.lt.u32.totalorder %s15358_s2, %s19639_s26 }
  0x20   :  { %p15364_p2 = pnand %p15362_p1, %p15359_p0 }
  0x22   :  { %15367 = shalt.err (!%p15364_p2)
}
  0x23   :  { %s15368_s29 = scalar_lea.vmem %s61_s30, 16  ;;  %s15372_s3 = scalar_lea.vmem %s61_s30, 32 }
  0x24   :  { %p15369_p3 = scmp.ne.s32.totalorder %s61_s30, %s15368_s29  ;;  %p15373_p4 = scmp.lt.s32.totalorder %s61_s30, %s61_s30 }
  0x25   :  { %p15374_p5 = scmp.lt.s32.totalorder %s15372_s3, %s15368_s29 }
  0x27   :  { %p15375_p6 = por %p15374_p5, %p15373_p4 }
  0x29   :  { %p15376_p7 = pnand %p15375_p6, %p15369_p3 }
  0x2b   :  { %15379 = shalt.err (!%p15376_p7)
}
  0x2c   :  { %63 = dma.hbm_to_vmem [thread:$0]  %s19639_s26, 16, %s61_s30, [#allocation6]  }
  0x2d   :  { %s19640_s1 = sld [smem:[#allocation81_spill]] }
  0x33   :  { %s15380_s6 = scalar_lea.hbm %s19640_s1, 32 }
  0x34   :  { %p15381_p8 = scmp.ne.s32.totalorder %s19640_s1, %s15380_s6  ;;  %p15384_p9 = scmp.lt.u32.totalorder %s15380_s6, %s19640_s1 }
  0x36   :  { %p15386_p10 = pnand %p15384_p9, %p15381_p8 }
  0x38   :  { %15389 = shalt.err (!%p15386_p10)
}
  0x39   :  { %s15390_s29 = scalar_lea.vmem %s15950_s25, 32  ;;  %p15395_p12 = scmp.lt.s32.totalorder %s15950_s25, %s15950_s25 }
  0x3a   :  { %p15391_p11 = scmp.ne.s32.totalorder %s15950_s25, %s15390_s29  ;;  %p15396_p13 = scmp.lt.s32.totalorder %s15390_s29, %s15390_s29 }
  0x3c   :  { %p15397_p0 = por %p15396_p13, %p15395_p12 }
  0x3e   :  { %p15398_p1 = pnand %p15397_p0, %p15391_p11 }
  0x40   :  { %15401 = shalt.err (!%p15398_p1)
}
  0x41   :  { %s15800_s30 = smov 16   ;;  %s15801_s26 = smov 1  }
  0x42   :  { %87 = dma.hbm_to_vmem [thread:$0]  %s19640_s1, 32, %s15950_s25, [#allocation9], %s15800_s30, %s15800_s30, %s15801_s26  }
  0x43   :  { %s15802_s4 = smov [#allocation11]   ;;  %s15803_s5 = smov [#allocation14]  }
  0x44   :  { %s107_s24 = sshll.u32 %s15802_s4, 4  ;;  %s133_s6 = sshll.u32 %s15803_s5, 4  ;;  %s108_s24 = int_to_ptr.vmem [resolvable:$true] %s107_s24  ;;  %s15984_s6 = int_to_ptr.vmem [resolvable:$true] %s133_s6 }
  0x45   :  { %s15402_s7 = scalar_lea.hbm %s19466_s8, 32 }
  0x46   :  { %p15403_p2 = scmp.ne.s32.totalorder %s19466_s8, %s15402_s7  ;;  %p15406_p3 = scmp.lt.u32.totalorder %s15402_s7, %s19466_s8 }
  0x48   :  { %p15408_p4 = pnand %p15406_p3, %p15403_p2 }
  0x4a   :  { %15411 = shalt.err (!%p15408_p4)
}
  0x4b   :  { %s15412_s25 = scalar_lea.vmem %s108_s24, 32  ;;  %p15417_p6 = scmp.lt.s32.totalorder %s108_s24, %s108_s24 }
  0x4c   :  { %p15413_p5 = scmp.ne.s32.totalorder %s108_s24, %s15412_s25  ;;  %p15418_p7 = scmp.lt.s32.totalorder %s15412_s25, %s15412_s25 }
  0x4e   :  { %p15419_p8 = por %p15418_p7, %p15417_p6 }
  0x50   :  { %p15420_p9 = pnand %p15419_p8, %p15413_p5 }
  0x52   :  { %15423 = shalt.err (!%p15420_p9)
}
  0x53   :  { %113 = dma.hbm_to_vmem [thread:$0]  %s19466_s8, 32, %s108_s24, [#allocation12], %s15800_s30, %s15800_s30, %s15801_s26  }
  0x54   :  { %s15424_s22 = scalar_lea.hbm %s19469_s11, 32 }
  0x55   :  { %p15425_p10 = scmp.ne.s32.totalorder %s19469_s11, %s15424_s22  ;;  %p15428_p11 = scmp.lt.u32.totalorder %s15424_s22, %s19469_s11 }
  0x57   :  { %p15430_p12 = pnand %p15428_p11, %p15425_p10 }
  0x59   :  { %15433 = shalt.err (!%p15430_p12)
}
  0x5a   :  { %s15434_s7 = scalar_lea.vmem %s15984_s6, 32  ;;  %p15439_p0 = scmp.lt.s32.totalorder %s15984_s6, %s15984_s6 }
  0x5b   :  { %p15435_p13 = scmp.ne.s32.totalorder %s15984_s6, %s15434_s7  ;;  %p15440_p1 = scmp.lt.s32.totalorder %s15434_s7, %s15434_s7 }
  0x5d   :  { %p15441_p2 = por %p15440_p1, %p15439_p0 }
  0x5f   :  { %p15442_p3 = pnand %p15441_p2, %p15435_p13 }
  0x61   :  { %15445 = shalt.err (!%p15442_p3)
}
  0x62   :  { %139 = dma.hbm_to_vmem [thread:$0]  %s19469_s11, 32, %s15984_s6, [#allocation15], %s15800_s30, %s15800_s30, %s15801_s26  }
  0x63   :  { %s15804_s28 = smov [#allocation17]   ;;  %s15805_s25 = smov [#allocation20]  }
  0x64   :  { %s157_s29 = sshll.u32 %s15804_s28, 4  ;;  %s181_s1 = sshll.u32 %s15805_s25, 4  ;;  %s158_s29 = int_to_ptr.vmem [resolvable:$true] %s157_s29  ;;  %s182_s1 = int_to_ptr.vmem [resolvable:$true] %s181_s1 }
  0x65   :  { %s15446_s4 = scalar_lea.hbm %s19471_s13, 32 }
  0x66   :  { %p15447_p4 = scmp.ne.s32.totalorder %s19471_s13, %s15446_s4  ;;  %p15450_p5 = scmp.lt.u32.totalorder %s15446_s4, %s19471_s13 }
  0x68   :  { %p15452_p6 = pnand %p15450_p5, %p15447_p4 }
  0x6a   :  { %15455 = shalt.err (!%p15452_p6)
}
  0x6b   :  { %s15456_s11 = scalar_lea.vmem %s158_s29, 32  ;;  %p15461_p8 = scmp.lt.s32.totalorder %s158_s29, %s158_s29 }
  0x6c   :  { %p15457_p7 = scmp.ne.s32.totalorder %s158_s29, %s15456_s11  ;;  %p15462_p9 = scmp.lt.s32.totalorder %s15456_s11, %s15456_s11 }
  0x6e   :  { %p15463_p10 = por %p15462_p9, %p15461_p8 }
  0x70   :  { %p15464_p11 = pnand %p15463_p10, %p15457_p7 }
  0x72   :  { %15467 = shalt.err (!%p15464_p11)
}
  0x73   :  { %163 = dma.hbm_to_vmem [thread:$0]  %s19471_s13, 32, %s158_s29, [#allocation18], %s15800_s30, %s15800_s30, %s15801_s26  }
  0x74   :  { %s15468_s24 = scalar_lea.hbm %s19474_s16, 69632 }
  0x75   :  { %p15469_p12 = scmp.ne.s32.totalorder %s19474_s16, %s15468_s24  ;;  %p15472_p13 = scmp.lt.u32.totalorder %s15468_s24, %s19474_s16 }
  0x77   :  { %p15474_p0 = pnand %p15472_p13, %p15469_p12 }
  0x79   :  { %15477 = shalt.err (!%p15474_p0)
}
  0x7a   :  { %s15478_s4 = scalar_lea.vmem %s182_s1, 69632  ;;  %p15483_p2 = scmp.lt.s32.totalorder %s182_s1, %s182_s1 }
  0x7b   :  { %p15479_p1 = scmp.ne.s32.totalorder %s182_s1, %s15478_s4  ;;  %p15484_p3 = scmp.lt.s32.totalorder %s15478_s4, %s15478_s4 }
  0x7d   :  { %p15485_p4 = por %p15484_p3, %p15483_p2 }
  0x7f   :  { %p15486_p5 = pnand %p15485_p4, %p15479_p1 }
  0x81   :  { %15489 = shalt.err (!%p15486_p5)
}
  0x82   :  { %s15806_s13 = smov 512   ;;  %s15807_s29 = smov 32  }
  0x83   :  { %187 = dma.hbm_to_vmem [thread:$0]  %s19474_s16, 69632, %s182_s1, [#allocation21], %s15806_s13, %s15806_s13, %s15807_s29  }
  0x84   :  { %s15808_s5 = smov [#allocation23]   ;;  %s15809_s11 = smov [#allocation26]  }
  0x85   :  { %s203_s27 = sshll.u32 %s15808_s5, 4  ;;  %s225_s6 = sshll.u32 %s15809_s11, 4  ;;  %s204_s27 = int_to_ptr.vmem [resolvable:$true] %s203_s27  ;;  %s226_s6 = int_to_ptr.vmem [resolvable:$true] %s225_s6 }
  0x86   :  { %s15490_s8 = scalar_lea.hbm %s19476_s18, 32768 }
  0x87   :  { %p15491_p6 = scmp.ne.s32.totalorder %s19476_s18, %s15490_s8  ;;  %p15494_p7 = scmp.lt.u32.totalorder %s15490_s8, %s19476_s18 }
  0x89   :  { %p15496_p8 = pnand %p15494_p7, %p15491_p6 }
  0x8b   :  { %15499 = shalt.err (!%p15496_p8)
}
  0x8c   :  { %s15500_s16 = scalar_lea.vmem %s204_s27, 32768  ;;  %p15505_p10 = scmp.lt.s32.totalorder %s204_s27, %s204_s27 }
  0x8d   :  { %p15501_p9 = scmp.ne.s32.totalorder %s204_s27, %s15500_s16  ;;  %p15506_p11 = scmp.lt.s32.totalorder %s15500_s16, %s15500_s16 }
  0x8f   :  { %p15507_p12 = por %p15506_p11, %p15505_p10 }
  0x91   :  { %p15508_p13 = pnand %p15507_p12, %p15501_p9 }
  0x93   :  { %15511 = shalt.err (!%p15508_p13)
}
  0x94   :  { %s15810_s1 = smov 256   ;;  %s15512_s5 = scalar_lea.hbm %s19478_s20, 32768 }
  0x95   :  { %209 = dma.hbm_to_vmem [thread:$0]  %s19476_s18, 32768, %s204_s27, [#allocation24], %s15810_s1, %s15810_s1, %s15800_s30  }
  0x96   :  { %p15513_p0 = scmp.ne.s32.totalorder %s19478_s20, %s15512_s5  ;;  %p15516_p1 = scmp.lt.u32.totalorder %s15512_s5, %s19478_s20 }
  0x98   :  { %p15518_p2 = pnand %p15516_p1, %p15513_p0 }
  0x9a   :  { %15521 = shalt.err (!%p15518_p2)
}
  0x9b   :  { %s15522_s24 = scalar_lea.vmem %s226_s6, 32768  ;;  %p15527_p4 = scmp.lt.s32.totalorder %s226_s6, %s226_s6 }
  0x9c   :  { %p15523_p3 = scmp.ne.s32.totalorder %s226_s6, %s15522_s24  ;;  %p15528_p5 = scmp.lt.s32.totalorder %s15522_s24, %s15522_s24 }
  0x9e   :  { %p15529_p6 = por %p15528_p5, %p15527_p4 }
  0xa0   :  { %p15530_p7 = pnand %p15529_p6, %p15523_p3 }
  0xa2   :  { %15533 = shalt.err (!%p15530_p7)
}
  0xa3   :  { %231 = dma.hbm_to_vmem [thread:$0]  %s19478_s20, 32768, %s226_s6, [#allocation27], %s15806_s13, %s15806_s13, %s15807_s29  }
  0xa4   :  { %s15811_s28 = smov [#allocation2]   ;;  %s19641_s1 = sld [smem:[#allocation77_spill]] }
  0xa5   :  { %s47_s25 = sshll.u32 %s15811_s28, 4  ;;  %s48_s25 = int_to_ptr.vmem [resolvable:$true] %s47_s25 }
  0xaa   :  { %s15534_s0 = scalar_lea.hbm %s19641_s1, 192 }
  0xab   :  { %p15535_p8 = scmp.ne.s32.totalorder %s19641_s1, %s15534_s0  ;;  %p15538_p9 = scmp.lt.u32.totalorder %s15534_s0, %s19641_s1 }
  0xad   :  { %p15540_p10 = pnand %p15538_p9, %p15535_p8 }
  0xaf   :  { %15543 = shalt.err (!%p15540_p10)
}
  0xb0   :  { %s15544_s11 = scalar_lea.vmem %s48_s25, 192  ;;  %p15549_p12 = scmp.lt.s32.totalorder %s48_s25, %s48_s25 }
  0xb1   :  { %p15545_p11 = scmp.ne.s32.totalorder %s48_s25, %s15544_s11  ;;  %p15550_p13 = scmp.lt.s32.totalorder %s15544_s11, %s15544_s11 }
  0xb3   :  { %p15551_p0 = por %p15550_p13, %p15549_p12 }
  0xb5   :  { %p15552_p1 = pnand %p15551_p0, %p15545_p11 }
  0xb7   :  { %15555 = shalt.err (!%p15552_p1)
}
  0xb8   :  { %s15812_s20 = smov 64   ;;  %s15813_s13 = smov 4  }
  0xb9   :  { %53 = dma.hbm_to_vmem [thread:$0]  %s19641_s1, 192, %s48_s25, [#allocation3], %s15812_s20, %s15812_s20, %s15813_s13  }
  0xba   :  { %s15814_s7 = smov [#allocation7]   ;;  %s15815_s24 = smov [#allocation10]  }
  0xbb   :  { %s70_s8 = sshll.u32 %s15814_s7, 4  ;;  %s93_s18 = sshll.u32 %s15815_s24, 4  ;;  %s71_s8 = int_to_ptr.vmem [resolvable:$true] %s70_s8  ;;  %s16093_s18 = int_to_ptr.vmem [resolvable:$true] %s93_s18 }
  0xbc   :  { %s19642_s3 = sld [smem:[#allocation79_spill]] }
  0xc2   :  { %s15556_s16 = scalar_lea.hbm %s19642_s3, 16 }
  0xc3   :  { %p15557_p2 = scmp.ne.s32.totalorder %s19642_s3, %s15556_s16  ;;  %p15560_p3 = scmp.lt.u32.totalorder %s15556_s16, %s19642_s3 }
  0xc5   :  { %p15562_p4 = pnand %p15560_p3, %p15557_p2 }
  0xc7   :  { %15565 = shalt.err (!%p15562_p4)
}
  0xc8   :  { %s15566_s25 = scalar_lea.vmem %s71_s8, 16  ;;  %s15570_s1 = scalar_lea.vmem %s71_s8, 32 }
  0xc9   :  { %p15567_p5 = scmp.ne.s32.totalorder %s71_s8, %s15566_s25  ;;  %p15571_p6 = scmp.lt.s32.totalorder %s71_s8, %s71_s8 }
  0xca   :  { %p15572_p7 = scmp.lt.s32.totalorder %s15570_s1, %s15566_s25 }
  0xcc   :  { %p15573_p8 = por %p15572_p7, %p15571_p6 }
  0xce   :  { %p15574_p9 = pnand %p15573_p8, %p15567_p5 }
  0xd0   :  { %15577 = shalt.err (!%p15574_p9)
}
  0xd1   :  { %73 = dma.hbm_to_vmem [thread:$0]  %s19642_s3, 16, %s71_s8, [#allocation6]  }
  0xd2   :  { %s19643_s2 = sld [smem:[#allocation82_spill]] }
  0xd8   :  { %s15578_s7 = scalar_lea.hbm %s19643_s2, 32 }
  0xd9   :  { %p15579_p10 = scmp.ne.s32.totalorder %s19643_s2, %s15578_s7  ;;  %p15582_p11 = scmp.lt.u32.totalorder %s15578_s7, %s19643_s2 }
  0xdb   :  { %p15584_p12 = pnand %p15582_p11, %p15579_p10 }
  0xdd   :  { %15587 = shalt.err (!%p15584_p12)
}
  0xde   :  { %s15588_s0 = scalar_lea.vmem %s16093_s18, 32  ;;  %p15593_p0 = scmp.lt.s32.totalorder %s16093_s18, %s16093_s18 }
  0xdf   :  { %p15589_p13 = scmp.ne.s32.totalorder %s16093_s18, %s15588_s0  ;;  %p15594_p1 = scmp.lt.s32.totalorder %s15588_s0, %s15588_s0 }
  0xe1   :  { %p15595_p2 = por %p15594_p1, %p15593_p0 }
  0xe3   :  { %p15596_p3 = pnand %p15595_p2, %p15589_p13 }
  0xe5   :  { %15599 = shalt.err (!%p15596_p3)
}
  0xe6   :  { %99 = dma.hbm_to_vmem [thread:$0]  %s19643_s2, 32, %s16093_s18, [#allocation9], %s15800_s30, %s15800_s30, %s15801_s26  }
  0xe7   :  { %s15816_s4 = smov [#allocation13]   ;;  %s15817_s23 = smov [#allocation16]  }
  0xe8   :  { %s119_s22 = sshll.u32 %s15816_s4, 4  ;;  %s145_s25 = sshll.u32 %s15817_s23, 4  ;;  %s120_s22 = int_to_ptr.vmem [resolvable:$true] %s119_s22  ;;  %s16127_s25 = int_to_ptr.vmem [resolvable:$true] %s145_s25 }
  0xe9   :  { %s15600_s11 = scalar_lea.hbm %s19467_s9, 32 }
  0xea   :  { %p15601_p4 = scmp.ne.s32.totalorder %s19467_s9, %s15600_s11  ;;  %p15604_p5 = scmp.lt.u32.totalorder %s15600_s11, %s19467_s9 }
  0xec   :  { %p15606_p6 = pnand %p15604_p5, %p15601_p4 }
  0xee   :  { %15609 = shalt.err (!%p15606_p6)
}
  0xef   :  { %s15610_s18 = scalar_lea.vmem %s120_s22, 32  ;;  %p15615_p8 = scmp.lt.s32.totalorder %s120_s22, %s120_s22 }
  0xf0   :  { %p15611_p7 = scmp.ne.s32.totalorder %s120_s22, %s15610_s18  ;;  %p15616_p9 = scmp.lt.s32.totalorder %s15610_s18, %s15610_s18 }
  0xf2   :  { %p15617_p10 = por %p15616_p9, %p15615_p8 }
  0xf4   :  { %p15618_p11 = pnand %p15617_p10, %p15611_p7 }
  0xf6   :  { %15621 = shalt.err (!%p15618_p11)
}
  0xf7   :  { %125 = dma.hbm_to_vmem [thread:$0]  %s19467_s9, 32, %s120_s22, [#allocation12], %s15800_s30, %s15800_s30, %s15801_s26  }
  0xf8   :  { %s15622_s0 = scalar_lea.hbm %s19470_s12, 64 }
  0xf9   :  { %p15623_p12 = scmp.ne.s32.totalorder %s19470_s12, %s15622_s0  ;;  %p15626_p13 = scmp.lt.u32.totalorder %s15622_s0, %s19470_s12 }
  0xfb   :  { %p15628_p0 = pnand %p15626_p13, %p15623_p12 }
  0xfd   :  { %15631 = shalt.err (!%p15628_p0)
}
  0xfe   :  { %s15632_s1 = scalar_lea.vmem %s16127_s25, 64  ;;  %p15637_p2 = scmp.lt.s32.totalorder %s16127_s25, %s16127_s25 }
  0xff   :  { %p15633_p1 = scmp.ne.s32.totalorder %s16127_s25, %s15632_s1  ;;  %p15638_p3 = scmp.lt.s32.totalorder %s15632_s1, %s15632_s1 }
 0x101   :  { %p15639_p4 = por %p15638_p3, %p15637_p2 }
 0x103   :  { %p15640_p5 = pnand %p15639_p4, %p15633_p1 }
 0x105   :  { %15643 = shalt.err (!%p15640_p5)
}
 0x106   :  { %s15818_s9 = smov 2   ;;  %s15819_s5 = smov [#allocation19]  }
 0x107   :  { %151 = dma.hbm_to_vmem [thread:$0]  %s19470_s12, 64, %s16127_s25, [#allocation15], %s15807_s29, %s15807_s29, %s15818_s9  }
 0x108   :  { %s172_s11 = sshll.u32 %s15819_s5, 4  ;;  %s15820_s13 = smov [#allocation22]   ;;  %s173_s11 = int_to_ptr.vmem [resolvable:$true] %s172_s11 }
 0x109   :  { %s194_s6 = sshll.u32 %s15820_s13, 4  ;;  %s15644_s18 = scalar_lea.hbm %s19473_s15, 16  ;;  %s195_s6 = int_to_ptr.vmem [resolvable:$true] %s194_s6 }
 0x10a   :  { %p15645_p6 = scmp.ne.s32.totalorder %s19473_s15, %s15644_s18  ;;  %p15648_p7 = scmp.lt.u32.totalorder %s15644_s18, %s19473_s15 }
 0x10c   :  { %p15650_p8 = pnand %p15648_p7, %p15645_p6 }
 0x10e   :  { %15653 = shalt.err (!%p15650_p8)
}
 0x10f   :  { %s15654_s12 = scalar_lea.vmem %s173_s11, 16  ;;  %s15658_s25 = scalar_lea.vmem %s173_s11, 32 }
 0x110   :  { %p15655_p9 = scmp.ne.s32.totalorder %s173_s11, %s15654_s12  ;;  %p15659_p10 = scmp.lt.s32.totalorder %s173_s11, %s173_s11 }
 0x111   :  { %p15660_p11 = scmp.lt.s32.totalorder %s15658_s25, %s15654_s12 }
 0x113   :  { %p15661_p12 = por %p15660_p11, %p15659_p10 }
 0x115   :  { %p15662_p13 = pnand %p15661_p12, %p15655_p9 }
 0x117   :  { %15665 = shalt.err (!%p15662_p13)
}
 0x118   :  { %175 = dma.hbm_to_vmem [thread:$0]  %s19473_s15, 16, %s173_s11, [#allocation18]  }
 0x119   :  { %s15666_s23 = scalar_lea.hbm %s19475_s17, 128 }
 0x11a   :  { %p15667_p0 = scmp.ne.s32.totalorder %s19475_s17, %s15666_s23  ;;  %p15670_p1 = scmp.lt.u32.totalorder %s15666_s23, %s19475_s17 }
 0x11c   :  { %p15672_p2 = pnand %p15670_p1, %p15667_p0 }
 0x11e   :  { %15675 = shalt.err (!%p15672_p2)
}
 0x11f   :  { %s15676_s5 = scalar_lea.vmem %s195_s6, 128  ;;  %p15681_p4 = scmp.lt.s32.totalorder %s195_s6, %s195_s6 }
 0x120   :  { %p15677_p3 = scmp.ne.s32.totalorder %s195_s6, %s15676_s5  ;;  %p15682_p5 = scmp.lt.s32.totalorder %s15676_s5, %s15676_s5 }
 0x122   :  { %p15683_p6 = por %p15682_p5, %p15681_p4 }
 0x124   :  { %p15684_p7 = pnand %p15683_p6, %p15677_p3 }
 0x126   :  { %15687 = shalt.err (!%p15684_p7)
}
 0x127   :  { %197 = dma.hbm_to_vmem [thread:$0]  %s19475_s17, 128, %s195_s6, [#allocation21]  }
 0x128   :  { %s15821_s13 = smov [#allocation25]   ;;  %s15822_s24 = smov [#allocation28]  }
 0x129   :  { %s216_s7 = sshll.u32 %s15821_s13, 4  ;;  %s238_s18 = sshll.u32 %s15822_s24, 4  ;;  %s217_s7 = int_to_ptr.vmem [resolvable:$true] %s216_s7  ;;  %s239_s18 = int_to_ptr.vmem [resolvable:$true] %s238_s18 }
 0x12a   :  { %s15688_s28 = scalar_lea.hbm %s19477_s19, 64 }
 0x12b   :  { %p15689_p8 = scmp.ne.s32.totalorder %s19477_s19, %s15688_s28  ;;  %p15692_p9 = scmp.lt.u32.totalorder %s15688_s28, %s19477_s19 }
 0x12d   :  { %p15694_p10 = pnand %p15692_p9, %p15689_p8 }
 0x12f   :  { %15697 = shalt.err (!%p15694_p10)
}
 0x130   :  { %s15698_s17 = scalar_lea.vmem %s217_s7, 64  ;;  %p15703_p12 = scmp.lt.s32.totalorder %s217_s7, %s217_s7 }
 0x131   :  { %p15699_p11 = scmp.ne.s32.totalorder %s217_s7, %s15698_s17  ;;  %p15704_p13 = scmp.lt.s32.totalorder %s15698_s17, %s15698_s17 }
 0x133   :  { %p15705_p0 = por %p15704_p13, %p15703_p12 }
 0x135   :  { %p15706_p1 = pnand %p15705_p0, %p15699_p11 }
 0x137   :  { %15709 = shalt.err (!%p15706_p1)
}
 0x138   :  { %219 = dma.hbm_to_vmem [thread:$0]  %s19477_s19, 64, %s217_s7, [#allocation24]  }
 0x139   :  { %s15710_s23 = scalar_lea.hbm %s19479_s21, 128 }
 0x13a   :  { %p15711_p2 = scmp.ne.s32.totalorder %s19479_s21, %s15710_s23  ;;  %p15714_p3 = scmp.lt.u32.totalorder %s15710_s23, %s19479_s21 }
 0x13c   :  { %p15716_p4 = pnand %p15714_p3, %p15711_p2 }
 0x13e   :  { %15719 = shalt.err (!%p15716_p4)
}
 0x13f   :  { %s15720_s5 = scalar_lea.vmem %s239_s18, 128  ;;  %p15725_p6 = scmp.lt.s32.totalorder %s239_s18, %s239_s18 }
 0x140   :  { %p15721_p5 = scmp.ne.s32.totalorder %s239_s18, %s15720_s5  ;;  %p15726_p7 = scmp.lt.s32.totalorder %s15720_s5, %s15720_s5 }
 0x142   :  { %p15727_p8 = por %p15726_p7, %p15725_p6 }
 0x144   :  { %p15728_p9 = pnand %p15727_p8, %p15721_p5 }
 0x146   :  { %15731 = shalt.err (!%p15728_p9)
}
 0x147   :  { %241 = dma.hbm_to_vmem [thread:$0]  %s19479_s21, 128, %s239_s18, [#allocation27]  }
 0x148   :  { %15776 = dma.done.wait [#allocation3], 192  }
 0x149   :  { %15777 = vsyncadd [#allocation3], 4294967104 }
 0x14a   :  { %15778 = dma.done.wait [#allocation6], 32  }
 0x14b   :  { %15779 = vsyncadd [#allocation6], 4294967264 }
 0x14c   :  { %15780 = dma.done.wait [#allocation9], 64  }
 0x14d   :  { %15781 = vsyncadd [#allocation9], 4294967232 }
 0x14e   :  { %15782 = dma.done.wait [#allocation12], 64  }
 0x14f   :  { %15783 = vsyncadd [#allocation12], 4294967232 }
 0x150   :  { %15784 = dma.done.wait [#allocation15], 96  }
 0x151   :  { %15785 = vsyncadd [#allocation15], 4294967200 }
 0x152   :  { %15786 = dma.done.wait [#allocation18], 48  }
 0x153   :  { %15787 = vsyncadd [#allocation18], 4294967248 }
 0x154   :  { %15788 = dma.done.wait [#allocation21], 69760  }
 0x155   :  { %15789 = vsyncadd [#allocation21], 4294897536 }
 0x156   :  { %15790 = dma.done.wait [#allocation24], 32832  }
 0x157   :  { %15791 = vsyncadd [#allocation24], 4294934464 }
 0x158   :  { %15792 = dma.done.wait [#allocation27], 32896  }
 0x159   :  { %15793 = vsyncadd [#allocation27], 4294934400  ;;  %v19526_v0 = vmov 0.0   ;;  %vm15824_vm0 = vmmov 0   ;;  %s19644_s13 = sld [smem:[#allocation76_spill]]  ;;  %s15825_s1 = smov 8  }
 0x15a   :  { %14244 = vmatprep.subr.bf16.mxu0 %v19526_v0  ;;  %14764 = vmatprep.subr.bf16.mxu1 %v19526_v0  ;;  %vm365_vm1 = vcmask 1043456   ;;  %v14932_v40 = vld [vmem:[#allocation2] sm:$0xff]   ;;  %v14933_v42 = vld [vmem:[#allocation2 + $0x8] ss:$0 sps:$4 sm:$0xff]   ;;  %vm474_vm2 = vcmask 64512   ;;  %vm525_vm3 = vcmask 130048  }
 0x15b   :  { %14248 = vmatprep.mubr.msk.bf16.mxu0 %vm15824_vm0, %v19526_v0  ;;  %14344 = vmatprep.mubr.msk.bf16.mxu1 %vm15824_vm0, %v19526_v0  ;;  %v605_v48 = vsel %vm365_vm1, %v14933_v42, 0  ;;  %vm569_vm4 = vcmask 195584   ;;  %vm1044_vm5 = vcmask 261120   ;;  %vm1095_vm6 = vcmask 523264   ;;  %s19672_s16 = sld [smem:[#allocation83_spill]] }
 0x15c   :  { %14245 = vmatpush3.bf16.msra.mxu0 %v14932_v40  ;;  %vm1166_vm7 = vcmask 785408   ;;  %vm2287_vm8 = vcmask 1041408   ;;  %vm2280_vm9 = vcmask 15360  }
 0x15d   :  { %14246 = vmatprep.subr.bf16.mxu0 %v19526_v0 }
 0x15f   :  { %v294_v1 = vld [vmem:[%s19644_s13] sm:$0xff]  ;;  %v295_v2 = vld [vmem:[%s19644_s13 + $0x8] sm:$0xff]  ;;  %v296_v3 = vld [vmem:[%s19644_s13 + $0x10] sm:$0xff] }
 0x160   :  { %v16226_v4 = vpack.c.bf16 %v295_v2, %v294_v1  ;;  %v297_v5 = vld [vmem:[%s19644_s13 + $0x18] sm:$0xff]  ;;  %v298_v6 = vld [vmem:[%s19644_s13 + $0x20] sm:$0xff]  ;;  %v299_v7 = vld [vmem:[%s19644_s13 + $0x28] sm:$0xff]  ;;  %14247 = vmatpush3.bf16.msra.mxu0 %v605_v48 }
 0x161   :  { %v332_v8 = vpack.c.bf16 %v297_v5, %v296_v3  ;;  %v333_v9 = vpack.c.bf16 %v299_v7, %v298_v6  ;;  %v300_v10 = vld [vmem:[%s19644_s13 + $0x30] sm:$0xff]  ;;  %v301_v11 = vld [vmem:[%s19644_s13 + $0x38] sm:$0xff]  ;;  %v302_v12 = vld [vmem:[%s19644_s13 + $0x40] sm:$0xff]  ;;  %14316 = vmatprep.subr.bf16.mxu0 %v19526_v0 }
 0x162   :  { %405 = vrot.lane.b32.xlu0 %v16226_v4, %s15825_s1  ;;  %v366_v13 = vrot.slane %v16226_v4, 4  ;;  %v334_v14 = vpack.c.bf16 %v301_v11, %v300_v10  ;;  %v303_v15 = vld [vmem:[%s19644_s13 + $0x48] sm:$0xff]  ;;  %v304_v20 = vld [vmem:[%s19644_s13 + $0x50] sm:$0xff]  ;;  %v305_v21 = vld [vmem:[%s19644_s13 + $0x58] sm:$0xff] }
 0x163   :  { %v367_v16 = vrot.slane %v332_v8, 4  ;;  %407 = vrot.lane.b32.xlu1 %v332_v8, %s15825_s1  ;;  %v369_v17 = vrot.slane %v333_v9, 4  ;;  %v335_v19 = vpack.c.bf16 %v303_v15, %v302_v12  ;;  %v306_v22 = vld [vmem:[%s19644_s13 + $0x60] sm:$0xff]  ;;  %v307_v25 = vld [vmem:[%s19644_s13 + $0x68] sm:$0xff]  ;;  %v308_v26 = vld [vmem:[%s19644_s13 + $0x70] sm:$0xff]  ;;  %v336_v28 = vpack.c.bf16 %v305_v21, %v304_v20 }
 0x164   :  { %v371_v18 = vrot.slane %v334_v14, 4  ;;  %v309_v27 = vld [vmem:[%s19644_s13 + $0x78] sm:$0xff]  ;;  %v310_v29 = vld [vmem:[%s19644_s13 + $0x80] sm:$0xff]  ;;  %v311_v30 = vld [vmem:[%s19644_s13 + $0x88] sm:$0xff]  ;;  %v337_v33 = vpack.c.bf16 %v307_v25, %v306_v22 }
 0x165   :  { %v16265_v23 = vsel %vm365_vm1, %v366_v13, %v367_v16  ;;  %v16268_v24 = vsel %vm365_vm1, %v367_v16, %v369_v17  ;;  %v373_v32 = vrot.slane %v335_v19, 4  ;;  %v338_v34 = vpack.c.bf16 %v309_v27, %v308_v26  ;;  %v312_v35 = vld [vmem:[%s19644_s13 + $0x90] sm:$0xff]  ;;  %v313_v36 = vld [vmem:[%s19644_s13 + $0x98] sm:$0xff]  ;;  %v314_v38 = vld [vmem:[%s19644_s13 + $0xa0] sm:$0xff] }
 0x166   :  { %440 = vrot.lane.b32.xlu0 %v16265_v23, %s15800_s30  ;;  %v16290_v31 = vsel %vm365_vm1, %v369_v17, %v371_v18  ;;  %v339_v37 = vpack.c.bf16 %v311_v30, %v310_v29  ;;  %v315_v39 = vld [vmem:[%s19644_s13 + $0xa8] sm:$0xff]  ;;  %v340_v41 = vpack.c.bf16 %v313_v36, %v312_v35  ;;  %v375_v44 = vrot.slane %v336_v28, 4  ;;  %v316_v55 = vld [vmem:[%s19644_s13 + $0xb0] sm:$0xff]  ;;  %v317_v56 = vld [vmem:[%s19644_s13 + $0xb8] sm:$0xff] }
 0x167   :  { %442 = vrot.lane.b32.xlu1 %v16268_v24, %s15800_s30  ;;  %v16308_v43 = vsel %vm365_vm1, %v371_v18, %v373_v32  ;;  %v377_v45 = vrot.slane %v337_v33, 4  ;;  %v379_v46 = vrot.slane %v338_v34, 4  ;;  %v341_v47 = vpack.c.bf16 %v315_v39, %v314_v38  ;;  %v318_v58 = vld [vmem:[%s19644_s13 + $0xc0] sm:$0xff]  ;;  %v319_v59 = vld [vmem:[%s19644_s13 + $0xc8] sm:$0xff]  ;;  %v320_v62 = vld [vmem:[%s19644_s13 + $0xd0] sm:$0xff] }
 0x168   :  { %v381_v49 = vrot.slane %v339_v37, 4  ;;  %v383_v50 = vrot.slane %v340_v41, 4  ;;  %v16316_v51 = vsel %vm365_vm1, %v373_v32, %v375_v44  ;;  %v342_v61 = vpack.c.bf16 %v317_v56, %v316_v55  ;;  %v321_v63 = vld [vmem:[%s19644_s13 + $0xd8] sm:$0xff]  ;;  %v322_v5 = vld [vmem:[%s19644_s13 + $0xe0] sm:$0xff]  ;;  %v323_v6 = vld [vmem:[%s19644_s13 + $0xe8] sm:$0xff] }
 0x169   :  { %v385_v52 = vrot.slane %v341_v47, 4  ;;  %v16323_v53 = vsel %vm365_vm1, %v375_v44, %v377_v45  ;;  %v16329_v54 = vsel %vm365_vm1, %v377_v45, %v379_v46  ;;  %v343_v3 = vpack.c.bf16 %v319_v59, %v318_v58  ;;  %v324_v10 = vld [vmem:[%s19644_s13 + $0xf0] sm:$0xff]  ;;  %v325_v11 = vld [vmem:[%s19644_s13 + $0xf8] sm:$0xff]  ;;  %v326_v16 = vld [vmem:[%s19644_s13 + $0x100] sm:$0xff] }
 0x16a   :  { %409 = vrot.lane.b32.xlu0 %v333_v9, %s15825_s1  ;;  %v16341_v57 = vsel %vm365_vm1, %v379_v46, %v381_v49  ;;  %v16353_v60 = vsel %vm365_vm1, %v381_v49, %v383_v50  ;;  %v387_v2 = vrot.slane %v342_v61, 4  ;;  %v344_v9 = vpack.c.bf16 %v321_v63, %v320_v62  ;;  %v327_v17 = vld [vmem:[%s19644_s13 + $0x108] sm:$0xff] }
 0x16b   :  { %444 = vrot.lane.b32.xlu1 %v16290_v31, %s15800_s30  ;;  %v16365_v1 = vsel %vm365_vm1, %v383_v50, %v385_v52  ;;  %v389_v8 = vrot.slane %v343_v3, 4  ;;  %v345_v15 = vpack.c.bf16 %v323_v6, %v322_v5  ;;  %v346_v20 = vpack.c.bf16 %v325_v11, %v324_v10 }
 0x16c   :  { %v16377_v7 = vsel %vm365_vm1, %v385_v52, %v387_v2  ;;  %v347_v25 = vpack.c.bf16 %v327_v17, %v326_v16  ;;  %v402_v32 = vsel %vm365_vm1, 0, %v366_v13 }
 0x16d   :  { %v16389_v12 = vsel %vm365_vm1, %v387_v2, %v389_v8  ;;  %v395_v22 = vrot.slane %v346_v20, 4 }
 0x16e   :  { %411 = vrot.lane.b32.xlu0 %v334_v14, %s15825_s1  ;;  %v391_v14 = vrot.slane %v344_v9, 4  ;;  %v397_v27 = vrot.slane %v347_v25, 4 }
 0x16f   :  { %446 = vrot.lane.b32.xlu1 %v16308_v43, %s15800_s30 }
 0x170   :  { %v16401_v18 = vsel %vm365_vm1, %v389_v8, %v391_v14  ;;  %v404_v29 = vsel %vm365_vm1, %v397_v27, 0 }
 0x172   :  { %413 = vrot.lane.b32.xlu0 %v335_v19, %s15825_s1  ;;  %v393_v19 = vrot.slane %v345_v15, 4 }
 0x173   :  { %448 = vrot.lane.b32.xlu1 %v16316_v51, %s15800_s30 }
 0x174   :  { %v16407_v21 = vsel %vm365_vm1, %v391_v14, %v393_v19  ;;  %v16413_v26 = vsel %vm365_vm1, %v393_v19, %v395_v22 }
 0x176   :  { %415 = vrot.lane.b32.xlu0 %v336_v28, %s15825_s1  ;;  %v16419_v28 = vsel %vm365_vm1, %v395_v22, %v397_v27 }
 0x177   :  { %450 = vrot.lane.b32.xlu1 %v16323_v53, %s15800_s30 }
 0x17a   :  { %417 = vrot.lane.b32.xlu0 %v337_v33, %s15825_s1 }
 0x17b   :  { %452 = vrot.lane.b32.xlu1 %v16329_v54, %s15800_s30 }
 0x17e   :  { %419 = vrot.lane.b32.xlu0 %v338_v34, %s15825_s1 }
 0x17f   :  { %454 = vrot.lane.b32.xlu1 %v16341_v57, %s15800_s30 }
 0x182   :  { %421 = vrot.lane.b32.xlu0 %v339_v37, %s15825_s1 }
 0x183   :  { %456 = vrot.lane.b32.xlu1 %v16353_v60, %s15800_s30 }
 0x186   :  { %423 = vrot.lane.b32.xlu0 %v340_v41, %s15825_s1 }
 0x187   :  { %458 = vrot.lane.b32.xlu1 %v16365_v1, %s15800_s30 }
 0x18a   :  { %425 = vrot.lane.b32.xlu0 %v341_v47, %s15825_s1 }
 0x18b   :  { %460 = vrot.lane.b32.xlu1 %v16377_v7, %s15800_s30 }
 0x18e   :  { %427 = vrot.lane.b32.xlu0 %v342_v61, %s15825_s1 }
 0x18f   :  { %462 = vrot.lane.b32.xlu1 %v16389_v12, %s15800_s30 }
 0x192   :  { %429 = vrot.lane.b32.xlu0 %v343_v3, %s15825_s1 }
 0x193   :  { %464 = vrot.lane.b32.xlu1 %v16401_v18, %s15800_s30 }
 0x196   :  { %431 = vrot.lane.b32.xlu0 %v344_v9, %s15825_s1 }
 0x197   :  { %466 = vrot.lane.b32.xlu1 %v16407_v21, %s15800_s30 }
 0x19a   :  { %433 = vrot.lane.b32.xlu0 %v345_v15, %s15825_s1 }
 0x19b   :  { %468 = vrot.lane.b32.xlu1 %v16413_v26, %s15800_s30 }
 0x19e   :  { %435 = vrot.lane.b32.xlu0 %v346_v20, %s15825_s1 }
 0x19f   :  { %470 = vrot.lane.b32.xlu1 %v16419_v28, %s15800_s30 }
 0x1a2   :  { %437 = vrot.lane.b32.xlu0 %v347_v25, %s15825_s1  ;;  %s19645_s1 = sld [smem:[#allocation80_spill]] }
 0x1a3   :  { %472 = vrot.lane.b32.xlu1 %v404_v29, %s15800_s30 }
 0x1d4   :  { %v406_v30 = vpop.permute.xlu0 %405 }
 0x1d5   :  { %v408_v33 = vpop.permute.xlu1 %407  ;;  %v476_v34 = vsel %vm474_vm2, %v402_v32, %v406_v30 }
 0x1d6   :  { %v479_v4 = vsel %vm474_vm2, %v16265_v23, %v408_v33 }
 0x1d8   :  { %v441_v35 = vpop.permute.xlu0 %440 }
 0x1d9   :  { %v527_v36 = vsel %vm525_vm3, %v476_v34, %v441_v35  ;;  %v443_v37 = vpop.permute.xlu1 %442 }
 0x1da   :  { %14249 = vmatmul.mubr.msk.bf16.vlgmr.msra.gmra.mrb[0].mxu0 %vm569_vm4, %v527_v36  ;;  %v529_v40 = vsel %vm525_vm3, %v479_v4, %v443_v37  ;;  %v14937_v4 = vld [vmem:[%s19645_s1 + $0x18] sm:$0xff]  }
 0x1db   :  { %14252 = vmatprep.mubr.msk.bf16.mxu0 %vm15824_vm0, %v19526_v0 }
 0x1dc   :  { %v410_v38 = vpop.permute.xlu0 %409 }
 0x1dd   :  { %v445_v39 = vpop.permute.xlu1 %444  ;;  %v482_v42 = vsel %vm474_vm2, %v16268_v24, %v410_v38 }
 0x1de   :  { %v531_v46 = vsel %vm525_vm3, %v482_v42, %v445_v39  ;;  %v14936_v39 = vld [vmem:[%s19645_s1 + $0x10] sm:$0xff]  }
 0x1e0   :  { %v412_v13 = vpop.permute.xlu0 %411 }
 0x1e1   :  { %v447_v41 = vpop.permute.xlu1 %446  ;;  %v485_v23 = vsel %vm474_vm2, %v16290_v31, %v412_v13  ;;  %v14938_v13 = vld [vmem:[%s19645_s1 + $0x20] sm:$0xff]  }
 0x1e2   :  { %14253 = vmatmul.mubr.msk.bf16.gmra.mrb[4].mxu0 %vm569_vm4, %v529_v40  ;;  %v533_v52 = vsel %vm525_vm3, %v485_v23, %v447_v41  ;;  %v14939_v40 = vld [vmem:[%s19645_s1 + $0x28] sm:$0xff]  }
 0x1e3   :  { %14256 = vmatprep.mubr.msk.bf16.mxu0 %vm15824_vm0, %v19526_v0  ;;  %v16560_v41 = vld [vmem:[#allocation5] ss:$0 sm:$0xff] }
 0x1e4   :  { %v414_v44 = vpop.permute.xlu0 %413 }
 0x1e5   :  { %v449_v45 = vpop.permute.xlu1 %448  ;;  %v488_v56 = vsel %vm474_vm2, %v16308_v43, %v414_v44  ;;  %v16562_v44 = vld [vmem:[#allocation7] ss:$0 sm:$0xff] }
 0x1e6   :  { %v535_v62 = vsel %vm525_vm3, %v488_v56, %v449_v45 }
 0x1e8   :  { %v416_v47 = vpop.permute.xlu0 %415 }
 0x1e9   :  { %v451_v48 = vpop.permute.xlu1 %450  ;;  %v491_v43 = vsel %vm474_vm2, %v16316_v51, %v416_v47 }
 0x1ea   :  { %14257 = vmatmul.mubr.msk.bf16.gmra.mrb[8].mxu0 %vm569_vm4, %v531_v46 }
 0x1eb   :  { %14260 = vmatprep.mubr.msk.bf16.mxu0 %vm15824_vm0, %v19526_v0 }
 0x1ec   :  { %v418_v49 = vpop.permute.xlu0 %417 }
 0x1ed   :  { %v453_v50 = vpop.permute.xlu1 %452  ;;  %v494_v51 = vsel %vm474_vm2, %v16323_v53, %v418_v49 }
 0x1f0   :  { %v420_v55 = vpop.permute.xlu0 %419 }
 0x1f1   :  { %v455_v24 = vpop.permute.xlu1 %454  ;;  %v497_v53 = vsel %vm474_vm2, %v16329_v54, %v420_v55 }
 0x1f2   :  { %14261 = vmatmul.mubr.msk.bf16.gmra.mrb[12].mxu0 %vm569_vm4, %v533_v52 }
 0x1f3   :  { %14264 = vmatprep.mubr.msk.bf16.mxu0 %vm15824_vm0, %v19526_v0 }
 0x1f4   :  { %v422_v58 = vpop.permute.xlu0 %421 }
 0x1f5   :  { %v500_v59 = vsel %vm474_vm2, %v16341_v57, %v422_v58  ;;  %v457_v61 = vpop.permute.xlu1 %456 }
 0x1f6   :  { %v543_v31 = vsel %vm525_vm3, %v500_v59, %v457_v61 }
 0x1f8   :  { %v424_v63 = vpop.permute.xlu0 %423 }
 0x1f9   :  { %v503_v2 = vsel %vm474_vm2, %v16353_v60, %v424_v63  ;;  %v459_v3 = vpop.permute.xlu1 %458  ;;  %v537_v60 = vsel %vm525_vm3, %v491_v43, %v451_v48 }
 0x1fa   :  { %14265 = vmatmul.mubr.msk.bf16.gmra.mrb[16].mxu0 %vm569_vm4, %v535_v62  ;;  %v545_v5 = vsel %vm525_vm3, %v503_v2, %v459_v3 }
 0x1fb   :  { %14268 = vmatprep.mubr.msk.bf16.mxu0 %vm15824_vm0, %v19526_v0 }
 0x1fc   :  { %v426_v57 = vpop.permute.xlu0 %425 }
 0x1fd   :  { %v506_v6 = vsel %vm474_vm2, %v16365_v1, %v426_v57  ;;  %v461_v8 = vpop.permute.xlu1 %460 }
 0x1fe   :  { %v547_v9 = vsel %vm525_vm3, %v506_v6, %v461_v8 }
 0x200   :  { %v428_v10 = vpop.permute.xlu0 %427 }
 0x201   :  { %v509_v11 = vsel %vm474_vm2, %v16377_v7, %v428_v10  ;;  %v463_v14 = vpop.permute.xlu1 %462  ;;  %v539_v7 = vsel %vm525_vm3, %v494_v51, %v453_v50 }
 0x202   :  { %14269 = vmatmul.mubr.msk.bf16.gmra.mrb[20].mxu0 %vm569_vm4, %v537_v60  ;;  %v549_v15 = vsel %vm525_vm3, %v509_v11, %v463_v14 }
 0x203   :  { %14272 = vmatprep.mubr.msk.bf16.mxu0 %vm15824_vm0, %v19526_v0 }
 0x204   :  { %v430_v1 = vpop.permute.xlu0 %429 }
 0x205   :  { %v512_v16 = vsel %vm474_vm2, %v16389_v12, %v430_v1  ;;  %v465_v17 = vpop.permute.xlu1 %464 }
 0x206   :  { %v551_v19 = vsel %vm525_vm3, %v512_v16, %v465_v17 }
 0x208   :  { %v432_v20 = vpop.permute.xlu0 %431 }
 0x209   :  { %v515_v22 = vsel %vm474_vm2, %v16401_v18, %v432_v20  ;;  %v467_v25 = vpop.permute.xlu1 %466  ;;  %v541_v18 = vsel %vm525_vm3, %v497_v53, %v455_v24 }
 0x20a   :  { %14273 = vmatmul.mubr.msk.bf16.gmra.mrb[24].mxu0 %vm569_vm4, %v539_v7  ;;  %v553_v27 = vsel %vm525_vm3, %v515_v22, %v467_v25 }
 0x20b   :  { %14276 = vmatprep.mubr.msk.bf16.mxu0 %vm15824_vm0, %v19526_v0 }
 0x20c   :  { %v434_v12 = vpop.permute.xlu0 %433 }
 0x20d   :  { %v518_v29 = vsel %vm474_vm2, %v16407_v21, %v434_v12  ;;  %v469_v30 = vpop.permute.xlu1 %468 }
 0x20e   :  { %v555_v32 = vsel %vm525_vm3, %v518_v29, %v469_v30 }
 0x210   :  { %v436_v33 = vpop.permute.xlu0 %435 }
 0x211   :  { %v521_v34 = vsel %vm474_vm2, %v16413_v26, %v436_v33  ;;  %v471_v35 = vpop.permute.xlu1 %470  ;;  %v14934_v26 = vld [vmem:[%s19645_s1] sm:$0xff]  }
 0x212   :  { %14277 = vmatmul.mubr.msk.bf16.gmra.mrb[28].mxu0 %vm569_vm4, %v541_v18  ;;  %v557_v36 = vsel %vm525_vm3, %v521_v34, %v471_v35  ;;  %14770 = vmatpush3.bf16.msra.mxu1 %v14934_v26 }
 0x213   :  { %14280 = vmatprep.mubr.msk.bf16.mxu0 %vm15824_vm0, %v19526_v0  ;;  %14317 = vmatpush3.bf16.msra.mxu0 %v14934_v26 }
 0x214   :  { %v438_v54 = vpop.permute.xlu0 %437  ;;  %14318 = vmatprep.subr.bf16.mxu0 %v19526_v0  ;;  %14765 = vmatprep.subr.bf16.mxu1 %v19526_v0 }
 0x215   :  { %v524_v21 = vsel %vm474_vm2, %v16419_v28, %v438_v54  ;;  %v473_v37 = vpop.permute.xlu1 %472  ;;  %v14935_v28 = vld [vmem:[%s19645_s1 + $0x8] sm:$0xff]  }
 0x216   :  { %v559_v38 = vsel %vm525_vm3, %v524_v21, %v473_v37  ;;  %14771 = vmatpush3.bf16.msra.mxu1 %v14935_v28 }
 0x217   :  { %14319 = vmatpush3.bf16.msra.mxu0 %v14935_v28  ;;  %14766 = vmatprep.subr.bf16.mxu1 %v19526_v0 }
 0x218   :  { %14320 = vmatprep.subr.bf16.mxu0 %v19526_v0 }
 0x21a   :  { %14281 = vmatmul.mubr.msk.bf16.gmra.mrb[32].mxu0 %vm569_vm4, %v543_v31  ;;  %14772 = vmatpush3.bf16.msra.mxu1 %v14936_v39 }
 0x21b   :  { %14284 = vmatprep.mubr.msk.bf16.mxu0 %vm15824_vm0, %v19526_v0  ;;  %14321 = vmatpush3.bf16.msra.mxu0 %v14936_v39 }
 0x21c   :  { %14322 = vmatprep.subr.bf16.mxu0 %v19526_v0  ;;  %14767 = vmatprep.subr.bf16.mxu1 %v19526_v0 }
 0x21e   :  { %14773 = vmatpush3.bf16.msra.mxu1 %v14937_v4 }
 0x21f   :  { %14323 = vmatpush3.bf16.msra.mxu0 %v14937_v4  ;;  %14768 = vmatprep.subr.bf16.mxu1 %v19526_v0 }
 0x220   :  { %14324 = vmatprep.subr.bf16.mxu0 %v19526_v0 }
 0x222   :  { %14285 = vmatmul.mubr.msk.bf16.gmra.mrb[36].mxu0 %vm569_vm4, %v545_v5  ;;  %14774 = vmatpush3.bf16.msra.mxu1 %v14938_v13 }
 0x223   :  { %14288 = vmatprep.mubr.msk.bf16.mxu0 %vm15824_vm0, %v19526_v0  ;;  %14325 = vmatpush3.bf16.msra.mxu0 %v14938_v13 }
 0x224   :  { %14326 = vmatprep.subr.bf16.mxu0 %v19526_v0  ;;  %14769 = vmatprep.subr.bf16.mxu1 %v19526_v0 }
 0x226   :  { %14775 = vmatpush3.bf16.msra.mxu1 %v14939_v40 }
 0x227   :  { %14327 = vmatpush3.bf16.msra.mxu0 %v14939_v40 }
 0x228   :  { %14396 = vmatprep.subr.bf16.mxu0 %v19526_v0 }
 0x22a   :  { %14289 = vmatmul.mubr.msk.bf16.gmra.mrb[40].mxu0 %vm569_vm4, %v547_v9 }
 0x22b   :  { %14292 = vmatprep.mubr.msk.bf16.mxu0 %vm15824_vm0, %v19526_v0 }
 0x232   :  { %14293 = vmatmul.mubr.msk.bf16.gmra.mrb[44].mxu0 %vm569_vm4, %v549_v15 }
 0x233   :  { %14296 = vmatprep.mubr.msk.bf16.mxu0 %vm15824_vm0, %v19526_v0 }
 0x23a   :  { %14297 = vmatmul.mubr.msk.bf16.gmra.mrb[48].mxu0 %vm569_vm4, %v551_v19 }
 0x23b   :  { %14300 = vmatprep.mubr.msk.bf16.mxu0 %vm15824_vm0, %v19526_v0 }
 0x242   :  { %14301 = vmatmul.mubr.msk.bf16.gmra.mrb[52].mxu0 %vm569_vm4, %v553_v27 }
 0x243   :  { %14304 = vmatprep.mubr.msk.bf16.mxu0 %vm15824_vm0, %v19526_v0 }
 0x24a   :  { %14305 = vmatmul.mubr.msk.bf16.gmra.mrb[56].mxu0 %vm569_vm4, %v555_v32 }
 0x24b   :  { %14308 = vmatprep.mubr.msk.bf16.mxu0 %vm15824_vm0, %v19526_v0 }
 0x252   :  { %14309 = vmatmul.mubr.msk.bf16.gmra.mrb[60].mxu0 %vm569_vm4, %v557_v36 }
 0x253   :  { %14312 = vmatprep.mubr.msk.bf16.mxu0 %vm15824_vm0, %v19526_v0 }
 0x25a   :  { %14313 = vmatmul.mubr.msk.bf16.gmra.mrb[64].mxu0 %vm569_vm4, %v559_v38 }
 0x25b   :  { %14328 = vmatprep.mubr.msk.bf16.mxu0 %vm15824_vm0, %v19526_v0 }
 0x2ad   :  { %v641_v42 = vpop.f32.mrb[0].mxu0 }
 0x2ae   :  { %v783_v45 = vmul.f32 %v16560_v41, %v641_v42  ;;  %v14250_v46 = vpop.f32.mrb[1].mxu0 }
 0x2af   :  { %v644_v47 = vpop.f32.mrb[2].mxu0 }
 0x2b0   :  { %v16566_v48 = vadd.f32 %v16562_v44, %v783_v45  ;;  %v784_v23 = vmul.f32 %v16560_v41, %v644_v47  ;;  %v14251_v49 = vpop.f32.mrb[3].mxu0 }
 0x2b2   :  { %v16570_v50 = vadd.f32 %v16562_v44, %v784_v23  ;;  %v19521_v52 = vmax.f32 %v16566_v48, 0.0 }
 0x2b4   :  { %v19520_v55 = vmax.f32 %v16570_v50, 0.0 }
 0x2b5   :  { %v649_v24 = vpop.f32.mrb[4].mxu0 }
 0x2b6   :  { %v785_v56 = vmul.f32 %v16560_v41, %v649_v24  ;;  %v14254_v58 = vpop.f32.mrb[5].mxu0  ;;  %v16579_v59 = vpack.c.bf16 %v19520_v55, %v19521_v52 }
 0x2b7   :  { %v652_v61 = vpop.f32.mrb[6].mxu0 }
 0x2b8   :  { %v16582_v31 = vadd.f32 %v16562_v44, %v785_v56  ;;  %v786_v62 = vmul.f32 %v16560_v41, %v652_v61  ;;  %975 = vrot.lane.b32.xlu0 %v16579_v59, %s15807_s29  ;;  %v14255_v63 = vpop.f32.mrb[7].mxu0  ;;  %v938_v60 = vrot.slane %v16579_v59, 4 }
 0x2ba   :  { %v16588_v2 = vadd.f32 %v16562_v44, %v786_v62  ;;  %v19519_v3 = vmax.f32 %v16582_v31, 0.0 }
 0x2bc   :  { %v19516_v5 = vmax.f32 %v16588_v2, 0.0 }
 0x2bd   :  { %v657_v43 = vpop.f32.mrb[8].mxu0 }
 0x2be   :  { %v787_v57 = vmul.f32 %v16560_v41, %v657_v43  ;;  %v14258_v6 = vpop.f32.mrb[9].mxu0  ;;  %v905_v8 = vpack.c.bf16 %v19516_v5, %v19519_v3 }
 0x2bf   :  { %v660_v9 = vpop.f32.mrb[10].mxu0 }
 0x2c0   :  { %v16599_v10 = vadd.f32 %v16562_v44, %v787_v57  ;;  %v788_v11 = vmul.f32 %v16560_v41, %v660_v9  ;;  %977 = vrot.lane.b32.xlu0 %v905_v8, %s15807_s29  ;;  %v939_v14 = vrot.slane %v905_v8, 4  ;;  %v14259_v15 = vpop.f32.mrb[11].mxu0 }
 0x2c2   :  { %v16604_v51 = vadd.f32 %v16562_v44, %v788_v11  ;;  %v16609_v1 = vsel %vm365_vm1, %v938_v60, %v939_v14  ;;  %v19515_v16 = vmax.f32 %v16599_v10, 0.0 }
 0x2c3   :  { %1010 = vrot.lane.b32.xlu1 %v16609_v1, %s15812_s20 }
 0x2c4   :  { %v19514_v17 = vmax.f32 %v16604_v51, 0.0 }
 0x2c5   :  { %v665_v19 = vpop.f32.mrb[12].mxu0 }
 0x2c6   :  { %v789_v7 = vmul.f32 %v16560_v41, %v665_v19  ;;  %v14262_v20 = vpop.f32.mrb[13].mxu0  ;;  %v906_v22 = vpack.c.bf16 %v19514_v17, %v19515_v16 }
 0x2c7   :  { %v668_v25 = vpop.f32.mrb[14].mxu0 }
 0x2c8   :  { %v16621_v27 = vadd.f32 %v16562_v44, %v789_v7  ;;  %v790_v53 = vmul.f32 %v16560_v41, %v668_v25  ;;  %979 = vrot.lane.b32.xlu0 %v906_v22, %s15807_s29  ;;  %v941_v12 = vrot.slane %v906_v22, 4  ;;  %v14263_v29 = vpop.f32.mrb[15].mxu0 }
 0x2ca   :  { %v16626_v30 = vadd.f32 %v16562_v44, %v790_v53  ;;  %v16629_v32 = vsel %vm365_vm1, %v939_v14, %v941_v12  ;;  %v19511_v18 = vmax.f32 %v16621_v27, 0.0 }
 0x2cb   :  { %1012 = vrot.lane.b32.xlu1 %v16629_v32, %s15812_s20 }
 0x2cc   :  { %v19510_v33 = vmax.f32 %v16626_v30, 0.0 }
 0x2cd   :  { %v673_v34 = vpop.f32.mrb[16].mxu0 }
 0x2ce   :  { %v791_v35 = vmul.f32 %v16560_v41, %v673_v34  ;;  %v14266_v36 = vpop.f32.mrb[17].mxu0  ;;  %v907_v54 = vpack.c.bf16 %v19510_v33, %v19511_v18 }
 0x2cf   :  { %v676_v21 = vpop.f32.mrb[18].mxu0 }
 0x2d0   :  { %v16641_v37 = vadd.f32 %v16562_v44, %v791_v35  ;;  %v792_v38 = vmul.f32 %v16560_v41, %v676_v21  ;;  %981 = vrot.lane.b32.xlu0 %v907_v54, %s15807_s29  ;;  %v943_v26 = vrot.slane %v907_v54, 4  ;;  %v14267_v28 = vpop.f32.mrb[19].mxu0 }
 0x2d2   :  { %19646 = vst [vmem:[#allocation43_spill] sm:$0xff] %v16641_v37  ;;  %v16646_v39 = vadd.f32 %v16562_v44, %v792_v38  ;;  %v16649_v4 = vsel %vm365_vm1, %v941_v12, %v943_v26  ;;  %v19509_v13 = vmax.f32 %v16641_v37, 0.0 }
 0x2d3   :  { %1014 = vrot.lane.b32.xlu1 %v16649_v4, %s15812_s20 }
 0x2d4   :  { %19647 = vst [vmem:[#allocation44_spill] sm:$0xff] %v16646_v39  ;;  %v19506_v40 = vmax.f32 %v16646_v39, 0.0 }
 0x2d5   :  { %v681_v42 = vpop.f32.mrb[20].mxu0 }
 0x2d6   :  { %v793_v45 = vmul.f32 %v16560_v41, %v681_v42  ;;  %v14270_v46 = vpop.f32.mrb[21].mxu0  ;;  %v908_v47 = vpack.c.bf16 %v19506_v40, %v19509_v13 }
 0x2d7   :  { %v684_v23 = vpop.f32.mrb[22].mxu0 }
 0x2d8   :  { %v16661_v49 = vadd.f32 %v16562_v44, %v793_v45  ;;  %v794_v24 = vmul.f32 %v16560_v41, %v684_v23  ;;  %983 = vrot.lane.b32.xlu0 %v908_v47, %s15807_s29  ;;  %v945_v56 = vrot.slane %v908_v47, 4  ;;  %v14271_v58 = vpop.f32.mrb[23].mxu0 }
 0x2da   :  { %19648 = vst [vmem:[#allocation45_spill] sm:$0xff] %v16661_v49  ;;  %v16666_v61 = vadd.f32 %v16562_v44, %v794_v24  ;;  %v16669_v62 = vsel %vm365_vm1, %v943_v26, %v945_v56  ;;  %v19505_v63 = vmax.f32 %v16661_v49, 0.0 }
 0x2db   :  { %1016 = vrot.lane.b32.xlu1 %v16669_v62, %s15812_s20 }
 0x2dc   :  { %19649 = vst [vmem:[#allocation46_spill] sm:$0xff] %v16666_v61  ;;  %v19504_v43 = vmax.f32 %v16666_v61, 0.0 }
 0x2dd   :  { %v689_v57 = vpop.f32.mrb[24].mxu0 }
 0x2de   :  { %v795_v6 = vmul.f32 %v16560_v41, %v689_v57  ;;  %v14274_v8 = vpop.f32.mrb[25].mxu0  ;;  %v909_v9 = vpack.c.bf16 %v19504_v43, %v19505_v63 }
 0x2df   :  { %v692_v11 = vpop.f32.mrb[26].mxu0 }
 0x2e0   :  { %v16681_v14 = vadd.f32 %v16562_v44, %v795_v6  ;;  %v796_v15 = vmul.f32 %v16560_v41, %v692_v11  ;;  %985 = vrot.lane.b32.xlu0 %v909_v9, %s15807_s29  ;;  %v947_v19 = vrot.slane %v909_v9, 4  ;;  %v14275_v7 = vpop.f32.mrb[27].mxu0 }
 0x2e2   :  { %19650 = vst [vmem:[#allocation47_spill] sm:$0xff] %v16681_v14  ;;  %v16686_v20 = vadd.f32 %v16562_v44, %v796_v15  ;;  %v16689_v22 = vsel %vm365_vm1, %v945_v56, %v947_v19  ;;  %v19501_v25 = vmax.f32 %v16681_v14, 0.0 }
 0x2e3   :  { %1018 = vrot.lane.b32.xlu1 %v16689_v22, %s15812_s20 }
 0x2e4   :  { %19651 = vst [vmem:[#allocation48_spill] sm:$0xff] %v16686_v20  ;;  %v19500_v53 = vmax.f32 %v16686_v20, 0.0 }
 0x2e5   :  { %v697_v12 = vpop.f32.mrb[28].mxu0 }
 0x2e6   :  { %v797_v29 = vmul.f32 %v16560_v41, %v697_v12  ;;  %v14278_v34 = vpop.f32.mrb[29].mxu0  ;;  %v910_v35 = vpack.c.bf16 %v19500_v53, %v19501_v25 }
 0x2e7   :  { %v700_v36 = vpop.f32.mrb[30].mxu0 }
 0x2e8   :  { %v16701_v54 = vadd.f32 %v16562_v44, %v797_v29  ;;  %v798_v21 = vmul.f32 %v16560_v41, %v700_v36  ;;  %987 = vrot.lane.b32.xlu0 %v910_v35, %s15807_s29  ;;  %v949_v38 = vrot.slane %v910_v35, 4  ;;  %v14279_v26 = vpop.f32.mrb[31].mxu0 }
 0x2ea   :  { %19652 = vst [vmem:[#allocation49_spill] sm:$0xff] %v16701_v54  ;;  %v16706_v28 = vadd.f32 %v16562_v44, %v798_v21  ;;  %v16709_v42 = vsel %vm365_vm1, %v947_v19, %v949_v38  ;;  %v19499_v45 = vmax.f32 %v16701_v54, 0.0 }
 0x2eb   :  { %1020 = vrot.lane.b32.xlu1 %v16709_v42, %s15812_s20 }
 0x2ec   :  { %19653 = vst [vmem:[#allocation50_spill] sm:$0xff] %v16706_v28  ;;  %v19496_v46 = vmax.f32 %v16706_v28, 0.0 }
 0x2ed   :  { %v705_v47 = vpop.f32.mrb[32].mxu0 }
 0x2ee   :  { %v799_v23 = vmul.f32 %v16560_v41, %v705_v47  ;;  %v14282_v24 = vpop.f32.mrb[33].mxu0  ;;  %v911_v56 = vpack.c.bf16 %v19496_v46, %v19499_v45 }
 0x2ef   :  { %v708_v58 = vpop.f32.mrb[34].mxu0 }
 0x2f0   :  { %v16721_v57 = vadd.f32 %v16562_v44, %v799_v23  ;;  %v800_v6 = vmul.f32 %v16560_v41, %v708_v58  ;;  %989 = vrot.lane.b32.xlu0 %v911_v56, %s15807_s29  ;;  %v951_v8 = vrot.slane %v911_v56, 4  ;;  %v14283_v9 = vpop.f32.mrb[35].mxu0 }
 0x2f2   :  { %19654 = vst [vmem:[#allocation51_spill] sm:$0xff] %v16721_v57  ;;  %v16726_v11 = vadd.f32 %v16562_v44, %v800_v6  ;;  %v16729_v15 = vsel %vm365_vm1, %v949_v38, %v951_v8  ;;  %v19495_v19 = vmax.f32 %v16721_v57, 0.0 }
 0x2f3   :  { %1022 = vrot.lane.b32.xlu1 %v16729_v15, %s15812_s20 }
 0x2f4   :  { %19655 = vst [vmem:[#allocation52_spill] sm:$0xff] %v16726_v11  ;;  %v19494_v7 = vmax.f32 %v16726_v11, 0.0 }
 0x2f5   :  { %v713_v12 = vpop.f32.mrb[36].mxu0 }
 0x2f6   :  { %v801_v29 = vmul.f32 %v16560_v41, %v713_v12  ;;  %v14286_v34 = vpop.f32.mrb[37].mxu0  ;;  %v912_v35 = vpack.c.bf16 %v19494_v7, %v19495_v19 }
 0x2f7   :  { %v716_v36 = vpop.f32.mrb[38].mxu0 }
 0x2f8   :  { %v16741_v21 = vadd.f32 %v16562_v44, %v801_v29  ;;  %v802_v38 = vmul.f32 %v16560_v41, %v716_v36  ;;  %991 = vrot.lane.b32.xlu0 %v912_v35, %s15807_s29  ;;  %v953_v26 = vrot.slane %v912_v35, 4  ;;  %v14287_v47 = vpop.f32.mrb[39].mxu0 }
 0x2fa   :  { %19656 = vst [vmem:[#allocation53_spill] sm:$0xff] %v16741_v21  ;;  %v16746_v23 = vadd.f32 %v16562_v44, %v802_v38  ;;  %v16749_v24 = vsel %vm365_vm1, %v951_v8, %v953_v26  ;;  %v19493_v56 = vmax.f32 %v16741_v21, 0.0 }
 0x2fb   :  { %1024 = vrot.lane.b32.xlu1 %v16749_v24, %s15812_s20 }
 0x2fc   :  { %19657 = vst [vmem:[#allocation54_spill] sm:$0xff] %v16746_v23  ;;  %v19492_v58 = vmax.f32 %v16746_v23, 0.0 }
 0x2fd   :  { %v721_v6 = vpop.f32.mrb[40].mxu0 }
 0x2fe   :  { %v803_v9 = vmul.f32 %v16560_v41, %v721_v6  ;;  %v14290_v12 = vpop.f32.mrb[41].mxu0  ;;  %v913_v29 = vpack.c.bf16 %v19492_v58, %v19493_v56 }
 0x2ff   :  { %v724_v34 = vpop.f32.mrb[42].mxu0 }
 0x300   :  { %v16761_v8 = vadd.f32 %v16562_v44, %v803_v9  ;;  %v804_v35 = vmul.f32 %v16560_v41, %v724_v34  ;;  %993 = vrot.lane.b32.xlu0 %v913_v29, %s15807_s29  ;;  %v955_v36 = vrot.slane %v913_v29, 4  ;;  %v14291_v38 = vpop.f32.mrb[43].mxu0 }
 0x302   :  { %19658 = vst [vmem:[#allocation55_spill] sm:$0xff] %v16761_v8  ;;  %v16766_v47 = vadd.f32 %v16562_v44, %v804_v35  ;;  %v16769_v6 = vsel %vm365_vm1, %v953_v26, %v955_v36  ;;  %v19498_v12 = vmax.f32 %v16761_v8, 0.0 }
 0x303   :  { %1026 = vrot.lane.b32.xlu1 %v16769_v6, %s15812_s20 }
 0x304   :  { %19659 = vst [vmem:[#allocation56_spill] sm:$0xff] %v16766_v47  ;;  %v19497_v9 = vmax.f32 %v16766_v47, 0.0 }
 0x305   :  { %v729_v58 = vpop.f32.mrb[44].mxu0 }
 0x306   :  { %v805_v34 = vmul.f32 %v16560_v41, %v729_v58  ;;  %v14294_v56 = vpop.f32.mrb[45].mxu0  ;;  %v914_v29 = vpack.c.bf16 %v19497_v9, %v19498_v12 }
 0x307   :  { %v732_v35 = vpop.f32.mrb[46].mxu0 }
 0x308   :  { %v16781_v26 = vadd.f32 %v16562_v44, %v805_v34  ;;  %v806_v38 = vmul.f32 %v16560_v41, %v732_v35  ;;  %995 = vrot.lane.b32.xlu0 %v914_v29, %s15807_s29  ;;  %v957_v7 = vrot.slane %v914_v29, 4  ;;  %v14295_v19 = vpop.f32.mrb[47].mxu0 }
 0x30a   :  { %19660 = vst [vmem:[#allocation57_spill] sm:$0xff] %v16781_v26  ;;  %v16786_v46 = vadd.f32 %v16562_v44, %v806_v38  ;;  %v16789_v56 = vsel %vm365_vm1, %v955_v36, %v957_v7  ;;  %v19503_v58 = vmax.f32 %v16781_v26, 0.0 }
 0x30b   :  { %1028 = vrot.lane.b32.xlu1 %v16789_v56, %s15812_s20 }
 0x30c   :  { %19661 = vst [vmem:[#allocation58_spill] sm:$0xff] %v16786_v46  ;;  %v19502_v34 = vmax.f32 %v16786_v46, 0.0 }
 0x30d   :  { %v737_v9 = vpop.f32.mrb[48].mxu0 }
 0x30e   :  { %v807_v35 = vmul.f32 %v16560_v41, %v737_v9  ;;  %v14298_v12 = vpop.f32.mrb[49].mxu0  ;;  %v915_v19 = vpack.c.bf16 %v19502_v34, %v19503_v58 }
 0x30f   :  { %v740_v29 = vpop.f32.mrb[50].mxu0 }
 0x310   :  { %v16801_v36 = vadd.f32 %v16562_v44, %v807_v35  ;;  %v808_v38 = vmul.f32 %v16560_v41, %v740_v29  ;;  %997 = vrot.lane.b32.xlu0 %v915_v19, %s15807_s29  ;;  %v959_v45 = vrot.slane %v915_v19, 4  ;;  %v14299_v53 = vpop.f32.mrb[51].mxu0 }
 0x312   :  { %19662 = vst [vmem:[#allocation59_spill] sm:$0xff] %v16801_v36  ;;  %v16806_v25 = vadd.f32 %v16562_v44, %v808_v38  ;;  %v16809_v12 = vsel %vm365_vm1, %v957_v7, %v959_v45  ;;  %v19508_v9 = vmax.f32 %v16801_v36, 0.0 }
 0x313   :  { %1030 = vrot.lane.b32.xlu1 %v16809_v12, %s15812_s20 }
 0x314   :  { %19663 = vst [vmem:[#allocation60_spill] sm:$0xff] %v16806_v25  ;;  %v19507_v35 = vmax.f32 %v16806_v25, 0.0 }
 0x315   :  { %v745_v34 = vpop.f32.mrb[52].mxu0 }
 0x316   :  { %v809_v29 = vmul.f32 %v16560_v41, %v745_v34  ;;  %v14302_v58 = vpop.f32.mrb[53].mxu0  ;;  %v916_v53 = vpack.c.bf16 %v19507_v35, %v19508_v9 }
 0x317   :  { %v748_v19 = vpop.f32.mrb[54].mxu0 }
 0x318   :  { %v16821_v7 = vadd.f32 %v16562_v44, %v809_v29  ;;  %v810_v38 = vmul.f32 %v16560_v41, %v748_v19  ;;  %999 = vrot.lane.b32.xlu0 %v916_v53, %s15807_s29  ;;  %v961_v43 = vrot.slane %v916_v53, 4  ;;  %v14303_v63 = vpop.f32.mrb[55].mxu0 }
 0x31a   :  { %19664 = vst [vmem:[#allocation61_spill] sm:$0xff] %v16821_v7  ;;  %v16826_v40 = vadd.f32 %v16562_v44, %v810_v38  ;;  %v16829_v58 = vsel %vm365_vm1, %v959_v45, %v961_v43  ;;  %v19513_v34 = vmax.f32 %v16821_v7, 0.0 }
 0x31b   :  { %1032 = vrot.lane.b32.xlu1 %v16829_v58, %s15812_s20 }
 0x31c   :  { %19665 = vst [vmem:[#allocation62_spill] sm:$0xff] %v16826_v40  ;;  %v19512_v29 = vmax.f32 %v16826_v40, 0.0 }
 0x31d   :  { %v753_v35 = vpop.f32.mrb[56].mxu0 }
 0x31e   :  { %v811_v19 = vmul.f32 %v16560_v41, %v753_v35  ;;  %v14306_v9 = vpop.f32.mrb[57].mxu0  ;;  %v917_v63 = vpack.c.bf16 %v19512_v29, %v19513_v34 }
 0x31f   :  { %v756_v53 = vpop.f32.mrb[58].mxu0 }
 0x320   :  { %v16841_v45 = vadd.f32 %v16562_v44, %v811_v19  ;;  %v812_v38 = vmul.f32 %v16560_v41, %v756_v53  ;;  %1001 = vrot.lane.b32.xlu0 %v917_v63, %s15807_s29  ;;  %v963_v13 = vrot.slane %v917_v63, 4  ;;  %v14307_v33 = vpop.f32.mrb[59].mxu0 }
 0x322   :  { %19666 = vst [vmem:[#allocation63_spill] sm:$0xff] %v16841_v45  ;;  %v16846_v18 = vadd.f32 %v16562_v44, %v812_v38  ;;  %v16849_v9 = vsel %vm365_vm1, %v961_v43, %v963_v13  ;;  %v19518_v35 = vmax.f32 %v16841_v45, 0.0 }
 0x323   :  { %1034 = vrot.lane.b32.xlu1 %v16849_v9, %s15812_s20 }
 0x324   :  { %19667 = vst [vmem:[#allocation64_spill] sm:$0xff] %v16846_v18  ;;  %v19517_v19 = vmax.f32 %v16846_v18, 0.0 }
 0x325   :  { %v761_v29 = vpop.f32.mrb[60].mxu0 }
 0x326   :  { %v813_v53 = vmul.f32 %v16560_v41, %v761_v29  ;;  %v14310_v34 = vpop.f32.mrb[61].mxu0  ;;  %v918_v33 = vpack.c.bf16 %v19517_v19, %v19518_v35 }
 0x327   :  { %v764_v63 = vpop.f32.mrb[62].mxu0 }
 0x328   :  { %v16861_v43 = vadd.f32 %v16562_v44, %v813_v53  ;;  %v814_v38 = vmul.f32 %v16560_v41, %v764_v63  ;;  %1003 = vrot.lane.b32.xlu0 %v918_v33, %s15807_s29  ;;  %v965_v17 = vrot.slane %v918_v33, 4  ;;  %v14311_v16 = vpop.f32.mrb[63].mxu0 }
 0x32a   :  { %19668 = vst [vmem:[#allocation65_spill] sm:$0xff] %v16861_v43  ;;  %v16866_v5 = vadd.f32 %v16562_v44, %v814_v38  ;;  %v16869_v34 = vsel %vm365_vm1, %v963_v13, %v965_v17  ;;  %v19525_v29 = vmax.f32 %v16861_v43, 0.0  ;;  %v976_v52 = vpop.permute.xlu0 %975 }
 0x32b   :  { %1036 = vrot.lane.b32.xlu1 %v16869_v34, %s15812_s20 }
 0x32c   :  { %19669 = vst [vmem:[#allocation66_spill] sm:$0xff] %v16866_v5  ;;  %v19524_v53 = vmax.f32 %v16866_v5, 0.0 }
 0x32d   :  { %v769_v19 = vpop.f32.mrb[64].mxu0 }
 0x32e   :  { %v815_v63 = vmul.f32 %v16560_v41, %v769_v19  ;;  %v14314_v35 = vpop.f32.mrb[65].mxu0  ;;  %v919_v16 = vpack.c.bf16 %v19524_v53, %v19525_v29 }
 0x32f   :  { %v772_v33 = vpop.f32.mrb[66].mxu0 }
 0x330   :  { %v16881_v13 = vadd.f32 %v16562_v44, %v815_v63  ;;  %v816_v38 = vmul.f32 %v16560_v41, %v772_v33  ;;  %1005 = vrot.lane.b32.xlu0 %v919_v16, %s15807_s29  ;;  %v967_v3 = vrot.slane %v919_v16, 4  ;;  %v14315_v55 = vpop.f32.mrb[67].mxu0  ;;  %v972_v41 = vsel %vm365_vm1, 0, %v938_v60 }
 0x331   :  { %v1046_v16 = vsel %vm1044_vm5, %v972_v41, %v976_v52 }
 0x332   :  { %19670 = vst [vmem:[#allocation67_spill] sm:$0xff] %v16881_v13  ;;  %v16886_v19 = vadd.f32 %v16562_v44, %v816_v38  ;;  %v16889_v35 = vsel %vm365_vm1, %v965_v17, %v967_v3  ;;  %v19523_v63 = vmax.f32 %v16881_v13, 0.0  ;;  %v978_v60 = vpop.permute.xlu0 %977 }
 0x333   :  { %1038 = vrot.lane.b32.xlu1 %v16889_v35, %s15812_s20  ;;  %v1049_v52 = vsel %vm1044_vm5, %v16609_v1, %v978_v60 }
 0x334   :  { %19671 = vst [vmem:[#allocation68_spill] sm:$0xff] %v16886_v19  ;;  %v19522_v55 = vmax.f32 %v16886_v19, 0.0 }
 0x335   :  { %v1011_v44 = vpop.permute.xlu1 %1010 }
 0x336   :  { %v1097_v33 = vsel %vm1095_vm6, %v1046_v16, %v1011_v44  ;;  %v920_v17 = vpack.c.bf16 %v19522_v55, %v19523_v63 }
 0x337   :  { %14329 = vmatmul.mubr.msk.bf16.vlgmr.msra.gmra.mrb[68].mxu0 %vm1166_vm7, %v1097_v33 }
 0x338   :  { %1007 = vrot.lane.b32.xlu0 %v920_v17, %s15807_s29  ;;  %v969_v59 = vrot.slane %v920_v17, 4  ;;  %14332 = vmatprep.mubr.msk.bf16.mxu0 %vm15824_vm0, %v19526_v0 }
 0x33a   :  { %v16909_v38 = vsel %vm365_vm1, %v967_v3, %v969_v59  ;;  %v974_v44 = vsel %vm365_vm1, %v969_v59, 0  ;;  %v980_v3 = vpop.permute.xlu0 %979 }
 0x33b   :  { %1040 = vrot.lane.b32.xlu1 %v16909_v38, %s15812_s20  ;;  %v1052_v33 = vsel %vm1044_vm5, %v16629_v32, %v980_v3 }
 0x33d   :  { %v1013_v41 = vpop.permute.xlu1 %1012 }
 0x33e   :  { %v1099_v16 = vsel %vm1095_vm6, %v1049_v52, %v1013_v41 }
 0x33f   :  { %14333 = vmatmul.mubr.msk.bf16.gmra.mrb[72].mxu0 %vm1166_vm7, %v1099_v16  ;;  %1042 = vrot.lane.b32.xlu1 %v974_v44, %s15812_s20 }
 0x340   :  { %14336 = vmatprep.mubr.msk.bf16.mxu0 %vm15824_vm0, %v19526_v0 }
 0x342   :  { %v982_v1 = vpop.permute.xlu0 %981 }
 0x343   :  { %v1055_v59 = vsel %vm1044_vm5, %v16649_v4, %v982_v1 }
 0x345   :  { %v1015_v17 = vpop.permute.xlu1 %1014 }
 0x346   :  { %v1101_v55 = vsel %vm1095_vm6, %v1052_v33, %v1015_v17 }
 0x347   :  { %14337 = vmatmul.mubr.msk.bf16.gmra.mrb[76].mxu0 %vm1166_vm7, %v1101_v55 }
 0x348   :  { %14340 = vmatprep.mubr.msk.bf16.mxu0 %vm15824_vm0, %v19526_v0 }
 0x34a   :  { %v984_v32 = vpop.permute.xlu0 %983 }
 0x34b   :  { %v1058_v41 = vsel %vm1044_vm5, %v16669_v62, %v984_v32 }
 0x34d   :  { %v1017_v60 = vpop.permute.xlu1 %1016 }
 0x34e   :  { %v1103_v52 = vsel %vm1095_vm6, %v1055_v59, %v1017_v60 }
 0x34f   :  { %14341 = vmatmul.mubr.msk.bf16.gmra.mrb[80].mxu0 %vm1166_vm7, %v1103_v52 }
 0x350   :  { %14408 = vmatprep.mubr.msk.bf16.mxu0 %vm15824_vm0, %v19526_v0 }
 0x352   :  { %v986_v4 = vpop.permute.xlu0 %985 }
 0x353   :  { %v1061_v44 = vsel %vm1044_vm5, %v16689_v22, %v986_v4 }
 0x355   :  { %v1019_v55 = vpop.permute.xlu1 %1018 }
 0x356   :  { %v1105_v16 = vsel %vm1095_vm6, %v1058_v41, %v1019_v55 }
 0x357   :  { %14345 = vmatmul.mubr.msk.bf16.vlgmr.msra.gmra.mrb[0].mxu1 %vm1166_vm7, %v1105_v16 }
 0x358   :  { %14348 = vmatprep.mubr.msk.bf16.mxu1 %vm15824_vm0, %v19526_v0 }
 0x35a   :  { %v988_v62 = vpop.permute.xlu0 %987 }
 0x35b   :  { %v1064_v17 = vsel %vm1044_vm5, %v16709_v42, %v988_v62 }
 0x35d   :  { %v1021_v3 = vpop.permute.xlu1 %1020 }
 0x35e   :  { %v1107_v33 = vsel %vm1095_vm6, %v1061_v44, %v1021_v3 }
 0x35f   :  { %14349 = vmatmul.mubr.msk.bf16.gmra.mrb[4].mxu1 %vm1166_vm7, %v1107_v33 }
 0x360   :  { %14352 = vmatprep.mubr.msk.bf16.mxu1 %vm15824_vm0, %v19526_v0 }
 0x362   :  { %v990_v22 = vpop.permute.xlu0 %989 }
 0x363   :  { %v1067_v60 = vsel %vm1044_vm5, %v16729_v15, %v990_v22 }
 0x365   :  { %v1023_v1 = vpop.permute.xlu1 %1022 }
 0x366   :  { %v1109_v59 = vsel %vm1095_vm6, %v1064_v17, %v1023_v1 }
 0x367   :  { %14353 = vmatmul.mubr.msk.bf16.gmra.mrb[8].mxu1 %vm1166_vm7, %v1109_v59 }
 0x368   :  { %14356 = vmatprep.mubr.msk.bf16.mxu1 %vm15824_vm0, %v19526_v0 }
 0x36a   :  { %v992_v42 = vpop.permute.xlu0 %991 }
 0x36b   :  { %v1070_v41 = vsel %vm1044_vm5, %v16749_v24, %v992_v42 }
 0x36d   :  { %v1025_v52 = vpop.permute.xlu1 %1024 }
 0x36e   :  { %v1111_v32 = vsel %vm1095_vm6, %v1067_v60, %v1025_v52 }
 0x36f   :  { %14357 = vmatmul.mubr.msk.bf16.gmra.mrb[12].mxu1 %vm1166_vm7, %v1111_v32 }
 0x370   :  { %14360 = vmatprep.mubr.msk.bf16.mxu1 %vm15824_vm0, %v19526_v0 }
 0x372   :  { %v994_v15 = vpop.permute.xlu0 %993 }
 0x373   :  { %v1073_v4 = vsel %vm1044_vm5, %v16769_v6, %v994_v15 }
 0x375   :  { %v1027_v55 = vpop.permute.xlu1 %1026 }
 0x376   :  { %v1113_v16 = vsel %vm1095_vm6, %v1070_v41, %v1027_v55 }
 0x377   :  { %14361 = vmatmul.mubr.msk.bf16.gmra.mrb[16].mxu1 %vm1166_vm7, %v1113_v16 }
 0x378   :  { %14364 = vmatprep.mubr.msk.bf16.mxu1 %vm15824_vm0, %v19526_v0 }
 0x37a   :  { %v996_v24 = vpop.permute.xlu0 %995 }
 0x37b   :  { %v1076_v33 = vsel %vm1044_vm5, %v16789_v56, %v996_v24 }
 0x37d   :  { %v1029_v44 = vpop.permute.xlu1 %1028 }
 0x37e   :  { %v1115_v3 = vsel %vm1095_vm6, %v1073_v4, %v1029_v44 }
 0x37f   :  { %14365 = vmatmul.mubr.msk.bf16.gmra.mrb[20].mxu1 %vm1166_vm7, %v1115_v3 }
 0x380   :  { %14368 = vmatprep.mubr.msk.bf16.mxu1 %vm15824_vm0, %v19526_v0 }
 0x382   :  { %v998_v6 = vpop.permute.xlu0 %997 }
 0x383   :  { %v1079_v1 = vsel %vm1044_vm5, %v16809_v12, %v998_v6  ;;  %v14941_v6 = vld [vmem:[%s19672_s16 + $0x8] sm:$0xff]  }
 0x385   :  { %v1031_v62 = vpop.permute.xlu1 %1030 }
 0x386   :  { %v1117_v17 = vsel %vm1095_vm6, %v1076_v33, %v1031_v62 }
 0x387   :  { %14369 = vmatmul.mubr.msk.bf16.gmra.mrb[24].mxu1 %vm1166_vm7, %v1117_v17 }
 0x388   :  { %14372 = vmatprep.mubr.msk.bf16.mxu1 %vm15824_vm0, %v19526_v0 }
 0x38a   :  { %v1000_v56 = vpop.permute.xlu0 %999 }
 0x38b   :  { %v1082_v60 = vsel %vm1044_vm5, %v16829_v58, %v1000_v56  ;;  %v17026_v56 = vld [vmem:[#allocation10] ss:$0 sm:$0xff] }
 0x38d   :  { %v1033_v59 = vpop.permute.xlu1 %1032 }
 0x38e   :  { %v1119_v22 = vsel %vm1095_vm6, %v1079_v1, %v1033_v59  ;;  %v14943_v1 = vld [vmem:[%s19672_s16 + $0x18] sm:$0xff]   ;;  %v17024_v59 = vld [vmem:[#allocation8] ss:$0 sm:$0xff] }
 0x38f   :  { %14373 = vmatmul.mubr.msk.bf16.gmra.mrb[28].mxu1 %vm1166_vm7, %v1119_v22 }
 0x390   :  { %14376 = vmatprep.mubr.msk.bf16.mxu1 %vm15824_vm0, %v19526_v0 }
 0x392   :  { %v1002_v12 = vpop.permute.xlu0 %1001 }
 0x393   :  { %v1085_v42 = vsel %vm1044_vm5, %v16849_v9, %v1002_v12 }
 0x395   :  { %v1035_v52 = vpop.permute.xlu1 %1034 }
 0x396   :  { %v1121_v32 = vsel %vm1095_vm6, %v1082_v60, %v1035_v52 }
 0x397   :  { %14377 = vmatmul.mubr.msk.bf16.gmra.mrb[32].mxu1 %vm1166_vm7, %v1121_v32  ;;  %v14944_v32 = vld [vmem:[%s19672_s16 + $0x20] sm:$0xff]  }
 0x398   :  { %14380 = vmatprep.mubr.msk.bf16.mxu1 %vm15824_vm0, %v19526_v0 }
 0x39a   :  { %v1004_v58 = vpop.permute.xlu0 %1003 }
 0x39b   :  { %v1088_v16 = vsel %vm1044_vm5, %v16869_v34, %v1004_v58 }
 0x39d   :  { %v1037_v41 = vpop.permute.xlu1 %1036 }
 0x39e   :  { %v1123_v55 = vsel %vm1095_vm6, %v1085_v42, %v1037_v41 }
 0x39f   :  { %14381 = vmatmul.mubr.msk.bf16.gmra.mrb[36].mxu1 %vm1166_vm7, %v1123_v55 }
 0x3a0   :  { %14384 = vmatprep.mubr.msk.bf16.mxu1 %vm15824_vm0, %v19526_v0 }
 0x3a2   :  { %v1006_v9 = vpop.permute.xlu0 %1005 }
 0x3a3   :  { %v1091_v44 = vsel %vm1044_vm5, %v16889_v35, %v1006_v9  ;;  %v14940_v35 = vld [vmem:[%s19672_s16] sm:$0xff]  }
 0x3a4   :  { %14397 = vmatpush3.bf16.msra.mxu0 %v14940_v35 }
 0x3a5   :  { %v1039_v15 = vpop.permute.xlu1 %1038  ;;  %14398 = vmatprep.subr.bf16.mxu0 %v19526_v0 }
 0x3a6   :  { %v1125_v4 = vsel %vm1095_vm6, %v1088_v16, %v1039_v15  ;;  %v14945_v16 = vld [vmem:[%s19672_s16 + $0x28] sm:$0xff]  }
 0x3a7   :  { %14385 = vmatmul.mubr.msk.bf16.gmra.mrb[40].mxu1 %vm1166_vm7, %v1125_v4 }
 0x3a8   :  { %14388 = vmatprep.mubr.msk.bf16.mxu1 %vm15824_vm0, %v19526_v0  ;;  %14399 = vmatpush3.bf16.msra.mxu0 %v14941_v6 }
 0x3a9   :  { %14400 = vmatprep.subr.bf16.mxu0 %v19526_v0 }
 0x3aa   :  { %v1008_v34 = vpop.permute.xlu0 %1007 }
 0x3ab   :  { %v1094_v62 = vsel %vm1044_vm5, %v16909_v38, %v1008_v34  ;;  %v14942_v38 = vld [vmem:[%s19672_s16 + $0x10] sm:$0xff]  }
 0x3ac   :  { %14401 = vmatpush3.bf16.msra.mxu0 %v14942_v38 }
 0x3ad   :  { %v1041_v3 = vpop.permute.xlu1 %1040  ;;  %14402 = vmatprep.subr.bf16.mxu0 %v19526_v0 }
 0x3ae   :  { %v1127_v24 = vsel %vm1095_vm6, %v1091_v44, %v1041_v3 }
 0x3af   :  { %14389 = vmatmul.mubr.msk.bf16.gmra.mrb[44].mxu1 %vm1166_vm7, %v1127_v24 }
 0x3b0   :  { %14392 = vmatprep.mubr.msk.bf16.mxu1 %vm15824_vm0, %v19526_v0  ;;  %14403 = vmatpush3.bf16.msra.mxu0 %v14943_v1 }
 0x3b1   :  { %v1043_v33 = vpop.permute.xlu1 %1042  ;;  %14404 = vmatprep.subr.bf16.mxu0 %v19526_v0 }
 0x3b2   :  { %v1129_v17 = vsel %vm1095_vm6, %v1094_v62, %v1043_v33 }
 0x3b4   :  { %14405 = vmatpush3.bf16.msra.mxu0 %v14944_v32 }
 0x3b5   :  { %14406 = vmatprep.subr.bf16.mxu0 %v19526_v0 }
 0x3b7   :  { %14393 = vmatmul.mubr.msk.bf16.gmra.mrb[48].mxu1 %vm1166_vm7, %v1129_v17 }
 0x3b8   :  { %14407 = vmatpush3.bf16.msra.mxu0 %v14945_v16 }
 0x3b9   :  { %14572 = vmatprep.subr.bf16.mxu0 %v19526_v0 }
 0x40a   :  { %v1235_v22 = vpop.f32.mrb[68].mxu0 }
 0x40b   :  { %v1377_v60 = vmul.f32 %v17024_v59, %v1235_v22  ;;  %v14330_v52 = vpop.f32.mrb[69].mxu0 }
 0x40c   :  { %v1238_v12 = vpop.f32.mrb[70].mxu0 }
 0x40d   :  { %v1418_v42 = vadd.f32 %v17026_v56, %v1377_v60  ;;  %v1378_v41 = vmul.f32 %v17024_v59, %v1238_v12  ;;  %v14331_v55 = vpop.f32.mrb[71].mxu0 }
 0x40f   :  { %v1419_v58 = vadd.f32 %v17026_v56, %v1378_v41  ;;  %v1452_v15 = vmax.f32 %v1418_v42, 0.0 }
 0x411   :  { %v1453_v4 = vmax.f32 %v1419_v58, 0.0 }
 0x412   :  { %v1243_v9 = vpop.f32.mrb[72].mxu0 }
 0x413   :  { %v1379_v44 = vmul.f32 %v17024_v59, %v1243_v9  ;;  %v14334_v3 = vpop.f32.mrb[73].mxu0  ;;  %v17042_v24 = vpack.c.bf16 %v1453_v4, %v1452_v15 }
 0x414   :  { %v1246_v34 = vpop.f32.mrb[74].mxu0 }
 0x415   :  { %v1420_v33 = vadd.f32 %v17026_v56, %v1379_v44  ;;  %v1380_v62 = vmul.f32 %v17024_v59, %v1246_v34  ;;  %1569 = vrot.lane.b32.xlu0 %v17042_v24, %s15807_s29  ;;  %v14335_v17 = vpop.f32.mrb[75].mxu0  ;;  %v19528_v12 = vrot.slane %v17042_v24, 4 }
 0x417   :  { %v1421_v35 = vadd.f32 %v17026_v56, %v1380_v62  ;;  %v1454_v6 = vmax.f32 %v1420_v33, 0.0 }
 0x419   :  { %v1455_v38 = vmax.f32 %v1421_v35, 0.0 }
 0x41a   :  { %v1251_v1 = vpop.f32.mrb[76].mxu0 }
 0x41b   :  { %v1381_v22 = vmul.f32 %v17024_v59, %v1251_v1  ;;  %v14338_v60 = vpop.f32.mrb[77].mxu0  ;;  %v1499_v52 = vpack.c.bf16 %v1455_v38, %v1454_v6 }
 0x41c   :  { %v1254_v32 = vpop.f32.mrb[78].mxu0 }
 0x41d   :  { %v1422_v42 = vadd.f32 %v17026_v56, %v1381_v22  ;;  %v1382_v41 = vmul.f32 %v17024_v59, %v1254_v32  ;;  %1571 = vrot.lane.b32.xlu0 %v1499_v52, %s15807_s29  ;;  %v1533_v55 = vrot.slane %v1499_v52, 4  ;;  %v14339_v58 = vpop.f32.mrb[79].mxu0 }
 0x41f   :  { %v1423_v16 = vadd.f32 %v17026_v56, %v1382_v41  ;;  %v17058_v15 = vsel %vm365_vm1, %v19528_v12, %v1533_v55  ;;  %v1456_v4 = vmax.f32 %v1422_v42, 0.0 }
 0x420   :  { %1604 = vrot.lane.b32.xlu1 %v17058_v15, %s15812_s20 }
 0x421   :  { %v1457_v9 = vmax.f32 %v1423_v16, 0.0 }
 0x422   :  { %v1259_v44 = vpop.f32.mrb[80].mxu0 }
 0x423   :  { %v1383_v3 = vmul.f32 %v17024_v59, %v1259_v44  ;;  %v14342_v34 = vpop.f32.mrb[81].mxu0  ;;  %v1500_v33 = vpack.c.bf16 %v1457_v9, %v1456_v4 }
 0x424   :  { %v1262_v62 = vpop.f32.mrb[82].mxu0 }
 0x425   :  { %v1424_v17 = vadd.f32 %v17026_v56, %v1383_v3  ;;  %v1384_v35 = vmul.f32 %v17024_v59, %v1262_v62  ;;  %1573 = vrot.lane.b32.xlu0 %v1500_v33, %s15807_s29  ;;  %v1535_v6 = vrot.slane %v1500_v33, 4  ;;  %v14343_v38 = vpop.f32.mrb[83].mxu0 }
 0x427   :  { %v1425_v1 = vadd.f32 %v17026_v56, %v1384_v35  ;;  %v17068_v22 = vsel %vm365_vm1, %v1533_v55, %v1535_v6  ;;  %v1458_v60 = vmax.f32 %v1424_v17, 0.0 }
 0x428   :  { %1606 = vrot.lane.b32.xlu1 %v17068_v22, %s15812_s20 }
 0x429   :  { %v1459_v52 = vmax.f32 %v1425_v1, 0.0 }
 0x42a   :  { %v1267_v32 = vpop.f32.mrb[0].mxu1 }
 0x42b   :  { %v1385_v42 = vmul.f32 %v17024_v59, %v1267_v32  ;;  %v14346_v41 = vpop.f32.mrb[1].mxu1  ;;  %v1501_v58 = vpack.c.bf16 %v1459_v52, %v1458_v60 }
 0x42c   :  { %v1270_v16 = vpop.f32.mrb[2].mxu1 }
 0x42d   :  { %v1426_v4 = vadd.f32 %v17026_v56, %v1385_v42  ;;  %v1386_v9 = vmul.f32 %v17024_v59, %v1270_v16  ;;  %v14347_v44 = vpop.f32.mrb[3].mxu1  ;;  %1575 = vrot.lane.b32.xlu0 %v1501_v58, %s15807_s29  ;;  %v1537_v55 = vrot.slane %v1501_v58, 4 }
 0x42f   :  { %v1427_v3 = vadd.f32 %v17026_v56, %v1386_v9  ;;  %v17078_v34 = vsel %vm365_vm1, %v1535_v6, %v1537_v55  ;;  %v1460_v33 = vmax.f32 %v1426_v4, 0.0 }
 0x430   :  { %1608 = vrot.lane.b32.xlu1 %v17078_v34, %s15812_s20 }
 0x431   :  { %v1461_v62 = vmax.f32 %v1427_v3, 0.0 }
 0x432   :  { %v1275_v17 = vpop.f32.mrb[4].mxu1 }
 0x433   :  { %v1387_v35 = vmul.f32 %v17024_v59, %v1275_v17  ;;  %v14350_v38 = vpop.f32.mrb[5].mxu1  ;;  %v1502_v1 = vpack.c.bf16 %v1461_v62, %v1460_v33 }
 0x434   :  { %v1278_v60 = vpop.f32.mrb[6].mxu1 }
 0x435   :  { %v1428_v52 = vadd.f32 %v17026_v56, %v1387_v35  ;;  %v1388_v32 = vmul.f32 %v17024_v59, %v1278_v60  ;;  %v14351_v42 = vpop.f32.mrb[7].mxu1  ;;  %v1539_v41 = vrot.slane %v1502_v1, 4  ;;  %1577 = vrot.lane.b32.xlu0 %v1502_v1, %s15807_s29 }
 0x437   :  { %v1429_v6 = vadd.f32 %v17026_v56, %v1388_v32  ;;  %v17088_v58 = vsel %vm365_vm1, %v1537_v55, %v1539_v41  ;;  %v1462_v16 = vmax.f32 %v1428_v52, 0.0 }
 0x438   :  { %1610 = vrot.lane.b32.xlu1 %v17088_v58, %s15812_s20 }
 0x439   :  { %v1463_v4 = vmax.f32 %v1429_v6, 0.0 }
 0x43a   :  { %v1283_v9 = vpop.f32.mrb[8].mxu1 }
 0x43b   :  { %v1389_v44 = vmul.f32 %v17024_v59, %v1283_v9  ;;  %v14354_v3 = vpop.f32.mrb[9].mxu1  ;;  %v1503_v33 = vpack.c.bf16 %v1463_v4, %v1462_v16 }
 0x43c   :  { %v1286_v62 = vpop.f32.mrb[10].mxu1 }
 0x43d   :  { %v1430_v17 = vadd.f32 %v17026_v56, %v1389_v44  ;;  %v1390_v35 = vmul.f32 %v17024_v59, %v1286_v62  ;;  %v14355_v38 = vpop.f32.mrb[11].mxu1  ;;  %v1541_v1 = vrot.slane %v1503_v33, 4  ;;  %1579 = vrot.lane.b32.xlu0 %v1503_v33, %s15807_s29 }
 0x43f   :  { %v1431_v55 = vadd.f32 %v17026_v56, %v1390_v35  ;;  %v17098_v60 = vsel %vm365_vm1, %v1539_v41, %v1541_v1  ;;  %v1464_v52 = vmax.f32 %v1430_v17, 0.0 }
 0x440   :  { %1612 = vrot.lane.b32.xlu1 %v17098_v60, %s15812_s20 }
 0x441   :  { %v1465_v32 = vmax.f32 %v1431_v55, 0.0 }
 0x442   :  { %v1291_v42 = vpop.f32.mrb[12].mxu1 }
 0x443   :  { %v1391_v6 = vmul.f32 %v17024_v59, %v1291_v42  ;;  %v14358_v16 = vpop.f32.mrb[13].mxu1  ;;  %v1504_v4 = vpack.c.bf16 %v1465_v32, %v1464_v52 }
 0x444   :  { %v1294_v9 = vpop.f32.mrb[14].mxu1 }
 0x445   :  { %v1432_v44 = vadd.f32 %v17026_v56, %v1391_v6  ;;  %v1392_v3 = vmul.f32 %v17024_v59, %v1294_v9  ;;  %v14359_v33 = vpop.f32.mrb[15].mxu1  ;;  %v1543_v62 = vrot.slane %v1504_v4, 4  ;;  %1581 = vrot.lane.b32.xlu0 %v1504_v4, %s15807_s29 }
 0x447   :  { %v1433_v41 = vadd.f32 %v17026_v56, %v1392_v3  ;;  %v17108_v35 = vsel %vm365_vm1, %v1541_v1, %v1543_v62  ;;  %v1466_v17 = vmax.f32 %v1432_v44, 0.0 }
 0x448   :  { %1614 = vrot.lane.b32.xlu1 %v17108_v35, %s15812_s20 }
 0x449   :  { %v1467_v38 = vmax.f32 %v1433_v41, 0.0 }
 0x44a   :  { %v1299_v55 = vpop.f32.mrb[16].mxu1 }
 0x44b   :  { %v1393_v52 = vmul.f32 %v17024_v59, %v1299_v55  ;;  %v14362_v32 = vpop.f32.mrb[17].mxu1  ;;  %v1505_v42 = vpack.c.bf16 %v1467_v38, %v1466_v17 }
 0x44c   :  { %v1302_v6 = vpop.f32.mrb[18].mxu1 }
 0x44d   :  { %v1434_v16 = vadd.f32 %v17026_v56, %v1393_v52  ;;  %v1394_v4 = vmul.f32 %v17024_v59, %v1302_v6  ;;  %v14363_v9 = vpop.f32.mrb[19].mxu1  ;;  %v1545_v3 = vrot.slane %v1505_v42, 4  ;;  %1583 = vrot.lane.b32.xlu0 %v1505_v42, %s15807_s29 }
 0x44f   :  { %v1435_v1 = vadd.f32 %v17026_v56, %v1394_v4  ;;  %v17118_v33 = vsel %vm365_vm1, %v1543_v62, %v1545_v3  ;;  %v1468_v44 = vmax.f32 %v1434_v16, 0.0 }
 0x450   :  { %1616 = vrot.lane.b32.xlu1 %v17118_v33, %s15812_s20 }
 0x451   :  { %v1469_v41 = vmax.f32 %v1435_v1, 0.0 }
 0x452   :  { %v1307_v17 = vpop.f32.mrb[20].mxu1 }
 0x453   :  { %v1395_v38 = vmul.f32 %v17024_v59, %v1307_v17  ;;  %v14366_v55 = vpop.f32.mrb[21].mxu1  ;;  %v1506_v52 = vpack.c.bf16 %v1469_v41, %v1468_v44 }
 0x454   :  { %v1310_v32 = vpop.f32.mrb[22].mxu1 }
 0x455   :  { %v1436_v6 = vadd.f32 %v17026_v56, %v1395_v38  ;;  %v1396_v42 = vmul.f32 %v17024_v59, %v1310_v32  ;;  %v14367_v9 = vpop.f32.mrb[23].mxu1  ;;  %v1547_v4 = vrot.slane %v1506_v52, 4  ;;  %1585 = vrot.lane.b32.xlu0 %v1506_v52, %s15807_s29 }
 0x457   :  { %v1437_v62 = vadd.f32 %v17026_v56, %v1396_v42  ;;  %v17128_v63 = vsel %vm365_vm1, %v1545_v3, %v1547_v4  ;;  %v1470_v16 = vmax.f32 %v1436_v6, 0.0 }
 0x458   :  { %1618 = vrot.lane.b32.xlu1 %v17128_v63, %s15812_s20 }
 0x459   :  { %v1471_v1 = vmax.f32 %v1437_v62, 0.0 }
 0x45a   :  { %v1315_v44 = vpop.f32.mrb[24].mxu1 }
 0x45b   :  { %v1397_v41 = vmul.f32 %v17024_v59, %v1315_v44  ;;  %v14370_v17 = vpop.f32.mrb[25].mxu1  ;;  %v1507_v38 = vpack.c.bf16 %v1471_v1, %v1470_v16 }
 0x45c   :  { %v1318_v55 = vpop.f32.mrb[26].mxu1 }
 0x45d   :  { %v1438_v32 = vadd.f32 %v17026_v56, %v1397_v41  ;;  %v1398_v52 = vmul.f32 %v17024_v59, %v1318_v55  ;;  %v14371_v9 = vpop.f32.mrb[27].mxu1  ;;  %v1549_v42 = vrot.slane %v1507_v38, 4  ;;  %1587 = vrot.lane.b32.xlu0 %v1507_v38, %s15807_s29 }
 0x45f   :  { %v1439_v3 = vadd.f32 %v17026_v56, %v1398_v52  ;;  %v17138_v53 = vsel %vm365_vm1, %v1547_v4, %v1549_v42  ;;  %v1472_v6 = vmax.f32 %v1438_v32, 0.0 }
 0x460   :  { %1620 = vrot.lane.b32.xlu1 %v17138_v53, %s15812_s20 }
 0x461   :  { %v1473_v62 = vmax.f32 %v1439_v3, 0.0 }
 0x462   :  { %v1323_v16 = vpop.f32.mrb[28].mxu1 }
 0x463   :  { %v1399_v1 = vmul.f32 %v17024_v59, %v1323_v16  ;;  %v14374_v44 = vpop.f32.mrb[29].mxu1  ;;  %v1508_v41 = vpack.c.bf16 %v1473_v62, %v1472_v6 }
 0x464   :  { %v1326_v17 = vpop.f32.mrb[30].mxu1 }
 0x465   :  { %v1440_v55 = vadd.f32 %v17026_v56, %v1399_v1  ;;  %v1400_v38 = vmul.f32 %v17024_v59, %v1326_v17  ;;  %v14375_v9 = vpop.f32.mrb[31].mxu1  ;;  %v1551_v52 = vrot.slane %v1508_v41, 4  ;;  %1589 = vrot.lane.b32.xlu0 %v1508_v41, %s15807_s29 }
 0x467   :  { %v1441_v4 = vadd.f32 %v17026_v56, %v1400_v38  ;;  %v17148_v29 = vsel %vm365_vm1, %v1549_v42, %v1551_v52  ;;  %v1474_v32 = vmax.f32 %v1440_v55, 0.0 }
 0x468   :  { %1622 = vrot.lane.b32.xlu1 %v17148_v29, %s15812_s20 }
 0x469   :  { %v1475_v3 = vmax.f32 %v1441_v4, 0.0 }
 0x46a   :  { %v1331_v6 = vpop.f32.mrb[32].mxu1 }
 0x46b   :  { %v1401_v62 = vmul.f32 %v17024_v59, %v1331_v6  ;;  %v14378_v16 = vpop.f32.mrb[33].mxu1  ;;  %v1509_v1 = vpack.c.bf16 %v1475_v3, %v1474_v32 }
 0x46c   :  { %v1334_v44 = vpop.f32.mrb[34].mxu1 }
 0x46d   :  { %v1442_v17 = vadd.f32 %v17026_v56, %v1401_v62  ;;  %v1402_v41 = vmul.f32 %v17024_v59, %v1334_v44  ;;  %v14379_v9 = vpop.f32.mrb[35].mxu1  ;;  %v1553_v38 = vrot.slane %v1509_v1, 4  ;;  %1591 = vrot.lane.b32.xlu0 %v1509_v1, %s15807_s29 }
 0x46f   :  { %v1443_v42 = vadd.f32 %v17026_v56, %v1402_v41  ;;  %v17158_v0 = vsel %vm365_vm1, %v1551_v52, %v1553_v38  ;;  %v1476_v55 = vmax.f32 %v1442_v17, 0.0 }
 0x470   :  { %1624 = vrot.lane.b32.xlu1 %v17158_v0, %s15812_s20 }
 0x471   :  { %v1477_v4 = vmax.f32 %v1443_v42, 0.0 }
 0x472   :  { %v1339_v32 = vpop.f32.mrb[36].mxu1 }
 0x473   :  { %v1403_v3 = vmul.f32 %v17024_v59, %v1339_v32  ;;  %v14382_v6 = vpop.f32.mrb[37].mxu1  ;;  %v1510_v62 = vpack.c.bf16 %v1477_v4, %v1476_v55 }
 0x474   :  { %v1342_v16 = vpop.f32.mrb[38].mxu1 }
 0x475   :  { %v1444_v44 = vadd.f32 %v17026_v56, %v1403_v3  ;;  %v1404_v1 = vmul.f32 %v17024_v59, %v1342_v16  ;;  %v14383_v9 = vpop.f32.mrb[39].mxu1  ;;  %v1555_v41 = vrot.slane %v1510_v62, 4  ;;  %1593 = vrot.lane.b32.xlu0 %v1510_v62, %s15807_s29 }
 0x477   :  { %v1445_v52 = vadd.f32 %v17026_v56, %v1404_v1  ;;  %v17168_v12 = vsel %vm365_vm1, %v1553_v38, %v1555_v41  ;;  %v1478_v17 = vmax.f32 %v1444_v44, 0.0 }
 0x478   :  { %1626 = vrot.lane.b32.xlu1 %v17168_v12, %s15812_s20 }
 0x479   :  { %v1479_v42 = vmax.f32 %v1445_v52, 0.0 }
 0x47a   :  { %v1347_v55 = vpop.f32.mrb[40].mxu1 }
 0x47b   :  { %v1405_v4 = vmul.f32 %v17024_v59, %v1347_v55  ;;  %v14386_v32 = vpop.f32.mrb[41].mxu1  ;;  %v1511_v3 = vpack.c.bf16 %v1479_v42, %v1478_v17 }
 0x47c   :  { %v1350_v6 = vpop.f32.mrb[42].mxu1 }
 0x47d   :  { %v1446_v16 = vadd.f32 %v17026_v56, %v1405_v4  ;;  %v1406_v62 = vmul.f32 %v17024_v59, %v1350_v6  ;;  %v14387_v9 = vpop.f32.mrb[43].mxu1  ;;  %v1557_v1 = vrot.slane %v1511_v3, 4  ;;  %1595 = vrot.lane.b32.xlu0 %v1511_v3, %s15807_s29 }
 0x47f   :  { %v1447_v38 = vadd.f32 %v17026_v56, %v1406_v62  ;;  %v17178_v19 = vsel %vm365_vm1, %v1555_v41, %v1557_v1  ;;  %v1480_v44 = vmax.f32 %v1446_v16, 0.0 }
 0x480   :  { %1628 = vrot.lane.b32.xlu1 %v17178_v19, %s15812_s20 }
 0x481   :  { %v1481_v52 = vmax.f32 %v1447_v38, 0.0 }
 0x482   :  { %v1355_v17 = vpop.f32.mrb[44].mxu1 }
 0x483   :  { %v1407_v42 = vmul.f32 %v17024_v59, %v1355_v17  ;;  %v14390_v55 = vpop.f32.mrb[45].mxu1  ;;  %v1512_v4 = vpack.c.bf16 %v1481_v52, %v1480_v44 }
 0x484   :  { %v1358_v32 = vpop.f32.mrb[46].mxu1 }
 0x485   :  { %v1448_v6 = vadd.f32 %v17026_v56, %v1407_v42  ;;  %v1408_v3 = vmul.f32 %v17024_v59, %v1358_v32  ;;  %v14391_v9 = vpop.f32.mrb[47].mxu1  ;;  %v1559_v62 = vrot.slane %v1512_v4, 4  ;;  %1597 = vrot.lane.b32.xlu0 %v1512_v4, %s15807_s29 }
 0x487   :  { %v1449_v41 = vadd.f32 %v17026_v56, %v1408_v3  ;;  %v17188_v13 = vsel %vm365_vm1, %v1557_v1, %v1559_v62  ;;  %v1482_v16 = vmax.f32 %v1448_v6, 0.0  ;;  %v1570_v3 = vpop.permute.xlu0 %1569 }
 0x488   :  { %1630 = vrot.lane.b32.xlu1 %v17188_v13, %s15812_s20 }
 0x489   :  { %v1483_v38 = vmax.f32 %v1449_v41, 0.0  ;;  %v19673_v41 = vrot.slane %v17042_v24, 4 }
 0x48a   :  { %v1363_v44 = vpop.f32.mrb[48].mxu1 }
 0x48b   :  { %v1409_v52 = vmul.f32 %v17024_v59, %v1363_v44  ;;  %v14394_v17 = vpop.f32.mrb[49].mxu1  ;;  %v1513_v42 = vpack.c.bf16 %v1483_v38, %v1482_v16  ;;  %v1566_v16 = vsel %vm365_vm1, 0, %v19673_v41 }
 0x48c   :  { %v1366_v55 = vpop.f32.mrb[50].mxu1 }
 0x48d   :  { %v1450_v32 = vadd.f32 %v17026_v56, %v1409_v52  ;;  %v1410_v4 = vmul.f32 %v17024_v59, %v1366_v55  ;;  %v14395_v9 = vpop.f32.mrb[51].mxu1  ;;  %1599 = vrot.lane.b32.xlu0 %v1513_v42, %s15807_s29  ;;  %v1561_v1 = vrot.slane %v1513_v42, 4  ;;  %v1639_v59 = vsel %vm1044_vm5, %v1566_v16, %v1570_v3 }
 0x48f   :  { %v1451_v5 = vadd.f32 %v17026_v56, %v1410_v4  ;;  %v17198_v6 = vsel %vm365_vm1, %v1559_v62, %v1561_v1  ;;  %v1484_v38 = vmax.f32 %v1450_v32, 0.0  ;;  %v19674_v62 = vmov 0.0   ;;  %v1572_v55 = vpop.permute.xlu0 %1571 }
 0x490   :  { %1632 = vrot.lane.b32.xlu1 %v17198_v6, %s15812_s20 }
 0x491   :  { %v1485_v44 = vmax.f32 %v1451_v5, 0.0  ;;  %v1642_v5 = vsel %vm1044_vm5, %v17058_v15, %v1572_v55 }
 0x492   :  { %v1605_v52 = vpop.permute.xlu1 %1604 }
 0x493   :  { %v1689_v17 = vsel %vm1095_vm6, %v1639_v59, %v1605_v52  ;;  %v1514_v42 = vpack.c.bf16 %v1485_v44, %v1484_v38 }
 0x494   :  { %14409 = vmatmul.mubr.msk.bf16.vlgmr.msra.gmra.mrb[84].mxu0 %vm1166_vm7, %v1689_v17 }
 0x495   :  { %v1563_v56 = vrot.slane %v1514_v42, 4  ;;  %1601 = vrot.lane.b32.xlu0 %v1514_v42, %s15807_s29  ;;  %14412 = vmatprep.mubr.msk.bf16.mxu0 %vm15824_vm0, %v19674_v62 }
 0x497   :  { %v17212_v24 = vsel %vm365_vm1, %v1561_v1, %v1563_v56  ;;  %v1568_v9 = vsel %vm365_vm1, %v1563_v56, 0  ;;  %v1574_v1 = vpop.permute.xlu0 %1573 }
 0x498   :  { %1634 = vrot.lane.b32.xlu1 %v17212_v24, %s15812_s20  ;;  %v1645_v3 = vsel %vm1044_vm5, %v17068_v22, %v1574_v1 }
 0x49a   :  { %v1607_v32 = vpop.permute.xlu1 %1606 }
 0x49b   :  { %v1691_v4 = vsel %vm1095_vm6, %v1642_v5, %v1607_v32 }
 0x49c   :  { %14413 = vmatmul.mubr.msk.bf16.gmra.mrb[88].mxu0 %vm1166_vm7, %v1691_v4  ;;  %1636 = vrot.lane.b32.xlu1 %v1568_v9, %s15812_s20 }
 0x49d   :  { %14416 = vmatprep.mubr.msk.bf16.mxu0 %vm15824_vm0, %v19674_v62 }
 0x49f   :  { %v1576_v15 = vpop.permute.xlu0 %1575 }
 0x4a0   :  { %v1648_v38 = vsel %vm1044_vm5, %v17078_v34, %v1576_v15 }
 0x4a2   :  { %v1609_v41 = vpop.permute.xlu1 %1608 }
 0x4a3   :  { %v1693_v16 = vsel %vm1095_vm6, %v1645_v3, %v1609_v41 }
 0x4a4   :  { %14417 = vmatmul.mubr.msk.bf16.gmra.mrb[92].mxu0 %vm1166_vm7, %v1693_v16 }
 0x4a5   :  { %14420 = vmatprep.mubr.msk.bf16.mxu0 %vm15824_vm0, %v19674_v62 }
 0x4a7   :  { %v1578_v22 = vpop.permute.xlu0 %1577 }
 0x4a8   :  { %v1651_v52 = vsel %vm1044_vm5, %v17088_v58, %v1578_v22 }
 0x4aa   :  { %v1611_v44 = vpop.permute.xlu1 %1610 }
 0x4ab   :  { %v1695_v59 = vsel %vm1095_vm6, %v1648_v38, %v1611_v44 }
 0x4ac   :  { %14421 = vmatmul.mubr.msk.bf16.gmra.mrb[96].mxu0 %vm1166_vm7, %v1695_v59 }
 0x4ad   :  { %14424 = vmatprep.mubr.msk.bf16.mxu0 %vm15824_vm0, %v19674_v62 }
 0x4af   :  { %v1580_v34 = vpop.permute.xlu0 %1579 }
 0x4b0   :  { %v1654_v56 = vsel %vm1044_vm5, %v17098_v60, %v1580_v34 }
 0x4b2   :  { %v1613_v17 = vpop.permute.xlu1 %1612 }
 0x4b3   :  { %v1697_v42 = vsel %vm1095_vm6, %v1651_v52, %v1613_v17 }
 0x4b4   :  { %14425 = vmatmul.mubr.msk.bf16.gmra.mrb[100].mxu0 %vm1166_vm7, %v1697_v42 }
 0x4b5   :  { %14428 = vmatprep.mubr.msk.bf16.mxu0 %vm15824_vm0, %v19674_v62 }
 0x4b7   :  { %v1582_v58 = vpop.permute.xlu0 %1581 }
 0x4b8   :  { %v1657_v32 = vsel %vm1044_vm5, %v17108_v35, %v1582_v58 }
 0x4ba   :  { %v1615_v55 = vpop.permute.xlu1 %1614 }
 0x4bb   :  { %v1699_v5 = vsel %vm1095_vm6, %v1654_v56, %v1615_v55 }
 0x4bc   :  { %14429 = vmatmul.mubr.msk.bf16.gmra.mrb[104].mxu0 %vm1166_vm7, %v1699_v5 }
 0x4bd   :  { %14432 = vmatprep.mubr.msk.bf16.mxu0 %vm15824_vm0, %v19674_v62 }
 0x4bf   :  { %v1584_v60 = vpop.permute.xlu0 %1583 }
 0x4c0   :  { %v1660_v1 = vsel %vm1044_vm5, %v17118_v33, %v1584_v60 }
 0x4c2   :  { %v1617_v4 = vpop.permute.xlu1 %1616 }
 0x4c3   :  { %v1701_v9 = vsel %vm1095_vm6, %v1657_v32, %v1617_v4 }
 0x4c4   :  { %14433 = vmatmul.mubr.msk.bf16.gmra.mrb[108].mxu0 %vm1166_vm7, %v1701_v9 }
 0x4c5   :  { %14436 = vmatprep.mubr.msk.bf16.mxu0 %vm15824_vm0, %v19674_v62 }
 0x4c7   :  { %v1586_v35 = vpop.permute.xlu0 %1585 }
 0x4c8   :  { %v1663_v16 = vsel %vm1044_vm5, %v17128_v63, %v1586_v35 }
 0x4ca   :  { %v1619_v3 = vpop.permute.xlu1 %1618 }
 0x4cb   :  { %v1703_v41 = vsel %vm1095_vm6, %v1660_v1, %v1619_v3 }
 0x4cc   :  { %14437 = vmatmul.mubr.msk.bf16.gmra.mrb[112].mxu0 %vm1166_vm7, %v1703_v41 }
 0x4cd   :  { %14440 = vmatprep.mubr.msk.bf16.mxu0 %vm15824_vm0, %v19674_v62 }
 0x4cf   :  { %v1588_v33 = vpop.permute.xlu0 %1587 }
 0x4d0   :  { %v1666_v44 = vsel %vm1044_vm5, %v17138_v53, %v1588_v33  ;;  %v2179_v33 = vld [vmem:[%s19468_s10 + $0x8] sm:$0xff] }
 0x4d2   :  { %v1621_v15 = vpop.permute.xlu1 %1620 }
 0x4d3   :  { %v1705_v38 = vsel %vm1095_vm6, %v1663_v16, %v1621_v15 }
 0x4d4   :  { %14441 = vmatmul.mubr.msk.bf16.gmra.mrb[116].mxu0 %vm1166_vm7, %v1705_v38  ;;  %v2178_v38 = vld [vmem:[%s19468_s10] sm:$0xff] }
 0x4d5   :  { %14444 = vmatprep.mubr.msk.bf16.mxu0 %vm15824_vm0, %v19674_v62 }
 0x4d7   :  { %v1590_v63 = vpop.permute.xlu0 %1589 }
 0x4d8   :  { %v1669_v52 = vsel %vm1044_vm5, %v17148_v29, %v1590_v63  ;;  %v2180_v63 = vld [vmem:[%s19468_s10 + $0x10] sm:$0xff] }
 0x4da   :  { %v1623_v59 = vpop.permute.xlu1 %1622 }
 0x4db   :  { %v1707_v22 = vsel %vm1095_vm6, %v1666_v44, %v1623_v59  ;;  %v14748_v59 = vpack.c.bf16 %v2179_v33, %v2178_v38 }
 0x4dc   :  { %14445 = vmatmul.mubr.msk.bf16.gmra.mrb[120].mxu0 %vm1166_vm7, %v1707_v22 }
 0x4dd   :  { %14448 = vmatprep.mubr.msk.bf16.mxu0 %vm15824_vm0, %v19674_v62  ;;  %14749 = vmatprep.subr.bf16.mxu1 %v14748_v59 }
 0x4de   :  { %14751 = vmatpush3.bf16.msra.mxu1 %v14748_v59 }
 0x4df   :  { %v1592_v53 = vpop.permute.xlu0 %1591 }
 0x4e0   :  { %v1672_v34 = vsel %vm1044_vm5, %v17158_v0, %v1592_v53 }
 0x4e2   :  { %v1625_v17 = vpop.permute.xlu1 %1624 }
 0x4e3   :  { %v1709_v42 = vsel %vm1095_vm6, %v1669_v52, %v1625_v17  ;;  %v2181_v52 = vld [vmem:[%s19468_s10 + $0x18] sm:$0xff] }
 0x4e4   :  { %14449 = vmatmul.mubr.msk.bf16.gmra.mrb[124].mxu0 %vm1166_vm7, %v1709_v42  ;;  %v14752_v17 = vpack.c.bf16 %v2181_v52, %v2180_v63 }
 0x4e5   :  { %14452 = vmatprep.mubr.msk.bf16.mxu0 %vm15824_vm0, %v19674_v62 }
 0x4e6   :  { %14753 = vmatprep.subr.bf16.mxu1 %v14752_v17 }
 0x4e7   :  { %v1594_v29 = vpop.permute.xlu0 %1593  ;;  %14755 = vmatpush3.bf16.msra.mxu1 %v14752_v17 }
 0x4e8   :  { %v1675_v5 = vsel %vm1044_vm5, %v17168_v12, %v1594_v29 }
 0x4ea   :  { %v1627_v56 = vpop.permute.xlu1 %1626 }
 0x4eb   :  { %v1711_v55 = vsel %vm1095_vm6, %v1672_v34, %v1627_v56 }
 0x4ec   :  { %14453 = vmatmul.mubr.msk.bf16.gmra.mrb[128].mxu0 %vm1166_vm7, %v1711_v55 }
 0x4ed   :  { %14456 = vmatprep.mubr.msk.bf16.mxu0 %vm15824_vm0, %v19674_v62 }
 0x4ef   :  { %v1596_v0 = vpop.permute.xlu0 %1595 }
 0x4f0   :  { %v1678_v4 = vsel %vm1044_vm5, %v17178_v19, %v1596_v0 }
 0x4f2   :  { %v1629_v58 = vpop.permute.xlu1 %1628 }
 0x4f3   :  { %v1713_v32 = vsel %vm1095_vm6, %v1675_v5, %v1629_v58 }
 0x4f4   :  { %14457 = vmatmul.mubr.msk.bf16.gmra.mrb[132].mxu0 %vm1166_vm7, %v1713_v32 }
 0x4f5   :  { %14460 = vmatprep.mubr.msk.bf16.mxu0 %vm15824_vm0, %v19674_v62 }
 0x4f7   :  { %v1598_v12 = vpop.permute.xlu0 %1597 }
 0x4f8   :  { %v1681_v1 = vsel %vm1044_vm5, %v17188_v13, %v1598_v12 }
 0x4fa   :  { %v1631_v9 = vpop.permute.xlu1 %1630 }
 0x4fb   :  { %v1715_v60 = vsel %vm1095_vm6, %v1678_v4, %v1631_v9 }
 0x4fc   :  { %14461 = vmatmul.mubr.msk.bf16.gmra.mrb[136].mxu0 %vm1166_vm7, %v1715_v60 }
 0x4fd   :  { %14464 = vmatprep.mubr.msk.bf16.mxu0 %vm15824_vm0, %v19674_v62 }
 0x4ff   :  { %v1600_v19 = vpop.permute.xlu0 %1599 }
 0x500   :  { %v1684_v35 = vsel %vm1044_vm5, %v17198_v6, %v1600_v19 }
 0x502   :  { %v1633_v3 = vpop.permute.xlu1 %1632 }
 0x503   :  { %v1717_v41 = vsel %vm1095_vm6, %v1681_v1, %v1633_v3  ;;  %v17326_v3 = vld [vmem:[#allocation11] ss:$0 sm:$0xff] }
 0x504   :  { %14465 = vmatmul.mubr.msk.bf16.gmra.mrb[140].mxu0 %vm1166_vm7, %v1717_v41 }
 0x505   :  { %14468 = vmatprep.mubr.msk.bf16.mxu0 %vm15824_vm0, %v19674_v62 }
 0x507   :  { %v1602_v13 = vpop.permute.xlu0 %1601 }
 0x508   :  { %v1687_v6 = vsel %vm1044_vm5, %v17212_v24, %v1602_v13  ;;  %v17331_v13 = vld [vmem:[#allocation13] ss:$0 sm:$0xff] }
 0x50a   :  { %v1635_v16 = vpop.permute.xlu1 %1634 }
 0x50b   :  { %v1719_v15 = vsel %vm1095_vm6, %v1684_v35, %v1635_v16 }
 0x50c   :  { %14469 = vmatmul.mubr.msk.bf16.gmra.mrb[144].mxu0 %vm1166_vm7, %v1719_v15 }
 0x50d   :  { %14472 = vmatprep.mubr.msk.bf16.mxu0 %vm15824_vm0, %v19674_v62 }
 0x50e   :  { %v1637_v44 = vpop.permute.xlu1 %1636 }
 0x50f   :  { %v1721_v22 = vsel %vm1095_vm6, %v1687_v6, %v1637_v44 }
 0x514   :  { %14473 = vmatmul.mubr.msk.bf16.gmra.mrb[148].mxu0 %vm1166_vm7, %v1721_v22 }
 0x515   :  { %14584 = vmatprep.mubr.msk.bf16.mxu0 %vm15824_vm0, %v19674_v62 }
 0x567   :  { %v1826_v24 = vpop.f32.mrb[84].mxu0 }
 0x568   :  { %v14410_v42 = vpop.f32.mrb[85].mxu0  ;;  %v1968_v35 = vmul.f32 %v17326_v3, %v1826_v24 }
 0x569   :  { %v1829_v53 = vpop.f32.mrb[86].mxu0 }
 0x56a   :  { %v14411_v34 = vpop.f32.mrb[87].mxu0  ;;  %v1969_v41 = vmul.f32 %v17326_v3, %v1829_v53  ;;  %v17337_v59 = vadd.f32 %v17331_v13, %v1968_v35 }
 0x56c   :  { %v17334_v33 = vadd.f32 %v17331_v13, %v1969_v41  ;;  %v2043_v24 = vsel %vm1044_vm5, %v17337_v59, 0.0 }
 0x56e   :  { %v2044_v63 = vsel %vm1044_vm5, %v17334_v33, 0.0 }
 0x56f   :  { %v1834_v56 = vpop.f32.mrb[88].mxu0 }
 0x570   :  { %v14414_v55 = vpop.f32.mrb[89].mxu0  ;;  %v1970_v16 = vmul.f32 %v17326_v3, %v1834_v56  ;;  %v2045_v56 = vadd.f32 %v2044_v63, %v2043_v24 }
 0x571   :  { %v1837_v29 = vpop.f32.mrb[90].mxu0 }
 0x572   :  { %v14415_v5 = vpop.f32.mrb[91].mxu0  ;;  %v17340_v6 = vadd.f32 %v17331_v13, %v1970_v16  ;;  %v1971_v22 = vmul.f32 %v17326_v3, %v1837_v29 }
 0x574   :  { %v2046_v42 = vsel %vm1044_vm5, %v17340_v6, 0.0  ;;  %v17351_v53 = vadd.f32 %v17331_v13, %v1971_v22 }
 0x576   :  { %v2114_v57 = vsel %vm1044_vm5, %v17351_v53, -inf }
 0x577   :  { %v1842_v58 = vpop.f32.mrb[92].mxu0 }
 0x578   :  { %v14418_v32 = vpop.f32.mrb[93].mxu0  ;;  %v1972_v52 = vmul.f32 %v17326_v3, %v1842_v58  ;;  %v2047_v58 = vadd.f32 %v2046_v42, %v2045_v56 }
 0x579   :  { %v1845_v0 = vpop.f32.mrb[94].mxu0 }
 0x57a   :  { %v14419_v4 = vpop.f32.mrb[95].mxu0  ;;  %v17354_v29 = vadd.f32 %v17331_v13, %v1972_v52  ;;  %v1973_v5 = vmul.f32 %v17326_v3, %v1845_v0 }
 0x57b   :  { %v2048_v4 = vsel %vm1044_vm5, %v17351_v53, 0.0 }
 0x57c   :  { %v17363_v41 = vadd.f32 %v17331_v13, %v1973_v5  ;;  %v2049_v35 = vadd.f32 %v2048_v4, %v2047_v58  ;;  %v2115_v8 = vsel %vm1044_vm5, %v17354_v29, -inf }
 0x57e   :  { %v2052_v52 = vsel %vm1044_vm5, %v17363_v41, 0.0 }
 0x57f   :  { %v1850_v9 = vpop.f32.mrb[96].mxu0 }
 0x580   :  { %v14422_v60 = vpop.f32.mrb[97].mxu0 }
 0x581   :  { %v1853_v12 = vpop.f32.mrb[98].mxu0  ;;  %v1974_v60 = vmul.f32 %v17326_v3, %v1850_v9 }
 0x582   :  { %v14423_v1 = vpop.f32.mrb[99].mxu0  ;;  %v1975_v0 = vmul.f32 %v17326_v3, %v1853_v12 }
 0x583   :  { %v2050_v1 = vsel %vm1044_vm5, %v17354_v29, 0.0 }
 0x584   :  { %v2051_v22 = vadd.f32 %v2050_v1, %v2049_v35 }
 0x586   :  { %v2053_v56 = vadd.f32 %v2052_v52, %v2051_v22 }
 0x587   :  { %v1858_v19 = vpop.f32.mrb[100].mxu0 }
 0x588   :  { %v14426_v15 = vpop.f32.mrb[101].mxu0  ;;  %v1976_v9 = vmul.f32 %v17326_v3, %v1858_v19 }
 0x589   :  { %v1861_v38 = vpop.f32.mrb[102].mxu0  ;;  %v17366_v15 = vadd.f32 %v17331_v13, %v1974_v60 }
 0x58a   :  { %v14427_v44 = vpop.f32.mrb[103].mxu0  ;;  %v17378_v5 = vadd.f32 %v17331_v13, %v1976_v9  ;;  %v1977_v12 = vmul.f32 %v17326_v3, %v1861_v38 }
 0x58b   :  { %v2054_v42 = vsel %vm1044_vm5, %v17366_v15, 0.0  ;;  %v2119_v21 = vsel %vm1044_vm5, %v17366_v15, -inf }
 0x58c   :  { %v2058_v35 = vsel %vm1044_vm5, %v17378_v5, 0.0 }
 0x58f   :  { %v1866_v17 = vpop.f32.mrb[104].mxu0 }
 0x590   :  { %v14430_v34 = vpop.f32.mrb[105].mxu0  ;;  %v1978_v19 = vmul.f32 %v17326_v3, %v1866_v17 }
 0x591   :  { %v1869_v55 = vpop.f32.mrb[106].mxu0  ;;  %v17375_v34 = vadd.f32 %v17331_v13, %v1975_v0  ;;  %v17387_v0 = vadd.f32 %v17331_v13, %v1977_v12 }
 0x592   :  { %v14431_v32 = vpop.f32.mrb[107].mxu0  ;;  %v17390_v52 = vadd.f32 %v17331_v13, %v1978_v19  ;;  %v1979_v38 = vmul.f32 %v17326_v3, %v1869_v55 }
 0x593   :  { %v2055_v32 = vadd.f32 %v2054_v42, %v2053_v56  ;;  %v2056_v4 = vsel %vm1044_vm5, %v17375_v34, 0.0  ;;  %v2125_v54 = vsel %vm1044_vm5, %v17387_v0, -inf }
 0x594   :  { %19675 = vst [vmem:[#allocation69_spill] sm:$0xff] %v17390_v52  ;;  %v2062_v56 = vsel %vm1044_vm5, %v17390_v52, 0.0  ;;  %v17399_v12 = vadd.f32 %v17331_v13, %v1979_v38  ;;  %v2127_v20 = vsel %vm1044_vm5, %v17390_v52, -inf }
 0x595   :  { %v2057_v22 = vadd.f32 %v2056_v4, %v2055_v32 }
 0x596   :  { %19676 = vst [vmem:[#allocation70_spill] sm:$0xff] %v17399_v12 }
 0x597   :  { %v1874_v16 = vpop.f32.mrb[108].mxu0  ;;  %v2059_v9 = vadd.f32 %v2058_v35, %v2057_v22 }
 0x598   :  { %v14434_v44 = vpop.f32.mrb[109].mxu0  ;;  %v1980_v17 = vmul.f32 %v17326_v3, %v1874_v16  ;;  %v2064_v16 = vsel %vm1044_vm5, %v17399_v12, 0.0 }
 0x599   :  { %v1877_v63 = vpop.f32.mrb[110].mxu0 }
 0x59a   :  { %v14435_v24 = vpop.f32.mrb[111].mxu0  ;;  %v17402_v19 = vadd.f32 %v17331_v13, %v1980_v17  ;;  %v1981_v55 = vmul.f32 %v17326_v3, %v1877_v63 }
 0x59b   :  { %v2060_v24 = vsel %vm1044_vm5, %v17387_v0, 0.0 }
 0x59c   :  { %v2061_v32 = vadd.f32 %v2060_v24, %v2059_v9  ;;  %v2066_v43 = vsel %vm1044_vm5, %v17402_v19, 0.0  ;;  %v17411_v38 = vadd.f32 %v17331_v13, %v1981_v55 }
 0x59f   :  { %v1882_v58 = vpop.f32.mrb[112].mxu0 }
 0x5a0   :  { %v14438_v60 = vpop.f32.mrb[113].mxu0  ;;  %v1982_v22 = vmul.f32 %v17326_v3, %v1882_v58 }
 0x5a1   :  { %v1885_v1 = vpop.f32.mrb[114].mxu0 }
 0x5a2   :  { %v14439_v44 = vpop.f32.mrb[115].mxu0  ;;  %v17414_v17 = vadd.f32 %v17331_v13, %v1982_v22  ;;  %v1983_v63 = vmul.f32 %v17326_v3, %v1885_v1 }
 0x5a3   :  { %v2063_v44 = vadd.f32 %v2062_v56, %v2061_v32 }
 0x5a4   :  { %v2070_v55 = vsel %vm1044_vm5, %v17414_v17, 0.0 }
 0x5a5   :  { %v2065_v9 = vadd.f32 %v2064_v16, %v2063_v44  ;;  %v17423_v44 = vadd.f32 %v17331_v13, %v1983_v63 }
 0x5a7   :  { %v1890_v42 = vpop.f32.mrb[116].mxu0  ;;  %v2067_v56 = vadd.f32 %v2066_v43, %v2065_v9 }
 0x5a8   :  { %v14442_v60 = vpop.f32.mrb[117].mxu0  ;;  %v1984_v58 = vmul.f32 %v17326_v3, %v1890_v42 }
 0x5a9   :  { %v1893_v4 = vpop.f32.mrb[118].mxu0 }
 0x5aa   :  { %v14443_v35 = vpop.f32.mrb[119].mxu0  ;;  %v17426_v22 = vadd.f32 %v17331_v13, %v1984_v58  ;;  %v1985_v1 = vmul.f32 %v17326_v3, %v1893_v4 }
 0x5ab   :  { %v2068_v35 = vsel %vm1044_vm5, %v17411_v38, 0.0 }
 0x5ac   :  { %v2069_v16 = vadd.f32 %v2068_v35, %v2067_v56  ;;  %v2074_v40 = vsel %vm1044_vm5, %v17426_v22, 0.0  ;;  %v17435_v63 = vadd.f32 %v17331_v13, %v1985_v1 }
 0x5ae   :  { %v2071_v43 = vadd.f32 %v2070_v55, %v2069_v16  ;;  %v2076_v16 = vsel %vm1044_vm5, %v17435_v63, 0.0 }
 0x5af   :  { %v1898_v24 = vpop.f32.mrb[120].mxu0 }
 0x5b0   :  { %v14446_v60 = vpop.f32.mrb[121].mxu0  ;;  %v1986_v42 = vmul.f32 %v17326_v3, %v1898_v24 }
 0x5b1   :  { %v1901_v32 = vpop.f32.mrb[122].mxu0  ;;  %v2072_v60 = vsel %vm1044_vm5, %v17423_v44, 0.0 }
 0x5b2   :  { %v14447_v18 = vpop.f32.mrb[123].mxu0  ;;  %v2073_v35 = vadd.f32 %v2072_v60, %v2071_v43  ;;  %v17438_v58 = vadd.f32 %v17331_v13, %v1986_v42  ;;  %v1987_v4 = vmul.f32 %v17326_v3, %v1901_v32 }
 0x5b4   :  { %v2075_v55 = vadd.f32 %v2074_v40, %v2073_v35  ;;  %v2078_v7 = vsel %vm1044_vm5, %v17438_v58, 0.0  ;;  %v17447_v1 = vadd.f32 %v17331_v13, %v1987_v4 }
 0x5b6   :  { %v2077_v43 = vadd.f32 %v2076_v16, %v2075_v55 }
 0x5b7   :  { %v1906_v9 = vpop.f32.mrb[124].mxu0 }
 0x5b8   :  { %v14450_v18 = vpop.f32.mrb[125].mxu0  ;;  %v1988_v24 = vmul.f32 %v17326_v3, %v1906_v9  ;;  %v2079_v35 = vadd.f32 %v2078_v7, %v2077_v43  ;;  %v2080_v9 = vsel %vm1044_vm5, %v17447_v1, 0.0 }
 0x5b9   :  { %v1909_v45 = vpop.f32.mrb[126].mxu0 }
 0x5ba   :  { %v14451_v56 = vpop.f32.mrb[127].mxu0  ;;  %v17450_v42 = vadd.f32 %v17331_v13, %v1988_v24  ;;  %v1989_v40 = vmul.f32 %v17326_v3, %v1909_v45  ;;  %v2081_v55 = vadd.f32 %v2080_v9, %v2079_v35 }
 0x5bc   :  { %19677 = vst [vmem:[#allocation71_spill] sm:$0xff] %v17450_v42  ;;  %v2082_v36 = vsel %vm1044_vm5, %v17450_v42, 0.0  ;;  %v17459_v4 = vadd.f32 %v17331_v13, %v1989_v40 }
 0x5bd   :  { %v2083_v7 = vadd.f32 %v2082_v36, %v2081_v55 }
 0x5be   :  { %19678 = vst [vmem:[#allocation72_spill] sm:$0xff] %v17459_v4 }
 0x5bf   :  { %v1914_v18 = vpop.f32.mrb[128].mxu0 }
 0x5c0   :  { %v14454_v56 = vpop.f32.mrb[129].mxu0  ;;  %v1990_v25 = vmul.f32 %v17326_v3, %v1914_v18 }
 0x5c1   :  { %v1917_v60 = vpop.f32.mrb[130].mxu0 }
 0x5c2   :  { %v14455_v32 = vpop.f32.mrb[131].mxu0  ;;  %v17462_v24 = vadd.f32 %v17331_v13, %v1990_v25  ;;  %v1991_v45 = vmul.f32 %v17326_v3, %v1917_v60 }
 0x5c3   :  { %v2084_v32 = vsel %vm1044_vm5, %v17459_v4, 0.0 }
 0x5c4   :  { %v2086_v40 = vsel %vm1044_vm5, %v17462_v24, 0.0  ;;  %v17471_v35 = vadd.f32 %v17331_v13, %v1991_v45  ;;  %v2085_v9 = vadd.f32 %v2084_v32, %v2083_v7 }
 0x5c6   :  { %v2087_v36 = vadd.f32 %v2086_v40, %v2085_v9 }
 0x5c7   :  { %v1922_v16 = vpop.f32.mrb[132].mxu0 }
 0x5c8   :  { %v14458_v56 = vpop.f32.mrb[133].mxu0  ;;  %v1992_v18 = vmul.f32 %v17326_v3, %v1922_v16 }
 0x5c9   :  { %v1925_v43 = vpop.f32.mrb[134].mxu0  ;;  %v2088_v56 = vsel %vm1044_vm5, %v17471_v35, 0.0 }
 0x5ca   :  { %v14459_v46 = vpop.f32.mrb[135].mxu0  ;;  %v17474_v25 = vadd.f32 %v17331_v13, %v1992_v18  ;;  %v1993_v60 = vmul.f32 %v17326_v3, %v1925_v43  ;;  %v2089_v32 = vadd.f32 %v2088_v56, %v2087_v36 }
 0x5cc   :  { %v2090_v47 = vsel %vm1044_vm5, %v17474_v25, 0.0  ;;  %v17483_v45 = vadd.f32 %v17331_v13, %v1993_v60 }
 0x5cd   :  { %v2091_v40 = vadd.f32 %v2090_v47, %v2089_v32  ;;  %v2112_v47 = vsel %vm1044_vm5, %v17334_v33, -inf }
 0x5ce   :  { %v2092_v9 = vsel %vm1044_vm5, %v17483_v45, 0.0 }
 0x5cf   :  { %v1930_v55 = vpop.f32.mrb[136].mxu0  ;;  %v2093_v32 = vadd.f32 %v2092_v9, %v2091_v40  ;;  %v2123_v40 = vsel %vm1044_vm5, %v17378_v5, -inf }
 0x5d0   :  { %v1994_v16 = vmul.f32 %v17326_v3, %v1930_v55  ;;  %v14462_v46 = vpop.f32.mrb[137].mxu0  ;;  %v2111_v55 = vsel %vm1044_vm5, %v17337_v59, -inf }
 0x5d1   :  { %v1933_v26 = vpop.f32.mrb[138].mxu0  ;;  %v2116_v28 = vmax.f32 %v2111_v55, %v2115_v8  ;;  %v2131_v55 = vsel %vm1044_vm5, %v17402_v19, -inf }
 0x5d2   :  { %v14463_v7 = vpop.f32.mrb[139].mxu0  ;;  %v17486_v18 = vadd.f32 %v17331_v13, %v1994_v16  ;;  %v1995_v43 = vmul.f32 %v17326_v3, %v1933_v26  ;;  %v2113_v16 = vsel %vm1044_vm5, %v17340_v6, -inf }
 0x5d3   :  { %v2117_v7 = vsel %vm1044_vm5, %v17363_v41, -inf  ;;  %v2120_v14 = vmax.f32 %v2113_v16, %v2119_v21  ;;  %v2124_v8 = vmax.f32 %v2116_v28, %v2123_v40  ;;  %v2135_v28 = vsel %vm1044_vm5, %v17414_v17, -inf }
 0x5d4   :  { %v2094_v60 = vsel %vm1044_vm5, %v17486_v18, 0.0  ;;  %v17498_v36 = vadd.f32 %v17331_v13, %v1995_v43  ;;  %v2121_v43 = vsel %vm1044_vm5, %v17375_v34, -inf }
 0x5d5   :  { %v2095_v9 = vadd.f32 %v2094_v60, %v2093_v32  ;;  %v2122_v61 = vmax.f32 %v2114_v57, %v2121_v43  ;;  %v2128_v39 = vmax.f32 %v2120_v14, %v2127_v20  ;;  %v2137_v57 = vsel %vm1044_vm5, %v17423_v44, -inf }
 0x5d6   :  { %v2143_v43 = vsel %vm1044_vm5, %v17438_v58, -inf }
 0x5d7   :  { %v1938_v46 = vpop.f32.mrb[140].mxu0 }
 0x5d8   :  { %v1996_v56 = vmul.f32 %v17326_v3, %v1938_v46  ;;  %v14466_v26 = vpop.f32.mrb[141].mxu0 }
 0x5d9   :  { %v1941_v23 = vpop.f32.mrb[142].mxu0 }
 0x5da   :  { %v17512_v46 = vadd.f32 %v17331_v13, %v1996_v56  ;;  %v1997_v26 = vmul.f32 %v17326_v3, %v1941_v23  ;;  %v14467_v11 = vpop.f32.mrb[143].mxu0  ;;  %v2129_v56 = vsel %vm1044_vm5, %v17399_v12, -inf  ;;  %v2118_v23 = vmax.f32 %v2112_v47, %v2117_v7 }
 0x5db   :  { %v2096_v11 = vsel %vm1044_vm5, %v17498_v36, 0.0  ;;  %v2130_v37 = vmax.f32 %v2122_v61, %v2129_v56  ;;  %v2133_v47 = vsel %vm1044_vm5, %v17411_v38, -inf  ;;  %v2132_v7 = vmax.f32 %v2124_v8, %v2131_v55 }
 0x5dc   :  { %v2098_v60 = vsel %vm1044_vm5, %v17512_v46, 0.0  ;;  %v17532_v32 = vadd.f32 %v17331_v13, %v1997_v26  ;;  %v2126_v49 = vmax.f32 %v2118_v23, %v2125_v54  ;;  %v2097_v12 = vadd.f32 %v2096_v11, %v2095_v9 }
 0x5dd   :  { %v2139_v54 = vsel %vm1044_vm5, %v17426_v22, -inf  ;;  %v2141_v61 = vsel %vm1044_vm5, %v17435_v63, -inf  ;;  %v2136_v11 = vmax.f32 %v2128_v39, %v2135_v28  ;;  %v2138_v23 = vmax.f32 %v2130_v37, %v2137_v57 }
 0x5de   :  { %v2099_v14 = vadd.f32 %v2098_v60, %v2097_v12  ;;  %v2100_v26 = vsel %vm1044_vm5, %v17532_v32, 0.0  ;;  %v2134_v56 = vmax.f32 %v2126_v49, %v2133_v47  ;;  %v2145_v8 = vsel %vm1044_vm5, %v17447_v1, -inf }
 0x5df   :  { %v1946_v52 = vpop.f32.mrb[144].mxu0  ;;  %v2147_v12 = vsel %vm1044_vm5, %v17450_v42, -inf  ;;  %v2149_v55 = vsel %vm1044_vm5, %v17459_v4, -inf  ;;  %v2144_v49 = vmax.f32 %v2136_v11, %v2143_v43  ;;  %v2146_v37 = vmax.f32 %v2138_v23, %v2145_v8 }
 0x5e0   :  { %v1998_v21 = vmul.f32 %v17326_v3, %v1946_v52  ;;  %v14470_v16 = vpop.f32.mrb[145].mxu0  ;;  %v2101_v39 = vadd.f32 %v2100_v26, %v2099_v14  ;;  %v2151_v47 = vsel %vm1044_vm5, %v17462_v24, -inf  ;;  %v2153_v28 = vsel %vm1044_vm5, %v17471_v35, -inf }
 0x5e1   :  { %v1949_v20 = vpop.f32.mrb[146].mxu0  ;;  %v2140_v16 = vmax.f32 %v2132_v7, %v2139_v54  ;;  %v2155_v57 = vsel %vm1044_vm5, %v17474_v25, -inf  ;;  %v2159_v54 = vsel %vm1044_vm5, %v17486_v18, -inf  ;;  %v2154_v11 = vmax.f32 %v2146_v37, %v2153_v28 }
 0x5e2   :  { %v17550_v40 = vadd.f32 %v17331_v13, %v1998_v21  ;;  %v1999_v52 = vmul.f32 %v17326_v3, %v1949_v20  ;;  %v14471_v9 = vpop.f32.mrb[147].mxu0  ;;  %v2142_v20 = vmax.f32 %v2134_v56, %v2141_v61  ;;  %v2161_v61 = vsel %vm1044_vm5, %v17498_v36, -inf }
 0x5e3   :  { %v2148_v9 = vmax.f32 %v2140_v16, %v2147_v12  ;;  %v2152_v56 = vmax.f32 %v2144_v49, %v2151_v47  ;;  %v2163_v8 = vsel %vm1044_vm5, %v17512_v46, -inf  ;;  %v2162_v37 = vmax.f32 %v2154_v11, %v2161_v61 }
 0x5e4   :  { %v2102_v60 = vsel %vm1044_vm5, %v17550_v40, 0.0  ;;  %v17562_v21 = vadd.f32 %v17331_v13, %v1999_v52  ;;  %v2150_v4 = vmax.f32 %v2142_v20, %v2149_v55  ;;  %v2157_v52 = vsel %vm1044_vm5, %v17483_v45, -inf }
 0x5e5   :  { %v2103_v42 = vadd.f32 %v2102_v60, %v2101_v39  ;;  %v2156_v23 = vmax.f32 %v2148_v9, %v2155_v57  ;;  %v2165_v55 = vsel %vm1044_vm5, %v17532_v32, -inf  ;;  %v2160_v49 = vmax.f32 %v2152_v56, %v2159_v54 }
 0x5e6   :  { %19679 = vst [vmem:[#allocation73_spill] sm:$0xff] %v17562_v21  ;;  %v2104_v14 = vsel %vm1044_vm5, %v17562_v21, 0.0  ;;  %v2169_v60 = vsel %vm1044_vm5, %v17562_v21, -inf  ;;  %v2167_v28 = vsel %vm1044_vm5, %v17550_v40, -inf }
 0x5e7   :  { %v1954_v7 = vpop.f32.mrb[148].mxu0  ;;  %v2105_v47 = vadd.f32 %v2104_v14, %v2103_v42 }
 0x5e8   :  { %v2000_v43 = vmul.f32 %v17326_v3, %v1954_v7  ;;  %v14474_v26 = vpop.f32.mrb[149].mxu0  ;;  %v2158_v7 = vmax.f32 %v2150_v4, %v2157_v52  ;;  %v2168_v52 = vmax.f32 %v2160_v49, %v2167_v28  ;;  %v12851_v49 = vld [vmem:[#allocation17] ss:$0 sm:$0xff] }
 0x5e9   :  { %v1957_v12 = vpop.f32.mrb[150].mxu0 }
 0x5ea   :  { %v17586_v16 = vadd.f32 %v17331_v13, %v2000_v43  ;;  %v2001_v20 = vmul.f32 %v17326_v3, %v1957_v12  ;;  %v14475_v39 = vpop.f32.mrb[151].mxu0  ;;  %v2164_v43 = vmax.f32 %v2156_v23, %v2163_v8  ;;  %v2166_v21 = vmax.f32 %v2158_v7, %v2165_v55  ;;  %v12848_v23 = vld [vmem:[#allocation14] ss:$0 sm:$0xff] }
 0x5eb   :  { %v2170_v3 = vmax.f32 %v2162_v37, %v2169_v60  ;;  %v14947_v37 = vld [vmem:[%s19645_s1 + $0x38] sm:$0xff]  }
 0x5ec   :  { %19680 = vst [vmem:[#allocation74_spill] sm:$0xff] %v17586_v16  ;;  %v2106_v57 = vsel %vm1044_vm5, %v17586_v16, 0.0  ;;  %v2171_v9 = vsel %vm1044_vm5, %v17586_v16, -inf  ;;  %v17596_v26 = vadd.f32 %v17331_v13, %v2001_v20  ;;  %v2272_v13 = vld [vmem:[#allocation16] sm:$0x3] }
 0x5ed   :  { %v2107_v12 = vadd.f32 %v2106_v57, %v2105_v47  ;;  %v2172_v54 = vmax.f32 %v2164_v43, %v2171_v9  ;;  %v2176_v56 = vmax.f32 %v2168_v52, %v2170_v3  ;;  %14487 = vmatprep.subr.msk.mxu1 %vm2287_vm8, %v2272_v13  ;;  %v14948_v43 = vld [vmem:[%s19645_s1 + $0x40] sm:$0xff]   ;;  %v14950_v52 = vld [vmem:[%s19645_s1 + $0x50] sm:$0xff]  }
 0x5ee   :  { %v2108_v4 = vsel %vm1044_vm5, %v17596_v26, 0.0  ;;  %v2173_v42 = vsel %vm1044_vm5, %v17596_v26, -inf }
 0x5ef   :  { %v2174_v61 = vmax.f32 %v2166_v21, %v2173_v42  ;;  %v2109_v14 = vadd.f32 %v2108_v4, %v2107_v12  ;;  %v14949_v4 = vld [vmem:[%s19645_s1 + $0x48] sm:$0xff]  }
 0x5f1   :  { %v2175_v11 = vmax.f32 %v2172_v54, %v2174_v61  ;;  %v2110_v39 = vmul.f32 0.029411765, %v2109_v14 }
 0x5f3   :  { %v2177_v16 = vmax.f32 %v2175_v11, %v2176_v56  ;;  %14484 = vmatprep.mubr.msk.f32.mxu1 %vm1044_vm5, %v2110_v39  ;;  %v14951_v56 = vld [vmem:[%s19645_s1 + $0x58] sm:$0xff]  }
 0x5f5   :  { %14485 = vmatmul.mubr.msk.f32.vlgmr.msra.gmra.mrb[52].mxu1 %vm1044_vm5, %v2177_v16  ;;  %v14946_v16 = vld [vmem:[%s19645_s1 + $0x30] sm:$0xff]  }
 0x5f6   :  { %14488 = vmatpush3.msk.msra.mxu1 %vm2287_vm8, %v2272_v13  ;;  %v19681_v13 = vmax.f32 %v16566_v48, 0.0 }
 0x5f7   :  { %14492 = vmatprep.subr.bf16.mxu1 %v19674_v62 }
 0x6c8   :  { %v14486_v8 = vpop.f32.mrb[52].mxu1 }
 0x6c9   :  { %v2267_v21 = vadd.f32 %v14486_v8, %v12848_v23  ;;  %v2261_v55 = vpop.f32.mrb[53].mxu1  ;;  %v19682_v8 = vmax.f32 %v16570_v50, 0.0 }
 0x6ca   :  { %v2262_v60 = vadd.f32 %v12848_v23, %v2261_v55 }
 0x6cb   :  { %v2271_v7 = vmax.f32 %v2267_v21, 0.0 }
 0x6cc   :  { %v2270_v20 = vmax.f32 %v2262_v60, 0.0 }
 0x6ce   :  { %14489 = vmatprep.mubr.msk.f32.mxu1 %vm2280_vm9, %v2270_v20 }
 0x6cf   :  { %14490 = vmatmul.mubr.msk.f32.vlgmr.msra.gmra.mrb[54].mxu1 %vm2280_vm9, %v2271_v7  ;;  %v19684_v7 = vmax.f32 %v16588_v2, 0.0  ;;  %v19686_v2 = vmax.f32 %v16604_v51, 0.0 }
 0x6d0   :  { %14504 = vmatprep.mubr.msk.bf16.mxu1 %vm15824_vm0, %v19674_v62  ;;  %14493 = vmatpush3.bf16.msra.mxu1 %v14946_v16 }
 0x6d1   :  { %14494 = vmatprep.subr.bf16.mxu1 %v19674_v62 }
 0x6d4   :  { %14495 = vmatpush3.bf16.msra.mxu1 %v14947_v37 }
 0x6d5   :  { %14496 = vmatprep.subr.bf16.mxu1 %v19674_v62 }
 0x6d8   :  { %14497 = vmatpush3.bf16.msra.mxu1 %v14948_v43 }
 0x6d9   :  { %14498 = vmatprep.subr.bf16.mxu1 %v19674_v62 }
 0x6dc   :  { %14499 = vmatpush3.bf16.msra.mxu1 %v14949_v4 }
 0x6dd   :  { %14500 = vmatprep.subr.bf16.mxu1 %v19674_v62 }
 0x6e0   :  { %14501 = vmatpush3.bf16.msra.mxu1 %v14950_v52 }
 0x6e1   :  { %14502 = vmatprep.subr.bf16.mxu1 %v19674_v62 }
 0x6e4   :  { %14503 = vmatpush3.bf16.msra.mxu1 %v14951_v56 }
 0x7a2   :  { %v14491_v47 = vpop.f32.mrb[54].mxu1 }
 0x7a3   :  { %v2363_v28 = vadd.f32 %v14491_v47, %v12851_v49  ;;  %v2357_v57 = vpop.f32.mrb[55].mxu1 }
 0x7a4   :  { %v2358_v9 = vadd.f32 %v12851_v49, %v2357_v57 }
 0x7a6   :  { %v2366_v3 = vadd.f32 %v2363_v28, %v2358_v9 }
 0x7a8   :  { %v2367_v12 = vsub.f32 0.0, %v2366_v3 }
 0x7aa   :  { %v2368_v42 = vmul.f32 1.442695, %v2367_v12  ;;  %v19691_v12 = vld [vmem:[#allocation70_spill] sm:$0xff] }
 0x7ac   :  { %15348 = vpow2.f32 %v2368_v42 }
 0x7b6   :  { %v15349_v54 = vpop.eup %15348 }
 0x7b7   :  { %v2370_v61 = vadd.f32 1.0, %v15349_v54 }
 0x7b9   :  { %15350 = vrcp.f32 %v2370_v61 }
 0x7c3   :  { %v17631_v14 = vpop.eup %15350 }
 0x7c4   :  { %v2372_v11 = vmul.f32 %v17631_v14, %v17337_v59  ;;  %v2373_v39 = vmul.f32 %v17631_v14, %v17334_v33  ;;  %v2374_v55 = vmul.f32 %v17631_v14, %v17340_v6  ;;  %v2375_v60 = vmul.f32 %v17631_v14, %v17351_v53 }
 0x7c5   :  { %v2376_v50 = vmul.f32 %v17631_v14, %v17354_v29  ;;  %v2377_v33 = vmul.f32 %v17631_v14, %v17363_v41  ;;  %v19683_v6 = vmax.f32 %v16582_v31, 0.0  ;;  %v2378_v49 = vmul.f32 %v17631_v14, %v17366_v15 }
 0x7c6   :  { %v17642_v23 = vadd.f32 %v2372_v11, %v19681_v13  ;;  %v17646_v21 = vadd.f32 %v2373_v39, %v19682_v8  ;;  %v17672_v16 = vadd.f32 %v2375_v60, %v19684_v7  ;;  %v2379_v29 = vmul.f32 %v17631_v14, %v17375_v34 }
 0x7c7   :  { %v17668_v53 = vadd.f32 %v2374_v55, %v19683_v6  ;;  %v2380_v41 = vmul.f32 %v17631_v14, %v17378_v5  ;;  %v2381_v37 = vmul.f32 %v17631_v14, %v17387_v0  ;;  %v19685_v31 = vmax.f32 %v16599_v10, 0.0  ;;  %v19690_v0 = vld [vmem:[#allocation69_spill] sm:$0xff] }
 0x7c8   :  { %v19584_v20 = vmax.f32 %v17642_v23, 0.0  ;;  %v19583_v59 = vmax.f32 %v17646_v21, 0.0  ;;  %v17688_v28 = vadd.f32 %v2377_v33, %v19686_v2  ;;  %v19579_v15 = vmax.f32 %v17672_v16, 0.0  ;;  %v19698_v33 = vld [vmem:[#allocation45_spill] sm:$0xff] }
 0x7c9   :  { %v17684_v47 = vadd.f32 %v2376_v50, %v19685_v31  ;;  %v19580_v57 = vmax.f32 %v17668_v53, 0.0  ;;  %v19687_v34 = vmax.f32 %v16621_v27, 0.0  ;;  %v19688_v5 = vmax.f32 %v16626_v30, 0.0  ;;  %v19692_v27 = vld [vmem:[#allocation43_spill] sm:$0xff]  ;;  %v19695_v30 = vld [vmem:[#allocation44_spill] sm:$0xff] }
 0x7ca   :  { %v17658_v48 = vpack.c.bf16 %v19583_v59, %v19584_v20  ;;  %v2382_v3 = vmul.f32 %v17631_v14, %v19690_v0  ;;  %v2383_v4 = vmul.f32 %v17631_v14, %v19691_v12  ;;  %v19693_v42 = vmax.f32 %v19692_v27, 0.0  ;;  %v19707_v12 = vld [vmem:[#allocation48_spill] sm:$0xff] }
 0x7cb   :  { %v17694_v9 = vadd.f32 %v2378_v49, %v19687_v34  ;;  %v17698_v43 = vadd.f32 %v2379_v29, %v19688_v5  ;;  %v2488_v51 = vpack.c.bf16 %v19579_v15, %v19580_v57  ;;  %v19696_v54 = vmax.f32 %v19695_v30, 0.0  ;;  %v19701_v49 = vld [vmem:[#allocation46_spill] sm:$0xff] }
 0x7cc   :  { %2558 = vrot.lane.b32.xlu0 %v17658_v48, %s15807_s29  ;;  %v19587_v10 = vrot.slane %v17658_v48, 4  ;;  %v17711_v52 = vadd.f32 %v2380_v41, %v19693_v42  ;;  %v19576_v11 = vmax.f32 %v17684_v47, 0.0  ;;  %v19573_v39 = vmax.f32 %v17688_v28, 0.0 }
 0x7cd   :  { %19689 = vst [vmem:[#allocation75_spill] sm:$0xff] %v17698_v43  ;;  %v17715_v61 = vadd.f32 %v2381_v37, %v19696_v54  ;;  %v2522_v56 = vrot.slane %v2488_v51, 4  ;;  %v19570_v13 = vmax.f32 %v17694_v9, 0.0  ;;  %v19567_v8 = vmax.f32 %v17698_v43, 0.0 }
 0x7ce   :  { %19694 = vst [vmem:[#allocation69_spill] sm:$0xff] %v17711_v52  ;;  %v2384_v60 = vmul.f32 %v17631_v14, %v17402_v19  ;;  %v2385_v50 = vmul.f32 %v17631_v14, %v17411_v38  ;;  %v19699_v6 = vmax.f32 %v19698_v33, 0.0  ;;  %v19702_v29 = vmax.f32 %v19701_v49, 0.0  ;;  %v19710_v33 = vld [vmem:[#allocation49_spill] sm:$0xff]  ;;  %v19713_v49 = vld [vmem:[#allocation50_spill] sm:$0xff] }
 0x7cf   :  { %19697 = vst [vmem:[#allocation70_spill] sm:$0xff] %v17715_v61  ;;  %v17725_v55 = vsel %vm365_vm1, %v19587_v10, %v2522_v56  ;;  %v19564_v37 = vmax.f32 %v17711_v52, 0.0  ;;  %v19563_v31 = vmax.f32 %v17715_v61, 0.0  ;;  %v2489_v19 = vpack.c.bf16 %v19573_v39, %v19576_v11 }
 0x7d0   :  { %2560 = vrot.lane.b32.xlu0 %v2488_v51, %s15807_s29  ;;  %v17733_v7 = vadd.f32 %v2382_v3, %v19699_v6  ;;  %2593 = vrot.lane.b32.xlu1 %v17725_v55, %s15812_s20  ;;  %v17739_v41 = vadd.f32 %v2383_v4, %v19702_v29  ;;  %v2490_v38 = vpack.c.bf16 %v19567_v8, %v19570_v13  ;;  %v19704_v51 = vld [vmem:[#allocation47_spill] sm:$0xff]  ;;  %v19708_v4 = vmax.f32 %v19707_v12, 0.0 }
 0x7d1   :  { %v2386_v2 = vmul.f32 %v17631_v14, %v17414_v17  ;;  %v2524_v34 = vrot.slane %v2489_v19, 4  ;;  %v2387_v5 = vmul.f32 %v17631_v14, %v17423_v44  ;;  %v19705_v0 = vmax.f32 %v19704_v51, 0.0 }
 0x7d2   :  { %19700 = vst [vmem:[#allocation43_spill] sm:$0xff] %v17733_v7  ;;  %19703 = vst [vmem:[#allocation44_spill] sm:$0xff] %v17739_v41  ;;  %v17762_v27 = vadd.f32 %v2385_v50, %v19708_v4  ;;  %v19562_v42 = vmax.f32 %v17733_v7, 0.0  ;;  %v19561_v30 = vmax.f32 %v17739_v41, 0.0  ;;  %v2526_v54 = vrot.slane %v2490_v38, 4 }
 0x7d3   :  { %v17758_v3 = vadd.f32 %v2384_v60, %v19705_v0  ;;  %v17767_v17 = vsel %vm365_vm1, %v2522_v56, %v2524_v34  ;;  %v2491_v44 = vpack.c.bf16 %v19563_v31, %v19564_v37  ;;  %v2388_v60 = vmul.f32 %v17631_v14, %v17426_v22 }
 0x7d4   :  { %2562 = vrot.lane.b32.xlu0 %v2489_v19, %s15807_s29  ;;  %19709 = vst [vmem:[#allocation46_spill] sm:$0xff] %v17762_v27  ;;  %2595 = vrot.lane.b32.xlu1 %v17767_v17, %s15812_s20  ;;  %v2389_v50 = vmul.f32 %v17631_v14, %v17435_v63  ;;  %v19711_v56 = vmax.f32 %v19710_v33, 0.0  ;;  %v19714_v29 = vmax.f32 %v19713_v49, 0.0  ;;  %v19565_v0 = vmax.f32 %v17762_v27, 0.0  ;;  %v19719_v33 = vld [vmem:[#allocation52_spill] sm:$0xff] }
 0x7d5   :  { %19706 = vst [vmem:[#allocation45_spill] sm:$0xff] %v17758_v3  ;;  %v19566_v51 = vmax.f32 %v17758_v3, 0.0  ;;  %v17791_v12 = vsel %vm365_vm1, %v2524_v34, %v2526_v54  ;;  %v2528_v22 = vrot.slane %v2491_v44, 4  ;;  %v2492_v63 = vpack.c.bf16 %v19561_v30, %v19562_v42 }
 0x7d6   :  { %v17782_v6 = vadd.f32 %v2386_v2, %v19711_v56  ;;  %v17786_v19 = vadd.f32 %v2387_v5, %v19714_v29  ;;  %v2391_v2 = vmul.f32 %v17631_v14, %v17447_v1  ;;  %v19716_v5 = vld [vmem:[#allocation51_spill] sm:$0xff]  ;;  %v19720_v56 = vmax.f32 %v19719_v33, 0.0 }
 0x7d7   :  { %v19717_v34 = vmax.f32 %v19716_v5, 0.0  ;;  %v17815_v42 = vsel %vm365_vm1, %v2526_v54, %v2528_v22  ;;  %v2493_v1 = vpack.c.bf16 %v19565_v0, %v19566_v51 }
 0x7d8   :  { %2564 = vrot.lane.b32.xlu0 %v2490_v38, %s15807_s29  ;;  %19712 = vst [vmem:[#allocation47_spill] sm:$0xff] %v17782_v6  ;;  %19715 = vst [vmem:[#allocation48_spill] sm:$0xff] %v17786_v19  ;;  %2597 = vrot.lane.b32.xlu1 %v17791_v12, %s15812_s20  ;;  %v2390_v38 = vmul.f32 %v17631_v14, %v17438_v58  ;;  %v17810_v49 = vadd.f32 %v2389_v50, %v19720_v56  ;;  %v19569_v29 = vmax.f32 %v17782_v6, 0.0  ;;  %v19723_v50 = vld [vmem:[#allocation72_spill] sm:$0xff]  ;;  %v19727_v56 = vld [vmem:[#allocation54_spill] sm:$0xff] }
 0x7d9   :  { %v17806_v4 = vadd.f32 %v2388_v60, %v19717_v34  ;;  %v19568_v30 = vmax.f32 %v17786_v19, 0.0  ;;  %v2530_v58 = vrot.slane %v2492_v63, 4  ;;  %v2393_v5 = vmul.f32 %v17631_v14, %v19723_v50  ;;  %v19724_v34 = vld [vmem:[#allocation53_spill] sm:$0xff] }
 0x7da   :  { %19721 = vst [vmem:[#allocation50_spill] sm:$0xff] %v17810_v49  ;;  %v19725_v54 = vmax.f32 %v19724_v34, 0.0  ;;  %v19728_v31 = vmax.f32 %v19727_v56, 0.0  ;;  %v19571_v51 = vmax.f32 %v17810_v49, 0.0  ;;  %v19733_v34 = vld [vmem:[#allocation56_spill] sm:$0xff] }
 0x7db   :  { %19718 = vst [vmem:[#allocation49_spill] sm:$0xff] %v17806_v4  ;;  %v19572_v0 = vmax.f32 %v17806_v4, 0.0  ;;  %v17839_v8 = vsel %vm365_vm1, %v2528_v22, %v2530_v58 }
 0x7dc   :  { %2566 = vrot.lane.b32.xlu0 %v2491_v44, %s15807_s29  ;;  %2599 = vrot.lane.b32.xlu1 %v17815_v42, %s15812_s20  ;;  %v19722_v44 = vld [vmem:[#allocation71_spill] sm:$0xff]  ;;  %v17830_v33 = vadd.f32 %v2390_v38, %v19725_v54  ;;  %v17834_v37 = vadd.f32 %v2391_v2, %v19728_v31  ;;  %v2394_v31 = vmul.f32 %v17631_v14, %v17462_v24  ;;  %v19734_v54 = vmax.f32 %v19733_v34, 0.0 }
 0x7dd   :  { %v2392_v60 = vmul.f32 %v17631_v14, %v19722_v44  ;;  %v2532_v44 = vrot.slane %v2493_v1, 4  ;;  %v2395_v38 = vmul.f32 %v17631_v14, %v17471_v35  ;;  %v19730_v2 = vld [vmem:[#allocation55_spill] sm:$0xff]  ;;  %v2495_v35 = vpack.c.bf16 %v19571_v51, %v19572_v0 }
 0x7de   :  { %19726 = vst [vmem:[#allocation51_spill] sm:$0xff] %v17830_v33  ;;  %19729 = vst [vmem:[#allocation52_spill] sm:$0xff] %v17834_v37  ;;  %v19731_v22 = vmax.f32 %v19730_v2, 0.0  ;;  %v17858_v56 = vadd.f32 %v2393_v5, %v19734_v54  ;;  %v19736_v5 = vld [vmem:[#allocation57_spill] sm:$0xff] }
 0x7df   :  { %v17863_v13 = vsel %vm365_vm1, %v2530_v58, %v2532_v44  ;;  %v19737_v58 = vmax.f32 %v19736_v5, 0.0 }
 0x7e0   :  { %2568 = vrot.lane.b32.xlu0 %v2492_v63, %s15807_s29  ;;  %v2494_v63 = vpack.c.bf16 %v19568_v30, %v19569_v29  ;;  %2601 = vrot.lane.b32.xlu1 %v17839_v8, %s15812_s20  ;;  %v17854_v50 = vadd.f32 %v2392_v60, %v19731_v22  ;;  %19735 = vst [vmem:[#allocation72_spill] sm:$0xff] %v17858_v56  ;;  %v19575_v30 = vmax.f32 %v17830_v33, 0.0  ;;  %v19574_v29 = vmax.f32 %v17834_v37, 0.0  ;;  %v19739_v22 = vld [vmem:[#allocation58_spill] sm:$0xff] }
 0x7e1   :  { %v2397_v60 = vmul.f32 %v17631_v14, %v17483_v45  ;;  %v17878_v2 = vadd.f32 %v2394_v31, %v19737_v58  ;;  %v19740_v34 = vmax.f32 %v19739_v22, 0.0  ;;  %v19577_v0 = vmax.f32 %v17858_v56, 0.0  ;;  %v19745_v58 = vld [vmem:[#allocation60_spill] sm:$0xff] }
 0x7e2   :  { %19732 = vst [vmem:[#allocation71_spill] sm:$0xff] %v17854_v50  ;;  %v2534_v24 = vrot.slane %v2494_v63, 4  ;;  %v19578_v51 = vmax.f32 %v17854_v50, 0.0  ;;  %v2496_v45 = vpack.c.bf16 %v19574_v29, %v19575_v30  ;;  %v2399_v31 = vmul.f32 %v17631_v14, %v17498_v36 }
 0x7e3   :  { %19738 = vst [vmem:[#allocation53_spill] sm:$0xff] %v17878_v2  ;;  %v17882_v54 = vadd.f32 %v2395_v38, %v19740_v34  ;;  %v19742_v38 = vld [vmem:[#allocation59_spill] sm:$0xff]  ;;  %v19746_v22 = vmax.f32 %v19745_v58, 0.0  ;;  %v19582_v29 = vmax.f32 %v17878_v2, 0.0 }
 0x7e4   :  { %2570 = vrot.lane.b32.xlu0 %v2493_v1, %s15807_s29  ;;  %2603 = vrot.lane.b32.xlu1 %v17863_v13, %s15812_s20  ;;  %v2396_v1 = vmul.f32 %v17631_v14, %v17474_v25  ;;  %v17887_v39 = vsel %vm365_vm1, %v2532_v44, %v2534_v24  ;;  %v2536_v25 = vrot.slane %v2495_v35, 4  ;;  %v19743_v44 = vmax.f32 %v19742_v38, 0.0 }
 0x7e5   :  { %19741 = vst [vmem:[#allocation54_spill] sm:$0xff] %v17882_v54  ;;  %v17906_v34 = vadd.f32 %v2397_v60, %v19746_v22  ;;  %v19581_v30 = vmax.f32 %v17882_v54, 0.0  ;;  %v2497_v36 = vpack.c.bf16 %v19577_v0, %v19578_v51  ;;  %v19748_v60 = vld [vmem:[#allocation61_spill] sm:$0xff] }
 0x7e6   :  { %v17902_v5 = vadd.f32 %v2396_v1, %v19743_v44  ;;  %v17911_v11 = vsel %vm365_vm1, %v2534_v24, %v2536_v25  ;;  %v2401_v1 = vmul.f32 %v17631_v14, %v17532_v32  ;;  %v19749_v24 = vmax.f32 %v19748_v60, 0.0  ;;  %v19751_v44 = vld [vmem:[#allocation62_spill] sm:$0xff]  ;;  %v19755_v60 = vld [vmem:[#allocation63_spill] sm:$0xff] }
 0x7e7   :  { %19747 = vst [vmem:[#allocation56_spill] sm:$0xff] %v17906_v34  ;;  %v19752_v58 = vmax.f32 %v19751_v44, 0.0  ;;  %v19585_v51 = vmax.f32 %v17906_v34, 0.0  ;;  %v2498_v32 = vpack.c.bf16 %v19581_v30, %v19582_v29  ;;  %v19758_v44 = vld [vmem:[#allocation64_spill] sm:$0xff] }
 0x7e8   :  { %2572 = vrot.lane.b32.xlu0 %v2494_v63, %s15807_s29  ;;  %2605 = vrot.lane.b32.xlu1 %v17887_v39, %s15812_s20  ;;  %v2398_v63 = vmul.f32 %v17631_v14, %v17486_v18  ;;  %19744 = vst [vmem:[#allocation55_spill] sm:$0xff] %v17902_v5  ;;  %v2538_v18 = vrot.slane %v2496_v45, 4  ;;  %v19586_v0 = vmax.f32 %v17902_v5, 0.0 }
 0x7e9   :  { %v17930_v22 = vadd.f32 %v2399_v31, %v19752_v58  ;;  %v19759_v58 = vmax.f32 %v19758_v44, 0.0  ;;  %v19765_v44 = vld [vmem:[#allocation66_spill] sm:$0xff] }
 0x7ea   :  { %v17926_v38 = vadd.f32 %v2398_v63, %v19749_v24  ;;  %v17935_v15 = vsel %vm365_vm1, %v2536_v25, %v2538_v18  ;;  %v19754_v63 = vld [vmem:[#allocation73_spill] sm:$0xff]  ;;  %v19756_v25 = vmax.f32 %v19755_v60, 0.0 }
 0x7eb   :  { %19753 = vst [vmem:[#allocation58_spill] sm:$0xff] %v17930_v22  ;;  %v2403_v31 = vmul.f32 %v17631_v14, %v19754_v63  ;;  %v17954_v57 = vadd.f32 %v2401_v1, %v19759_v58  ;;  %v19588_v29 = vmax.f32 %v17930_v22, 0.0  ;;  %v2405_v63 = vmul.f32 %v17631_v14, %v17596_v26  ;;  %v19762_v60 = vld [vmem:[#allocation65_spill] sm:$0xff] }
 0x7ec   :  { %2574 = vrot.lane.b32.xlu0 %v2495_v35, %s15807_s29  ;;  %2607 = vrot.lane.b32.xlu1 %v17911_v11, %s15812_s20  ;;  %v2400_v35 = vmul.f32 %v17631_v14, %v17512_v46  ;;  %19750 = vst [vmem:[#allocation57_spill] sm:$0xff] %v17926_v38  ;;  %v2540_v46 = vrot.slane %v2497_v36, 4  ;;  %v19595_v30 = vmax.f32 %v17926_v38, 0.0  ;;  %v19766_v58 = vmax.f32 %v19765_v44, 0.0 }
 0x7ed   :  { %19760 = vst [vmem:[#allocation60_spill] sm:$0xff] %v17954_v57 }
 0x7ee   :  { %v17950_v24 = vadd.f32 %v2400_v35, %v19756_v25  ;;  %v17959_v59 = vsel %vm365_vm1, %v2538_v18, %v2540_v46  ;;  %v19761_v35 = vld [vmem:[#allocation74_spill] sm:$0xff]  ;;  %v19763_v18 = vmax.f32 %v19762_v60, 0.0  ;;  %v17978_v20 = vadd.f32 %v2403_v31, %v19766_v58  ;;  %v19771_v31 = vld [vmem:[#allocation68_spill] sm:$0xff] }
 0x7ef   :  { %v2404_v1 = vmul.f32 %v17631_v14, %v19761_v35  ;;  %v2500_v26 = vpack.c.bf16 %v19588_v29, %v19595_v30  ;;  %v19772_v60 = vmax.f32 %v19771_v31, 0.0 }
 0x7f0   :  { %2576 = vrot.lane.b32.xlu0 %v2496_v45, %s15807_s29  ;;  %2609 = vrot.lane.b32.xlu1 %v17935_v15, %s15812_s20  ;;  %v2402_v45 = vmul.f32 %v17631_v14, %v17550_v40  ;;  %19757 = vst [vmem:[#allocation59_spill] sm:$0xff] %v17950_v24  ;;  %v2542_v40 = vrot.slane %v2498_v32, 4  ;;  %19767 = vst [vmem:[#allocation62_spill] sm:$0xff] %v17978_v20  ;;  %v19768_v14 = vld [vmem:[#allocation67_spill] sm:$0xff]  ;;  %v19589_v44 = vmax.f32 %v17978_v20, 0.0 }
 0x7f1   :  { %v2546_v29 = vrot.slane %v2500_v26, 4 }
 0x7f2   :  { %v17974_v25 = vadd.f32 %v2402_v45, %v19763_v18  ;;  %v17983_v10 = vsel %vm365_vm1, %v2540_v46, %v2542_v40  ;;  %v17998_v18 = vadd.f32 %v2405_v63, %v19772_v60 }
 0x7f4   :  { %2578 = vrot.lane.b32.xlu0 %v2497_v36, %s15807_s29  ;;  %v2499_v36 = vpack.c.bf16 %v19585_v51, %v19586_v0  ;;  %2611 = vrot.lane.b32.xlu1 %v17959_v59, %s15812_s20  ;;  %19764 = vst [vmem:[#allocation61_spill] sm:$0xff] %v17974_v25  ;;  %v19594_v51 = vmax.f32 %v17950_v24, 0.0  ;;  %v19593_v0 = vmax.f32 %v17954_v57, 0.0  ;;  %19773 = vst [vmem:[#allocation63_spill] sm:$0xff] %v17998_v18  ;;  %v19592_v46 = vmax.f32 %v17974_v25, 0.0 }
 0x7f5   :  { %v19590_v63 = vmax.f32 %v17998_v18, 0.0 }
 0x7f6   :  { %v2544_v35 = vrot.slane %v2499_v36, 4 }
 0x7f8   :  { %2580 = vrot.lane.b32.xlu0 %v2498_v32, %s15807_s29  ;;  %2613 = vrot.lane.b32.xlu1 %v17983_v10, %s15812_s20  ;;  %v19769_v32 = vmax.f32 %v19768_v14, 0.0  ;;  %v18003_v58 = vsel %vm365_vm1, %v2542_v40, %v2544_v35  ;;  %v18015_v14 = vsel %vm365_vm1, %v2544_v35, %v2546_v29 }
 0x7fa   :  { %v17994_v45 = vadd.f32 %v2404_v1, %v19769_v32  ;;  %v2502_v32 = vpack.c.bf16 %v19589_v44, %v19592_v46 }
 0x7fc   :  { %2582 = vrot.lane.b32.xlu0 %v2499_v36, %s15807_s29  ;;  %19770 = vst [vmem:[#allocation73_spill] sm:$0xff] %v17994_v45  ;;  %v2501_v36 = vpack.c.bf16 %v19593_v0, %v19594_v51  ;;  %2615 = vrot.lane.b32.xlu1 %v18003_v58, %s15812_s20  ;;  %v19591_v1 = vmax.f32 %v17994_v45, 0.0  ;;  %v2550_v31 = vrot.slane %v2502_v32, 4 }
 0x7fe   :  { %v2548_v40 = vrot.slane %v2501_v36, 4  ;;  %v2503_v35 = vpack.c.bf16 %v19590_v63, %v19591_v1 }
 0x800   :  { %2584 = vrot.lane.b32.xlu0 %v2500_v26, %s15807_s29  ;;  %2617 = vrot.lane.b32.xlu1 %v18015_v14, %s15812_s20  ;;  %v18025_v26 = vsel %vm365_vm1, %v2546_v29, %v2548_v40  ;;  %v18035_v60 = vsel %vm365_vm1, %v2548_v40, %v2550_v31  ;;  %v2552_v44 = vrot.slane %v2503_v35, 4  ;;  %v19774_v40 = vrot.slane %v17658_v48, 4 }
 0x802   :  { %v18041_v29 = vsel %vm365_vm1, %v2550_v31, %v2552_v44  ;;  %v2555_v63 = vsel %vm365_vm1, 0, %v19774_v40 }
 0x804   :  { %2586 = vrot.lane.b32.xlu0 %v2501_v36, %s15807_s29  ;;  %2619 = vrot.lane.b32.xlu1 %v18025_v26, %s15812_s20  ;;  %v2557_v36 = vsel %vm365_vm1, %v2552_v44, 0 }
 0x808   :  { %2588 = vrot.lane.b32.xlu0 %v2502_v32, %s15807_s29  ;;  %2621 = vrot.lane.b32.xlu1 %v18035_v60, %s15812_s20 }
 0x80c   :  { %2590 = vrot.lane.b32.xlu0 %v2503_v35, %s15807_s29  ;;  %2623 = vrot.lane.b32.xlu1 %v18041_v29, %s15812_s20 }
 0x810   :  { %2625 = vrot.lane.b32.xlu1 %v2557_v36, %s15812_s20 }
 0x83e   :  { %v2559_v32 = vpop.permute.xlu0 %2558 }
 0x83f   :  { %v2628_v1 = vsel %vm1044_vm5, %v2555_v63, %v2559_v32 }
 0x842   :  { %v2594_v46 = vpop.permute.xlu1 %2593  ;;  %v2561_v31 = vpop.permute.xlu0 %2560 }
 0x843   :  { %v2678_v35 = vsel %vm1095_vm6, %v2628_v1, %v2594_v46  ;;  %v2631_v44 = vsel %vm1044_vm5, %v17725_v55, %v2561_v31 }
 0x844   :  { %14505 = vmatmul.mubr.msk.bf16.vlgmr.msra.gmra.mrb[56].mxu1 %vm1166_vm7, %v2678_v35 }
 0x845   :  { %14508 = vmatprep.mubr.msk.bf16.mxu1 %vm15824_vm0, %v19674_v62 }
 0x846   :  { %v2596_v0 = vpop.permute.xlu1 %2595  ;;  %v2563_v48 = vpop.permute.xlu0 %2562 }
 0x847   :  { %v2680_v36 = vsel %vm1095_vm6, %v2631_v44, %v2596_v0  ;;  %v2634_v46 = vsel %vm1044_vm5, %v17767_v17, %v2563_v48 }
 0x84a   :  { %v2598_v63 = vpop.permute.xlu1 %2597  ;;  %v2565_v55 = vpop.permute.xlu0 %2564 }
 0x84b   :  { %v2682_v1 = vsel %vm1095_vm6, %v2634_v46, %v2598_v63  ;;  %v2637_v0 = vsel %vm1044_vm5, %v17791_v12, %v2565_v55 }
 0x84c   :  { %14509 = vmatmul.mubr.msk.bf16.gmra.mrb[60].mxu1 %vm1166_vm7, %v2680_v36 }
 0x84d   :  { %14512 = vmatprep.mubr.msk.bf16.mxu1 %vm15824_vm0, %v19674_v62 }
 0x84e   :  { %v2600_v32 = vpop.permute.xlu1 %2599  ;;  %v2567_v17 = vpop.permute.xlu0 %2566 }
 0x84f   :  { %v2684_v40 = vsel %vm1095_vm6, %v2637_v0, %v2600_v32  ;;  %v2640_v31 = vsel %vm1044_vm5, %v17815_v42, %v2567_v17 }
 0x852   :  { %v2602_v35 = vpop.permute.xlu1 %2601  ;;  %v2569_v12 = vpop.permute.xlu0 %2568 }
 0x853   :  { %v2686_v44 = vsel %vm1095_vm6, %v2640_v31, %v2602_v35  ;;  %v2643_v48 = vsel %vm1044_vm5, %v17839_v8, %v2569_v12 }
 0x854   :  { %14513 = vmatmul.mubr.msk.bf16.gmra.mrb[64].mxu1 %vm1166_vm7, %v2682_v1 }
 0x855   :  { %14516 = vmatprep.mubr.msk.bf16.mxu1 %vm15824_vm0, %v19674_v62 }
 0x856   :  { %v2604_v36 = vpop.permute.xlu1 %2603  ;;  %v2571_v42 = vpop.permute.xlu0 %2570 }
 0x857   :  { %v2688_v63 = vsel %vm1095_vm6, %v2643_v48, %v2604_v36  ;;  %v2646_v1 = vsel %vm1044_vm5, %v17863_v13, %v2571_v42 }
 0x85a   :  { %v2606_v46 = vpop.permute.xlu1 %2605  ;;  %v2573_v8 = vpop.permute.xlu0 %2572 }
 0x85b   :  { %v2690_v55 = vsel %vm1095_vm6, %v2646_v1, %v2606_v46  ;;  %v2649_v0 = vsel %vm1044_vm5, %v17887_v39, %v2573_v8 }
 0x85c   :  { %14517 = vmatmul.mubr.msk.bf16.gmra.mrb[68].mxu1 %vm1166_vm7, %v2684_v40 }
 0x85d   :  { %14520 = vmatprep.mubr.msk.bf16.mxu1 %vm15824_vm0, %v19674_v62 }
 0x85e   :  { %v2608_v32 = vpop.permute.xlu1 %2607  ;;  %v2575_v13 = vpop.permute.xlu0 %2574 }
 0x85f   :  { %v2692_v40 = vsel %vm1095_vm6, %v2649_v0, %v2608_v32  ;;  %v2652_v35 = vsel %vm1044_vm5, %v17911_v11, %v2575_v13 }
 0x862   :  { %v2610_v17 = vpop.permute.xlu1 %2609  ;;  %v2577_v39 = vpop.permute.xlu0 %2576 }
 0x863   :  { %v2694_v31 = vsel %vm1095_vm6, %v2652_v35, %v2610_v17  ;;  %v2655_v12 = vsel %vm1044_vm5, %v17935_v15, %v2577_v39 }
 0x864   :  { %14521 = vmatmul.mubr.msk.bf16.gmra.mrb[72].mxu1 %vm1166_vm7, %v2686_v44 }
 0x865   :  { %14524 = vmatprep.mubr.msk.bf16.mxu1 %vm15824_vm0, %v19674_v62 }
 0x866   :  { %v2612_v44 = vpop.permute.xlu1 %2611  ;;  %v2579_v11 = vpop.permute.xlu0 %2578 }
 0x867   :  { %v2696_v36 = vsel %vm1095_vm6, %v2655_v12, %v2612_v44 }
 0x86a   :  { %v2614_v48 = vpop.permute.xlu1 %2613  ;;  %v2581_v15 = vpop.permute.xlu0 %2580 }
 0x86b   :  { %v2661_v1 = vsel %vm1044_vm5, %v17983_v10, %v2581_v15 }
 0x86c   :  { %14525 = vmatmul.mubr.msk.bf16.gmra.mrb[76].mxu1 %vm1166_vm7, %v2688_v63  ;;  %v2658_v63 = vsel %vm1044_vm5, %v17959_v59, %v2579_v11  ;;  %v14952_v59 = vld [vmem:[%s19672_s16 + $0x30] sm:$0xff]  }
 0x86d   :  { %14528 = vmatprep.mubr.msk.bf16.mxu1 %vm15824_vm0, %v19674_v62  ;;  %v2698_v42 = vsel %vm1095_vm6, %v2658_v63, %v2614_v48  ;;  %14573 = vmatpush3.bf16.msra.mxu0 %v14952_v59 }
 0x86e   :  { %v2616_v46 = vpop.permute.xlu1 %2615  ;;  %v2583_v8 = vpop.permute.xlu0 %2582  ;;  %14574 = vmatprep.subr.bf16.mxu0 %v19674_v62 }
 0x86f   :  { %v2664_v0 = vsel %vm1044_vm5, %v18003_v58, %v2583_v8  ;;  %v18174_v8 = vld [vmem:[#allocation10 + $0x1] ss:$0 sm:$0xff] }
 0x872   :  { %v2618_v32 = vpop.permute.xlu1 %2617 }
 0x873   :  { %v2702_v10 = vsel %vm1095_vm6, %v2664_v0, %v2618_v32 }
 0x874   :  { %14529 = vmatmul.mubr.msk.bf16.gmra.mrb[80].mxu1 %vm1166_vm7, %v2690_v55  ;;  %v2700_v55 = vsel %vm1095_vm6, %v2661_v1, %v2616_v46  ;;  %v14955_v46 = vld [vmem:[%s19672_s16 + $0x48] sm:$0xff]   ;;  %v14957_v1 = vld [vmem:[%s19672_s16 + $0x58] sm:$0xff]  }
 0x875   :  { %14532 = vmatprep.mubr.msk.bf16.mxu1 %vm15824_vm0, %v19674_v62 }
 0x876   :  { %v2620_v13 = vpop.permute.xlu1 %2619 }
 0x87c   :  { %14533 = vmatmul.mubr.msk.bf16.gmra.mrb[84].mxu1 %vm1166_vm7, %v2692_v40  ;;  %v2585_v40 = vpop.permute.xlu0 %2584 }
 0x87d   :  { %14536 = vmatprep.mubr.msk.bf16.mxu1 %vm15824_vm0, %v19674_v62  ;;  %v2667_v17 = vsel %vm1044_vm5, %v18015_v14, %v2585_v40  ;;  %v14953_v14 = vld [vmem:[%s19672_s16 + $0x38] sm:$0xff]  }
 0x87e   :  { %v2704_v35 = vsel %vm1095_vm6, %v2667_v17, %v2620_v13  ;;  %14575 = vmatpush3.bf16.msra.mxu0 %v14953_v14 }
 0x87f   :  { %14576 = vmatprep.subr.bf16.mxu0 %v19674_v62 }
 0x880   :  { %v2587_v58 = vpop.permute.xlu0 %2586 }
 0x881   :  { %v2670_v39 = vsel %vm1044_vm5, %v18025_v26, %v2587_v58 }
 0x884   :  { %14537 = vmatmul.mubr.msk.bf16.gmra.mrb[88].mxu1 %vm1166_vm7, %v2694_v31  ;;  %v2622_v31 = vpop.permute.xlu1 %2621  ;;  %v2589_v12 = vpop.permute.xlu0 %2588 }
 0x885   :  { %14540 = vmatprep.mubr.msk.bf16.mxu1 %vm15824_vm0, %v19674_v62  ;;  %v2706_v44 = vsel %vm1095_vm6, %v2670_v39, %v2622_v31  ;;  %v2673_v11 = vsel %vm1044_vm5, %v18035_v60, %v2589_v12  ;;  %v14954_v60 = vld [vmem:[%s19672_s16 + $0x40] sm:$0xff]  }
 0x886   :  { %14577 = vmatpush3.bf16.msra.mxu0 %v14954_v60 }
 0x887   :  { %14578 = vmatprep.subr.bf16.mxu0 %v19674_v62 }
 0x888   :  { %v2591_v48 = vpop.permute.xlu0 %2590 }
 0x88a   :  { %14579 = vmatpush3.bf16.msra.mxu0 %v14955_v46 }
 0x88b   :  { %14580 = vmatprep.subr.bf16.mxu0 %v19674_v62 }
 0x88c   :  { %14541 = vmatmul.mubr.msk.bf16.gmra.mrb[92].mxu1 %vm1166_vm7, %v2696_v36  ;;  %v2624_v36 = vpop.permute.xlu1 %2623 }
 0x88d   :  { %14544 = vmatprep.mubr.msk.bf16.mxu1 %vm15824_vm0, %v19674_v62  ;;  %v2708_v26 = vsel %vm1095_vm6, %v2673_v11, %v2624_v36 }
 0x890   :  { %v2626_v63 = vpop.permute.xlu1 %2625 }
 0x894   :  { %14545 = vmatmul.mubr.msk.bf16.gmra.mrb[96].mxu1 %vm1166_vm7, %v2698_v42  ;;  %v2676_v42 = vsel %vm1044_vm5, %v18041_v29, %v2591_v48  ;;  %v14956_v29 = vld [vmem:[%s19672_s16 + $0x50] sm:$0xff]  }
 0x895   :  { %14548 = vmatprep.mubr.msk.bf16.mxu1 %vm15824_vm0, %v19674_v62  ;;  %v2710_v15 = vsel %vm1095_vm6, %v2676_v42, %v2626_v63  ;;  %14581 = vmatpush3.bf16.msra.mxu0 %v14956_v29 }
 0x896   :  { %14582 = vmatprep.subr.bf16.mxu0 %v19674_v62 }
 0x899   :  { %14583 = vmatpush3.bf16.msra.mxu0 %v14957_v1 }
 0x89c   :  { %14549 = vmatmul.mubr.msk.bf16.gmra.mrb[100].mxu1 %vm1166_vm7, %v2700_v55  ;;  %v18172_v55 = vld [vmem:[#allocation8 + $0x1] ss:$0 sm:$0xff] }
 0x89d   :  { %14552 = vmatprep.mubr.msk.bf16.mxu1 %vm15824_vm0, %v19674_v62 }
 0x8a4   :  { %14553 = vmatmul.mubr.msk.bf16.gmra.mrb[104].mxu1 %vm1166_vm7, %v2702_v10 }
 0x8a5   :  { %14556 = vmatprep.mubr.msk.bf16.mxu1 %vm15824_vm0, %v19674_v62 }
 0x8ac   :  { %14557 = vmatmul.mubr.msk.bf16.gmra.mrb[108].mxu1 %vm1166_vm7, %v2704_v35 }
 0x8ad   :  { %14560 = vmatprep.mubr.msk.bf16.mxu1 %vm15824_vm0, %v19674_v62 }
 0x8b4   :  { %14561 = vmatmul.mubr.msk.bf16.gmra.mrb[112].mxu1 %vm1166_vm7, %v2706_v44 }
 0x8b5   :  { %14564 = vmatprep.mubr.msk.bf16.mxu1 %vm15824_vm0, %v19674_v62 }
 0x8bc   :  { %14565 = vmatmul.mubr.msk.bf16.gmra.mrb[116].mxu1 %vm1166_vm7, %v2708_v26 }
 0x8bd   :  { %14568 = vmatprep.mubr.msk.bf16.mxu1 %vm15824_vm0, %v19674_v62 }
 0x8c4   :  { %14569 = vmatmul.mubr.msk.bf16.gmra.mrb[120].mxu1 %vm1166_vm7, %v2710_v15 }
 0x917   :  { %v2815_v59 = vpop.f32.mrb[56].mxu1 }
 0x918   :  { %v2958_v32 = vmul.f32 %v18172_v55, %v2815_v59  ;;  %v14506_v0 = vpop.f32.mrb[57].mxu1 }
 0x919   :  { %v2818_v10 = vpop.f32.mrb[58].mxu1 }
 0x91a   :  { %v3000_v40 = vadd.f32 %v18174_v8, %v2958_v32  ;;  %v2959_v13 = vmul.f32 %v18172_v55, %v2818_v10  ;;  %v14507_v17 = vpop.f32.mrb[59].mxu1 }
 0x91c   :  { %v3001_v35 = vadd.f32 %v18174_v8, %v2959_v13  ;;  %v3034_v58 = vmax.f32 %v3000_v40, 0.0 }
 0x91e   :  { %v3035_v31 = vmax.f32 %v3001_v35, 0.0 }
 0x91f   :  { %v2823_v39 = vpop.f32.mrb[60].mxu1 }
 0x920   :  { %v2960_v44 = vmul.f32 %v18172_v55, %v2823_v39  ;;  %v14510_v14 = vpop.f32.mrb[61].mxu1  ;;  %v18181_v12 = vpack.c.bf16 %v3035_v31, %v3034_v58 }
 0x921   :  { %v2826_v36 = vpop.f32.mrb[62].mxu1 }
 0x922   :  { %v3002_v11 = vadd.f32 %v18174_v8, %v2960_v44  ;;  %v2961_v26 = vmul.f32 %v18172_v55, %v2826_v36  ;;  %3152 = vrot.lane.b32.xlu0 %v18181_v12, %s15807_s29  ;;  %v14511_v48 = vpop.f32.mrb[63].mxu1  ;;  %v19596_v32 = vrot.slane %v18181_v12, 4 }
 0x924   :  { %v3003_v63 = vadd.f32 %v18174_v8, %v2961_v26  ;;  %v3036_v42 = vmax.f32 %v3002_v11, 0.0 }
 0x926   :  { %v3037_v15 = vmax.f32 %v3003_v63, 0.0 }
 0x927   :  { %v2831_v60 = vpop.f32.mrb[64].mxu1 }
 0x928   :  { %v2962_v46 = vmul.f32 %v18172_v55, %v2831_v60  ;;  %v14514_v29 = vpop.f32.mrb[65].mxu1  ;;  %v3082_v1 = vpack.c.bf16 %v3037_v15, %v3036_v42 }
 0x929   :  { %v2834_v59 = vpop.f32.mrb[66].mxu1 }
 0x92a   :  { %v3004_v0 = vadd.f32 %v18174_v8, %v2962_v46  ;;  %v2963_v10 = vmul.f32 %v18172_v55, %v2834_v59  ;;  %3154 = vrot.lane.b32.xlu0 %v3082_v1, %s15807_s29  ;;  %v3116_v40 = vrot.slane %v3082_v1, 4  ;;  %v14515_v13 = vpop.f32.mrb[67].mxu1 }
 0x92c   :  { %v3005_v17 = vadd.f32 %v18174_v8, %v2963_v10  ;;  %v18197_v35 = vsel %vm365_vm1, %v19596_v32, %v3116_v40  ;;  %v3038_v58 = vmax.f32 %v3004_v0, 0.0 }
 0x92d   :  { %3187 = vrot.lane.b32.xlu1 %v18197_v35, %s15812_s20 }
 0x92e   :  { %v3039_v31 = vmax.f32 %v3005_v17, 0.0 }
 0x92f   :  { %v2839_v39 = vpop.f32.mrb[68].mxu1 }
 0x930   :  { %v2964_v44 = vmul.f32 %v18172_v55, %v2839_v39  ;;  %v14518_v14 = vpop.f32.mrb[69].mxu1  ;;  %v3083_v36 = vpack.c.bf16 %v3039_v31, %v3038_v58 }
 0x931   :  { %v2842_v11 = vpop.f32.mrb[70].mxu1 }
 0x932   :  { %v3006_v26 = vadd.f32 %v18174_v8, %v2964_v44  ;;  %v2965_v48 = vmul.f32 %v18172_v55, %v2842_v11  ;;  %3156 = vrot.lane.b32.xlu0 %v3083_v36, %s15807_s29  ;;  %v3118_v63 = vrot.slane %v3083_v36, 4  ;;  %v14519_v42 = vpop.f32.mrb[71].mxu1 }
 0x934   :  { %v3007_v15 = vadd.f32 %v18174_v8, %v2965_v48  ;;  %v18207_v60 = vsel %vm365_vm1, %v3116_v40, %v3118_v63  ;;  %v3040_v46 = vmax.f32 %v3006_v26, 0.0 }
 0x935   :  { %3189 = vrot.lane.b32.xlu1 %v18207_v60, %s15812_s20 }
 0x936   :  { %v3041_v29 = vmax.f32 %v3007_v15, 0.0 }
 0x937   :  { %v2847_v1 = vpop.f32.mrb[72].mxu1 }
 0x938   :  { %v2966_v59 = vmul.f32 %v18172_v55, %v2847_v1  ;;  %v14522_v0 = vpop.f32.mrb[73].mxu1  ;;  %v3084_v10 = vpack.c.bf16 %v3041_v29, %v3040_v46 }
 0x939   :  { %v2850_v13 = vpop.f32.mrb[74].mxu1 }
 0x93a   :  { %v3008_v17 = vadd.f32 %v18174_v8, %v2966_v59  ;;  %v2967_v58 = vmul.f32 %v18172_v55, %v2850_v13  ;;  %3158 = vrot.lane.b32.xlu0 %v3084_v10, %s15807_s29  ;;  %v3120_v31 = vrot.slane %v3084_v10, 4  ;;  %v14523_v40 = vpop.f32.mrb[75].mxu1 }
 0x93c   :  { %v3009_v39 = vadd.f32 %v18174_v8, %v2967_v58  ;;  %v18217_v44 = vsel %vm365_vm1, %v3118_v63, %v3120_v31  ;;  %v3042_v14 = vmax.f32 %v3008_v17, 0.0 }
 0x93d   :  { %3191 = vrot.lane.b32.xlu1 %v18217_v44, %s15812_s20 }
 0x93e   :  { %v3043_v36 = vmax.f32 %v3009_v39, 0.0 }
 0x93f   :  { %v2855_v11 = vpop.f32.mrb[76].mxu1 }
 0x940   :  { %v2968_v26 = vmul.f32 %v18172_v55, %v2855_v11  ;;  %v14526_v48 = vpop.f32.mrb[77].mxu1  ;;  %v3085_v42 = vpack.c.bf16 %v3043_v36, %v3042_v14 }
 0x941   :  { %v2858_v15 = vpop.f32.mrb[78].mxu1 }
 0x942   :  { %v3010_v46 = vadd.f32 %v18174_v8, %v2968_v26  ;;  %v2969_v29 = vmul.f32 %v18172_v55, %v2858_v15  ;;  %3160 = vrot.lane.b32.xlu0 %v3085_v42, %s15807_s29  ;;  %v3122_v1 = vrot.slane %v3085_v42, 4  ;;  %v14527_v63 = vpop.f32.mrb[79].mxu1 }
 0x944   :  { %v3011_v59 = vadd.f32 %v18174_v8, %v2969_v29  ;;  %v18227_v0 = vsel %vm365_vm1, %v3120_v31, %v3122_v1  ;;  %v3044_v10 = vmax.f32 %v3010_v46, 0.0 }
 0x945   :  { %3193 = vrot.lane.b32.xlu1 %v18227_v0, %s15812_s20 }
 0x946   :  { %v3045_v13 = vmax.f32 %v3011_v59, 0.0 }
 0x947   :  { %v2863_v17 = vpop.f32.mrb[80].mxu1 }
 0x948   :  { %v2970_v58 = vmul.f32 %v18172_v55, %v2863_v17  ;;  %v14530_v40 = vpop.f32.mrb[81].mxu1  ;;  %v3086_v39 = vpack.c.bf16 %v3045_v13, %v3044_v10 }
 0x949   :  { %v2866_v14 = vpop.f32.mrb[82].mxu1 }
 0x94a   :  { %v3012_v36 = vadd.f32 %v18174_v8, %v2970_v58  ;;  %v2971_v11 = vmul.f32 %v18172_v55, %v2866_v14  ;;  %3162 = vrot.lane.b32.xlu0 %v3086_v39, %s15807_s29  ;;  %v3124_v26 = vrot.slane %v3086_v39, 4  ;;  %v14531_v31 = vpop.f32.mrb[83].mxu1 }
 0x94c   :  { %v3013_v48 = vadd.f32 %v18174_v8, %v2971_v11  ;;  %v18237_v42 = vsel %vm365_vm1, %v3122_v1, %v3124_v26  ;;  %v3046_v15 = vmax.f32 %v3012_v36, 0.0 }
 0x94d   :  { %3195 = vrot.lane.b32.xlu1 %v18237_v42, %s15812_s20 }
 0x94e   :  { %v3047_v46 = vmax.f32 %v3013_v48, 0.0 }
 0x94f   :  { %v2871_v29 = vpop.f32.mrb[84].mxu1 }
 0x950   :  { %v2972_v63 = vmul.f32 %v18172_v55, %v2871_v29  ;;  %v14534_v59 = vpop.f32.mrb[85].mxu1  ;;  %v3087_v10 = vpack.c.bf16 %v3047_v46, %v3046_v15 }
 0x951   :  { %v2874_v13 = vpop.f32.mrb[86].mxu1 }
 0x952   :  { %v3014_v17 = vadd.f32 %v18174_v8, %v2972_v63  ;;  %v2973_v58 = vmul.f32 %v18172_v55, %v2874_v13  ;;  %3164 = vrot.lane.b32.xlu0 %v3087_v10, %s15807_s29  ;;  %v3126_v40 = vrot.slane %v3087_v10, 4  ;;  %v14535_v1 = vpop.f32.mrb[87].mxu1 }
 0x954   :  { %v3015_v39 = vadd.f32 %v18174_v8, %v2973_v58  ;;  %v18247_v14 = vsel %vm365_vm1, %v3124_v26, %v3126_v40  ;;  %v3048_v36 = vmax.f32 %v3014_v17, 0.0 }
 0x955   :  { %3197 = vrot.lane.b32.xlu1 %v18247_v14, %s15812_s20 }
 0x956   :  { %v3049_v11 = vmax.f32 %v3015_v39, 0.0 }
 0x957   :  { %v2879_v31 = vpop.f32.mrb[88].mxu1 }
 0x958   :  { %v2974_v48 = vmul.f32 %v18172_v55, %v2879_v31  ;;  %v14538_v15 = vpop.f32.mrb[89].mxu1  ;;  %v3088_v46 = vpack.c.bf16 %v3049_v11, %v3048_v36 }
 0x959   :  { %v2882_v29 = vpop.f32.mrb[90].mxu1 }
 0x95a   :  { %v3016_v63 = vadd.f32 %v18174_v8, %v2974_v48  ;;  %v2975_v59 = vmul.f32 %v18172_v55, %v2882_v29  ;;  %3166 = vrot.lane.b32.xlu0 %v3088_v46, %s15807_s29  ;;  %v3128_v10 = vrot.slane %v3088_v46, 4  ;;  %v14539_v26 = vpop.f32.mrb[91].mxu1 }
 0x95c   :  { %v3017_v13 = vadd.f32 %v18174_v8, %v2975_v59  ;;  %v18257_v58 = vsel %vm365_vm1, %v3126_v40, %v3128_v10  ;;  %v3050_v17 = vmax.f32 %v3016_v63, 0.0 }
 0x95d   :  { %3199 = vrot.lane.b32.xlu1 %v18257_v58, %s15812_s20 }
 0x95e   :  { %v3051_v1 = vmax.f32 %v3017_v13, 0.0 }
 0x95f   :  { %v2887_v39 = vpop.f32.mrb[92].mxu1 }
 0x960   :  { %v2976_v36 = vmul.f32 %v18172_v55, %v2887_v39  ;;  %v14542_v11 = vpop.f32.mrb[93].mxu1  ;;  %v3089_v31 = vpack.c.bf16 %v3051_v1, %v3050_v17 }
 0x961   :  { %v2890_v48 = vpop.f32.mrb[94].mxu1 }
 0x962   :  { %v3018_v15 = vadd.f32 %v18174_v8, %v2976_v36  ;;  %v2977_v46 = vmul.f32 %v18172_v55, %v2890_v48  ;;  %3168 = vrot.lane.b32.xlu0 %v3089_v31, %s15807_s29  ;;  %v3130_v29 = vrot.slane %v3089_v31, 4  ;;  %v14543_v40 = vpop.f32.mrb[95].mxu1 }
 0x964   :  { %v3019_v59 = vadd.f32 %v18174_v8, %v2977_v46  ;;  %v18267_v26 = vsel %vm365_vm1, %v3128_v10, %v3130_v29  ;;  %v3052_v63 = vmax.f32 %v3018_v15, 0.0 }
 0x965   :  { %3201 = vrot.lane.b32.xlu1 %v18267_v26, %s15812_s20 }
 0x966   :  { %v3053_v13 = vmax.f32 %v3019_v59, 0.0 }
 0x967   :  { %v2895_v17 = vpop.f32.mrb[96].mxu1 }
 0x968   :  { %v2978_v1 = vmul.f32 %v18172_v55, %v2895_v17  ;;  %v14546_v39 = vpop.f32.mrb[97].mxu1  ;;  %v3090_v36 = vpack.c.bf16 %v3053_v13, %v3052_v63 }
 0x969   :  { %v2898_v11 = vpop.f32.mrb[98].mxu1 }
 0x96a   :  { %v3020_v48 = vadd.f32 %v18174_v8, %v2978_v1  ;;  %v2979_v31 = vmul.f32 %v18172_v55, %v2898_v11  ;;  %3170 = vrot.lane.b32.xlu0 %v3090_v36, %s15807_s29  ;;  %v3132_v46 = vrot.slane %v3090_v36, 4  ;;  %v14547_v10 = vpop.f32.mrb[99].mxu1 }
 0x96c   :  { %v3021_v40 = vadd.f32 %v18174_v8, %v2979_v31  ;;  %v18277_v51 = vsel %vm365_vm1, %v3130_v29, %v3132_v46  ;;  %v3054_v15 = vmax.f32 %v3020_v48, 0.0 }
 0x96d   :  { %3203 = vrot.lane.b32.xlu1 %v18277_v51, %s15812_s20 }
 0x96e   :  { %v3055_v59 = vmax.f32 %v3021_v40, 0.0 }
 0x96f   :  { %v2903_v63 = vpop.f32.mrb[100].mxu1 }
 0x970   :  { %v2980_v13 = vmul.f32 %v18172_v55, %v2903_v63  ;;  %v14550_v17 = vpop.f32.mrb[101].mxu1  ;;  %v3091_v1 = vpack.c.bf16 %v3055_v59, %v3054_v15 }
 0x971   :  { %v2906_v39 = vpop.f32.mrb[102].mxu1 }
 0x972   :  { %v3022_v11 = vadd.f32 %v18174_v8, %v2980_v13  ;;  %v2981_v36 = vmul.f32 %v18172_v55, %v2906_v39  ;;  %3172 = vrot.lane.b32.xlu0 %v3091_v1, %s15807_s29  ;;  %v3134_v31 = vrot.slane %v3091_v1, 4  ;;  %v14551_v29 = vpop.f32.mrb[103].mxu1 }
 0x974   :  { %v3023_v10 = vadd.f32 %v18174_v8, %v2981_v36  ;;  %v18287_v30 = vsel %vm365_vm1, %v3132_v46, %v3134_v31  ;;  %v3056_v48 = vmax.f32 %v3022_v11, 0.0 }
 0x975   :  { %3205 = vrot.lane.b32.xlu1 %v18287_v30, %s15812_s20 }
 0x976   :  { %v3057_v40 = vmax.f32 %v3023_v10, 0.0 }
 0x977   :  { %v2911_v15 = vpop.f32.mrb[104].mxu1 }
 0x978   :  { %v2982_v59 = vmul.f32 %v18172_v55, %v2911_v15  ;;  %v14554_v63 = vpop.f32.mrb[105].mxu1  ;;  %v3092_v13 = vpack.c.bf16 %v3057_v40, %v3056_v48 }
 0x979   :  { %v2914_v17 = vpop.f32.mrb[106].mxu1 }
 0x97a   :  { %v3024_v39 = vadd.f32 %v18174_v8, %v2982_v59  ;;  %v2983_v1 = vmul.f32 %v18172_v55, %v2914_v17  ;;  %3174 = vrot.lane.b32.xlu0 %v3092_v13, %s15807_s29  ;;  %v3136_v36 = vrot.slane %v3092_v13, 4  ;;  %v14555_v46 = vpop.f32.mrb[107].mxu1 }
 0x97c   :  { %v3025_v29 = vadd.f32 %v18174_v8, %v2983_v1  ;;  %v18297_v32 = vsel %vm365_vm1, %v3134_v31, %v3136_v36  ;;  %v3058_v11 = vmax.f32 %v3024_v39, 0.0 }
 0x97d   :  { %3207 = vrot.lane.b32.xlu1 %v18297_v32, %s15812_s20 }
 0x97e   :  { %v3059_v10 = vmax.f32 %v3025_v29, 0.0 }
 0x97f   :  { %v2919_v48 = vpop.f32.mrb[108].mxu1 }
 0x980   :  { %v2984_v40 = vmul.f32 %v18172_v55, %v2919_v48  ;;  %v14558_v15 = vpop.f32.mrb[109].mxu1  ;;  %v3093_v59 = vpack.c.bf16 %v3059_v10, %v3058_v11 }
 0x981   :  { %v2922_v63 = vpop.f32.mrb[110].mxu1 }
 0x982   :  { %v3026_v17 = vadd.f32 %v18174_v8, %v2984_v40  ;;  %v2985_v13 = vmul.f32 %v18172_v55, %v2922_v63  ;;  %3176 = vrot.lane.b32.xlu0 %v3093_v59, %s15807_s29  ;;  %v3138_v1 = vrot.slane %v3093_v59, 4  ;;  %v14559_v31 = vpop.f32.mrb[111].mxu1 }
 0x984   :  { %v3027_v46 = vadd.f32 %v18174_v8, %v2985_v13  ;;  %v18307_v18 = vsel %vm365_vm1, %v3136_v36, %v3138_v1  ;;  %v3060_v39 = vmax.f32 %v3026_v17, 0.0 }
 0x985   :  { %3209 = vrot.lane.b32.xlu1 %v18307_v18, %s15812_s20 }
 0x986   :  { %v3061_v29 = vmax.f32 %v3027_v46, 0.0 }
 0x987   :  { %v2927_v11 = vpop.f32.mrb[112].mxu1 }
 0x988   :  { %v2986_v10 = vmul.f32 %v18172_v55, %v2927_v11  ;;  %v14562_v48 = vpop.f32.mrb[113].mxu1  ;;  %v3094_v40 = vpack.c.bf16 %v3061_v29, %v3060_v39 }
 0x989   :  { %v2930_v15 = vpop.f32.mrb[114].mxu1 }
 0x98a   :  { %v3028_v63 = vadd.f32 %v18174_v8, %v2986_v10  ;;  %v2987_v59 = vmul.f32 %v18172_v55, %v2930_v15  ;;  %3178 = vrot.lane.b32.xlu0 %v3094_v40, %s15807_s29  ;;  %v3140_v13 = vrot.slane %v3094_v40, 4  ;;  %v14563_v36 = vpop.f32.mrb[115].mxu1 }
 0x98c   :  { %v3029_v31 = vadd.f32 %v18174_v8, %v2987_v59  ;;  %v18317_v45 = vsel %vm365_vm1, %v3138_v1, %v3140_v13  ;;  %v3062_v17 = vmax.f32 %v3028_v63, 0.0 }
 0x98d   :  { %3211 = vrot.lane.b32.xlu1 %v18317_v45, %s15812_s20 }
 0x98e   :  { %v3063_v46 = vmax.f32 %v3029_v31, 0.0 }
 0x98f   :  { %v2935_v39 = vpop.f32.mrb[116].mxu1 }
 0x990   :  { %v2988_v29 = vmul.f32 %v18172_v55, %v2935_v39  ;;  %v14566_v11 = vpop.f32.mrb[117].mxu1  ;;  %v3095_v10 = vpack.c.bf16 %v3063_v46, %v3062_v17 }
 0x991   :  { %v2938_v48 = vpop.f32.mrb[118].mxu1 }
 0x992   :  { %v3030_v15 = vadd.f32 %v18174_v8, %v2988_v29  ;;  %v2989_v40 = vmul.f32 %v18172_v55, %v2938_v48  ;;  %3180 = vrot.lane.b32.xlu0 %v3095_v10, %s15807_s29  ;;  %v3142_v59 = vrot.slane %v3095_v10, 4  ;;  %v14567_v1 = vpop.f32.mrb[119].mxu1 }
 0x994   :  { %v3031_v36 = vadd.f32 %v18174_v8, %v2989_v40  ;;  %v18327_v20 = vsel %vm365_vm1, %v3140_v13, %v3142_v59  ;;  %v3064_v63 = vmax.f32 %v3030_v15, 0.0  ;;  %v3153_v1 = vpop.permute.xlu0 %3152 }
 0x995   :  { %3213 = vrot.lane.b32.xlu1 %v18327_v20, %s15812_s20 }
 0x996   :  { %v3065_v31 = vmax.f32 %v3031_v36, 0.0  ;;  %v19775_v36 = vrot.slane %v18181_v12, 4 }
 0x997   :  { %v2943_v17 = vpop.f32.mrb[120].mxu1 }
 0x998   :  { %v2990_v46 = vmul.f32 %v18172_v55, %v2943_v17  ;;  %v14570_v39 = vpop.f32.mrb[121].mxu1  ;;  %v3096_v29 = vpack.c.bf16 %v3065_v31, %v3064_v63  ;;  %v3149_v63 = vsel %vm365_vm1, 0, %v19775_v36 }
 0x999   :  { %v2946_v11 = vpop.f32.mrb[122].mxu1 }
 0x99a   :  { %v3032_v48 = vadd.f32 %v18174_v8, %v2990_v46  ;;  %v2991_v10 = vmul.f32 %v18172_v55, %v2946_v11  ;;  %3182 = vrot.lane.b32.xlu0 %v3096_v29, %s15807_s29  ;;  %v3144_v40 = vrot.slane %v3096_v29, 4  ;;  %v14571_v13 = vpop.f32.mrb[123].mxu1  ;;  %v3222_v55 = vsel %vm1044_vm5, %v3149_v63, %v3153_v1 }
 0x99c   :  { %v3033_v25 = vadd.f32 %v18174_v8, %v2991_v10  ;;  %v18337_v15 = vsel %vm365_vm1, %v3142_v59, %v3144_v40  ;;  %v3066_v31 = vmax.f32 %v3032_v48, 0.0  ;;  %v3155_v59 = vpop.permute.xlu0 %3154 }
 0x99d   :  { %3215 = vrot.lane.b32.xlu1 %v18337_v15, %s15812_s20 }
 0x99e   :  { %v3067_v17 = vmax.f32 %v3033_v25, 0.0  ;;  %v3225_v25 = vsel %vm1044_vm5, %v18197_v35, %v3155_v59 }
 0x99f   :  { %v3188_v46 = vpop.permute.xlu1 %3187 }
 0x9a0   :  { %v3272_v39 = vsel %vm1095_vm6, %v3222_v55, %v3188_v46  ;;  %v3097_v29 = vpack.c.bf16 %v3067_v17, %v3066_v31 }
 0x9a1   :  { %14585 = vmatmul.mubr.msk.bf16.vlgmr.msra.gmra.mrb[152].mxu0 %vm1166_vm7, %v3272_v39 }
 0x9a2   :  { %3184 = vrot.lane.b32.xlu0 %v3097_v29, %s15807_s29  ;;  %v3146_v8 = vrot.slane %v3097_v29, 4  ;;  %14588 = vmatprep.mubr.msk.bf16.mxu0 %vm15824_vm0, %v19674_v62 }
 0x9a4   :  { %v18351_v12 = vsel %vm365_vm1, %v3144_v40, %v3146_v8  ;;  %v3151_v10 = vsel %vm365_vm1, %v3146_v8, 0  ;;  %v3157_v40 = vpop.permute.xlu0 %3156 }
 0x9a5   :  { %3217 = vrot.lane.b32.xlu1 %v18351_v12, %s15812_s20  ;;  %v3228_v13 = vsel %vm1044_vm5, %v18207_v60, %v3157_v40 }
 0x9a7   :  { %v3190_v11 = vpop.permute.xlu1 %3189 }
 0x9a8   :  { %v3274_v48 = vsel %vm1095_vm6, %v3225_v25, %v3190_v11 }
 0x9a9   :  { %14589 = vmatmul.mubr.msk.bf16.gmra.mrb[156].mxu0 %vm1166_vm7, %v3274_v48  ;;  %3219 = vrot.lane.b32.xlu1 %v3151_v10, %s15812_s20 }
 0x9aa   :  { %14592 = vmatprep.mubr.msk.bf16.mxu0 %vm15824_vm0, %v19674_v62 }
 0x9ac   :  { %v3159_v35 = vpop.permute.xlu0 %3158 }
 0x9ad   :  { %v3231_v63 = vsel %vm1044_vm5, %v18217_v44, %v3159_v35 }
 0x9af   :  { %v3192_v1 = vpop.permute.xlu1 %3191 }
 0x9b0   :  { %v3276_v36 = vsel %vm1095_vm6, %v3228_v13, %v3192_v1 }
 0x9b1   :  { %14593 = vmatmul.mubr.msk.bf16.gmra.mrb[160].mxu0 %vm1166_vm7, %v3276_v36 }
 0x9b2   :  { %14596 = vmatprep.mubr.msk.bf16.mxu0 %vm15824_vm0, %v19674_v62 }
 0x9b4   :  { %v3161_v60 = vpop.permute.xlu0 %3160 }
 0x9b5   :  { %v3234_v55 = vsel %vm1044_vm5, %v18227_v0, %v3161_v60 }
 0x9b7   :  { %v3194_v31 = vpop.permute.xlu1 %3193 }
 0x9b8   :  { %v3278_v17 = vsel %vm1095_vm6, %v3231_v63, %v3194_v31 }
 0x9b9   :  { %14597 = vmatmul.mubr.msk.bf16.gmra.mrb[164].mxu0 %vm1166_vm7, %v3278_v17 }
 0x9ba   :  { %14600 = vmatprep.mubr.msk.bf16.mxu0 %vm15824_vm0, %v19674_v62 }
 0x9bc   :  { %v3163_v44 = vpop.permute.xlu0 %3162 }
 0x9bd   :  { %v3237_v29 = vsel %vm1044_vm5, %v18237_v42, %v3163_v44 }
 0x9bf   :  { %v3196_v46 = vpop.permute.xlu1 %3195 }
 0x9c0   :  { %v3280_v39 = vsel %vm1095_vm6, %v3234_v55, %v3196_v46 }
 0x9c1   :  { %14601 = vmatmul.mubr.msk.bf16.gmra.mrb[168].mxu0 %vm1166_vm7, %v3280_v39 }
 0x9c2   :  { %14604 = vmatprep.mubr.msk.bf16.mxu0 %vm15824_vm0, %v19674_v62 }
 0x9c4   :  { %v3165_v0 = vpop.permute.xlu0 %3164 }
 0x9c5   :  { %v3240_v25 = vsel %vm1044_vm5, %v18247_v14, %v3165_v0 }
 0x9c7   :  { %v3198_v8 = vpop.permute.xlu1 %3197 }
 0x9c8   :  { %v3282_v59 = vsel %vm1095_vm6, %v3237_v29, %v3198_v8  ;;  %v12929_v8 = vld [vmem:[%s19468_s10 + $0x20] sm:$0xff] }
 0x9c9   :  { %14605 = vmatmul.mubr.msk.bf16.gmra.mrb[172].mxu0 %vm1166_vm7, %v3282_v59  ;;  %v12930_v59 = vld [vmem:[%s19468_s10 + $0x28] sm:$0xff] }
 0x9ca   :  { %14608 = vmatprep.mubr.msk.bf16.mxu0 %vm15824_vm0, %v19674_v62  ;;  %v14756_v0 = vpack.c.bf16 %v12930_v59, %v12929_v8 }
 0x9cc   :  { %v3167_v42 = vpop.permute.xlu0 %3166  ;;  %14757 = vmatprep.subr.bf16.mxu1 %v14756_v0 }
 0x9cd   :  { %v3243_v10 = vsel %vm1044_vm5, %v18257_v58, %v3167_v42  ;;  %14759 = vmatpush3.bf16.msra.mxu1 %v14756_v0 }
 0x9cf   :  { %v3200_v11 = vpop.permute.xlu1 %3199 }
 0x9d0   :  { %v3284_v48 = vsel %vm1095_vm6, %v3240_v25, %v3200_v11 }
 0x9d1   :  { %14609 = vmatmul.mubr.msk.bf16.gmra.mrb[176].mxu0 %vm1166_vm7, %v3284_v48 }
 0x9d2   :  { %14612 = vmatprep.mubr.msk.bf16.mxu0 %vm15824_vm0, %v19674_v62 }
 0x9d4   :  { %v3169_v14 = vpop.permute.xlu0 %3168 }
 0x9d5   :  { %v3246_v1 = vsel %vm1044_vm5, %v18267_v26, %v3169_v14 }
 0x9d7   :  { %v3202_v40 = vpop.permute.xlu1 %3201 }
 0x9d8   :  { %v3286_v13 = vsel %vm1095_vm6, %v3243_v10, %v3202_v40 }
 0x9d9   :  { %14613 = vmatmul.mubr.msk.bf16.gmra.mrb[180].mxu0 %vm1166_vm7, %v3286_v13 }
 0x9da   :  { %14616 = vmatprep.mubr.msk.bf16.mxu0 %vm15824_vm0, %v19674_v62 }
 0x9dc   :  { %v3171_v58 = vpop.permute.xlu0 %3170 }
 0x9dd   :  { %v3249_v63 = vsel %vm1044_vm5, %v18277_v51, %v3171_v58 }
 0x9df   :  { %v3204_v36 = vpop.permute.xlu1 %3203 }
 0x9e0   :  { %v3288_v35 = vsel %vm1095_vm6, %v3246_v1, %v3204_v36 }
 0x9e1   :  { %14617 = vmatmul.mubr.msk.bf16.gmra.mrb[184].mxu0 %vm1166_vm7, %v3288_v35 }
 0x9e2   :  { %14620 = vmatprep.mubr.msk.bf16.mxu0 %vm15824_vm0, %v19674_v62 }
 0x9e4   :  { %v3173_v26 = vpop.permute.xlu0 %3172 }
 0x9e5   :  { %v3252_v60 = vsel %vm1044_vm5, %v18287_v30, %v3173_v26  ;;  %v12932_v26 = vld [vmem:[%s19468_s10 + $0x38] sm:$0xff] }
 0x9e7   :  { %v3206_v31 = vpop.permute.xlu1 %3205 }
 0x9e8   :  { %v3290_v17 = vsel %vm1095_vm6, %v3249_v63, %v3206_v31 }
 0x9e9   :  { %14621 = vmatmul.mubr.msk.bf16.gmra.mrb[188].mxu0 %vm1166_vm7, %v3290_v17 }
 0x9ea   :  { %14624 = vmatprep.mubr.msk.bf16.mxu0 %vm15824_vm0, %v19674_v62 }
 0x9ec   :  { %v3175_v51 = vpop.permute.xlu0 %3174 }
 0x9ed   :  { %v3255_v39 = vsel %vm1044_vm5, %v18297_v32, %v3175_v51 }
 0x9ef   :  { %v3208_v55 = vpop.permute.xlu1 %3207 }
 0x9f0   :  { %v3292_v46 = vsel %vm1095_vm6, %v3252_v60, %v3208_v55 }
 0x9f1   :  { %14625 = vmatmul.mubr.msk.bf16.gmra.mrb[192].mxu0 %vm1166_vm7, %v3292_v46 }
 0x9f2   :  { %14628 = vmatprep.mubr.msk.bf16.mxu0 %vm15824_vm0, %v19674_v62 }
 0x9f4   :  { %v3177_v30 = vpop.permute.xlu0 %3176 }
 0x9f5   :  { %v3258_v32 = vsel %vm1044_vm5, %v18307_v18, %v3177_v30 }
 0x9f7   :  { %v3210_v44 = vpop.permute.xlu1 %3209 }
 0x9f8   :  { %v3294_v29 = vsel %vm1095_vm6, %v3255_v39, %v3210_v44 }
 0x9f9   :  { %14629 = vmatmul.mubr.msk.bf16.gmra.mrb[196].mxu0 %vm1166_vm7, %v3294_v29 }
 0x9fa   :  { %14632 = vmatprep.mubr.msk.bf16.mxu0 %vm15824_vm0, %v19674_v62 }
 0x9fc   :  { %v3179_v48 = vpop.permute.xlu0 %3178 }
 0x9fd   :  { %v3261_v42 = vsel %vm1044_vm5, %v18317_v45, %v3179_v48 }
 0x9ff   :  { %v3212_v25 = vpop.permute.xlu1 %3211 }
 0xa00   :  { %v3296_v11 = vsel %vm1095_vm6, %v3258_v32, %v3212_v25 }
 0xa01   :  { %14633 = vmatmul.mubr.msk.bf16.gmra.mrb[200].mxu0 %vm1166_vm7, %v3296_v11 }
 0xa02   :  { %14636 = vmatprep.mubr.msk.bf16.mxu0 %vm15824_vm0, %v19674_v62 }
 0xa04   :  { %v3181_v18 = vpop.permute.xlu0 %3180 }
 0xa05   :  { %v3264_v13 = vsel %vm1044_vm5, %v18327_v20, %v3181_v18 }
 0xa07   :  { %v3214_v10 = vpop.permute.xlu1 %3213 }
 0xa08   :  { %v3298_v40 = vsel %vm1095_vm6, %v3261_v42, %v3214_v10  ;;  %v18463_v10 = vld [vmem:[#allocation11 + $0x1] ss:$0 sm:$0xff] }
 0xa09   :  { %14637 = vmatmul.mubr.msk.bf16.gmra.mrb[204].mxu0 %vm1166_vm7, %v3298_v40 }
 0xa0a   :  { %14640 = vmatprep.mubr.msk.bf16.mxu0 %vm15824_vm0, %v19674_v62 }
 0xa0c   :  { %v3183_v45 = vpop.permute.xlu0 %3182 }
 0xa0d   :  { %v3267_v36 = vsel %vm1044_vm5, %v18337_v15, %v3183_v45  ;;  %v12931_v15 = vld [vmem:[%s19468_s10 + $0x30] sm:$0xff] }
 0xa0e   :  { %v14760_v60 = vpack.c.bf16 %v12932_v26, %v12931_v15  ;;  %v18468_v45 = vld [vmem:[#allocation13 + $0x1] ss:$0 sm:$0xff] }
 0xa0f   :  { %v3216_v14 = vpop.permute.xlu1 %3215 }
 0xa10   :  { %v3300_v1 = vsel %vm1095_vm6, %v3264_v13, %v3216_v14  ;;  %14761 = vmatprep.subr.bf16.mxu1 %v14760_v60 }
 0xa11   :  { %14641 = vmatmul.mubr.msk.bf16.gmra.mrb[208].mxu0 %vm1166_vm7, %v3300_v1  ;;  %14763 = vmatpush3.bf16.msra.mxu1 %v14760_v60 }
 0xa12   :  { %14644 = vmatprep.mubr.msk.bf16.mxu0 %vm15824_vm0, %v19674_v62 }
 0xa14   :  { %v3185_v20 = vpop.permute.xlu0 %3184 }
 0xa15   :  { %v3270_v31 = vsel %vm1044_vm5, %v18351_v12, %v3185_v20 }
 0xa17   :  { %v3218_v35 = vpop.permute.xlu1 %3217 }
 0xa18   :  { %v3302_v58 = vsel %vm1095_vm6, %v3267_v36, %v3218_v35 }
 0xa19   :  { %14645 = vmatmul.mubr.msk.bf16.gmra.mrb[212].mxu0 %vm1166_vm7, %v3302_v58 }
 0xa1a   :  { %14648 = vmatprep.mubr.msk.bf16.mxu0 %vm15824_vm0, %v19674_v62 }
 0xa1b   :  { %v3220_v63 = vpop.permute.xlu1 %3219 }
 0xa1c   :  { %v3304_v17 = vsel %vm1095_vm6, %v3270_v31, %v3220_v63 }
 0xa21   :  { %14649 = vmatmul.mubr.msk.bf16.gmra.mrb[216].mxu0 %vm1166_vm7, %v3304_v17 }
 0xa74   :  { %v3409_v55 = vpop.f32.mrb[152].mxu0 }
 0xa75   :  { %v14586_v46 = vpop.f32.mrb[153].mxu0  ;;  %v3552_v13 = vmul.f32 %v18463_v10, %v3409_v55 }
 0xa76   :  { %v3412_v51 = vpop.f32.mrb[154].mxu0 }
 0xa77   :  { %v14587_v39 = vpop.f32.mrb[155].mxu0  ;;  %v3553_v40 = vmul.f32 %v18463_v10, %v3412_v51  ;;  %v18474_v20 = vadd.f32 %v18468_v45, %v3552_v13 }
 0xa79   :  { %v18471_v35 = vadd.f32 %v18468_v45, %v3553_v40  ;;  %v3628_v60 = vsel %vm1044_vm5, %v18474_v20, 0.0 }
 0xa7b   :  { %v3629_v17 = vsel %vm1044_vm5, %v18471_v35, 0.0 }
 0xa7c   :  { %v3417_v12 = vpop.f32.mrb[156].mxu0  ;;  %v3630_v39 = vadd.f32 %v3629_v17, %v3628_v60 }
 0xa7d   :  { %v14590_v44 = vpop.f32.mrb[157].mxu0  ;;  %v3554_v14 = vmul.f32 %v18463_v10, %v3417_v12 }
 0xa7e   :  { %v3420_v29 = vpop.f32.mrb[158].mxu0 }
 0xa7f   :  { %v14591_v30 = vpop.f32.mrb[159].mxu0  ;;  %v18477_v63 = vadd.f32 %v18468_v45, %v3554_v14  ;;  %v3555_v31 = vmul.f32 %v18463_v10, %v3420_v29 }
 0xa81   :  { %v3631_v55 = vsel %vm1044_vm5, %v18477_v63, 0.0  ;;  %v18488_v46 = vadd.f32 %v18468_v45, %v3555_v31 }
 0xa83   :  { %v3699_v3 = vsel %vm1044_vm5, %v18488_v46, -inf }
 0xa84   :  { %v3425_v8 = vpop.f32.mrb[160].mxu0 }
 0xa85   :  { %v14594_v59 = vpop.f32.mrb[161].mxu0  ;;  %v3556_v15 = vmul.f32 %v18463_v10, %v3425_v8  ;;  %v3632_v8 = vadd.f32 %v3631_v55, %v3630_v39 }
 0xa86   :  { %v3428_v0 = vpop.f32.mrb[162].mxu0  ;;  %v3633_v59 = vsel %vm1044_vm5, %v18488_v46, 0.0 }
 0xa87   :  { %v14595_v32 = vpop.f32.mrb[163].mxu0  ;;  %v18491_v44 = vadd.f32 %v18468_v45, %v3556_v15  ;;  %v3557_v29 = vmul.f32 %v18463_v10, %v3428_v0  ;;  %v3634_v40 = vadd.f32 %v3633_v59, %v3632_v8 }
 0xa89   :  { %v3700_v4 = vsel %vm1044_vm5, %v18491_v44, -inf }
 0xa8c   :  { %v3433_v25 = vpop.f32.mrb[164].mxu0 }
 0xa8d   :  { %v14598_v11 = vpop.f32.mrb[165].mxu0  ;;  %v3558_v32 = vmul.f32 %v18463_v10, %v3433_v25 }
 0xa8e   :  { %v3436_v48 = vpop.f32.mrb[166].mxu0  ;;  %v3635_v11 = vsel %vm1044_vm5, %v18491_v44, 0.0 }
 0xa8f   :  { %v14599_v42 = vpop.f32.mrb[167].mxu0  ;;  %v18503_v14 = vadd.f32 %v18468_v45, %v3558_v32  ;;  %v3559_v0 = vmul.f32 %v18463_v10, %v3436_v48 }
 0xa90   :  { %v18500_v42 = vadd.f32 %v18468_v45, %v3557_v29 }
 0xa91   :  { %v3639_v60 = vsel %vm1044_vm5, %v18503_v14, 0.0  ;;  %v18512_v55 = vadd.f32 %v18468_v45, %v3559_v0  ;;  %v3704_v6 = vsel %vm1044_vm5, %v18503_v14, -inf }
 0xa92   :  { %v3637_v17 = vsel %vm1044_vm5, %v18500_v42, 0.0 }
 0xa93   :  { %v3641_v8 = vsel %vm1044_vm5, %v18512_v55, 0.0 }
 0xa94   :  { %v3441_v18 = vpop.f32.mrb[168].mxu0 }
 0xa95   :  { %v14602_v1 = vpop.f32.mrb[169].mxu0  ;;  %v3560_v25 = vmul.f32 %v18463_v10, %v3441_v18 }
 0xa96   :  { %v3444_v36 = vpop.f32.mrb[170].mxu0 }
 0xa97   :  { %v14603_v58 = vpop.f32.mrb[171].mxu0  ;;  %v18515_v39 = vadd.f32 %v18468_v45, %v3560_v25  ;;  %v3561_v48 = vmul.f32 %v18463_v10, %v3444_v36 }
 0xa98   :  { %v3636_v58 = vadd.f32 %v3635_v11, %v3634_v40 }
 0xa99   :  { %v3643_v11 = vsel %vm1044_vm5, %v18515_v39, 0.0  ;;  %v18524_v40 = vadd.f32 %v18468_v45, %v3561_v48 }
 0xa9b   :  { %v3645_v25 = vsel %vm1044_vm5, %v18524_v40, 0.0  ;;  %v3710_v34 = vsel %vm1044_vm5, %v18524_v40, -inf }
 0xa9c   :  { %v3449_v26 = vpop.f32.mrb[172].mxu0 }
 0xa9d   :  { %v14606_v51 = vpop.f32.mrb[173].mxu0  ;;  %v3562_v18 = vmul.f32 %v18463_v10, %v3449_v26 }
 0xa9e   :  { %v3452_v12 = vpop.f32.mrb[174].mxu0  ;;  %v3638_v51 = vadd.f32 %v3637_v17, %v3636_v58 }
 0xa9f   :  { %v14607_v30 = vpop.f32.mrb[175].mxu0  ;;  %v18527_v58 = vadd.f32 %v18468_v45, %v3562_v18  ;;  %v3563_v36 = vmul.f32 %v18463_v10, %v3452_v12 }
 0xaa0   :  { %v3640_v29 = vadd.f32 %v3639_v60, %v3638_v51 }
 0xaa1   :  { %v3647_v60 = vsel %vm1044_vm5, %v18527_v58, 0.0  ;;  %v18536_v51 = vadd.f32 %v18468_v45, %v3563_v36  ;;  %v3712_v5 = vsel %vm1044_vm5, %v18527_v58, -inf }
 0xaa3   :  { %19776 = vst [vmem:[#allocation64_spill] sm:$0xff] %v18536_v51 }
 0xaa4   :  { %v3457_v13 = vpop.f32.mrb[176].mxu0 }
 0xaa5   :  { %v14610_v1 = vpop.f32.mrb[177].mxu0  ;;  %v3564_v26 = vmul.f32 %v18463_v10, %v3457_v13  ;;  %v3649_v13 = vsel %vm1044_vm5, %v18536_v51, 0.0 }
 0xaa6   :  { %v3460_v31 = vpop.f32.mrb[178].mxu0  ;;  %v3642_v1 = vadd.f32 %v3641_v8, %v3640_v29 }
 0xaa7   :  { %v14611_v15 = vpop.f32.mrb[179].mxu0  ;;  %v18539_v18 = vadd.f32 %v18468_v45, %v3564_v26  ;;  %v3565_v12 = vmul.f32 %v18463_v10, %v3460_v31 }
 0xaa8   :  { %v3644_v17 = vadd.f32 %v3643_v11, %v3642_v1 }
 0xaa9   :  { %v3651_v1 = vsel %vm1044_vm5, %v18539_v18, 0.0  ;;  %v18548_v36 = vadd.f32 %v18468_v45, %v3565_v12 }
 0xaaa   :  { %v3646_v29 = vadd.f32 %v3645_v25, %v3644_v17 }
 0xaac   :  { %v3465_v30 = vpop.f32.mrb[180].mxu0  ;;  %v3648_v11 = vadd.f32 %v3647_v60, %v3646_v29 }
 0xaad   :  { %v14614_v59 = vpop.f32.mrb[181].mxu0 }
 0xaae   :  { %v3468_v32 = vpop.f32.mrb[182].mxu0  ;;  %v3650_v17 = vadd.f32 %v3649_v13, %v3648_v11 }
 0xaaf   :  { %v14615_v0 = vpop.f32.mrb[183].mxu0  ;;  %v3567_v31 = vmul.f32 %v18463_v10, %v3468_v32 }
 0xab0   :  { %v3566_v0 = vmul.f32 %v18463_v10, %v3465_v30  ;;  %v3652_v60 = vadd.f32 %v3651_v1, %v3650_v17 }
 0xab1   :  { %v18560_v11 = vadd.f32 %v18468_v45, %v3567_v31 }
 0xab2   :  { %v18551_v26 = vadd.f32 %v18468_v45, %v3566_v0 }
 0xab4   :  { %v3473_v15 = vpop.f32.mrb[184].mxu0  ;;  %v3655_v12 = vsel %vm1044_vm5, %v18551_v26, 0.0 }
 0xab5   :  { %v14618_v48 = vpop.f32.mrb[185].mxu0  ;;  %v3568_v30 = vmul.f32 %v18463_v10, %v3473_v15 }
 0xab6   :  { %v3476_v8 = vpop.f32.mrb[186].mxu0 }
 0xab7   :  { %v14619_v59 = vpop.f32.mrb[187].mxu0  ;;  %v18563_v0 = vadd.f32 %v18468_v45, %v3568_v30  ;;  %v3569_v32 = vmul.f32 %v18463_v10, %v3476_v8 }
 0xab8   :  { %v3653_v59 = vsel %vm1044_vm5, %v18548_v36, 0.0 }
 0xab9   :  { %v3654_v13 = vadd.f32 %v3653_v59, %v3652_v60  ;;  %v3659_v22 = vsel %vm1044_vm5, %v18563_v0, 0.0  ;;  %v18572_v31 = vadd.f32 %v18468_v45, %v3569_v32 }
 0xabb   :  { %v3656_v1 = vadd.f32 %v3655_v12, %v3654_v13  ;;  %v3661_v13 = vsel %vm1044_vm5, %v18572_v31, 0.0 }
 0xabc   :  { %v3481_v25 = vpop.f32.mrb[188].mxu0 }
 0xabd   :  { %v14622_v48 = vpop.f32.mrb[189].mxu0  ;;  %v3570_v15 = vmul.f32 %v18463_v10, %v3481_v25 }
 0xabe   :  { %v3484_v29 = vpop.f32.mrb[190].mxu0  ;;  %v3657_v48 = vsel %vm1044_vm5, %v18560_v11, 0.0 }
 0xabf   :  { %v14623_v57 = vpop.f32.mrb[191].mxu0  ;;  %v3658_v59 = vadd.f32 %v3657_v48, %v3656_v1  ;;  %v18575_v30 = vadd.f32 %v18468_v45, %v3570_v15  ;;  %v3571_v8 = vmul.f32 %v18463_v10, %v3484_v29 }
 0xac1   :  { %v3660_v12 = vadd.f32 %v3659_v22, %v3658_v59  ;;  %v3663_v38 = vsel %vm1044_vm5, %v18575_v30, 0.0  ;;  %v18584_v32 = vadd.f32 %v18468_v45, %v3571_v8 }
 0xac3   :  { %v3662_v1 = vadd.f32 %v3661_v13, %v3660_v12 }
 0xac4   :  { %v3489_v17 = vpop.f32.mrb[192].mxu0 }
 0xac5   :  { %v14626_v57 = vpop.f32.mrb[193].mxu0  ;;  %v3572_v25 = vmul.f32 %v18463_v10, %v3489_v17  ;;  %v3664_v59 = vadd.f32 %v3663_v38, %v3662_v1  ;;  %v3665_v17 = vsel %vm1044_vm5, %v18584_v32, 0.0 }
 0xac6   :  { %v3492_v24 = vpop.f32.mrb[194].mxu0 }
 0xac7   :  { %v14627_v60 = vpop.f32.mrb[195].mxu0  ;;  %v18587_v15 = vadd.f32 %v18468_v45, %v3572_v25  ;;  %v3573_v22 = vmul.f32 %v18463_v10, %v3492_v24  ;;  %v3666_v12 = vadd.f32 %v3665_v17, %v3664_v59 }
 0xac9   :  { %19777 = vst [vmem:[#allocation74_spill] sm:$0xff] %v18587_v15  ;;  %v3667_v50 = vsel %vm1044_vm5, %v18587_v15, 0.0  ;;  %v18596_v8 = vadd.f32 %v18468_v45, %v3573_v22 }
 0xaca   :  { %v3668_v38 = vadd.f32 %v3667_v50, %v3666_v12 }
 0xacb   :  { %19778 = vst [vmem:[#allocation65_spill] sm:$0xff] %v18596_v8 }
 0xacc   :  { %v3497_v57 = vpop.f32.mrb[196].mxu0 }
 0xacd   :  { %v14630_v60 = vpop.f32.mrb[197].mxu0  ;;  %v3574_v56 = vmul.f32 %v18463_v10, %v3497_v57 }
 0xace   :  { %v3500_v48 = vpop.f32.mrb[198].mxu0 }
 0xacf   :  { %v14631_v29 = vpop.f32.mrb[199].mxu0  ;;  %v18599_v25 = vadd.f32 %v18468_v45, %v3574_v56  ;;  %v3575_v24 = vmul.f32 %v18463_v10, %v3500_v48 }
 0xad0   :  { %v3669_v29 = vsel %vm1044_vm5, %v18596_v8, 0.0 }
 0xad1   :  { %v3671_v22 = vsel %vm1044_vm5, %v18599_v25, 0.0  ;;  %v18608_v59 = vadd.f32 %v18468_v45, %v3575_v24  ;;  %v3670_v17 = vadd.f32 %v3669_v29, %v3668_v38 }
 0xad3   :  { %v3672_v50 = vadd.f32 %v3671_v22, %v3670_v17 }
 0xad4   :  { %v3505_v13 = vpop.f32.mrb[200].mxu0 }
 0xad5   :  { %v14634_v60 = vpop.f32.mrb[201].mxu0  ;;  %v3576_v57 = vmul.f32 %v18463_v10, %v3505_v13 }
 0xad6   :  { %v3508_v1 = vpop.f32.mrb[202].mxu0  ;;  %v3673_v60 = vsel %vm1044_vm5, %v18608_v59, 0.0 }
 0xad7   :  { %v14635_v37 = vpop.f32.mrb[203].mxu0  ;;  %v18611_v56 = vadd.f32 %v18468_v45, %v3576_v57  ;;  %v3577_v48 = vmul.f32 %v18463_v10, %v3508_v1  ;;  %v3674_v29 = vadd.f32 %v3673_v60, %v3672_v50 }
 0xad9   :  { %v3675_v49 = vsel %vm1044_vm5, %v18611_v56, 0.0  ;;  %v18620_v24 = vadd.f32 %v18468_v45, %v3577_v48 }
 0xada   :  { %v3676_v22 = vadd.f32 %v3675_v49, %v3674_v29  ;;  %v3697_v49 = vsel %vm1044_vm5, %v18471_v35, -inf }
 0xadb   :  { %v3677_v17 = vsel %vm1044_vm5, %v18620_v24, 0.0 }
 0xadc   :  { %v3513_v12 = vpop.f32.mrb[204].mxu0  ;;  %v3678_v29 = vadd.f32 %v3677_v17, %v3676_v22  ;;  %v3708_v22 = vsel %vm1044_vm5, %v18515_v39, -inf }
 0xadd   :  { %v3578_v13 = vmul.f32 %v18463_v10, %v3513_v12  ;;  %v14638_v37 = vpop.f32.mrb[205].mxu0  ;;  %v3696_v12 = vsel %vm1044_vm5, %v18474_v20, -inf }
 0xade   :  { %v3516_v33 = vpop.f32.mrb[206].mxu0  ;;  %v3701_v41 = vmax.f32 %v3696_v12, %v3700_v4  ;;  %v3716_v12 = vsel %vm1044_vm5, %v18539_v18, -inf }
 0xadf   :  { %v14639_v38 = vpop.f32.mrb[207].mxu0  ;;  %v18623_v57 = vadd.f32 %v18468_v45, %v3578_v13  ;;  %v3579_v1 = vmul.f32 %v18463_v10, %v3516_v33  ;;  %v3698_v13 = vsel %vm1044_vm5, %v18477_v63, -inf }
 0xae0   :  { %v3702_v38 = vsel %vm1044_vm5, %v18500_v42, -inf  ;;  %v3705_v54 = vmax.f32 %v3698_v13, %v3704_v6  ;;  %v3709_v4 = vmax.f32 %v3701_v41, %v3708_v22  ;;  %v3720_v41 = vsel %vm1044_vm5, %v18551_v26, -inf }
 0xae1   :  { %v3679_v48 = vsel %vm1044_vm5, %v18623_v57, 0.0  ;;  %v18635_v50 = vadd.f32 %v18468_v45, %v3579_v1  ;;  %v3706_v1 = vsel %vm1044_vm5, %v18512_v55, -inf }
 0xae2   :  { %v3680_v17 = vadd.f32 %v3679_v48, %v3678_v29  ;;  %v3707_v2 = vmax.f32 %v3699_v3, %v3706_v1  ;;  %v3713_v61 = vmax.f32 %v3705_v54, %v3712_v5  ;;  %v3722_v3 = vsel %vm1044_vm5, %v18560_v11, -inf }
 0xae3   :  { %v3728_v1 = vsel %vm1044_vm5, %v18575_v30, -inf }
 0xae4   :  { %v3521_v37 = vpop.f32.mrb[208].mxu0 }
 0xae5   :  { %v3580_v60 = vmul.f32 %v18463_v10, %v3521_v37  ;;  %v14642_v33 = vpop.f32.mrb[209].mxu0 }
 0xae6   :  { %v3524_v19 = vpop.f32.mrb[210].mxu0 }
 0xae7   :  { %v18649_v37 = vadd.f32 %v18468_v45, %v3580_v60  ;;  %v3581_v33 = vmul.f32 %v18463_v10, %v3524_v19  ;;  %v14643_v27 = vpop.f32.mrb[211].mxu0  ;;  %v3714_v60 = vsel %vm1044_vm5, %v18536_v51, -inf  ;;  %v3703_v19 = vmax.f32 %v3697_v49, %v3702_v38 }
 0xae8   :  { %v3681_v27 = vsel %vm1044_vm5, %v18635_v50, 0.0  ;;  %v3715_v52 = vmax.f32 %v3707_v2, %v3714_v60  ;;  %v3718_v49 = vsel %vm1044_vm5, %v18548_v36, -inf  ;;  %v3717_v38 = vmax.f32 %v3709_v4, %v3716_v12 }
 0xae9   :  { %v3683_v48 = vsel %vm1044_vm5, %v18649_v37, 0.0  ;;  %v18669_v29 = vadd.f32 %v18468_v45, %v3581_v33  ;;  %v3711_v7 = vmax.f32 %v3703_v19, %v3710_v34  ;;  %v3682_v51 = vadd.f32 %v3681_v27, %v3680_v17 }
 0xaea   :  { %v3724_v34 = vsel %vm1044_vm5, %v18563_v0, -inf  ;;  %v3726_v2 = vsel %vm1044_vm5, %v18572_v31, -inf  ;;  %v3721_v27 = vmax.f32 %v3713_v61, %v3720_v41  ;;  %v3723_v19 = vmax.f32 %v3715_v52, %v3722_v3 }
 0xaeb   :  { %v3684_v54 = vadd.f32 %v3683_v48, %v3682_v51  ;;  %v3685_v33 = vsel %vm1044_vm5, %v18669_v29, 0.0  ;;  %v3719_v60 = vmax.f32 %v3711_v7, %v3718_v49  ;;  %v3730_v4 = vsel %vm1044_vm5, %v18584_v32, -inf }
 0xaec   :  { %v3529_v43 = vpop.f32.mrb[212].mxu0  ;;  %v3732_v51 = vsel %vm1044_vm5, %v18587_v15, -inf  ;;  %v3734_v12 = vsel %vm1044_vm5, %v18596_v8, -inf  ;;  %v3729_v7 = vmax.f32 %v3721_v27, %v3728_v1  ;;  %v3731_v52 = vmax.f32 %v3723_v19, %v3730_v4 }
 0xaed   :  { %v3582_v6 = vmul.f32 %v18463_v10, %v3529_v43  ;;  %v14646_v13 = vpop.f32.mrb[213].mxu0  ;;  %v3686_v61 = vadd.f32 %v3685_v33, %v3684_v54  ;;  %v3736_v49 = vsel %vm1044_vm5, %v18599_v25, -inf  ;;  %v3738_v41 = vsel %vm1044_vm5, %v18608_v59, -inf }
 0xaee   :  { %v3532_v5 = vpop.f32.mrb[214].mxu0  ;;  %v3725_v13 = vmax.f32 %v3717_v38, %v3724_v34  ;;  %v3740_v3 = vsel %vm1044_vm5, %v18611_v56, -inf  ;;  %v3744_v34 = vsel %vm1044_vm5, %v18623_v57, -inf  ;;  %v3739_v27 = vmax.f32 %v3731_v52, %v3738_v41 }
 0xaef   :  { %v18687_v22 = vadd.f32 %v18468_v45, %v3582_v6  ;;  %v3583_v43 = vmul.f32 %v18463_v10, %v3532_v5  ;;  %v14647_v17 = vpop.f32.mrb[215].mxu0  ;;  %v3727_v5 = vmax.f32 %v3719_v60, %v3726_v2  ;;  %v3746_v2 = vsel %vm1044_vm5, %v18635_v50, -inf }
 0xaf0   :  { %v3733_v17 = vmax.f32 %v3725_v13, %v3732_v51  ;;  %v3737_v60 = vmax.f32 %v3729_v7, %v3736_v49  ;;  %v3748_v4 = vsel %vm1044_vm5, %v18649_v37, -inf  ;;  %v3747_v52 = vmax.f32 %v3739_v27, %v3746_v2 }
 0xaf1   :  { %v3687_v48 = vsel %vm1044_vm5, %v18687_v22, 0.0  ;;  %v18699_v6 = vadd.f32 %v18468_v45, %v3583_v43  ;;  %v3735_v8 = vmax.f32 %v3727_v5, %v3734_v12  ;;  %v3742_v43 = vsel %vm1044_vm5, %v18620_v24, -inf }
 0xaf2   :  { %v3688_v15 = vadd.f32 %v3687_v48, %v3686_v61  ;;  %v3741_v19 = vmax.f32 %v3733_v17, %v3740_v3  ;;  %v3750_v12 = vsel %vm1044_vm5, %v18669_v29, -inf  ;;  %v3745_v7 = vmax.f32 %v3737_v60, %v3744_v34 }
 0xaf3   :  { %19779 = vst [vmem:[#allocation66_spill] sm:$0xff] %v18699_v6  ;;  %v3689_v54 = vsel %vm1044_vm5, %v18699_v6, 0.0  ;;  %v3754_v48 = vsel %vm1044_vm5, %v18699_v6, -inf  ;;  %v3752_v41 = vsel %vm1044_vm5, %v18687_v22, -inf }
 0xaf4   :  { %v3537_v38 = vpop.f32.mrb[216].mxu0  ;;  %v3690_v49 = vadd.f32 %v3689_v54, %v3688_v15 }
 0xaf5   :  { %v3584_v1 = vmul.f32 %v18463_v10, %v3537_v38  ;;  %v14650_v33 = vpop.f32.mrb[217].mxu0  ;;  %v3743_v38 = vmax.f32 %v3735_v8, %v3742_v43  ;;  %v3753_v43 = vmax.f32 %v3745_v7, %v3752_v41  ;;  %v12936_v7 = vld [vmem:[#allocation17 + $0x1] ss:$0 sm:$0xff] }
 0xaf6   :  { %v3540_v51 = vpop.f32.mrb[218].mxu0 }
 0xaf7   :  { %v18723_v13 = vadd.f32 %v18468_v45, %v3584_v1  ;;  %v3585_v5 = vmul.f32 %v18463_v10, %v3540_v51  ;;  %v14651_v61 = vpop.f32.mrb[219].mxu0  ;;  %v3749_v1 = vmax.f32 %v3741_v19, %v3748_v4  ;;  %v3751_v6 = vmax.f32 %v3743_v38, %v3750_v12  ;;  %v12933_v19 = vld [vmem:[#allocation14 + $0x1] ss:$0 sm:$0xff] }
 0xaf8   :  { %v3755_v10 = vmax.f32 %v3747_v52, %v3754_v48  ;;  %v14959_v52 = vld [vmem:[%s19472_s14 + $0x8] sm:$0xff]  }
 0xaf9   :  { %19780 = vst [vmem:[#allocation67_spill] sm:$0xff] %v18723_v13  ;;  %v3691_v3 = vsel %vm1044_vm5, %v18723_v13, 0.0  ;;  %v3756_v17 = vsel %vm1044_vm5, %v18723_v13, -inf  ;;  %v18733_v33 = vadd.f32 %v18468_v45, %v3585_v5  ;;  %v3860_v45 = vld [vmem:[#allocation16 + $0x2] sm:$0x3] }
 0xafa   :  { %v3692_v51 = vadd.f32 %v3691_v3, %v3690_v49  ;;  %v3757_v34 = vmax.f32 %v3749_v1, %v3756_v17  ;;  %v3761_v60 = vmax.f32 %v3753_v43, %v3755_v10  ;;  %14663 = vmatprep.subr.msk.mxu1 %vm2287_vm8, %v3860_v45  ;;  %v14960_v1 = vld [vmem:[%s19472_s14 + $0x10] sm:$0xff]   ;;  %v14962_v43 = vld [vmem:[%s19472_s14 + $0x20] sm:$0xff]  }
 0xafb   :  { %v3693_v8 = vsel %vm1044_vm5, %v18733_v33, 0.0  ;;  %v3758_v15 = vsel %vm1044_vm5, %v18733_v33, -inf }
 0xafc   :  { %v3759_v2 = vmax.f32 %v3751_v6, %v3758_v15  ;;  %v3694_v54 = vadd.f32 %v3693_v8, %v3692_v51  ;;  %v14961_v8 = vld [vmem:[%s19472_s14 + $0x18] sm:$0xff]  }
 0xafe   :  { %v3760_v27 = vmax.f32 %v3757_v34, %v3759_v2  ;;  %v3695_v61 = vmul.f32 0.029411765, %v3694_v54 }
 0xb00   :  { %v3762_v13 = vmax.f32 %v3760_v27, %v3761_v60  ;;  %14660 = vmatprep.mubr.msk.f32.mxu1 %vm1044_vm5, %v3695_v61  ;;  %v14963_v60 = vld [vmem:[%s19472_s14 + $0x28] sm:$0xff]  }
 0xb02   :  { %14661 = vmatmul.mubr.msk.f32.vlgmr.msra.gmra.mrb[124].mxu1 %vm1044_vm5, %v3762_v13  ;;  %v14958_v13 = vld [vmem:[%s19472_s14] sm:$0xff]   ;;  %s15826_s14 = smov 96  }
 0xb03   :  { %14664 = vmatpush3.msk.msra.mxu1 %vm2287_vm8, %v3860_v45  ;;  %v19781_v45 = vmax.f32 %v17642_v23, 0.0 }
 0xb04   :  { %14668 = vmatprep.subr.bf16.mxu1 %v19674_v62 }
 0xbd5   :  { %v14662_v4 = vpop.f32.mrb[124].mxu1 }
 0xbd6   :  { %v3854_v12 = vadd.f32 %v14662_v4, %v12933_v19  ;;  %v3848_v6 = vpop.f32.mrb[125].mxu1  ;;  %v19782_v4 = vmax.f32 %v17646_v21, 0.0  ;;  %v19783_v21 = vmax.f32 %v17668_v53, 0.0  ;;  %v19786_v53 = vmax.f32 %v17688_v28, 0.0 }
 0xbd7   :  { %v3849_v48 = vadd.f32 %v12933_v19, %v3848_v6 }
 0xbd8   :  { %v3858_v38 = vmax.f32 %v3854_v12, 0.0 }
 0xbd9   :  { %v3857_v5 = vmax.f32 %v3849_v48, 0.0 }
 0xbdb   :  { %14665 = vmatprep.mubr.msk.f32.mxu1 %vm2280_vm9, %v3857_v5 }
 0xbdc   :  { %14666 = vmatmul.mubr.msk.f32.vlgmr.msra.gmra.mrb[126].mxu1 %vm2280_vm9, %v3858_v38 }
 0xbdd   :  { %14680 = vmatprep.mubr.msk.bf16.mxu1 %vm15824_vm0, %v19674_v62  ;;  %14669 = vmatpush3.bf16.msra.mxu1 %v14958_v13 }
 0xbde   :  { %14670 = vmatprep.subr.bf16.mxu1 %v19674_v62 }
 0xbe1   :  { %14671 = vmatpush3.bf16.msra.mxu1 %v14959_v52 }
 0xbe2   :  { %14672 = vmatprep.subr.bf16.mxu1 %v19674_v62 }
 0xbe5   :  { %14673 = vmatpush3.bf16.msra.mxu1 %v14960_v1  ;;  %v19787_v1 = vmax.f32 %v17694_v9, 0.0 }
 0xbe6   :  { %14674 = vmatprep.subr.bf16.mxu1 %v19674_v62 }
 0xbe9   :  { %14675 = vmatpush3.bf16.msra.mxu1 %v14961_v8  ;;  %v19790_v8 = vld [vmem:[#allocation64_spill] sm:$0xff] }
 0xbea   :  { %14676 = vmatprep.subr.bf16.mxu1 %v19674_v62 }
 0xbed   :  { %14677 = vmatpush3.bf16.msra.mxu1 %v14962_v43 }
 0xbee   :  { %14678 = vmatprep.subr.bf16.mxu1 %v19674_v62 }
 0xbf1   :  { %14679 = vmatpush3.bf16.msra.mxu1 %v14963_v60 }
 0xcaf   :  { %v14667_v49 = vpop.f32.mrb[126].mxu1 }
 0xcb0   :  { %v3950_v41 = vadd.f32 %v14667_v49, %v12936_v7  ;;  %v3944_v3 = vpop.f32.mrb[127].mxu1  ;;  %v19785_v49 = vmax.f32 %v17684_v47, 0.0 }
 0xcb1   :  { %v3945_v17 = vadd.f32 %v12936_v7, %v3944_v3 }
 0xcb3   :  { %v3953_v10 = vadd.f32 %v3950_v41, %v3945_v17 }
 0xcb5   :  { %v3954_v51 = vsub.f32 0.0, %v3953_v10  ;;  %v19788_v10 = vld [vmem:[#allocation75_spill] sm:$0xff] }
 0xcb7   :  { %v3955_v15 = vmul.f32 1.442695, %v3954_v51  ;;  %v19789_v51 = vmax.f32 %v19788_v10, 0.0  ;;  %v19807_v10 = vld [vmem:[#allocation45_spill] sm:$0xff] }
 0xcb9   :  { %15352 = vpow2.f32 %v3955_v15 }
 0xcc3   :  { %v15353_v34 = vpop.eup %15352 }
 0xcc4   :  { %v3957_v2 = vadd.f32 1.0, %v15353_v34  ;;  %v19791_v34 = vld [vmem:[#allocation69_spill] sm:$0xff] }
 0xcc6   :  { %15354 = vrcp.f32 %v3957_v2  ;;  %v19792_v2 = vmax.f32 %v19791_v34, 0.0 }
 0xcd0   :  { %v18768_v54 = vpop.eup %15354 }
 0xcd1   :  { %v3959_v27 = vmul.f32 %v18768_v54, %v18474_v20  ;;  %v3960_v61 = vmul.f32 %v18768_v54, %v18471_v35  ;;  %v3961_v6 = vmul.f32 %v18768_v54, %v18477_v63  ;;  %v3962_v48 = vmul.f32 %v18768_v54, %v18488_v46 }
 0xcd2   :  { %v3963_v20 = vmul.f32 %v18768_v54, %v18491_v44  ;;  %v3964_v23 = vmul.f32 %v18768_v54, %v18500_v42  ;;  %v19784_v63 = vmax.f32 %v17672_v16, 0.0  ;;  %v3965_v46 = vmul.f32 %v18768_v54, %v18503_v14 }
 0xcd3   :  { %v3993_v19 = vadd.f32 %v3959_v27, %v19781_v45  ;;  %v3994_v12 = vadd.f32 %v3960_v61, %v19782_v4  ;;  %v3995_v35 = vadd.f32 %v3961_v6, %v19783_v21  ;;  %v3966_v52 = vmul.f32 %v18768_v54, %v18512_v55  ;;  %v19793_v27 = vld [vmem:[#allocation70_spill] sm:$0xff] }
 0xcd4   :  { %v3996_v7 = vadd.f32 %v3962_v48, %v19784_v63  ;;  %v3967_v44 = vmul.f32 %v18768_v54, %v18515_v39  ;;  %v3968_v42 = vmul.f32 %v18768_v54, %v18524_v40  ;;  %v3997_v41 = vadd.f32 %v3963_v20, %v19785_v49  ;;  %v19797_v20 = vld [vmem:[#allocation53_spill] sm:$0xff]  ;;  %v19805_v49 = vld [vmem:[#allocation44_spill] sm:$0xff] }
 0xcd5   :  { %v4027_v5 = vmax.f32 %v3993_v19, 0.0  ;;  %v4028_v38 = vmax.f32 %v3994_v12, 0.0  ;;  %v3998_v3 = vadd.f32 %v3964_v23, %v19786_v53  ;;  %v4029_v16 = vmax.f32 %v3995_v35, 0.0  ;;  %v19799_v35 = vld [vmem:[#allocation54_spill] sm:$0xff] }
 0xcd6   :  { %v4030_v17 = vmax.f32 %v3996_v7, 0.0  ;;  %v3969_v14 = vmul.f32 %v18768_v54, %v18527_v58  ;;  %v3999_v55 = vadd.f32 %v3965_v46, %v19787_v1  ;;  %v4000_v39 = vadd.f32 %v3966_v52, %v19789_v51  ;;  %v19801_v46 = vld [vmem:[#allocation55_spill] sm:$0xff] }
 0xcd7   :  { %v18785_v13 = vpack.c.bf16 %v4028_v38, %v4027_v5  ;;  %v3970_v40 = vmul.f32 %v18768_v54, %v19790_v8  ;;  %v3981_v47 = vmul.f32 %v18768_v54, %v18599_v25  ;;  %v3982_v43 = vmul.f32 %v18768_v54, %v18608_v59  ;;  %v19809_v8 = vld [vmem:[#allocation46_spill] sm:$0xff] }
 0xcd8   :  { %v4074_v15 = vpack.c.bf16 %v4030_v17, %v4029_v16  ;;  %v3983_v58 = vmul.f32 %v18768_v54, %v18611_v56  ;;  %v3984_v9 = vmul.f32 %v18768_v54, %v18620_v24  ;;  %v4001_v60 = vadd.f32 %v3967_v44, %v19792_v2  ;;  %v19795_v24 = vld [vmem:[#allocation43_spill] sm:$0xff]  ;;  %v19803_v44 = vld [vmem:[#allocation56_spill] sm:$0xff] }
 0xcd9   :  { %4144 = vrot.lane.b32.xlu0 %v18785_v13, %s15807_s29  ;;  %v4107_v28 = vrot.slane %v18785_v13, 4  ;;  %v19794_v61 = vmax.f32 %v19793_v27, 0.0  ;;  %v4031_v25 = vmax.f32 %v3997_v41, 0.0  ;;  %v4032_v4 = vmax.f32 %v3998_v3, 0.0 }
 0xcda   :  { %v4108_v19 = vrot.slane %v4074_v15, 4  ;;  %v4033_v12 = vmax.f32 %v3999_v55, 0.0  ;;  %v4034_v6 = vmax.f32 %v4000_v39, 0.0  ;;  %v3971_v59 = vmul.f32 %v18768_v54, %v18539_v18 }
 0xcdb   :  { %v4002_v45 = vadd.f32 %v3968_v42, %v19794_v61  ;;  %v3972_v56 = vmul.f32 %v18768_v54, %v18548_v36  ;;  %v19796_v48 = vmax.f32 %v19795_v24, 0.0  ;;  %v19798_v23 = vmax.f32 %v19797_v20, 0.0 }
 0xcdc   :  { %v18840_v38 = vsel %vm365_vm1, %v4107_v28, %v4108_v19  ;;  %v19800_v63 = vmax.f32 %v19799_v35, 0.0  ;;  %v19802_v52 = vmax.f32 %v19801_v46, 0.0  ;;  %v19804_v42 = vmax.f32 %v19803_v44, 0.0 }
 0xcdd   :  { %4146 = vrot.lane.b32.xlu0 %v4074_v15, %s15807_s29  ;;  %v4003_v5 = vadd.f32 %v3969_v14, %v19796_v48  ;;  %v4015_v21 = vadd.f32 %v3981_v47, %v19798_v23  ;;  %4179 = vrot.lane.b32.xlu1 %v18840_v38, %s15812_s20  ;;  %v19806_v41 = vmax.f32 %v19805_v49, 0.0  ;;  %v4035_v3 = vmax.f32 %v4001_v60, 0.0 }
 0xcde   :  { %v4016_v7 = vadd.f32 %v3982_v43, %v19800_v63  ;;  %v4017_v18 = vadd.f32 %v3983_v58, %v19802_v52  ;;  %v4018_v36 = vadd.f32 %v3984_v9, %v19804_v42  ;;  %v4036_v16 = vmax.f32 %v4002_v45, 0.0 }
 0xcdf   :  { %v4004_v53 = vadd.f32 %v3970_v40, %v19806_v41  ;;  %v4075_v17 = vpack.c.bf16 %v4032_v4, %v4031_v25  ;;  %v3973_v14 = vmul.f32 %v18768_v54, %v18551_v26  ;;  %v3974_v1 = vmul.f32 %v18768_v54, %v18560_v11  ;;  %v19811_v25 = vld [vmem:[#allocation47_spill] sm:$0xff] }
 0xce0   :  { %v4076_v55 = vpack.c.bf16 %v4034_v6, %v4033_v12  ;;  %v19808_v51 = vmax.f32 %v19807_v10, 0.0  ;;  %v19810_v47 = vmax.f32 %v19809_v8, 0.0  ;;  %v4037_v43 = vmax.f32 %v4003_v5, 0.0  ;;  %v19813_v6 = vld [vmem:[#allocation48_spill] sm:$0xff] }
 0xce1   :  { %v4110_v58 = vrot.slane %v4075_v17, 4  ;;  %4148 = vrot.lane.b32.xlu0 %v4075_v17, %s15807_s29  ;;  %v4049_v40 = vmax.f32 %v4015_v21, 0.0  ;;  %v4050_v9 = vmax.f32 %v4016_v7, 0.0  ;;  %v4051_v34 = vmax.f32 %v4017_v18, 0.0  ;;  %v19815_v7 = vld [vmem:[#allocation49_spill] sm:$0xff]  ;;  %v19817_v18 = vld [vmem:[#allocation50_spill] sm:$0xff] }
 0xce2   :  { %v4005_v39 = vadd.f32 %v3971_v59, %v19808_v51  ;;  %v4006_v15 = vadd.f32 %v3972_v56, %v19810_v47  ;;  %v4052_v2 = vmax.f32 %v4018_v36, 0.0  ;;  %v4038_v60 = vmax.f32 %v4004_v53, 0.0  ;;  %v19820_v17 = vld [vmem:[#allocation65_spill] sm:$0xff]  ;;  %v19823_v51 = vld [vmem:[#allocation52_spill] sm:$0xff] }
 0xce3   :  { %v18864_v26 = vsel %vm365_vm1, %v4108_v19, %v4110_v58  ;;  %v4112_v11 = vrot.slane %v4076_v55, 4  ;;  %v4077_v27 = vpack.c.bf16 %v4036_v16, %v4035_v3  ;;  %v3975_v61 = vmul.f32 %v18768_v54, %v18563_v0  ;;  %v19819_v3 = vld [vmem:[#allocation74_spill] sm:$0xff] }
 0xce4   :  { %4181 = vrot.lane.b32.xlu1 %v18864_v26, %s15812_s20  ;;  %v3976_v45 = vmul.f32 %v18768_v54, %v18572_v31  ;;  %v19812_v4 = vmax.f32 %v19811_v25, 0.0  ;;  %v19814_v59 = vmax.f32 %v19813_v6, 0.0  ;;  %v4039_v56 = vmax.f32 %v4005_v39, 0.0 }
 0xce5   :  { %4150 = vrot.lane.b32.xlu0 %v4076_v55, %s15807_s29  ;;  %v18877_v24 = vpack.c.bf16 %v4050_v9, %v4049_v40  ;;  %v18879_v48 = vpack.c.bf16 %v4052_v2, %v4051_v34  ;;  %v4040_v5 = vmax.f32 %v4006_v15, 0.0  ;;  %v18882_v20 = vsel %vm365_vm1, %v4110_v58, %v4112_v11  ;;  %v19825_v9 = vld [vmem:[#allocation71_spill] sm:$0xff] }
 0xce6   :  { %v4007_v12 = vadd.f32 %v3973_v14, %v19812_v4  ;;  %v4008_v19 = vadd.f32 %v3974_v1, %v19814_v59  ;;  %v4114_v0 = vrot.slane %v4077_v27, 4  ;;  %v4078_v23 = vpack.c.bf16 %v4038_v60, %v4037_v43  ;;  %v19821_v1 = vld [vmem:[#allocation51_spill] sm:$0xff]  ;;  %v19827_v60 = vld [vmem:[#allocation72_spill] sm:$0xff] }
 0xce7   :  { %v4128_v31 = vrot.slane %v18877_v24, 4  ;;  %v4130_v21 = vrot.slane %v18879_v48, 4  ;;  %v3977_v35 = vmul.f32 %v18768_v54, %v18575_v30  ;;  %v3978_v63 = vmul.f32 %v18768_v54, %v18584_v32 }
 0xce8   :  { %4183 = vrot.lane.b32.xlu1 %v18882_v20, %s15812_s20  ;;  %v19816_v46 = vmax.f32 %v19815_v7, 0.0  ;;  %v19818_v44 = vmax.f32 %v19817_v18, 0.0  ;;  %v4041_v36 = vmax.f32 %v4007_v12, 0.0  ;;  %v4042_v30 = vmax.f32 %v4008_v19, 0.0 }
 0xce9   :  { %4152 = vrot.lane.b32.xlu0 %v4077_v27, %s15807_s29  ;;  %v18902_v49 = vsel %vm365_vm1, %v4128_v31, %v4130_v21  ;;  %v18905_v41 = vsel %vm365_vm1, %v4112_v11, %v4114_v0  ;;  %v4116_v32 = vrot.slane %v4078_v23, 4  ;;  %v4079_v53 = vpack.c.bf16 %v4040_v5, %v4039_v56 }
 0xcea   :  { %v4009_v52 = vadd.f32 %v3975_v61, %v19816_v46  ;;  %v4010_v42 = vadd.f32 %v3976_v45, %v19818_v44  ;;  %v3979_v16 = vmul.f32 %v18768_v54, %v19819_v3  ;;  %v3980_v14 = vmul.f32 %v18768_v54, %v19820_v17  ;;  %v19834_v3 = vld [vmem:[#allocation59_spill] sm:$0xff] }
 0xceb   :  { %v19822_v55 = vmax.f32 %v19821_v1, 0.0  ;;  %v19824_v39 = vmax.f32 %v19823_v51, 0.0  ;;  %v18919_v43 = vsel %vm365_vm1, %v4114_v0, %v4116_v32  ;;  %v4118_v58 = vrot.slane %v4079_v53, 4 }
 0xcec   :  { %4185 = vrot.lane.b32.xlu1 %v18905_v41, %s15812_s20  ;;  %v4043_v47 = vmax.f32 %v4009_v52, 0.0  ;;  %v4044_v15 = vmax.f32 %v4010_v42, 0.0  ;;  %v4080_v40 = vpack.c.bf16 %v4042_v30, %v4041_v36  ;;  %v19826_v34 = vmax.f32 %v19825_v9, 0.0  ;;  %v19841_v9 = vld [vmem:[#allocation62_spill] sm:$0xff] }
 0xced   :  { %4154 = vrot.lane.b32.xlu0 %v4078_v23, %s15807_s29  ;;  %v4011_v10 = vadd.f32 %v3977_v35, %v19822_v55  ;;  %v4012_v8 = vadd.f32 %v3978_v63, %v19824_v39  ;;  %v19828_v11 = vmax.f32 %v19827_v60, 0.0  ;;  %v18929_v25 = vsel %vm365_vm1, %v4116_v32, %v4118_v58 }
 0xcee   :  { %v4013_v2 = vadd.f32 %v3979_v16, %v19826_v34  ;;  %v4120_v4 = vrot.slane %v4080_v40, 4  ;;  %v4081_v12 = vpack.c.bf16 %v4044_v15, %v4043_v47  ;;  %v3985_v0 = vmul.f32 %v18768_v54, %v18623_v57  ;;  %v19829_v57 = vld [vmem:[#allocation57_spill] sm:$0xff] }
 0xcef   :  { %v4014_v27 = vadd.f32 %v3980_v14, %v19828_v11  ;;  %v4045_v61 = vmax.f32 %v4011_v10, 0.0  ;;  %v4046_v45 = vmax.f32 %v4012_v8, 0.0  ;;  %v3986_v23 = vmul.f32 %v18768_v54, %v18635_v50  ;;  %v19831_v50 = vld [vmem:[#allocation58_spill] sm:$0xff]  ;;  %v19836_v14 = vld [vmem:[#allocation60_spill] sm:$0xff]  ;;  %v19839_v15 = vld [vmem:[#allocation61_spill] sm:$0xff] }
 0xcf0   :  { %4187 = vrot.lane.b32.xlu1 %v18919_v43, %s15812_s20  ;;  %v4047_v6 = vmax.f32 %v4013_v2, 0.0  ;;  %v18935_v19 = vsel %vm365_vm1, %v4118_v58, %v4120_v4  ;;  %v4122_v56 = vrot.slane %v4081_v12, 4  ;;  %v3987_v46 = vmul.f32 %v18768_v54, %v18649_v37 }
 0xcf1   :  { %4156 = vrot.lane.b32.xlu0 %v4079_v53, %s15807_s29  ;;  %v4048_v59 = vmax.f32 %v4014_v27, 0.0  ;;  %v4082_v5 = vpack.c.bf16 %v4046_v45, %v4045_v61  ;;  %v3988_v52 = vmul.f32 %v18768_v54, %v18669_v29  ;;  %v19830_v18 = vmax.f32 %v19829_v57, 0.0  ;;  %v19833_v53 = vld [vmem:[#allocation66_spill] sm:$0xff] }
 0xcf2   :  { %v18945_v35 = vsel %vm365_vm1, %v4120_v4, %v4122_v56  ;;  %v19832_v42 = vmax.f32 %v19831_v50, 0.0  ;;  %v3989_v37 = vmul.f32 %v18768_v54, %v18687_v22  ;;  %v3990_v29 = vmul.f32 %v18768_v54, %v19833_v53  ;;  %v19838_v22 = vld [vmem:[#allocation67_spill] sm:$0xff] }
 0xcf3   :  { %v4124_v63 = vrot.slane %v4082_v5, 4  ;;  %v4083_v7 = vpack.c.bf16 %v4048_v59, %v4047_v6  ;;  %v4019_v44 = vadd.f32 %v3985_v0, %v19830_v18  ;;  %v19835_v16 = vmax.f32 %v19834_v3, 0.0  ;;  %v19845_v4 = vld [vmem:[#allocation63_spill] sm:$0xff] }
 0xcf4   :  { %4189 = vrot.lane.b32.xlu1 %v18929_v25, %s15812_s20  ;;  %v4020_v36 = vadd.f32 %v3986_v23, %v19832_v42  ;;  %v19837_v1 = vmax.f32 %v19836_v14, 0.0  ;;  %v3991_v8 = vmul.f32 %v18768_v54, %v19838_v22  ;;  %v3992_v47 = vmul.f32 %v18768_v54, %v18733_v33  ;;  %v19843_v33 = vld [vmem:[#allocation73_spill] sm:$0xff] }
 0xcf5   :  { %4158 = vrot.lane.b32.xlu0 %v4080_v40, %s15807_s29  ;;  %v18959_v30 = vsel %vm365_vm1, %v4122_v56, %v4124_v63  ;;  %v4126_v32 = vrot.slane %v4083_v7, 4  ;;  %v4021_v17 = vadd.f32 %v3987_v46, %v19835_v16  ;;  %v4053_v10 = vmax.f32 %v4019_v44, 0.0 }
 0xcf6   :  { %v4022_v55 = vadd.f32 %v3988_v52, %v19837_v1  ;;  %v4054_v51 = vmax.f32 %v4020_v36, 0.0  ;;  %v19840_v58 = vmax.f32 %v19839_v15, 0.0  ;;  %v19842_v34 = vmax.f32 %v19841_v9, 0.0 }
 0xcf7   :  { %v18973_v39 = vsel %vm365_vm1, %v4124_v63, %v4126_v32  ;;  %v4055_v60 = vmax.f32 %v4021_v17, 0.0  ;;  %v18990_v27 = vsel %vm365_vm1, %v4126_v32, %v4128_v31  ;;  %v19844_v54 = vmax.f32 %v19843_v33, 0.0 }
 0xcf8   :  { %4191 = vrot.lane.b32.xlu1 %v18935_v19, %s15812_s20  ;;  %v4023_v40 = vadd.f32 %v3989_v37, %v19840_v58  ;;  %v4024_v2 = vadd.f32 %v3990_v29, %v19842_v34  ;;  %v4056_v11 = vmax.f32 %v4022_v55, 0.0  ;;  %v4086_v61 = vpack.c.bf16 %v4054_v51, %v4053_v10 }
 0xcf9   :  { %4160 = vrot.lane.b32.xlu0 %v4081_v12, %s15807_s29  ;;  %v4025_v45 = vadd.f32 %v3991_v8, %v19844_v54  ;;  %v19846_v12 = vmax.f32 %v19845_v4, 0.0  ;;  %v4141_v42 = vsel %vm365_vm1, 0, %v4107_v28 }
 0xcfa   :  { %v4057_v59 = vmax.f32 %v4023_v40, 0.0  ;;  %v4058_v56 = vmax.f32 %v4024_v2, 0.0 }
 0xcfb   :  { %v4026_v6 = vadd.f32 %v3992_v47, %v19846_v12  ;;  %v4059_v31 = vmax.f32 %v4025_v45, 0.0 }
 0xcfc   :  { %4193 = vrot.lane.b32.xlu1 %v18945_v35, %s15812_s20 }
 0xcfd   :  { %4162 = vrot.lane.b32.xlu0 %v4082_v5, %s15807_s29  ;;  %v4132_v5 = vrot.slane %v4086_v61, 4  ;;  %v4060_v0 = vmax.f32 %v4026_v6, 0.0 }
 0xcff   :  { %v19006_v23 = vsel %vm365_vm1, %v4130_v21, %v4132_v5  ;;  %v4089_v57 = vpack.c.bf16 %v4060_v0, %v4059_v31 }
 0xd00   :  { %4195 = vrot.lane.b32.xlu1 %v18959_v30, %s15812_s20 }
 0xd01   :  { %4164 = vrot.lane.b32.xlu0 %v4083_v7, %s15807_s29  ;;  %v4088_v7 = vpack.c.bf16 %v4058_v56, %v4057_v59  ;;  %v4138_v21 = vrot.slane %v4089_v57, 4 }
 0xd03   :  { %v4136_v52 = vrot.slane %v4088_v7, 4  ;;  %v4143_v44 = vsel %vm365_vm1, %v4138_v21, 0 }
 0xd04   :  { %4197 = vrot.lane.b32.xlu1 %v18973_v39, %s15812_s20 }
 0xd05   :  { %4166 = vrot.lane.b32.xlu0 %v18877_v24, %s15807_s29  ;;  %v4087_v24 = vpack.c.bf16 %v4056_v11, %v4055_v60  ;;  %v19024_v18 = vsel %vm365_vm1, %v4136_v52, %v4138_v21 }
 0xd07   :  { %v4134_v63 = vrot.slane %v4087_v24, 4 }
 0xd08   :  { %4199 = vrot.lane.b32.xlu1 %v18990_v27, %s15812_s20 }
 0xd09   :  { %4168 = vrot.lane.b32.xlu0 %v18879_v48, %s15807_s29  ;;  %v19012_v46 = vsel %vm365_vm1, %v4132_v5, %v4134_v63  ;;  %v19018_v48 = vsel %vm365_vm1, %v4134_v63, %v4136_v52  ;;  %v4800_v52 = vld [vmem:[#allocation20 + $0x20] sm:$0xff] }
 0xd0c   :  { %4201 = vrot.lane.b32.xlu1 %v18902_v49, %s15812_s20 }
 0xd0d   :  { %4170 = vrot.lane.b32.xlu0 %v4086_v61, %s15807_s29 }
 0xd10   :  { %4203 = vrot.lane.b32.xlu1 %v19006_v23, %s15812_s20 }
 0xd11   :  { %4172 = vrot.lane.b32.xlu0 %v4087_v24, %s15807_s29 }
 0xd14   :  { %4205 = vrot.lane.b32.xlu1 %v19012_v46, %s15812_s20 }
 0xd15   :  { %4174 = vrot.lane.b32.xlu0 %v4088_v7, %s15807_s29 }
 0xd18   :  { %4207 = vrot.lane.b32.xlu1 %v19018_v48, %s15812_s20 }
 0xd19   :  { %4176 = vrot.lane.b32.xlu0 %v4089_v57, %s15807_s29 }
 0xd1c   :  { %4209 = vrot.lane.b32.xlu1 %v19024_v18, %s15812_s20 }
 0xd20   :  { %4211 = vrot.lane.b32.xlu1 %v4143_v44, %s15812_s20 }
 0xd4b   :  { %v4145_v50 = vpop.permute.xlu0 %4144 }
 0xd4c   :  { %v4214_v36 = vsel %vm1044_vm5, %v4141_v42, %v4145_v50 }
 0xd4f   :  { %v4180_v32 = vpop.permute.xlu1 %4179  ;;  %v4147_v53 = vpop.permute.xlu0 %4146 }
 0xd50   :  { %v4264_v37 = vsel %vm1095_vm6, %v4214_v36, %v4180_v32  ;;  %v4217_v3 = vsel %vm1044_vm5, %v18840_v38, %v4147_v53 }
 0xd51   :  { %14681 = vmatmul.mubr.msk.bf16.vlgmr.msra.gmra.mrb[128].mxu1 %vm1166_vm7, %v4264_v37 }
 0xd52   :  { %14684 = vmatprep.mubr.msk.bf16.mxu1 %vm15824_vm0, %v19674_v62 }
 0xd53   :  { %v4149_v13 = vpop.permute.xlu0 %4148 }
 0xd54   :  { %v4220_v17 = vsel %vm1044_vm5, %v18864_v26, %v4149_v13 }
 0xd56   :  { %v4182_v29 = vpop.permute.xlu1 %4181 }
 0xd57   :  { %v4266_v16 = vsel %vm1095_vm6, %v4217_v3, %v4182_v29  ;;  %v4151_v38 = vpop.permute.xlu0 %4150  ;;  %v4804_v29 = vld [vmem:[#allocation20 + $0x40] sm:$0xff] }
 0xd58   :  { %v4223_v55 = vsel %vm1044_vm5, %v18882_v20, %v4151_v38  ;;  %v4808_v3 = vld [vmem:[#allocation20 + $0x60] sm:$0xff] }
 0xd59   :  { %14685 = vmatmul.mubr.msk.bf16.gmra.mrb[132].mxu1 %vm1166_vm7, %v4266_v16  ;;  %v13007_v16 = vcombine.high %v4804_v29, %v4808_v3  ;;  %v4816_v38 = vld [vmem:[#allocation20 + $0xa0] sm:$0xff] }
 0xd5a   :  { %14688 = vmatprep.mubr.msk.bf16.mxu1 %vm15824_vm0, %v19674_v62  ;;  %v4184_v28 = vpop.permute.xlu1 %4183 }
 0xd5b   :  { %v4268_v14 = vsel %vm1095_vm6, %v4220_v17, %v4184_v28  ;;  %v4153_v26 = vpop.permute.xlu0 %4152 }
 0xd5c   :  { %v4226_v22 = vsel %vm1044_vm5, %v18905_v41, %v4153_v26 }
 0xd5e   :  { %v4186_v1 = vpop.permute.xlu1 %4185 }
 0xd5f   :  { %v4270_v10 = vsel %vm1095_vm6, %v4223_v55, %v4186_v1  ;;  %v4155_v20 = vpop.permute.xlu0 %4154 }
 0xd60   :  { %v4229_v15 = vsel %vm1044_vm5, %v18919_v43, %v4155_v20 }
 0xd61   :  { %14689 = vmatmul.mubr.msk.bf16.gmra.mrb[136].mxu1 %vm1166_vm7, %v4268_v14  ;;  %v4812_v14 = vld [vmem:[#allocation20 + $0x80] sm:$0xff] }
 0xd62   :  { %14692 = vmatprep.mubr.msk.bf16.mxu1 %vm15824_vm0, %v19674_v62  ;;  %v4188_v51 = vpop.permute.xlu1 %4187  ;;  %v13014_v1 = vcombine.low %v4812_v14, %v4816_v38  ;;  %v13015_v55 = vcombine.high %v4812_v14, %v4816_v38  ;;  %v4888_v38 = vld [vmem:[#allocation20 + $0x2e0] sm:$0xff] }
 0xd63   :  { %v4272_v8 = vsel %vm1095_vm6, %v4226_v22, %v4188_v51  ;;  %v4157_v41 = vpop.permute.xlu0 %4156  ;;  %v4820_v22 = vld [vmem:[#allocation20 + $0xc0] sm:$0xff] }
 0xd64   :  { %v4232_v9 = vsel %vm1044_vm5, %v18929_v25, %v4157_v41 }
 0xd66   :  { %v4190_v47 = vpop.permute.xlu1 %4189 }
 0xd67   :  { %v4274_v58 = vsel %vm1095_vm6, %v4229_v15, %v4190_v47  ;;  %v4159_v43 = vpop.permute.xlu0 %4158  ;;  %v4832_v15 = vld [vmem:[#allocation20 + $0x120] sm:$0xff] }
 0xd68   :  { %v4235_v60 = vsel %vm1044_vm5, %v18935_v19, %v4159_v43  ;;  %v4844_v43 = vld [vmem:[#allocation20 + $0x180] sm:$0xff] }
 0xd69   :  { %14693 = vmatmul.mubr.msk.bf16.gmra.mrb[140].mxu1 %vm1166_vm7, %v4270_v10 }
 0xd6a   :  { %14696 = vmatprep.mubr.msk.bf16.mxu1 %vm15824_vm0, %v19674_v62  ;;  %v4192_v40 = vpop.permute.xlu1 %4191 }
 0xd6b   :  { %v4276_v34 = vsel %vm1095_vm6, %v4232_v9, %v4192_v40  ;;  %v4161_v25 = vpop.permute.xlu0 %4160  ;;  %v4836_v40 = vld [vmem:[#allocation20 + $0x140] sm:$0xff] }
 0xd6c   :  { %v4238_v33 = vsel %vm1044_vm5, %v18945_v35, %v4161_v25  ;;  %v4840_v9 = vld [vmem:[#allocation20 + $0x160] sm:$0xff] }
 0xd6d   :  { %v4852_v25 = vld [vmem:[#allocation20 + $0x1c0] sm:$0xff] }
 0xd6e   :  { %v4194_v2 = vpop.permute.xlu1 %4193 }
 0xd6f   :  { %v4278_v11 = vsel %vm1095_vm6, %v4235_v60, %v4194_v2  ;;  %v4163_v19 = vpop.permute.xlu0 %4162  ;;  %v4848_v2 = vld [vmem:[#allocation20 + $0x1a0] sm:$0xff] }
 0xd70   :  { %v4241_v4 = vsel %vm1044_vm5, %v18959_v30, %v4163_v19  ;;  %v13046_v60 = vcombine.low %v4844_v43, %v4848_v2 }
 0xd71   :  { %14697 = vmatmul.mubr.msk.bf16.gmra.mrb[144].mxu1 %vm1166_vm7, %v4272_v8  ;;  %v4824_v8 = vld [vmem:[#allocation20 + $0xe0] sm:$0xff] }
 0xd72   :  { %14700 = vmatprep.mubr.msk.bf16.mxu1 %vm15824_vm0, %v19674_v62  ;;  %v4196_v61 = vpop.permute.xlu1 %4195  ;;  %v13022_v20 = vcombine.low %v4820_v22, %v4824_v8  ;;  %v13023_v47 = vcombine.high %v4820_v22, %v4824_v8  ;;  %v4853_v22 = vld [vmem:[#allocation20 + $0x1c8] sm:$0xff] }
 0xd73   :  { %v4280_v54 = vsel %vm1095_vm6, %v4238_v33, %v4196_v61  ;;  %v4165_v35 = vpop.permute.xlu0 %4164  ;;  %v4856_v61 = vld [vmem:[#allocation20 + $0x1e0] sm:$0xff]  ;;  %v4797_v33 = vld [vmem:[#allocation20 + $0x8] sm:$0xff] }
 0xd74   :  { %v4244_v59 = vsel %vm1044_vm5, %v18973_v39, %v4165_v35  ;;  %v13055_v19 = vcombine.high %v4852_v25, %v4856_v61  ;;  %v4860_v35 = vld [vmem:[#allocation20 + $0x200] sm:$0xff]  ;;  %v4857_v8 = vld [vmem:[#allocation20 + $0x1e8] sm:$0xff] }
 0xd76   :  { %v4198_v45 = vpop.permute.xlu1 %4197 }
 0xd77   :  { %v4282_v12 = vsel %vm1095_vm6, %v4241_v4, %v4198_v45  ;;  %v4167_v30 = vpop.permute.xlu0 %4166  ;;  %v4801_v45 = vld [vmem:[#allocation20 + $0x28] sm:$0xff] }
 0xd78   :  { %v4247_v24 = vsel %vm1044_vm5, %v18990_v27, %v4167_v30  ;;  %v4796_v27 = vld [vmem:[#allocation20] sm:$0xff]  ;;  %v13000_v4 = vcombine.low %v4797_v33, %v4801_v45 }
 0xd79   :  { %14701 = vmatmul.mubr.msk.bf16.gmra.mrb[148].mxu1 %vm1166_vm7, %v4274_v58  ;;  %v12998_v21 = vcombine.low %v4796_v27, %v4800_v52  ;;  %v12999_v44 = vcombine.high %v4796_v27, %v4800_v52  ;;  %v4817_v52 = vld [vmem:[#allocation20 + $0xa8] sm:$0xff] }
 0xd7a   :  { %14704 = vmatprep.mubr.msk.bf16.mxu1 %vm15824_vm0, %v19674_v62  ;;  %v4200_v6 = vpop.permute.xlu1 %4199 }
 0xd7b   :  { %v4284_v56 = vsel %vm1095_vm6, %v4244_v59, %v4200_v6  ;;  %v4169_v39 = vpop.permute.xlu0 %4168  ;;  %8104 = vmatprep.subr.bf16.mxu0 %v12999_v44  ;;  %v4864_v6 = vld [vmem:[#allocation20 + $0x220] sm:$0xff]  ;;  %v4805_v59 = vld [vmem:[#allocation20 + $0x48] sm:$0xff] }
 0xd7c   :  { %v4250_v63 = vsel %vm1044_vm5, %v18902_v49, %v4169_v39  ;;  %8105 = vmatpush1.bf16.msra.mxu0 %v12998_v21  ;;  %v13063_v30 = vcombine.high %v4860_v35, %v4864_v6  ;;  %v4868_v39 = vld [vmem:[#allocation20 + $0x240] sm:$0xff]  ;;  %v4821_v44 = vld [vmem:[#allocation20 + $0xc8] sm:$0xff] }
 0xd7d   :  { %8106 = vmatprep.subr.bf16.mxu0 %v13007_v16 }
 0xd7e   :  { %v4202_v5 = vpop.permute.xlu1 %4201 }
 0xd7f   :  { %v4286_v31 = vsel %vm1095_vm6, %v4247_v24, %v4202_v5  ;;  %v4171_v57 = vpop.permute.xlu0 %4170  ;;  %v4809_v5 = vld [vmem:[#allocation20 + $0x68] sm:$0xff] }
 0xd80   :  { %v4253_v42 = vsel %vm1044_vm5, %v19006_v23, %v4171_v57  ;;  %v13006_v23 = vcombine.low %v4804_v29, %v4808_v3  ;;  %v13008_v24 = vcombine.low %v4805_v59, %v4809_v5 }
 0xd81   :  { %14705 = vmatmul.mubr.msk.bf16.gmra.mrb[152].mxu1 %vm1166_vm7, %v4276_v34  ;;  %v13038_v34 = vcombine.low %v4836_v40, %v4840_v9 }
 0xd82   :  { %14708 = vmatprep.mubr.msk.bf16.mxu1 %vm15824_vm0, %v19674_v62  ;;  %v4204_v0 = vpop.permute.xlu1 %4203  ;;  %8107 = vmatpush1.bf16.msra.mxu0 %v13006_v23 }
 0xd83   :  { %v4288_v7 = vsel %vm1095_vm6, %v4250_v63, %v4204_v0  ;;  %v4173_v36 = vpop.permute.xlu0 %4172  ;;  %8108 = vmatprep.subr.bf16.mxu0 %v13015_v55  ;;  %v4872_v0 = vld [vmem:[#allocation20 + $0x260] sm:$0xff]  ;;  %v4813_v63 = vld [vmem:[#allocation20 + $0x88] sm:$0xff] }
 0xd84   :  { %v4256_v37 = vsel %vm1044_vm5, %v19012_v46, %v4173_v36  ;;  %v13071_v27 = vcombine.high %v4868_v39, %v4872_v0  ;;  %v13016_v57 = vcombine.low %v4813_v63, %v4817_v52  ;;  %v13017_v21 = vcombine.high %v4813_v63, %v4817_v52  ;;  %v4849_v55 = vld [vmem:[#allocation20 + $0x1a8] sm:$0xff]  ;;  %v4908_v63 = vld [vmem:[#allocation20 + $0x380] sm:$0xff] }
 0xd86   :  { %v4206_v50 = vpop.permute.xlu1 %4205  ;;  %8109 = vmatpush1.bf16.msra.mxu0 %v13014_v1  ;;  %v4845_v1 = vld [vmem:[#allocation20 + $0x188] sm:$0xff] }
 0xd87   :  { %v4290_v49 = vsel %vm1095_vm6, %v4253_v42, %v4206_v50  ;;  %v4175_v13 = vpop.permute.xlu0 %4174  ;;  %8110 = vmatprep.subr.bf16.mxu0 %v13023_v47  ;;  %v4825_v50 = vld [vmem:[#allocation20 + $0xe8] sm:$0xff]  ;;  %v4876_v42 = vld [vmem:[#allocation20 + $0x280] sm:$0xff]  ;;  %v13056_v47 = vcombine.low %v4853_v22, %v4857_v8 }
 0xd88   :  { %v4259_v17 = vsel %vm1044_vm5, %v19018_v48, %v4175_v13  ;;  %v13025_v36 = vcombine.high %v4821_v44, %v4825_v50  ;;  %v4837_v13 = vld [vmem:[#allocation20 + $0x148] sm:$0xff] }
 0xd89   :  { %14709 = vmatmul.mubr.msk.bf16.gmra.mrb[156].mxu1 %vm1166_vm7, %v4278_v11  ;;  %v13047_v11 = vcombine.high %v4844_v43, %v4848_v2  ;;  %v4869_v43 = vld [vmem:[#allocation20 + $0x248] sm:$0xff] }
 0xd8a   :  { %14712 = vmatprep.mubr.msk.bf16.mxu1 %vm15824_vm0, %v19674_v62  ;;  %v4208_v32 = vpop.permute.xlu1 %4207  ;;  %8111 = vmatpush1.bf16.msra.mxu0 %v13022_v20  ;;  %v4892_v20 = vld [vmem:[#allocation20 + $0x300] sm:$0xff]  ;;  %v4873_v2 = vld [vmem:[#allocation20 + $0x268] sm:$0xff] }
 0xd8b   :  { %v4292_v53 = vsel %vm1095_vm6, %v4256_v37, %v4208_v32  ;;  %v4177_v10 = vpop.permute.xlu0 %4176  ;;  %v4880_v32 = vld [vmem:[#allocation20 + $0x2a0] sm:$0xff]  ;;  %v4829_v37 = vld [vmem:[#allocation20 + $0x108] sm:$0xff] }
 0xd8c   :  { %v4262_v51 = vsel %vm1044_vm5, %v19024_v18, %v4177_v10  ;;  %v13039_v18 = vcombine.high %v4836_v40, %v4840_v9  ;;  %v13078_v29 = vcombine.low %v4876_v42, %v4880_v32  ;;  %v13079_v3 = vcombine.high %v4876_v42, %v4880_v32  ;;  %v4901_v32 = vld [vmem:[#allocation20 + $0x348] sm:$0xff] }
 0xd8e   :  { %v4210_v28 = vpop.permute.xlu1 %4209 }
 0xd8f   :  { %v4294_v46 = vsel %vm1095_vm6, %v4259_v17, %v4210_v28  ;;  %v4841_v28 = vld [vmem:[#allocation20 + $0x168] sm:$0xff]  ;;  %v4884_v17 = vld [vmem:[#allocation20 + $0x2c0] sm:$0xff] }
 0xd90   :  { %v13041_v14 = vcombine.high %v4837_v13, %v4841_v28  ;;  %v13086_v10 = vcombine.low %v4884_v17, %v4888_v38 }
 0xd91   :  { %14713 = vmatmul.mubr.msk.bf16.gmra.mrb[160].mxu1 %vm1166_vm7, %v4280_v54  ;;  %v13054_v54 = vcombine.low %v4852_v25, %v4856_v61  ;;  %v13072_v25 = vcombine.low %v4869_v43, %v4873_v2  ;;  %v13073_v61 = vcombine.high %v4869_v43, %v4873_v2  ;;  %v19145_v2 = vld [vmem:[#allocation20 + $0x400] sm:$0xff] }
 0xd92   :  { %14716 = vmatprep.mubr.msk.bf16.mxu1 %vm15824_vm0, %v19674_v62  ;;  %v4212_v26 = vpop.permute.xlu1 %4211 }
 0xd93   :  { %v4296_v48 = vsel %vm1095_vm6, %v4262_v51, %v4212_v26  ;;  %v13087_v26 = vcombine.high %v4884_v17, %v4888_v38  ;;  %v13049_v51 = vcombine.high %v4845_v1, %v4849_v55  ;;  %v4916_v17 = vld [vmem:[#allocation20 + $0x3c0] sm:$0xff] }
 0xd99   :  { %14717 = vmatmul.mubr.msk.bf16.gmra.mrb[164].mxu1 %vm1166_vm7, %v4282_v12  ;;  %v13001_v12 = vcombine.high %v4797_v33, %v4801_v45  ;;  %v4904_v33 = vld [vmem:[#allocation20 + $0x360] sm:$0xff] }
 0xd9a   :  { %14720 = vmatprep.mubr.msk.bf16.mxu1 %vm15824_vm0, %v19674_v62 }
 0xd9b   :  { %8309 = vmatprep.subr.bf16.mxu1 %v13001_v12 }
 0xd9c   :  { %8310 = vmatpush1.bf16.msra.mxu1 %v13000_v4 }
 0xda1   :  { %14721 = vmatmul.mubr.msk.bf16.gmra.mrb[168].mxu1 %vm1166_vm7, %v4284_v56  ;;  %v13062_v56 = vcombine.low %v4860_v35, %v4864_v6  ;;  %v19134_v35 = vld [vmem:[#allocation19] ss:$0 sm:$0xff] }
 0xda2   :  { %14724 = vmatprep.mubr.msk.bf16.mxu1 %vm15824_vm0, %v19674_v62 }
 0xda9   :  { %14725 = vmatmul.mubr.msk.bf16.gmra.mrb[172].mxu1 %vm1166_vm7, %v4286_v31  ;;  %v13009_v31 = vcombine.high %v4805_v59, %v4809_v5 }
 0xdaa   :  { %14728 = vmatprep.mubr.msk.bf16.mxu1 %vm15824_vm0, %v19674_v62 }
 0xdab   :  { %8311 = vmatprep.subr.bf16.mxu1 %v13009_v31 }
 0xdac   :  { %8312 = vmatpush1.bf16.msra.mxu1 %v13008_v24 }
 0xdad   :  { %8313 = vmatprep.subr.bf16.mxu1 %v13017_v21  ;;  %v4893_v21 = vld [vmem:[#allocation20 + $0x308] sm:$0xff] }
 0xdb0   :  { %8314 = vmatpush1.bf16.msra.mxu1 %v13016_v57  ;;  %v4912_v57 = vld [vmem:[#allocation20 + $0x3a0] sm:$0xff] }
 0xdb1   :  { %14729 = vmatmul.mubr.msk.bf16.gmra.mrb[176].mxu1 %vm1166_vm7, %v4288_v7  ;;  %v13070_v7 = vcombine.low %v4868_v39, %v4872_v0  ;;  %8315 = vmatprep.subr.bf16.mxu1 %v13025_v36  ;;  %v4885_v39 = vld [vmem:[#allocation20 + $0x2c8] sm:$0xff]  ;;  %v13111_v36 = vcombine.high %v4908_v63, %v4912_v57 }
 0xdb2   :  { %14732 = vmatprep.mubr.msk.bf16.mxu1 %vm15824_vm0, %v19674_v62  ;;  %v4889_v0 = vld [vmem:[#allocation20 + $0x2e8] sm:$0xff] }
 0xdb3   :  { %v13089_v52 = vcombine.high %v4885_v39, %v4889_v0 }
 0xdb9   :  { %14733 = vmatmul.mubr.msk.bf16.gmra.mrb[180].mxu1 %vm1166_vm7, %v4290_v49  ;;  %v13024_v49 = vcombine.low %v4821_v44, %v4825_v50  ;;  %v4897_v44 = vld [vmem:[#allocation20 + $0x328] sm:$0xff] }
 0xdba   :  { %14736 = vmatprep.mubr.msk.bf16.mxu1 %vm15824_vm0, %v19674_v62 }
 0xdbb   :  { %8316 = vmatpush1.bf16.msra.mxu1 %v13024_v49  ;;  %v13110_v49 = vcombine.low %v4908_v63, %v4912_v57 }
 0xdc1   :  { %14737 = vmatmul.mubr.msk.bf16.gmra.mrb[184].mxu1 %vm1166_vm7, %v4292_v53  ;;  %v4833_v53 = vld [vmem:[#allocation20 + $0x128] sm:$0xff] }
 0xdc2   :  { %14740 = vmatprep.mubr.msk.bf16.mxu1 %vm15824_vm0, %v19674_v62  ;;  %v13033_v23 = vcombine.high %v4829_v37, %v4833_v53  ;;  %v13032_v16 = vcombine.low %v4829_v37, %v4833_v53  ;;  %v4905_v37 = vld [vmem:[#allocation20 + $0x368] sm:$0xff] }
 0xdc4   :  { %8317 = vmatprep.subr.bf16.mxu1 %v13033_v23 }
 0xdc5   :  { %8318 = vmatpush1.bf16.msra.mxu1 %v13032_v16 }
 0xdc6   :  { %8319 = vmatprep.subr.bf16.mxu1 %v13041_v14 }
 0xdc9   :  { %14741 = vmatmul.mubr.msk.bf16.gmra.mrb[188].mxu1 %vm1166_vm7, %v4294_v46  ;;  %v13040_v46 = vcombine.low %v4837_v13, %v4841_v28  ;;  %v13096_v13 = vcombine.low %v4893_v21, %v4897_v44  ;;  %v13105_v28 = vcombine.high %v4901_v32, %v4905_v37 }
 0xdca   :  { %14744 = vmatprep.mubr.msk.bf16.mxu1 %vm15824_vm0, %v19674_v62  ;;  %v4828_v62 = vld [vmem:[#allocation20 + $0x100] sm:$0xff] }
 0xdcb   :  { %v13030_v58 = vcombine.low %v4828_v62, %v4832_v15  ;;  %v13031_v41 = vcombine.high %v4828_v62, %v4832_v15  ;;  %8320 = vmatpush1.bf16.msra.mxu1 %v13040_v46  ;;  %v13057_v62 = vcombine.high %v4853_v22, %v4857_v8  ;;  %v4896_v15 = vld [vmem:[#allocation20 + $0x320] sm:$0xff] }
 0xdcc   :  { %8321 = vmatprep.subr.bf16.mxu1 %v13049_v51  ;;  %v13094_v40 = vcombine.low %v4892_v20, %v4896_v15  ;;  %v13095_v9 = vcombine.high %v4892_v20, %v4896_v15  ;;  %v4920_v46 = vld [vmem:[#allocation20 + $0x3e0] sm:$0xff]  ;;  %v13104_v51 = vcombine.low %v4901_v32, %v4905_v37  ;;  %v4921_v15 = vld [vmem:[#allocation20 + $0x3e8] sm:$0xff] }
 0xdcd   :  { %8112 = vmatprep.subr.bf16.mxu0 %v13031_v41  ;;  %v4865_v41 = vld [vmem:[#allocation20 + $0x228] sm:$0xff] }
 0xdce   :  { %8113 = vmatpush1.bf16.msra.mxu0 %v13030_v58  ;;  %v4861_v58 = vld [vmem:[#allocation20 + $0x208] sm:$0xff] }
 0xdcf   :  { %8114 = vmatprep.subr.bf16.mxu0 %v13039_v18  ;;  %v13064_v18 = vcombine.low %v4861_v58, %v4865_v41 }
 0xdd1   :  { %14745 = vmatmul.mubr.msk.bf16.gmra.mrb[192].mxu1 %vm1166_vm7, %v4296_v48  ;;  %v13048_v48 = vcombine.low %v4845_v1, %v4849_v55  ;;  %v13118_v1 = vcombine.low %v4916_v17, %v4920_v46  ;;  %v13119_v55 = vcombine.high %v4916_v17, %v4920_v46 }
 0xdd2   :  { %8115 = vmatpush1.bf16.msra.mxu0 %v13038_v34  ;;  %v13065_v34 = vcombine.high %v4861_v58, %v4865_v41 }
 0xdd3   :  { %8116 = vmatprep.subr.bf16.mxu0 %v13047_v11  ;;  %8322 = vmatpush1.bf16.msra.mxu1 %v13048_v48 }
 0xdd4   :  { %8323 = vmatprep.subr.bf16.mxu1 %v13057_v62  ;;  %v4917_v62 = vld [vmem:[#allocation20 + $0x3c8] sm:$0xff] }
 0xdd5   :  { %v13120_v43 = vcombine.low %v4917_v62, %v4921_v15 }
 0xdd6   :  { %8117 = vmatpush1.bf16.msra.mxu0 %v13046_v60  ;;  %v4900_v60 = vld [vmem:[#allocation20 + $0x340] sm:$0xff] }
 0xdd7   :  { %8118 = vmatprep.subr.bf16.mxu0 %v13055_v19  ;;  %8324 = vmatpush1.bf16.msra.mxu1 %v13056_v47  ;;  %v4881_v19 = vld [vmem:[#allocation20 + $0x2a8] sm:$0xff]  ;;  %v13102_v4 = vcombine.low %v4900_v60, %v4904_v33  ;;  %v13103_v12 = vcombine.high %v4900_v60, %v4904_v33  ;;  %v19147_v60 = vld [vmem:[#allocation20 + $0x420] sm:$0xff] }
 0xdd8   :  { %8325 = vmatprep.subr.bf16.mxu1 %v13065_v34  ;;  %v13126_v33 = vcombine.low %v19145_v2, %v19147_v60 }
 0xdda   :  { %8119 = vmatpush1.bf16.msra.mxu0 %v13054_v54  ;;  %v4877_v54 = vld [vmem:[#allocation20 + $0x288] sm:$0xff] }
 0xddb   :  { %8120 = vmatprep.subr.bf16.mxu0 %v13063_v30  ;;  %8326 = vmatpush1.bf16.msra.mxu1 %v13064_v18  ;;  %v13081_v59 = vcombine.high %v4877_v54, %v4881_v19  ;;  %v13080_v5 = vcombine.low %v4877_v54, %v4881_v19  ;;  %v13127_v54 = vcombine.high %v19145_v2, %v19147_v60  ;;  %v19155_v19 = vld [vmem:[#allocation20 + $0x428] sm:$0xff] }
 0xddc   :  { %8327 = vmatprep.subr.bf16.mxu1 %v13073_v61 }
 0xdde   :  { %8121 = vmatpush1.bf16.msra.mxu0 %v13062_v56 }
 0xddf   :  { %8122 = vmatprep.subr.bf16.mxu0 %v13071_v27  ;;  %8328 = vmatpush1.bf16.msra.mxu1 %v13072_v25  ;;  %v13088_v27 = vcombine.low %v4885_v39, %v4889_v0  ;;  %v19149_v25 = vld [vmem:[#allocation20 + $0x408] sm:$0xff] }
 0xde0   :  { %8329 = vmatprep.subr.bf16.mxu1 %v13081_v59 }
 0xde2   :  { %8123 = vmatpush1.bf16.msra.mxu0 %v13070_v7 }
 0xde3   :  { %8124 = vmatprep.subr.bf16.mxu0 %v13079_v3  ;;  %8330 = vmatpush1.bf16.msra.mxu1 %v13080_v5 }
 0xde4   :  { %8331 = vmatprep.subr.bf16.mxu1 %v13089_v52 }
 0xde6   :  { %8125 = vmatpush1.bf16.msra.mxu0 %v13078_v29  ;;  %v13097_v29 = vcombine.high %v4893_v21, %v4897_v44 }
 0xde7   :  { %8126 = vmatprep.subr.bf16.mxu0 %v13087_v26  ;;  %8332 = vmatpush1.bf16.msra.mxu1 %v13088_v27  ;;  %v4913_v26 = vld [vmem:[#allocation20 + $0x3a8] sm:$0xff] }
 0xde8   :  { %8333 = vmatprep.subr.bf16.mxu1 %v13097_v29 }
 0xdea   :  { %8127 = vmatpush1.bf16.msra.mxu0 %v13086_v10  ;;  %v4909_v10 = vld [vmem:[#allocation20 + $0x388] sm:$0xff] }
 0xdeb   :  { %8128 = vmatprep.subr.bf16.mxu0 %v13095_v9  ;;  %8334 = vmatpush1.bf16.msra.mxu1 %v13096_v13  ;;  %v13113_v22 = vcombine.high %v4909_v10, %v4913_v26  ;;  %v13121_v9 = vcombine.high %v4917_v62, %v4921_v15 }
 0xdec   :  { %8335 = vmatprep.subr.bf16.mxu1 %v13105_v28 }
 0xdee   :  { %8129 = vmatpush1.bf16.msra.mxu0 %v13094_v40  ;;  %v13112_v40 = vcombine.low %v4909_v10, %v4913_v26 }
 0xdef   :  { %8130 = vmatprep.subr.bf16.mxu0 %v13103_v12  ;;  %8336 = vmatpush1.bf16.msra.mxu1 %v13104_v51  ;;  %v13128_v12 = vcombine.low %v19149_v25, %v19155_v19 }
 0xdf0   :  { %8337 = vmatprep.subr.bf16.mxu1 %v13113_v22 }
 0xdf2   :  { %8131 = vmatpush1.bf16.msra.mxu0 %v13102_v4 }
 0xdf3   :  { %8132 = vmatprep.subr.bf16.mxu0 %v13111_v36  ;;  %8338 = vmatpush1.bf16.msra.mxu1 %v13112_v40 }
 0xdf4   :  { %8339 = vmatprep.subr.bf16.mxu1 %v13121_v9 }
 0xdf6   :  { %8133 = vmatpush1.bf16.msra.mxu0 %v13110_v49 }
 0xdf7   :  { %8134 = vmatprep.subr.bf16.mxu0 %v13119_v55  ;;  %8340 = vmatpush1.bf16.msra.mxu1 %v13120_v43 }
 0xdfa   :  { %8135 = vmatpush1.bf16.msra.mxu0 %v13118_v1 }
 0xdfb   :  { %8145 = vmatprep.subr.bf16.mxu0 %v13127_v54 }
 0xe24   :  { %v19132_v11 = vpop.f32.mrb[128].mxu1 }
 0xe25   :  { %v14682_v45 = vpop.f32.mrb[129].mxu1 }
 0xe26   :  { %v4411_v6 = vpop.f32.mrb[130].mxu1 }
 0xe27   :  { %v4412_v56 = vadd.f32 %v19134_v35, %v4411_v6  ;;  %v14683_v30 = vpop.f32.mrb[131].mxu1  ;;  %v13129_v6 = vcombine.high %v19149_v25, %v19155_v19  ;;  %v4956_v25 = vld [vmem:[#allocation20 + $0x500] sm:$0xff]  ;;  %v4957_v19 = vld [vmem:[#allocation20 + $0x508] sm:$0xff] }
 0xe29   :  { %v4544_v24 = vmax.f32 %v4412_v56, 0.0  ;;  %8350 = vmatprep.subr.bf16.mxu1 %v13129_v6 }
 0xe2b   :  { %v14067_v31 = vpack.c.bf16 %v4544_v24, %v4544_v24 }
 0xe2c   :  { %v4416_v7 = vpop.f32.mrb[132].mxu1 }
 0xe2d   :  { %v4417_v50 = vadd.f32 %v19134_v35, %v4416_v7  ;;  %4655 = vrot.lane.b32.xlu1 %v14067_v31, %s15807_s29  ;;  %v14686_v42 = vpop.f32.mrb[133].mxu1 }
 0xe2e   :  { %v4419_v53 = vpop.f32.mrb[134].mxu1 }
 0xe2f   :  { %v4545_v3 = vmax.f32 %v4417_v50, 0.0  ;;  %v4420_v23 = vadd.f32 %v19134_v35, %v4419_v53  ;;  %v14687_v16 = vpop.f32.mrb[135].mxu1 }
 0xe31   :  { %v14068_v14 = vpack.c.bf16 %v4545_v3, %v4545_v3  ;;  %v4546_v38 = vmax.f32 %v4420_v23, 0.0 }
 0xe33   :  { %4658 = vrot.lane.b32.xlu1 %v14068_v14, %s15812_s20  ;;  %v14069_v8 = vpack.c.bf16 %v4546_v38, %v4546_v38 }
 0xe34   :  { %v19141_v48 = vpop.f32.mrb[136].mxu1 }
 0xe35   :  { %v14690_v20 = vpop.f32.mrb[137].mxu1 }
 0xe36   :  { %v4427_v47 = vpop.f32.mrb[138].mxu1 }
 0xe37   :  { %v4428_v58 = vadd.f32 %v19134_v35, %v4427_v47  ;;  %4661 = vrot.lane.b32.xlu1 %v14069_v8, %s15826_s14  ;;  %v14691_v41 = vpop.f32.mrb[139].mxu1 }
 0xe39   :  { %v4548_v34 = vmax.f32 %v4428_v58, 0.0 }
 0xe3b   :  { %v14070_v18 = vpack.c.bf16 %v4548_v34, %v4548_v34 }
 0xe3c   :  { %v4432_v61 = vpop.f32.mrb[140].mxu1 }
 0xe3d   :  { %v4433_v45 = vadd.f32 %v19134_v35, %v4432_v61  ;;  %4664 = vrot.lane.b32.xlu0 %v14070_v18, %s15807_s29  ;;  %v14694_v4 = vpop.f32.mrb[141].mxu1 }
 0xe3e   :  { %v4435_v59 = vpop.f32.mrb[142].mxu1 }
 0xe3f   :  { %v4549_v56 = vmax.f32 %v4433_v45, 0.0  ;;  %v4436_v30 = vadd.f32 %v19134_v35, %v4435_v59  ;;  %v14695_v5 = vpop.f32.mrb[143].mxu1 }
 0xe41   :  { %v14071_v24 = vpack.c.bf16 %v4549_v56, %v4549_v56  ;;  %v4550_v31 = vmax.f32 %v4436_v30, 0.0 }
 0xe43   :  { %4667 = vrot.lane.b32.xlu0 %v14071_v24, %s15812_s20  ;;  %v14072_v0 = vpack.c.bf16 %v4550_v31, %v4550_v31 }
 0xe44   :  { %v19165_v39 = vpop.f32.mrb[144].mxu1 }
 0xe45   :  { %v14698_v63 = vpop.f32.mrb[145].mxu1 }
 0xe46   :  { %v4443_v7 = vpop.f32.mrb[146].mxu1 }
 0xe47   :  { %v4444_v27 = vadd.f32 %v19134_v35, %v4443_v7  ;;  %4670 = vrot.lane.b32.xlu0 %v14072_v0, %s15826_s14  ;;  %v14699_v52 = vpop.f32.mrb[147].mxu1 }
 0xe49   :  { %v4552_v57 = vmax.f32 %v4444_v27, 0.0 }
 0xe4b   :  { %v14073_v21 = vpack.c.bf16 %v4552_v57, %v4552_v57 }
 0xe4c   :  { %v4448_v44 = vpop.f32.mrb[148].mxu1 }
 0xe4d   :  { %v4449_v50 = vadd.f32 %v19134_v35, %v4448_v44  ;;  %4673 = vrot.lane.b32.xlu1 %v14073_v21, %s15807_s29  ;;  %v14702_v42 = vpop.f32.mrb[149].mxu1 }
 0xe4e   :  { %v4451_v49 = vpop.f32.mrb[150].mxu1 }
 0xe4f   :  { %v4553_v36 = vmax.f32 %v4449_v50, 0.0  ;;  %v4452_v32 = vadd.f32 %v19134_v35, %v4451_v49  ;;  %v14703_v37 = vpop.f32.mrb[151].mxu1 }
 0xe51   :  { %v14074_v53 = vpack.c.bf16 %v4553_v36, %v4553_v36  ;;  %v4554_v29 = vmax.f32 %v4452_v32, 0.0 }
 0xe53   :  { %4676 = vrot.lane.b32.xlu1 %v14074_v53, %s15812_s20  ;;  %v14075_v23 = vpack.c.bf16 %v4554_v29, %v4554_v29 }
 0xe54   :  { %v19173_v3 = vpop.f32.mrb[152].mxu1 }
 0xe55   :  { %v14706_v16 = vpop.f32.mrb[153].mxu1 }
 0xe56   :  { %v4459_v13 = vpop.f32.mrb[154].mxu1 }
 0xe57   :  { %v4460_v28 = vadd.f32 %v19134_v35, %v4459_v13  ;;  %4679 = vrot.lane.b32.xlu1 %v14075_v23, %s15826_s14  ;;  %v14707_v17 = vpop.f32.mrb[155].mxu1 }
 0xe59   :  { %v4556_v46 = vmax.f32 %v4460_v28, 0.0 }
 0xe5b   :  { %v14076_v14 = vpack.c.bf16 %v4556_v46, %v4556_v46 }
 0xe5c   :  { %v4464_v38 = vpop.f32.mrb[156].mxu1 }
 0xe5d   :  { %v4465_v1 = vadd.f32 %v19134_v35, %v4464_v38  ;;  %4682 = vrot.lane.b32.xlu0 %v14076_v14, %s15807_s29  ;;  %v14710_v55 = vpop.f32.mrb[157].mxu1 }
 0xe5e   :  { %v4467_v10 = vpop.f32.mrb[158].mxu1 }
 0xe5f   :  { %v4557_v26 = vmax.f32 %v4465_v1, 0.0  ;;  %v4468_v51 = vadd.f32 %v19134_v35, %v4467_v10  ;;  %v14711_v22 = vpop.f32.mrb[159].mxu1 }
 0xe61   :  { %v14077_v8 = vpack.c.bf16 %v4557_v26, %v4557_v26  ;;  %v4558_v20 = vmax.f32 %v4468_v51, 0.0 }
 0xe63   :  { %4685 = vrot.lane.b32.xlu0 %v14077_v8, %s15812_s20  ;;  %v14078_v62 = vpack.c.bf16 %v4558_v20, %v4558_v20 }
 0xe64   :  { %v19181_v47 = vpop.f32.mrb[160].mxu1 }
 0xe65   :  { %v14714_v15 = vpop.f32.mrb[161].mxu1 }
 0xe66   :  { %v4475_v58 = vpop.f32.mrb[162].mxu1 }
 0xe67   :  { %v4476_v41 = vadd.f32 %v19134_v35, %v4475_v58  ;;  %4688 = vrot.lane.b32.xlu0 %v14078_v62, %s15826_s14  ;;  %v14715_v40 = vpop.f32.mrb[163].mxu1 }
 0xe69   :  { %v4560_v9 = vmax.f32 %v4476_v41, 0.0 }
 0xe6b   :  { %v14079_v34 = vpack.c.bf16 %v4560_v9, %v4560_v9 }
 0xe6c   :  { %v4480_v18 = vpop.f32.mrb[164].mxu1 }
 0xe6d   :  { %v4481_v43 = vadd.f32 %v19134_v35, %v4480_v18  ;;  %4723 = vrot.lane.b32.xlu1 %v14079_v34, %s15807_s29  ;;  %v14718_v61 = vpop.f32.mrb[165].mxu1 }
 0xe6e   :  { %v4483_v54 = vpop.f32.mrb[166].mxu1 }
 0xe6f   :  { %v4561_v45 = vmax.f32 %v4481_v43, 0.0  ;;  %v4484_v4 = vadd.f32 %v19134_v35, %v4483_v54  ;;  %v14719_v6 = vpop.f32.mrb[167].mxu1 }
 0xe71   :  { %v14080_v59 = vpack.c.bf16 %v4561_v45, %v4561_v45  ;;  %v4562_v56 = vmax.f32 %v4484_v4, 0.0 }
 0xe73   :  { %4726 = vrot.lane.b32.xlu1 %v14080_v59, %s15812_s20  ;;  %v14081_v5 = vpack.c.bf16 %v4562_v56, %v4562_v56 }
 0xe74   :  { %v19189_v30 = vpop.f32.mrb[168].mxu1 }
 0xe75   :  { %v14722_v24 = vpop.f32.mrb[169].mxu1 }
 0xe76   :  { %v4491_v31 = vpop.f32.mrb[170].mxu1 }
 0xe77   :  { %v4492_v0 = vadd.f32 %v19134_v35, %v4491_v31  ;;  %4729 = vrot.lane.b32.xlu1 %v14081_v5, %s15826_s14  ;;  %v14723_v63 = vpop.f32.mrb[171].mxu1 }
 0xe79   :  { %v4564_v7 = vmax.f32 %v4492_v0, 0.0 }
 0xe7b   :  { %v14082_v27 = vpack.c.bf16 %v4564_v7, %v4564_v7 }
 0xe7c   :  { %v4496_v52 = vpop.f32.mrb[172].mxu1 }
 0xe7d   :  { %v4497_v57 = vadd.f32 %v19134_v35, %v4496_v52  ;;  %4732 = vrot.lane.b32.xlu0 %v14082_v27, %s15807_s29  ;;  %v14726_v21 = vpop.f32.mrb[173].mxu1  ;;  %v4425_v52 = vadd.f32 %v19134_v35, %v19141_v48 }
 0xe7e   :  { %v4499_v44 = vpop.f32.mrb[174].mxu1  ;;  %v4409_v21 = vadd.f32 %v19134_v35, %v19132_v11 }
 0xe7f   :  { %v4565_v50 = vmax.f32 %v4497_v57, 0.0  ;;  %v4500_v42 = vadd.f32 %v19134_v35, %v4499_v44  ;;  %v14727_v49 = vpop.f32.mrb[175].mxu1 }
 0xe80   :  { %v4543_v49 = vmax.f32 %v4409_v21, 0.0  ;;  %v4973_v21 = vld [vmem:[#allocation20 + $0x588] sm:$0xff] }
 0xe81   :  { %v14083_v36 = vpack.c.bf16 %v4565_v50, %v4565_v50  ;;  %v4566_v32 = vmax.f32 %v4500_v42, 0.0  ;;  %v4547_v50 = vmax.f32 %v4425_v52, 0.0  ;;  %v4972_v52 = vld [vmem:[#allocation20 + $0x580] sm:$0xff] }
 0xe83   :  { %4735 = vrot.lane.b32.xlu0 %v14083_v36, %s15812_s20  ;;  %v14084_v53 = vpack.c.bf16 %v4566_v32, %v4566_v32  ;;  %v14059_v32 = vpack.c.bf16 %v4547_v50, %v4547_v50 }
 0xe84   :  { %v19197_v37 = vpop.f32.mrb[176].mxu1 }
 0xe85   :  { %v14730_v29 = vpop.f32.mrb[177].mxu1 }
 0xe86   :  { %v4507_v23 = vpop.f32.mrb[178].mxu1  ;;  %v14058_v29 = vpack.c.bf16 %v4543_v49, %v4543_v49  ;;  %v4457_v49 = vadd.f32 %v19134_v35, %v19173_v3  ;;  %v4992_v3 = vld [vmem:[#allocation20 + $0x620] sm:$0xff] }
 0xe87   :  { %v4508_v16 = vadd.f32 %v19134_v35, %v4507_v23  ;;  %4738 = vrot.lane.b32.xlu0 %v14084_v53, %s15826_s14  ;;  %v14731_v13 = vpop.f32.mrb[179].mxu1  ;;  %v4932_v53 = vld [vmem:[#allocation20 + $0x440] sm:$0xff] }
 0xe88   :  { %v4936_v23 = vld [vmem:[#allocation20 + $0x460] sm:$0xff]  ;;  %v4937_v13 = vld [vmem:[#allocation20 + $0x468] sm:$0xff] }
 0xe89   :  { %v4568_v28 = vmax.f32 %v4508_v16, 0.0  ;;  %v4933_v16 = vld [vmem:[#allocation20 + $0x448] sm:$0xff] }
 0xe8b   :  { %v14085_v17 = vpack.c.bf16 %v4568_v28, %v4568_v28 }
 0xe8c   :  { %v4512_v46 = vpop.f32.mrb[180].mxu1 }
 0xe8d   :  { %v4513_v14 = vadd.f32 %v19134_v35, %v4512_v46  ;;  %4741 = vrot.lane.b32.xlu1 %v14085_v17, %s15807_s29  ;;  %v14734_v38 = vpop.f32.mrb[181].mxu1 }
 0xe8e   :  { %v4515_v1 = vpop.f32.mrb[182].mxu1 }
 0xe8f   :  { %v4569_v55 = vmax.f32 %v4513_v14, 0.0  ;;  %v4516_v10 = vadd.f32 %v19134_v35, %v4515_v1  ;;  %v14735_v26 = vpop.f32.mrb[183].mxu1  ;;  %v13135_v1 = vcombine.high %v4932_v53, %v4936_v23 }
 0xe91   :  { %v14086_v51 = vpack.c.bf16 %v4569_v55, %v4569_v55  ;;  %v4570_v22 = vmax.f32 %v4516_v10, 0.0  ;;  %v13137_v55 = vcombine.high %v4933_v16, %v4937_v13  ;;  %v4940_v10 = vld [vmem:[#allocation20 + $0x480] sm:$0xff] }
 0xe93   :  { %4744 = vrot.lane.b32.xlu1 %v14086_v51, %s15812_s20  ;;  %v14087_v20 = vpack.c.bf16 %v4570_v22, %v4570_v22  ;;  %v4944_v51 = vld [vmem:[#allocation20 + $0x4a0] sm:$0xff]  ;;  %v4941_v22 = vld [vmem:[#allocation20 + $0x488] sm:$0xff] }
 0xe94   :  { %v19205_v8 = vpop.f32.mrb[184].mxu1 }
 0xe95   :  { %v14738_v62 = vpop.f32.mrb[185].mxu1 }
 0xe96   :  { %v4523_v15 = vpop.f32.mrb[186].mxu1  ;;  %v13134_v62 = vcombine.low %v4932_v53, %v4936_v23  ;;  %v4980_v53 = vld [vmem:[#allocation20 + $0x5c0] sm:$0xff]  ;;  %v4981_v23 = vld [vmem:[#allocation20 + $0x5c8] sm:$0xff] }
 0xe97   :  { %v4524_v58 = vadd.f32 %v19134_v35, %v4523_v15  ;;  %4747 = vrot.lane.b32.xlu1 %v14087_v20, %s15826_s14  ;;  %v14739_v41 = vpop.f32.mrb[187].mxu1  ;;  %v4945_v20 = vld [vmem:[#allocation20 + $0x4a8] sm:$0xff]  ;;  %v13136_v15 = vcombine.low %v4933_v16, %v4937_v13 }
 0xe98   :  { %v13145_v41 = vcombine.high %v4941_v22, %v4945_v20  ;;  %v4985_v16 = vld [vmem:[#allocation20 + $0x5e8] sm:$0xff] }
 0xe99   :  { %v4572_v40 = vmax.f32 %v4524_v58, 0.0  ;;  %v13143_v58 = vcombine.high %v4940_v10, %v4944_v51 }
 0xe9b   :  { %v14088_v9 = vpack.c.bf16 %v4572_v40, %v4572_v40  ;;  %v4948_v40 = vld [vmem:[#allocation20 + $0x4c0] sm:$0xff] }
 0xe9c   :  { %v4528_v34 = vpop.f32.mrb[188].mxu1 }
 0xe9d   :  { %v4529_v18 = vadd.f32 %v19134_v35, %v4528_v34  ;;  %4750 = vrot.lane.b32.xlu0 %v14088_v9, %s15807_s29  ;;  %v14742_v43 = vpop.f32.mrb[189].mxu1  ;;  %v4952_v9 = vld [vmem:[#allocation20 + $0x4e0] sm:$0xff]  ;;  %v4949_v34 = vld [vmem:[#allocation20 + $0x4c8] sm:$0xff] }
 0xe9e   :  { %v4531_v61 = vpop.f32.mrb[190].mxu1  ;;  %v13142_v43 = vcombine.low %v4940_v10, %v4944_v51  ;;  %v13151_v2 = vcombine.high %v4948_v40, %v4952_v9 }
 0xe9f   :  { %v4573_v54 = vmax.f32 %v4529_v18, 0.0  ;;  %v4532_v45 = vadd.f32 %v19134_v35, %v4531_v61  ;;  %v14743_v4 = vpop.f32.mrb[191].mxu1  ;;  %v4656_v57 = vpop.permute.xlu1 %4655  ;;  %v4953_v18 = vld [vmem:[#allocation20 + $0x4e8] sm:$0xff]  ;;  %v13144_v61 = vcombine.low %v4941_v22, %v4945_v20  ;;  %v13184_v22 = vcombine.low %v4981_v23, %v4985_v16 }
 0xea0   :  { %v4692_v48 = vsel %vm1044_vm5, %v14058_v29, %v4656_v57  ;;  %v13153_v60 = vcombine.high %v4949_v34, %v4953_v18  ;;  %v4976_v57 = vld [vmem:[#allocation20 + $0x5a0] sm:$0xff] }
 0xea1   :  { %v14089_v6 = vpack.c.bf16 %v4573_v54, %v4573_v54  ;;  %v4574_v59 = vmax.f32 %v4532_v45, 0.0  ;;  %v13150_v54 = vcombine.low %v4948_v40, %v4952_v9  ;;  %v13152_v45 = vcombine.low %v4949_v34, %v4953_v18  ;;  %v4984_v29 = vld [vmem:[#allocation20 + $0x5e0] sm:$0xff]  ;;  %v4997_v40 = vld [vmem:[#allocation20 + $0x648] sm:$0xff] }
 0xea2   :  { %v13182_v51 = vcombine.low %v4980_v53, %v4984_v29  ;;  %v5001_v9 = vld [vmem:[#allocation20 + $0x668] sm:$0xff] }
 0xea3   :  { %4753 = vrot.lane.b32.xlu0 %v14089_v6, %s15812_s20  ;;  %v14090_v5 = vpack.c.bf16 %v4574_v59, %v4574_v59  ;;  %v4964_v59 = vld [vmem:[#allocation20 + $0x540] sm:$0xff] }
 0xea4   :  { %v19213_v56 = vpop.f32.mrb[192].mxu1 }
 0xea5   :  { %v14746_v24 = vpop.f32.mrb[193].mxu1  ;;  %v4659_v42 = vpop.permute.xlu1 %4658 }
 0xea6   :  { %v4539_v31 = vpop.f32.mrb[194].mxu1  ;;  %v4694_v11 = vsel %vm1095_vm6, %v4692_v48, %v4659_v42  ;;  %v4965_v24 = vld [vmem:[#allocation20 + $0x548] sm:$0xff]  ;;  %v4555_v48 = vmax.f32 %v4457_v49, 0.0 }
 0xea7   :  { %v4540_v0 = vadd.f32 %v19134_v35, %v4539_v31  ;;  %4756 = vrot.lane.b32.xlu0 %v14090_v5, %s15826_s14  ;;  %v14747_v63 = vpop.f32.mrb[195].mxu1  ;;  %v4968_v5 = vld [vmem:[#allocation20 + $0x560] sm:$0xff]  ;;  %v4969_v31 = vld [vmem:[#allocation20 + $0x568] sm:$0xff] }
 0xea8   :  { %v13166_v50 = vcombine.low %v4964_v59, %v4968_v5  ;;  %v13168_v42 = vcombine.low %v4965_v24, %v4969_v31  ;;  %v14061_v20 = vpack.c.bf16 %v4555_v48, %v4555_v48 }
 0xea9   :  { %v4576_v7 = vmax.f32 %v4540_v0, 0.0  ;;  %v4662_v28 = vpop.permute.xlu1 %4661 }
 0xeaa   :  { %v19230_v26 = vsel %vm1166_vm7, %v4694_v11, %v4662_v28  ;;  %v13174_v28 = vcombine.low %v4972_v52, %v4976_v57  ;;  %v4988_v11 = vld [vmem:[#allocation20 + $0x600] sm:$0xff] }
 0xeab   :  { %v14091_v27 = vpack.c.bf16 %v4576_v7, %v4576_v7  ;;  %v13167_v7 = vcombine.high %v4964_v59, %v4968_v5 }
 0xead   :  { %4791 = vrot.lane.b32.xlu0 %v14091_v27, %s15807_s29  ;;  %v13169_v27 = vcombine.high %v4965_v24, %v4969_v31  ;;  %v5012_v24 = vld [vmem:[#allocation20 + $0x6c0] sm:$0xff]  ;;  %s15828_s29 = smov [#allocation29]  }
 0xeae   :  { %v5016_v31 = vld [vmem:[#allocation20 + $0x6e0] sm:$0xff]  ;;  %s12746_s20 = sshll.u32 %s15828_s29, 4  ;;  %s12747_s20 = int_to_ptr.vmem [resolvable:$true] %s12746_s20 }
 0xeaf   :  { %v4665_v44 = vpop.permute.xlu0 %4664  ;;  %v13214_v49 = vcombine.low %v5012_v24, %v5016_v31  ;;  %s15732_s23 = scalar_lea.vmem %s12747_s20, 512  ;;  %p15737_p11 = scmp.lt.s32.totalorder %s12747_s20, %s12747_s20 }
 0xeb0   :  { %v4700_v17 = vsel %vm1044_vm5, %v14059_v32, %v4665_v44  ;;  %v4977_v44 = vld [vmem:[#allocation20 + $0x5a8] sm:$0xff]  ;;  %p15733_p10 = scmp.ne.s32.totalorder %s12747_s20, %s15732_s23  ;;  %p15738_p12 = scmp.lt.s32.totalorder %s15732_s23, %s15732_s23 }
 0xeb1   :  { %v13177_v32 = vcombine.high %v4973_v21, %v4977_v44 }
 0xeb2   :  { %p15739_p13 = por %p15738_p12, %p15737_p11 }
 0xeb4   :  { %p15740_p0 = pnand %p15739_p13, %p15733_p10 }
 0xeb5   :  { %v4668_v36 = vpop.permute.xlu0 %4667 }
 0xeb6   :  { %v4702_v46 = vsel %vm1095_vm6, %v4700_v17, %v4668_v36  ;;  %v13175_v36 = vcombine.high %v4972_v52, %v4976_v57  ;;  %v13176_v17 = vcombine.low %v4973_v21, %v4977_v44  ;;  %v13215_v52 = vcombine.high %v5012_v24, %v5016_v31  ;;  %v5020_v21 = vld [vmem:[#allocation20 + $0x700] sm:$0xff] }
 0xeb7   :  { %v5024_v44 = vld [vmem:[#allocation20 + $0x720] sm:$0xff] }
 0xeb8   :  { %v5060_v31 = vld [vmem:[#allocation20 + $0x840] sm:$0xff] }
 0xeb9   :  { %v4671_v14 = vpop.permute.xlu0 %4670 }
 0xeba   :  { %v19227_v38 = vsel %vm1166_vm7, %v4702_v46, %v4671_v14  ;;  %v13183_v46 = vcombine.high %v4980_v53, %v4984_v29  ;;  %v13185_v14 = vcombine.high %v4981_v23, %v4985_v16  ;;  %v5028_v29 = vld [vmem:[#allocation20 + $0x740] sm:$0xff]  ;;  %v5029_v16 = vld [vmem:[#allocation20 + $0x748] sm:$0xff] }
 0xebb   :  { %8136 = vmatprep.mubr.bf16.mxu0 %v19227_v38  ;;  %8341 = vmatprep.mubr.bf16.mxu1 %v19227_v38  ;;  %v5032_v23 = vld [vmem:[#allocation20 + $0x760] sm:$0xff] }
 0xebc   :  { %8137 = vmatmul.mubr.bf16.vlgmr.msra.gmra.mrb[220].mxu0 %v19230_v26  ;;  %8342 = vmatmul.mubr.bf16.vlgmr.msra.gmra.mrb[196].mxu1 %v19230_v26  ;;  %v13231_v48 = vcombine.high %v5028_v29, %v5032_v23 }
 0xebd   :  { %8146 = vmatpush1.bf16.msra.mxu0 %v13126_v33  ;;  %8351 = vmatpush1.bf16.msra.mxu1 %v13128_v12  ;;  %v4960_v33 = vld [vmem:[#allocation20 + $0x520] sm:$0xff]  ;;  %v4961_v12 = vld [vmem:[#allocation20 + $0x528] sm:$0xff] }
 0xebe   :  { %8147 = vmatprep.subr.bf16.mxu0 %v13135_v1  ;;  %8352 = vmatprep.subr.bf16.mxu1 %v13137_v55  ;;  %v13159_v4 = vcombine.high %v4956_v25, %v4960_v33  ;;  %v13161_v6 = vcombine.high %v4957_v19, %v4961_v12  ;;  %v13158_v0 = vcombine.low %v4956_v25, %v4960_v33  ;;  %v4989_v1 = vld [vmem:[#allocation20 + $0x608] sm:$0xff] }
 0xebf   :  { %v13160_v63 = vcombine.low %v4957_v19, %v4961_v12  ;;  %v4993_v55 = vld [vmem:[#allocation20 + $0x628] sm:$0xff]  ;;  %v13201_v33 = vcombine.high %v4997_v40, %v5001_v9  ;;  %v5004_v19 = vld [vmem:[#allocation20 + $0x680] sm:$0xff] }
 0xec0   :  { %v5008_v12 = vld [vmem:[#allocation20 + $0x6a0] sm:$0xff] }
 0xec1   :  { %8148 = vmatpush1.bf16.msra.mxu0 %v13134_v62  ;;  %8353 = vmatpush1.bf16.msra.mxu1 %v13136_v15  ;;  %v13191_v62 = vcombine.high %v4988_v11, %v4992_v3  ;;  %v13193_v15 = vcombine.high %v4989_v1, %v4993_v55  ;;  %v13207_v59 = vcombine.high %v5004_v19, %v5008_v12 }
 0xec2   :  { %8149 = vmatprep.subr.bf16.mxu0 %v13143_v58  ;;  %8354 = vmatprep.subr.bf16.mxu1 %v13145_v41  ;;  %v4996_v58 = vld [vmem:[#allocation20 + $0x640] sm:$0xff] }
 0xec3   :  { %v5000_v41 = vld [vmem:[#allocation20 + $0x660] sm:$0xff] }
 0xec4   :  { %v13199_v25 = vcombine.high %v4996_v58, %v5000_v41 }
 0xec5   :  { %8150 = vmatpush1.bf16.msra.mxu0 %v13142_v43  ;;  %8355 = vmatpush1.bf16.msra.mxu1 %v13144_v61  ;;  %v13190_v61 = vcombine.low %v4988_v11, %v4992_v3  ;;  %v5040_v11 = vld [vmem:[#allocation20 + $0x7a0] sm:$0xff]  ;;  %v5037_v3 = vld [vmem:[#allocation20 + $0x788] sm:$0xff] }
 0xec6   :  { %8151 = vmatprep.subr.bf16.mxu0 %v13151_v2  ;;  %8356 = vmatprep.subr.bf16.mxu1 %v13153_v60  ;;  %v13192_v2 = vcombine.low %v4989_v1, %v4993_v55  ;;  %v5041_v1 = vld [vmem:[#allocation20 + $0x7a8] sm:$0xff]  ;;  %v13230_v55 = vcombine.low %v5028_v29, %v5032_v23  ;;  %v5068_v23 = vld [vmem:[#allocation20 + $0x880] sm:$0xff] }
 0xec9   :  { %8152 = vmatpush1.bf16.msra.mxu0 %v13150_v54  ;;  %8357 = vmatpush1.bf16.msra.mxu1 %v13152_v45  ;;  %v5005_v54 = vld [vmem:[#allocation20 + $0x688] sm:$0xff] }
 0xeca   :  { %8153 = vmatprep.subr.bf16.mxu0 %v13159_v4  ;;  %8358 = vmatprep.subr.bf16.mxu1 %v13161_v6  ;;  %v5009_v45 = vld [vmem:[#allocation20 + $0x6a8] sm:$0xff]  ;;  %v13198_v4 = vcombine.low %v4996_v58, %v5000_v41  ;;  %v13200_v6 = vcombine.low %v4997_v40, %v5001_v9  ;;  %v4441_v58 = vadd.f32 %v19134_v35, %v19165_v39  ;;  %v5048_v41 = vld [vmem:[#allocation20 + $0x7e0] sm:$0xff] }
 0xecb   :  { %v13209_v5 = vcombine.high %v5005_v54, %v5009_v45  ;;  %v5045_v40 = vld [vmem:[#allocation20 + $0x7c8] sm:$0xff] }
 0xecc   :  { %v5049_v9 = vld [vmem:[#allocation20 + $0x7e8] sm:$0xff] }
 0xecd   :  { %8154 = vmatpush1.bf16.msra.mxu0 %v13158_v0  ;;  %8359 = vmatpush1.bf16.msra.mxu1 %v13160_v63  ;;  %v5013_v0 = vld [vmem:[#allocation20 + $0x6c8] sm:$0xff] }
 0xece   :  { %8155 = vmatprep.subr.bf16.mxu0 %v13167_v7  ;;  %8360 = vmatprep.subr.bf16.mxu1 %v13169_v27  ;;  %v5017_v63 = vld [vmem:[#allocation20 + $0x6e8] sm:$0xff]  ;;  %v13206_v7 = vcombine.low %v5004_v19, %v5008_v12  ;;  %v13208_v27 = vcombine.low %v5005_v54, %v5009_v45  ;;  %v4551_v19 = vmax.f32 %v4441_v58, 0.0  ;;  %v5056_v12 = vld [vmem:[#allocation20 + $0x820] sm:$0xff] }
 0xecf   :  { %v4683_v13 = vpop.permute.xlu0 %4682  ;;  %v13217_v57 = vcombine.high %v5013_v0, %v5017_v63  ;;  %v5053_v54 = vld [vmem:[#allocation20 + $0x808] sm:$0xff] }
 0xed0   :  { %v4716_v34 = vsel %vm1044_vm5, %v14061_v20, %v4683_v13  ;;  %v5033_v13 = vld [vmem:[#allocation20 + $0x768] sm:$0xff]  ;;  %v14060_v24 = vpack.c.bf16 %v4551_v19, %v4551_v19 }
 0xed1   :  { %8156 = vmatpush1.bf16.msra.mxu0 %v13166_v50  ;;  %8361 = vmatpush1.bf16.msra.mxu1 %v13168_v42  ;;  %v5021_v50 = vld [vmem:[#allocation20 + $0x708] sm:$0xff] }
 0xed2   :  { %8157 = vmatprep.subr.bf16.mxu0 %v13175_v36  ;;  %8362 = vmatprep.subr.bf16.mxu1 %v13177_v32  ;;  %v5025_v42 = vld [vmem:[#allocation20 + $0x728] sm:$0xff]  ;;  %v13216_v36 = vcombine.low %v5013_v0, %v5017_v63  ;;  %v13223_v32 = vcombine.high %v5020_v21, %v5024_v44 }
 0xed3   :  { %v13225_v53 = vcombine.high %v5021_v50, %v5025_v42  ;;  %v5057_v45 = vld [vmem:[#allocation20 + $0x828] sm:$0xff] }
 0xed4   :  { %v5085_v58 = vld [vmem:[#allocation20 + $0x908] sm:$0xff] }
 0xed5   :  { %8158 = vmatpush1.bf16.msra.mxu0 %v13174_v28  ;;  %8363 = vmatpush1.bf16.msra.mxu1 %v13176_v17  ;;  %v4686_v10 = vpop.permute.xlu0 %4685  ;;  %v13222_v28 = vcombine.low %v5020_v21, %v5024_v44  ;;  %v13224_v17 = vcombine.low %v5021_v50, %v5025_v42 }
 0xed6   :  { %8159 = vmatprep.subr.bf16.mxu0 %v13183_v46  ;;  %8364 = vmatprep.subr.bf16.mxu1 %v13185_v14  ;;  %v4718_v18 = vsel %vm1095_vm6, %v4716_v34, %v4686_v10  ;;  %v13233_v46 = vcombine.high %v5029_v16, %v5033_v13  ;;  %v5036_v14 = vld [vmem:[#allocation20 + $0x780] sm:$0xff]  ;;  %v13232_v10 = vcombine.low %v5029_v16, %v5033_v13  ;;  %v5069_v13 = vld [vmem:[#allocation20 + $0x888] sm:$0xff] }
 0xed7   :  { %v13239_v20 = vcombine.high %v5036_v14, %v5040_v11  ;;  %v5072_v16 = vld [vmem:[#allocation20 + $0x8a0] sm:$0xff] }
 0xed9   :  { %8160 = vmatpush1.bf16.msra.mxu0 %v13182_v51  ;;  %8365 = vmatpush1.bf16.msra.mxu1 %v13184_v22  ;;  %v4689_v43 = vpop.permute.xlu0 %4688  ;;  %v4489_v51 = vadd.f32 %v19134_v35, %v19189_v30  ;;  %v4674_v22 = vpop.permute.xlu1 %4673 }
 0xeda   :  { %v19247_v60 = vsel %vm1166_vm7, %v4718_v18, %v4689_v43  ;;  %8161 = vmatprep.subr.bf16.mxu0 %v13191_v62  ;;  %8366 = vmatprep.subr.bf16.mxu1 %v13193_v15  ;;  %v13241_v62 = vcombine.high %v5037_v3, %v5041_v1  ;;  %v5044_v15 = vld [vmem:[#allocation20 + $0x7c0] sm:$0xff]  ;;  %v13238_v18 = vcombine.low %v5036_v14, %v5040_v11 }
 0xedb   :  { %8177 = vmatprep.mubr.bf16.mxu0 %v19247_v60  ;;  %8382 = vmatprep.mubr.bf16.mxu1 %v19247_v60  ;;  %v13240_v43 = vcombine.low %v5037_v3, %v5041_v1  ;;  %v13247_v30 = vcombine.high %v5044_v15, %v5048_v41  ;;  %v13246_v39 = vcombine.low %v5044_v15, %v5048_v41  ;;  %v5076_v11 = vld [vmem:[#allocation20 + $0x8c0] sm:$0xff]  ;;  %v5077_v1 = vld [vmem:[#allocation20 + $0x8c8] sm:$0xff] }
 0xedc   :  { %v5080_v3 = vld [vmem:[#allocation20 + $0x8e0] sm:$0xff]  ;;  %v5089_v41 = vld [vmem:[#allocation20 + $0x928] sm:$0xff] }
 0xedd   :  { %8162 = vmatpush1.bf16.msra.mxu0 %v13190_v61  ;;  %8367 = vmatpush1.bf16.msra.mxu1 %v13192_v2  ;;  %v4563_v61 = vmax.f32 %v4489_v51, 0.0  ;;  %v4677_v2 = vpop.permute.xlu1 %4676  ;;  %v5088_v15 = vld [vmem:[#allocation20 + $0x920] sm:$0xff] }
 0xede   :  { %8163 = vmatprep.subr.bf16.mxu0 %v13199_v25  ;;  %8368 = vmatprep.subr.bf16.mxu1 %v13201_v33  ;;  %v13249_v25 = vcombine.high %v5045_v40, %v5049_v9  ;;  %v5052_v33 = vld [vmem:[#allocation20 + $0x800] sm:$0xff] }
 0xedf   :  { %v13254_v50 = vcombine.low %v5052_v33, %v5056_v12 }
 0xee1   :  { %8164 = vmatpush1.bf16.msra.mxu0 %v13198_v4  ;;  %8369 = vmatpush1.bf16.msra.mxu1 %v13200_v6  ;;  %v13248_v4 = vcombine.low %v5045_v40, %v5049_v9  ;;  %v14063_v6 = vpack.c.bf16 %v4563_v61, %v4563_v61  ;;  %v4680_v0 = vpop.permute.xlu1 %4679  ;;  %v13278_v40 = vcombine.low %v5076_v11, %v5080_v3  ;;  %v5096_v61 = vld [vmem:[#allocation20 + $0x960] sm:$0xff] }
 0xee2   :  { %8165 = vmatprep.subr.bf16.mxu0 %v13207_v59  ;;  %8370 = vmatprep.subr.bf16.mxu1 %v13209_v5  ;;  %v13255_v59 = vcombine.high %v5052_v33, %v5056_v12  ;;  %v13257_v5 = vcombine.high %v5053_v54, %v5057_v45  ;;  %v13288_v33 = vcombine.low %v5085_v58, %v5089_v41 }
 0xee5   :  { %8166 = vmatpush1.bf16.msra.mxu0 %v13206_v7  ;;  %8371 = vmatpush1.bf16.msra.mxu1 %v13208_v27  ;;  %v5064_v7 = vld [vmem:[#allocation20 + $0x860] sm:$0xff]  ;;  %v5061_v27 = vld [vmem:[#allocation20 + $0x848] sm:$0xff] }
 0xee6   :  { %8167 = vmatprep.subr.bf16.mxu0 %v13215_v52  ;;  %8372 = vmatprep.subr.bf16.mxu1 %v13217_v57  ;;  %v5065_v52 = vld [vmem:[#allocation20 + $0x868] sm:$0xff]  ;;  %v4708_v57 = vsel %vm1044_vm5, %v14060_v24, %v4674_v22  ;;  %v13279_v22 = vcombine.high %v5076_v11, %v5080_v3  ;;  %v5108_v24 = vld [vmem:[#allocation20 + $0x9c0] sm:$0xff] }
 0xee7   :  { %v4710_v42 = vsel %vm1095_vm6, %v4708_v57, %v4677_v2  ;;  %v13265_v29 = vcombine.high %v5061_v27, %v5065_v52  ;;  %v5093_v2 = vld [vmem:[#allocation20 + $0x948] sm:$0xff]  ;;  %v5132_v3 = vld [vmem:[#allocation20 + $0xa80] sm:$0xff] }
 0xee9   :  { %8168 = vmatpush1.bf16.msra.mxu0 %v13214_v49  ;;  %8373 = vmatpush1.bf16.msra.mxu1 %v13216_v36  ;;  %v13256_v36 = vcombine.low %v5053_v54, %v5057_v45  ;;  %v5100_v54 = vld [vmem:[#allocation20 + $0x980] sm:$0xff] }
 0xeea   :  { %8169 = vmatprep.subr.bf16.mxu0 %v13223_v32  ;;  %8374 = vmatprep.subr.bf16.mxu1 %v13225_v53  ;;  %v19263_v32 = vsel %vm1166_vm7, %v4710_v42, %v4680_v0  ;;  %v13263_v53 = vcombine.high %v5060_v31, %v5064_v7  ;;  %v5104_v45 = vld [vmem:[#allocation20 + $0x9a0] sm:$0xff]  ;;  %v5109_v0 = vld [vmem:[#allocation20 + $0x9c8] sm:$0xff] }
 0xeeb   :  { %v5121_v42 = vld [vmem:[#allocation20 + $0xa28] sm:$0xff] }
 0xeed   :  { %8170 = vmatpush1.bf16.msra.mxu0 %v13222_v28  ;;  %8375 = vmatpush1.bf16.msra.mxu1 %v13224_v17  ;;  %v5073_v28 = vld [vmem:[#allocation20 + $0x8a8] sm:$0xff]  ;;  %v13262_v17 = vcombine.low %v5060_v31, %v5064_v7  ;;  %v5112_v31 = vld [vmem:[#allocation20 + $0x9e0] sm:$0xff]  ;;  %v13302_v7 = vcombine.low %v5100_v54, %v5104_v45 }
 0xeee   :  { %8171 = vmatprep.subr.bf16.mxu0 %v13231_v48  ;;  %8376 = vmatprep.subr.bf16.mxu1 %v13233_v46  ;;  %v13264_v48 = vcombine.low %v5061_v27, %v5065_v52  ;;  %v13271_v46 = vcombine.high %v5068_v23, %v5072_v16  ;;  %v13273_v14 = vcombine.high %v5069_v13, %v5073_v28 }
 0xeef   :  { %v4733_v34 = vpop.permute.xlu0 %4732  ;;  %v13272_v51 = vcombine.low %v5069_v13, %v5073_v28  ;;  %v13311_v52 = vcombine.high %v5108_v24, %v5112_v31  ;;  %v5128_v13 = vld [vmem:[#allocation20 + $0xa60] sm:$0xff]  ;;  %v5125_v28 = vld [vmem:[#allocation20 + $0xa48] sm:$0xff] }
 0xef0   :  { %v4768_v63 = vsel %vm1044_vm5, %v14063_v6, %v4733_v34 }
 0xef1   :  { %8172 = vmatpush1.bf16.msra.mxu0 %v13230_v55  ;;  %8377 = vmatpush1.bf16.msra.mxu1 %v13232_v10  ;;  %v5081_v55 = vld [vmem:[#allocation20 + $0x8e8] sm:$0xff]  ;;  %v13270_v10 = vcombine.low %v5068_v23, %v5072_v16  ;;  %v5124_v16 = vld [vmem:[#allocation20 + $0xa40] sm:$0xff] }
 0xef2   :  { %8173 = vmatprep.subr.bf16.mxu0 %v13239_v20  ;;  %8378 = vmatprep.subr.bf16.mxu1 %v13241_v62  ;;  %v13281_v20 = vcombine.high %v5077_v1, %v5081_v55  ;;  %v5084_v62 = vld [vmem:[#allocation20 + $0x900] sm:$0xff]  ;;  %v13280_v9 = vcombine.low %v5077_v1, %v5081_v55  ;;  %v5133_v55 = vld [vmem:[#allocation20 + $0xa88] sm:$0xff] }
 0xef3   :  { %v13287_v34 = vcombine.high %v5084_v62, %v5088_v15  ;;  %v5136_v1 = vld [vmem:[#allocation20 + $0xaa0] sm:$0xff] }
 0xef5   :  { %8174 = vmatpush1.bf16.msra.mxu0 %v13238_v18  ;;  %8379 = vmatpush1.bf16.msra.mxu1 %v13240_v43  ;;  %v4736_v35 = vpop.permute.xlu0 %4735  ;;  %v13289_v18 = vcombine.high %v5085_v58, %v5089_v41  ;;  %v5092_v43 = vld [vmem:[#allocation20 + $0x940] sm:$0xff]  ;;  %v5141_v41 = vld [vmem:[#allocation20 + $0xac8] sm:$0xff] }
 0xef6   :  { %8175 = vmatprep.subr.bf16.mxu0 %v13247_v30  ;;  %8380 = vmatprep.subr.bf16.mxu1 %v13249_v25  ;;  %v4770_v21 = vsel %vm1095_vm6, %v4768_v63, %v4736_v35  ;;  %v5097_v30 = vld [vmem:[#allocation20 + $0x968] sm:$0xff]  ;;  %v13286_v25 = vcombine.low %v5084_v62, %v5088_v15  ;;  %v13295_v19 = vcombine.high %v5092_v43, %v5096_v61  ;;  %v5140_v15 = vld [vmem:[#allocation20 + $0xac0] sm:$0xff] }
 0xef7   :  { %v13297_v12 = vcombine.high %v5093_v2, %v5097_v30  ;;  %v5101_v35 = vld [vmem:[#allocation20 + $0x988] sm:$0xff]  ;;  %v13296_v6 = vcombine.low %v5093_v2, %v5097_v30  ;;  %v5144_v58 = vld [vmem:[#allocation20 + $0xae0] sm:$0xff] }
 0xef8   :  { %v5113_v63 = vld [vmem:[#allocation20 + $0x9e8] sm:$0xff]  ;;  %v5152_v2 = vld [vmem:[#allocation20 + $0xb20] sm:$0xff] }
 0xef9   :  { %8176 = vmatpush1.bf16.msra.mxu0 %v13246_v39  ;;  %8381 = vmatpush1.bf16.msra.mxu1 %v13248_v4  ;;  %v4739_v44 = vpop.permute.xlu0 %4738  ;;  %v5105_v39 = vld [vmem:[#allocation20 + $0x9a8] sm:$0xff]  ;;  %v13294_v4 = vcombine.low %v5092_v43, %v5096_v61  ;;  %v13313_v57 = vcombine.high %v5109_v0, %v5113_v63  ;;  %v5148_v61 = vld [vmem:[#allocation20 + $0xb00] sm:$0xff] }
 0xefa   :  { %v19260_v49 = vsel %vm1166_vm7, %v4770_v21, %v4739_v44  ;;  %8186 = vmatprep.subr.bf16.mxu0 %v13255_v59  ;;  %8391 = vmatprep.subr.bf16.mxu1 %v13257_v5  ;;  %v13303_v59 = vcombine.high %v5100_v54, %v5104_v45  ;;  %v13305_v5 = vcombine.high %v5101_v35, %v5105_v39  ;;  %v5116_v21 = vld [vmem:[#allocation20 + $0xa00] sm:$0xff]  ;;  %v5149_v30 = vld [vmem:[#allocation20 + $0xb08] sm:$0xff] }
 0xefb   :  { %v13304_v27 = vcombine.low %v5101_v35, %v5105_v39  ;;  %v5120_v44 = vld [vmem:[#allocation20 + $0xa20] sm:$0xff]  ;;  %v5157_v39 = vld [vmem:[#allocation20 + $0xb48] sm:$0xff] }
 0xefc   :  { %8178 = vmatmul.mubr.bf16.vlgmr.msra.gmra.mrb[220].mxu0 %v19263_v32  ;;  %8383 = vmatmul.mubr.bf16.vlgmr.msra.gmra.mrb[196].mxu1 %v19263_v32  ;;  %v5156_v45 = vld [vmem:[#allocation20 + $0xb40] sm:$0xff] }
 0xefd   :  { %8187 = vmatpush1.bf16.msra.mxu0 %v13254_v50  ;;  %8218 = vmatprep.mubr.bf16.mxu0 %v19260_v49  ;;  %v5117_v50 = vld [vmem:[#allocation20 + $0xa08] sm:$0xff]  ;;  %v5160_v35 = vld [vmem:[#allocation20 + $0xb60] sm:$0xff] }
 0xefe   :  { %8392 = vmatpush1.bf16.msra.mxu1 %v13256_v36  ;;  %8423 = vmatprep.mubr.bf16.mxu1 %v19260_v49  ;;  %v13310_v36 = vcombine.low %v5108_v24, %v5112_v31  ;;  %v13321_v23 = vcombine.high %v5117_v50, %v5121_v42  ;;  %v5164_v31 = vld [vmem:[#allocation20 + $0xb80] sm:$0xff] }
 0xeff   :  { %8188 = vmatprep.subr.bf16.mxu0 %v13263_v53  ;;  %8393 = vmatprep.subr.bf16.mxu1 %v13265_v29  ;;  %v13312_v53 = vcombine.low %v5109_v0, %v5113_v63  ;;  %v13319_v29 = vcombine.high %v5116_v21, %v5120_v44  ;;  %v5168_v0 = vld [vmem:[#allocation20 + $0xba0] sm:$0xff]  ;;  %v5165_v63 = vld [vmem:[#allocation20 + $0xb88] sm:$0xff] }
 0xf01   :  { %8189 = vmatpush1.bf16.msra.mxu0 %v13262_v17  ;;  %v5129_v17 = vld [vmem:[#allocation20 + $0xa68] sm:$0xff] }
 0xf02   :  { %8394 = vmatpush1.bf16.msra.mxu1 %v13264_v48  ;;  %8190 = vmatprep.subr.bf16.mxu0 %v13271_v46  ;;  %v13318_v48 = vcombine.low %v5116_v21, %v5120_v44  ;;  %v13320_v46 = vcombine.low %v5117_v50, %v5121_v42  ;;  %v13329_v11 = vcombine.high %v5125_v28, %v5129_v17  ;;  %v19269_v44 = vld [vmem:[#allocation19] ss:$0 sm:$0xff] }
 0xf03   :  { %8395 = vmatprep.subr.bf16.mxu1 %v13273_v14  ;;  %v13327_v14 = vcombine.high %v5124_v16, %v5128_v13  ;;  %v13367_v21 = vcombine.high %v5164_v31, %v5168_v0  ;;  %v4473_v50 = vadd.f32 %v19269_v44, %v19181_v47 }
 0xf05   :  { %8191 = vmatpush1.bf16.msra.mxu0 %v13270_v10  ;;  %v5137_v10 = vld [vmem:[#allocation20 + $0xaa8] sm:$0xff] }
 0xf06   :  { %8396 = vmatpush1.bf16.msra.mxu1 %v13272_v51  ;;  %8192 = vmatprep.subr.bf16.mxu0 %v13279_v22  ;;  %v13326_v51 = vcombine.low %v5124_v16, %v5128_v13  ;;  %v13328_v22 = vcombine.low %v5125_v28, %v5129_v17  ;;  %v13337_v62 = vcombine.high %v5133_v55, %v5137_v10  ;;  %v5177_v16 = vld [vmem:[#allocation20 + $0xbe8] sm:$0xff] }
 0xf07   :  { %8397 = vmatprep.subr.bf16.mxu1 %v13281_v20  ;;  %v13335_v20 = vcombine.high %v5132_v3, %v5136_v1  ;;  %v4521_v13 = vadd.f32 %v19269_v44, %v19205_v8  ;;  %v13366_v28 = vcombine.low %v5164_v31, %v5168_v0 }
 0xf09   :  { %8193 = vmatpush1.bf16.msra.mxu0 %v13278_v40  ;;  %v5145_v40 = vld [vmem:[#allocation20 + $0xae8] sm:$0xff] }
 0xf0a   :  { %8398 = vmatpush1.bf16.msra.mxu1 %v13280_v9  ;;  %8194 = vmatprep.subr.bf16.mxu0 %v13287_v34  ;;  %v13334_v9 = vcombine.low %v5132_v3, %v5136_v1  ;;  %v13336_v34 = vcombine.low %v5133_v55, %v5137_v10  ;;  %v13345_v43 = vcombine.high %v5141_v41, %v5145_v40  ;;  %v5184_v3 = vld [vmem:[#allocation20 + $0xc20] sm:$0xff]  ;;  %v5181_v55 = vld [vmem:[#allocation20 + $0xc08] sm:$0xff] }
 0xf0b   :  { %8399 = vmatprep.subr.bf16.mxu1 %v13289_v18  ;;  %v13343_v18 = vcombine.high %v5140_v15, %v5144_v58  ;;  %v5185_v10 = vld [vmem:[#allocation20 + $0xc28] sm:$0xff] }
 0xf0d   :  { %8195 = vmatpush1.bf16.msra.mxu0 %v13286_v25  ;;  %v5153_v25 = vld [vmem:[#allocation20 + $0xb28] sm:$0xff] }
 0xf0e   :  { %8400 = vmatpush1.bf16.msra.mxu1 %v13288_v33  ;;  %8196 = vmatprep.subr.bf16.mxu0 %v13295_v19  ;;  %v13342_v33 = vcombine.low %v5140_v15, %v5144_v58  ;;  %v13344_v19 = vcombine.low %v5141_v41, %v5145_v40  ;;  %v13353_v54 = vcombine.high %v5149_v30, %v5153_v25  ;;  %v5188_v41 = vld [vmem:[#allocation20 + $0xc40] sm:$0xff] }
 0xf0f   :  { %8401 = vmatprep.subr.bf16.mxu1 %v13297_v12  ;;  %v13351_v12 = vcombine.high %v5148_v61, %v5152_v2  ;;  %v13385_v15 = vcombine.high %v5181_v55, %v5185_v10  ;;  %v5192_v40 = vld [vmem:[#allocation20 + $0xc60] sm:$0xff] }
 0xf11   :  { %8197 = vmatpush1.bf16.msra.mxu0 %v13294_v4  ;;  %v5161_v4 = vld [vmem:[#allocation20 + $0xb68] sm:$0xff] }
 0xf12   :  { %8402 = vmatpush1.bf16.msra.mxu1 %v13296_v6  ;;  %8198 = vmatprep.subr.bf16.mxu0 %v13303_v59  ;;  %v13350_v6 = vcombine.low %v5148_v61, %v5152_v2  ;;  %v13352_v59 = vcombine.low %v5149_v30, %v5153_v25  ;;  %v13361_v24 = vcombine.high %v5157_v39, %v5161_v4  ;;  %v5193_v61 = vld [vmem:[#allocation20 + $0xc68] sm:$0xff] }
 0xf13   :  { %8403 = vmatprep.subr.bf16.mxu1 %v13305_v5  ;;  %v13359_v5 = vcombine.high %v5156_v45, %v5160_v35  ;;  %v13384_v25 = vcombine.low %v5181_v55, %v5185_v10  ;;  %v5228_v10 = vld [vmem:[#allocation20 + $0xd80] sm:$0xff] }
 0xf15   :  { %8199 = vmatpush1.bf16.msra.mxu0 %v13302_v7  ;;  %v5169_v7 = vld [vmem:[#allocation20 + $0xba8] sm:$0xff] }
 0xf16   :  { %8404 = vmatpush1.bf16.msra.mxu1 %v13304_v27  ;;  %8200 = vmatprep.subr.bf16.mxu0 %v13311_v52  ;;  %v13358_v27 = vcombine.low %v5156_v45, %v5160_v35  ;;  %v4724_v52 = vpop.permute.xlu1 %4723  ;;  %v13369_v42 = vcombine.high %v5165_v63, %v5169_v7  ;;  %v5200_v45 = vld [vmem:[#allocation20 + $0xca0] sm:$0xff] }
 0xf17   :  { %8405 = vmatprep.subr.bf16.mxu1 %v13313_v57  ;;  %v13360_v57 = vcombine.low %v5157_v39, %v5161_v4  ;;  %v5197_v4 = vld [vmem:[#allocation20 + $0xc88] sm:$0xff] }
 0xf19   :  { %8201 = vmatpush1.bf16.msra.mxu0 %v13310_v36  ;;  %v5172_v36 = vld [vmem:[#allocation20 + $0xbc0] sm:$0xff] }
 0xf1a   :  { %8406 = vmatpush1.bf16.msra.mxu1 %v13312_v53  ;;  %8202 = vmatprep.subr.bf16.mxu0 %v13319_v29  ;;  %v5176_v53 = vld [vmem:[#allocation20 + $0xbe0] sm:$0xff]  ;;  %v4751_v29 = vpop.permute.xlu0 %4750  ;;  %v4727_v17 = vpop.permute.xlu1 %4726 }
 0xf1b   :  { %8407 = vmatprep.subr.bf16.mxu1 %v13321_v23  ;;  %v5173_v23 = vld [vmem:[#allocation20 + $0xbc8] sm:$0xff] }
 0xf1c   :  { %v13377_v47 = vcombine.high %v5173_v23, %v5177_v16  ;;  %v13376_v8 = vcombine.low %v5173_v23, %v5177_v16  ;;  %v5217_v23 = vld [vmem:[#allocation20 + $0xd28] sm:$0xff] }
 0xf1d   :  { %8203 = vmatpush1.bf16.msra.mxu0 %v13318_v48  ;;  %v13368_v48 = vcombine.low %v5165_v63, %v5169_v7  ;;  %v5204_v63 = vld [vmem:[#allocation20 + $0xcc0] sm:$0xff] }
 0xf1e   :  { %8408 = vmatpush1.bf16.msra.mxu1 %v13320_v46  ;;  %8204 = vmatprep.subr.bf16.mxu0 %v13327_v14  ;;  %v13375_v46 = vcombine.high %v5172_v36, %v5176_v53  ;;  %v4559_v14 = vmax.f32 %v4473_v50, 0.0  ;;  %v4754_v1 = vpop.permute.xlu0 %4753  ;;  %v4730_v58 = vpop.permute.xlu1 %4729  ;;  %v5208_v7 = vld [vmem:[#allocation20 + $0xce0] sm:$0xff] }
 0xf1f   :  { %8409 = vmatprep.subr.bf16.mxu1 %v13329_v11  ;;  %v5180_v11 = vld [vmem:[#allocation20 + $0xc00] sm:$0xff]  ;;  %v13407_v50 = vcombine.high %v5204_v63, %v5208_v7  ;;  %v13406_v16 = vcombine.low %v5204_v63, %v5208_v7 }
 0xf21   :  { %8205 = vmatpush1.bf16.msra.mxu0 %v13326_v51  ;;  %v4571_v51 = vmax.f32 %v4521_v13, 0.0 }
 0xf22   :  { %8410 = vmatpush1.bf16.msra.mxu1 %v13328_v22  ;;  %8206 = vmatprep.subr.bf16.mxu0 %v13335_v20  ;;  %v13374_v22 = vcombine.low %v5172_v36, %v5176_v53  ;;  %v13383_v20 = vcombine.high %v5180_v11, %v5184_v3  ;;  %v4757_v30 = vpop.permute.xlu0 %4756  ;;  %v5212_v36 = vld [vmem:[#allocation20 + $0xd00] sm:$0xff] }
 0xf23   :  { %8411 = vmatprep.subr.bf16.mxu1 %v13337_v62  ;;  %v14062_v62 = vpack.c.bf16 %v4559_v14, %v4559_v14  ;;  %v5216_v53 = vld [vmem:[#allocation20 + $0xd20] sm:$0xff]  ;;  %v5221_v14 = vld [vmem:[#allocation20 + $0xd48] sm:$0xff] }
 0xf25   :  { %8207 = vmatpush1.bf16.msra.mxu0 %v13334_v9  ;;  %v14065_v9 = vpack.c.bf16 %v4571_v51, %v4571_v51  ;;  %v5232_v51 = vld [vmem:[#allocation20 + $0xda0] sm:$0xff] }
 0xf26   :  { %8412 = vmatpush1.bf16.msra.mxu1 %v13336_v34  ;;  %8208 = vmatprep.subr.bf16.mxu0 %v13343_v18  ;;  %v4760_v34 = vsel %vm1044_vm5, %v14062_v62, %v4724_v52  ;;  %v13382_v18 = vcombine.low %v5180_v11, %v5184_v3  ;;  %v5209_v52 = vld [vmem:[#allocation20 + $0xce8] sm:$0xff]  ;;  %v13414_v11 = vcombine.low %v5212_v36, %v5216_v53 }
 0xf27   :  { %8413 = vmatprep.subr.bf16.mxu1 %v13345_v43  ;;  %v5189_v43 = vld [vmem:[#allocation20 + $0xc48] sm:$0xff]  ;;  %v4762_v2 = vsel %vm1095_vm6, %v4760_v34, %v4727_v17 }
 0xf28   :  { %v13393_v39 = vcombine.high %v5189_v43, %v5193_v61  ;;  %v5241_v34 = vld [vmem:[#allocation20 + $0xde8] sm:$0xff] }
 0xf29   :  { %8209 = vmatpush1.bf16.msra.mxu0 %v13342_v33  ;;  %v19278_v33 = vsel %vm1166_vm7, %v4762_v2, %v4730_v58 }
 0xf2a   :  { %8414 = vmatpush1.bf16.msra.mxu1 %v13344_v19  ;;  %8210 = vmatprep.subr.bf16.mxu0 %v13351_v12  ;;  %v4784_v19 = vsel %vm1044_vm5, %v14065_v9, %v4751_v29  ;;  %v13391_v12 = vcombine.high %v5188_v41, %v5192_v40  ;;  %v5213_v29 = vld [vmem:[#allocation20 + $0xd08] sm:$0xff] }
 0xf2b   :  { %8415 = vmatprep.subr.bf16.mxu1 %v13353_v54  ;;  %v5196_v54 = vld [vmem:[#allocation20 + $0xc80] sm:$0xff]  ;;  %v4786_v35 = vsel %vm1095_vm6, %v4784_v19, %v4754_v1  ;;  %v13417_v17 = vcombine.high %v5213_v29, %v5217_v23  ;;  %v13416_v3 = vcombine.low %v5213_v29, %v5217_v23  ;;  %v5237_v9 = vld [vmem:[#allocation20 + $0xdc8] sm:$0xff] }
 0xf2c   :  { %v13399_v31 = vcombine.high %v5196_v54, %v5200_v45  ;;  %v13441_v2 = vcombine.high %v5237_v9, %v5241_v34  ;;  %v5245_v19 = vld [vmem:[#allocation20 + $0xe08] sm:$0xff]  ;;  %v5268_v29 = vld [vmem:[#allocation20 + $0xec0] sm:$0xff] }
 0xf2d   :  { %8211 = vmatpush1.bf16.msra.mxu0 %v13350_v6  ;;  %v5201_v6 = vld [vmem:[#allocation20 + $0xca8] sm:$0xff]  ;;  %v5272_v23 = vld [vmem:[#allocation20 + $0xee0] sm:$0xff] }
 0xf2e   :  { %8416 = vmatpush1.bf16.msra.mxu1 %v13352_v59  ;;  %8212 = vmatprep.subr.bf16.mxu0 %v13359_v5  ;;  %v19284_v59 = vsel %vm1166_vm7, %v4786_v35, %v4757_v30  ;;  %v13390_v5 = vcombine.low %v5188_v41, %v5192_v40  ;;  %v13401_v0 = vcombine.high %v5197_v4, %v5201_v6  ;;  %v5236_v41 = vld [vmem:[#allocation20 + $0xdc0] sm:$0xff] }
 0xf2f   :  { %8417 = vmatprep.subr.bf16.mxu1 %v13361_v24  ;;  %v13392_v24 = vcombine.low %v5189_v43, %v5193_v61  ;;  %v5240_v40 = vld [vmem:[#allocation20 + $0xde0] sm:$0xff] }
 0xf30   :  { %v13439_v61 = vcombine.high %v5236_v41, %v5240_v40  ;;  %v5244_v30 = vld [vmem:[#allocation20 + $0xe00] sm:$0xff] }
 0xf31   :  { %8213 = vmatpush1.bf16.msra.mxu0 %v13358_v27  ;;  %v5205_v27 = vld [vmem:[#allocation20 + $0xcc8] sm:$0xff] }
 0xf32   :  { %8418 = vmatpush1.bf16.msra.mxu1 %v13360_v57  ;;  %8214 = vmatprep.subr.bf16.mxu0 %v13367_v21  ;;  %v13398_v57 = vcombine.low %v5196_v54, %v5200_v45  ;;  %v13400_v21 = vcombine.low %v5197_v4, %v5201_v6  ;;  %v13408_v13 = vcombine.low %v5205_v27, %v5209_v52  ;;  %v5252_v4 = vld [vmem:[#allocation20 + $0xe40] sm:$0xff] }
 0xf33   :  { %8419 = vmatprep.subr.bf16.mxu1 %v13369_v42  ;;  %v13409_v42 = vcombine.high %v5205_v27, %v5209_v52  ;;  %v13438_v54 = vcombine.low %v5236_v41, %v5240_v40  ;;  %v13440_v45 = vcombine.low %v5237_v9, %v5241_v34  ;;  %v5256_v6 = vld [vmem:[#allocation20 + $0xe60] sm:$0xff] }
 0xf34   :  { %v13455_v63 = vcombine.high %v5252_v4, %v5256_v6  ;;  %v5260_v27 = vld [vmem:[#allocation20 + $0xe80] sm:$0xff] }
 0xf35   :  { %8215 = vmatpush1.bf16.msra.mxu0 %v13366_v28  ;;  %v13415_v28 = vcombine.high %v5212_v36, %v5216_v53  ;;  %v5264_v52 = vld [vmem:[#allocation20 + $0xea0] sm:$0xff] }
 0xf36   :  { %8420 = vmatpush1.bf16.msra.mxu1 %v13368_v48  ;;  %8216 = vmatprep.subr.bf16.mxu0 %v13375_v46  ;;  %v5220_v48 = vld [vmem:[#allocation20 + $0xd40] sm:$0xff]  ;;  %v13463_v36 = vcombine.high %v5260_v27, %v5264_v52 }
 0xf37   :  { %8421 = vmatprep.subr.bf16.mxu1 %v13377_v47  ;;  %v5224_v46 = vld [vmem:[#allocation20 + $0xd60] sm:$0xff]  ;;  %v5225_v47 = vld [vmem:[#allocation20 + $0xd68] sm:$0xff] }
 0xf38   :  { %v13423_v1 = vcombine.high %v5220_v48, %v5224_v46  ;;  %v13425_v55 = vcombine.high %v5221_v14, %v5225_v47  ;;  %v13424_v62 = vcombine.low %v5221_v14, %v5225_v47  ;;  %v5276_v14 = vld [vmem:[#allocation20 + $0xf00] sm:$0xff] }
 0xf39   :  { %8217 = vmatpush1.bf16.msra.mxu0 %v13374_v22  ;;  %v5229_v22 = vld [vmem:[#allocation20 + $0xd88] sm:$0xff]  ;;  %v5280_v47 = vld [vmem:[#allocation20 + $0xf20] sm:$0xff] }
 0xf3a   :  { %8422 = vmatpush1.bf16.msra.mxu1 %v13376_v8  ;;  %8227 = vmatprep.subr.bf16.mxu0 %v13383_v20  ;;  %v5233_v8 = vld [vmem:[#allocation20 + $0xda8] sm:$0xff]  ;;  %v13422_v20 = vcombine.low %v5220_v48, %v5224_v46  ;;  %v13471_v48 = vcombine.high %v5268_v29, %v5272_v23  ;;  %v5292_v9 = vld [vmem:[#allocation20 + $0xf80] sm:$0xff] }
 0xf3b   :  { %8432 = vmatprep.subr.bf16.mxu1 %v13385_v15  ;;  %v13431_v15 = vcombine.high %v5228_v10, %v5232_v51  ;;  %v13433_v58 = vcombine.high %v5229_v22, %v5233_v8  ;;  %v13432_v43 = vcombine.low %v5229_v22, %v5233_v8  ;;  %v5284_v22 = vld [vmem:[#allocation20 + $0xf40] sm:$0xff] }
 0xf3c   :  { %8219 = vmatmul.mubr.bf16.vlgmr.msra.gmra.mrb[220].mxu0 %v19278_v33  ;;  %v5288_v8 = vld [vmem:[#allocation20 + $0xf60] sm:$0xff] }
 0xf3d   :  { %8424 = vmatmul.mubr.bf16.vlgmr.msra.gmra.mrb[196].mxu1 %v19278_v33  ;;  %8228 = vmatpush1.bf16.msra.mxu0 %v13382_v18  ;;  %v13430_v18 = vcombine.low %v5228_v10, %v5232_v51  ;;  %v13479_v10 = vcombine.high %v5276_v14, %v5280_v47  ;;  %v13487_v41 = vcombine.high %v5284_v22, %v5288_v8  ;;  %v5296_v34 = vld [vmem:[#allocation20 + $0xfa0] sm:$0xff] }
 0xf3e   :  { %8259 = vmatprep.mubr.bf16.mxu0 %v19284_v59  ;;  %8433 = vmatpush1.bf16.msra.mxu1 %v13384_v25  ;;  %v5248_v25 = vld [vmem:[#allocation20 + $0xe20] sm:$0xff] }
 0xf3f   :  { %8464 = vmatprep.mubr.bf16.mxu1 %v19284_v59  ;;  %8229 = vmatprep.subr.bf16.mxu0 %v13391_v12  ;;  %v5249_v12 = vld [vmem:[#allocation20 + $0xe28] sm:$0xff]  ;;  %v13447_v35 = vcombine.high %v5244_v30, %v5248_v25 }
 0xf40   :  { %8434 = vmatprep.subr.bf16.mxu1 %v13393_v39  ;;  %v13449_v39 = vcombine.high %v5245_v19, %v5249_v12 }
 0xf41   :  { %8230 = vmatpush1.bf16.msra.mxu0 %v13390_v5  ;;  %v5253_v5 = vld [vmem:[#allocation20 + $0xe48] sm:$0xff] }
 0xf42   :  { %8435 = vmatpush1.bf16.msra.mxu1 %v13392_v24  ;;  %8231 = vmatprep.subr.bf16.mxu0 %v13399_v31  ;;  %v5257_v24 = vld [vmem:[#allocation20 + $0xe68] sm:$0xff]  ;;  %v13446_v31 = vcombine.low %v5244_v30, %v5248_v25  ;;  %v13495_v25 = vcombine.high %v5292_v9, %v5296_v34 }
 0xf43   :  { %8436 = vmatprep.subr.bf16.mxu1 %v13401_v0  ;;  %v13448_v0 = vcombine.low %v5245_v19, %v5249_v12  ;;  %v13457_v7 = vcombine.high %v5253_v5, %v5257_v24  ;;  %v4505_v19 = vadd.f32 %v19269_v44, %v19197_v37  ;;  %v5313_v37 = vld [vmem:[#allocation20 + $0x1028] sm:$0xff] }
 0xf45   :  { %8232 = vmatpush1.bf16.msra.mxu0 %v13398_v57  ;;  %v5261_v57 = vld [vmem:[#allocation20 + $0xe88] sm:$0xff] }
 0xf46   :  { %8437 = vmatpush1.bf16.msra.mxu1 %v13400_v21  ;;  %8233 = vmatprep.subr.bf16.mxu0 %v13407_v50  ;;  %v5265_v21 = vld [vmem:[#allocation20 + $0xea8] sm:$0xff]  ;;  %v13454_v50 = vcombine.low %v5252_v4, %v5256_v6  ;;  %v13494_v4 = vcombine.low %v5292_v9, %v5296_v34 }
 0xf47   :  { %8438 = vmatprep.subr.bf16.mxu1 %v13409_v42  ;;  %v13456_v42 = vcombine.low %v5253_v5, %v5257_v24  ;;  %v13465_v53 = vcombine.high %v5261_v57, %v5265_v21 }
 0xf49   :  { %8234 = vmatpush1.bf16.msra.mxu0 %v13406_v16  ;;  %v5269_v16 = vld [vmem:[#allocation20 + $0xec8] sm:$0xff] }
 0xf4a   :  { %8439 = vmatpush1.bf16.msra.mxu1 %v13408_v13  ;;  %8235 = vmatprep.subr.bf16.mxu0 %v13415_v28  ;;  %v5273_v13 = vld [vmem:[#allocation20 + $0xee8] sm:$0xff]  ;;  %v13462_v28 = vcombine.low %v5260_v27, %v5264_v52 }
 0xf4b   :  { %8440 = vmatprep.subr.bf16.mxu1 %v13417_v17  ;;  %v13464_v17 = vcombine.low %v5261_v57, %v5265_v21  ;;  %v13473_v46 = vcombine.high %v5269_v16, %v5273_v13  ;;  %v5309_v27 = vld [vmem:[#allocation20 + $0x1008] sm:$0xff] }
 0xf4d   :  { %8236 = vmatpush1.bf16.msra.mxu0 %v13414_v11  ;;  %v5277_v11 = vld [vmem:[#allocation20 + $0xf08] sm:$0xff] }
 0xf4e   :  { %8441 = vmatpush1.bf16.msra.mxu1 %v13416_v3  ;;  %8237 = vmatprep.subr.bf16.mxu0 %v13423_v1  ;;  %v5281_v3 = vld [vmem:[#allocation20 + $0xf28] sm:$0xff]  ;;  %v13470_v1 = vcombine.low %v5268_v29, %v5272_v23 }
 0xf4f   :  { %8442 = vmatprep.subr.bf16.mxu1 %v13425_v55  ;;  %v13472_v55 = vcombine.low %v5269_v16, %v5273_v13  ;;  %v13481_v51 = vcombine.high %v5277_v11, %v5281_v3  ;;  %v5317_v23 = vld [vmem:[#allocation20 + $0x1048] sm:$0xff] }
 0xf50   :  { %v5321_v16 = vld [vmem:[#allocation20 + $0x1068] sm:$0xff] }
 0xf51   :  { %8238 = vmatpush1.bf16.msra.mxu0 %v13422_v20  ;;  %v5285_v20 = vld [vmem:[#allocation20 + $0xf48] sm:$0xff] }
 0xf52   :  { %8443 = vmatpush1.bf16.msra.mxu1 %v13424_v62  ;;  %8239 = vmatprep.subr.bf16.mxu0 %v13431_v15  ;;  %v5289_v62 = vld [vmem:[#allocation20 + $0xf68] sm:$0xff]  ;;  %v13478_v15 = vcombine.low %v5276_v14, %v5280_v47  ;;  %v13521_v47 = vcombine.high %v5317_v23, %v5321_v16 }
 0xf53   :  { %8444 = vmatprep.subr.bf16.mxu1 %v13433_v58  ;;  %v13480_v58 = vcombine.low %v5277_v11, %v5281_v3  ;;  %v13489_v40 = vcombine.high %v5285_v20, %v5289_v62  ;;  %v13488_v30 = vcombine.low %v5285_v20, %v5289_v62  ;;  %v5324_v11 = vld [vmem:[#allocation20 + $0x1080] sm:$0xff] }
 0xf54   :  { %v5328_v3 = vld [vmem:[#allocation20 + $0x10a0] sm:$0xff] }
 0xf55   :  { %8240 = vmatpush1.bf16.msra.mxu0 %v13430_v18  ;;  %v5293_v18 = vld [vmem:[#allocation20 + $0xf88] sm:$0xff]  ;;  %v5332_v20 = vld [vmem:[#allocation20 + $0x10c0] sm:$0xff]  ;;  %v13526_v9 = vcombine.low %v5324_v11, %v5328_v3 }
 0xf56   :  { %8445 = vmatpush1.bf16.msra.mxu1 %v13432_v43  ;;  %8241 = vmatprep.subr.bf16.mxu0 %v13439_v61  ;;  %v5297_v43 = vld [vmem:[#allocation20 + $0xfa8] sm:$0xff]  ;;  %v13486_v61 = vcombine.low %v5284_v22, %v5288_v8  ;;  %v13527_v22 = vcombine.high %v5324_v11, %v5328_v3  ;;  %v5336_v62 = vld [vmem:[#allocation20 + $0x10e0] sm:$0xff]  ;;  %v4831_v11 = vld [vmem:[#allocation20 + $0x118] sm:$0xff] }
 0xf57   :  { %8446 = vmatprep.subr.bf16.mxu1 %v13441_v2  ;;  %v4742_v2 = vpop.permute.xlu1 %4741  ;;  %v13497_v12 = vcombine.high %v5293_v18, %v5297_v43  ;;  %v13496_v5 = vcombine.low %v5293_v18, %v5297_v43  ;;  %v13535_v18 = vcombine.high %v5332_v20, %v5336_v62  ;;  %v4835_v3 = vld [vmem:[#allocation20 + $0x138] sm:$0xff] }
 0xf59   :  { %8242 = vmatpush1.bf16.msra.mxu0 %v13438_v54  ;;  %v5300_v54 = vld [vmem:[#allocation20 + $0xfc0] sm:$0xff] }
 0xf5a   :  { %8447 = vmatpush1.bf16.msra.mxu1 %v13440_v45  ;;  %8243 = vmatprep.subr.bf16.mxu0 %v13447_v35  ;;  %v5304_v45 = vld [vmem:[#allocation20 + $0xfe0] sm:$0xff]  ;;  %v5301_v35 = vld [vmem:[#allocation20 + $0xfc8] sm:$0xff] }
 0xf5b   :  { %8448 = vmatprep.subr.bf16.mxu1 %v13449_v39  ;;  %v5305_v39 = vld [vmem:[#allocation20 + $0xfe8] sm:$0xff]  ;;  %v4745_v6 = vpop.permute.xlu1 %4744  ;;  %v13503_v24 = vcombine.high %v5300_v54, %v5304_v45  ;;  %v13502_v52 = vcombine.low %v5300_v54, %v5304_v45 }
 0xf5c   :  { %v13504_v57 = vcombine.low %v5301_v35, %v5305_v39 }
 0xf5d   :  { %8244 = vmatpush1.bf16.msra.mxu0 %v13446_v31  ;;  %v4567_v31 = vmax.f32 %v4505_v19, 0.0 }
 0xf5e   :  { %8449 = vmatpush1.bf16.msra.mxu1 %v13448_v0  ;;  %8245 = vmatprep.subr.bf16.mxu0 %v13455_v63  ;;  %v13505_v0 = vcombine.high %v5301_v35, %v5305_v39  ;;  %v5308_v63 = vld [vmem:[#allocation20 + $0x1000] sm:$0xff]  ;;  %v4806_v35 = vld [vmem:[#allocation20 + $0x50] sm:$0xff] }
 0xf5f   :  { %8450 = vmatprep.subr.bf16.mxu1 %v13457_v7  ;;  %v5312_v7 = vld [vmem:[#allocation20 + $0x1020] sm:$0xff]  ;;  %v4748_v29 = vpop.permute.xlu1 %4747  ;;  %v4810_v39 = vld [vmem:[#allocation20 + $0x70] sm:$0xff] }
 0xf60   :  { %v13511_v21 = vcombine.high %v5308_v63, %v5312_v7 }
 0xf61   :  { %8246 = vmatpush1.bf16.msra.mxu0 %v13454_v50  ;;  %v14064_v50 = vpack.c.bf16 %v4567_v31, %v4567_v31 }
 0xf62   :  { %8451 = vmatpush1.bf16.msra.mxu1 %v13456_v42  ;;  %8247 = vmatprep.subr.bf16.mxu0 %v13463_v36  ;;  %v13513_v42 = vcombine.high %v5309_v27, %v5313_v37  ;;  %v5316_v36 = vld [vmem:[#allocation20 + $0x1040] sm:$0xff] }
 0xf63   :  { %8452 = vmatprep.subr.bf16.mxu1 %v13465_v53  ;;  %v5320_v53 = vld [vmem:[#allocation20 + $0x1060] sm:$0xff]  ;;  %v4776_v13 = vsel %vm1044_vm5, %v14064_v50, %v4742_v2  ;;  %v4802_v2 = vld [vmem:[#allocation20 + $0x30] sm:$0xff] }
 0xf65   :  { %8248 = vmatpush1.bf16.msra.mxu0 %v13462_v28  ;;  %v13510_v28 = vcombine.low %v5308_v63, %v5312_v7  ;;  %v13011_v63 = vcombine.high %v4806_v35, %v4810_v39  ;;  %v4814_v7 = vld [vmem:[#allocation20 + $0x90] sm:$0xff] }
 0xf66   :  { %8453 = vmatpush1.bf16.msra.mxu1 %v13464_v17  ;;  %8249 = vmatprep.subr.bf16.mxu0 %v13471_v48  ;;  %v4778_v17 = vsel %vm1095_vm6, %v4776_v13, %v4745_v6  ;;  %v13512_v48 = vcombine.low %v5309_v27, %v5313_v37  ;;  %v4818_v27 = vld [vmem:[#allocation20 + $0xb0] sm:$0xff] }
 0xf67   :  { %8454 = vmatprep.subr.bf16.mxu1 %v13473_v46  ;;  %v13519_v46 = vcombine.high %v5316_v36, %v5320_v53  ;;  %v19294_v14 = vsel %vm1166_vm7, %v4778_v17, %v4748_v29  ;;  %v4826_v29 = vld [vmem:[#allocation20 + $0xf0] sm:$0xff]  ;;  %v13018_v13 = vcombine.low %v4814_v7, %v4818_v27 }
 0xf69   :  { %8250 = vmatpush1.bf16.msra.mxu0 %v13470_v1  ;;  %v5325_v1 = vld [vmem:[#allocation20 + $0x1088] sm:$0xff] }
 0xf6a   :  { %8455 = vmatpush1.bf16.msra.mxu1 %v13472_v55  ;;  %8251 = vmatprep.subr.bf16.mxu0 %v13479_v10  ;;  %v5329_v55 = vld [vmem:[#allocation20 + $0x10a8] sm:$0xff]  ;;  %v13518_v10 = vcombine.low %v5316_v36, %v5320_v53  ;;  %v4822_v53 = vld [vmem:[#allocation20 + $0xd0] sm:$0xff] }
 0xf6b   :  { %8456 = vmatprep.subr.bf16.mxu1 %v13481_v51  ;;  %v13520_v51 = vcombine.low %v5317_v23, %v5321_v16  ;;  %v13529_v8 = vcombine.high %v5325_v1, %v5329_v55  ;;  %v13528_v34 = vcombine.low %v5325_v1, %v5329_v55  ;;  %v4823_v23 = vld [vmem:[#allocation20 + $0xd8] sm:$0xff]  ;;  %v13027_v17 = vcombine.high %v4822_v53, %v4826_v29 }
 0xf6c   :  { %v4827_v16 = vld [vmem:[#allocation20 + $0xf8] sm:$0xff] }
 0xf6d   :  { %8252 = vmatpush1.bf16.msra.mxu0 %v13478_v15  ;;  %v15827_v15 = vmov 0   ;;  %v13028_v1 = vcombine.low %v4823_v23, %v4827_v16 }
 0xf6e   :  { %8457 = vmatpush1.bf16.msra.mxu1 %v13480_v58  ;;  %8253 = vmatprep.subr.bf16.mxu0 %v13487_v41  ;;  %v5333_v58 = vld [vmem:[#allocation20 + $0x10c8] sm:$0xff] }
 0xf6f   :  { %8458 = vmatprep.subr.bf16.mxu1 %v13489_v40  ;;  %v5337_v41 = vld [vmem:[#allocation20 + $0x10e8] sm:$0xff]  ;;  %v4537_v40 = vadd.f32 %v19269_v44, %v19213_v56  ;;  %v4792_v44 = vpop.permute.xlu0 %4791 }
 0xf70   :  { %v13537_v43 = vcombine.high %v5333_v58, %v5337_v41  ;;  %v13536_v54 = vcombine.low %v5333_v58, %v5337_v41  ;;  %v13036_v58 = vcombine.low %v4831_v11, %v4835_v3 }
 0xf71   :  { %8254 = vmatpush1.bf16.msra.mxu0 %v13486_v61  ;;  %v4798_v61 = vld [vmem:[#allocation20 + $0x10] sm:$0xff]  ;;  %v4575_v19 = vmax.f32 %v4537_v40, 0.0 }
 0xf72   :  { %8459 = vmatpush1.bf16.msra.mxu1 %v13488_v30  ;;  %8255 = vmatprep.subr.bf16.mxu0 %v13495_v25  ;;  %v4799_v30 = vld [vmem:[#allocation20 + $0x18] sm:$0xff]  ;;  %v13003_v45 = vcombine.high %v4798_v61, %v4802_v2  ;;  %v13002_v6 = vcombine.low %v4798_v61, %v4802_v2 }
 0xf73   :  { %8460 = vmatprep.subr.bf16.mxu1 %v13497_v12  ;;  %v4803_v25 = vld [vmem:[#allocation20 + $0x38] sm:$0xff]  ;;  %v13534_v12 = vcombine.low %v5332_v20, %v5336_v62 }
 0xf74   :  { %v13005_v56 = vcombine.high %v4799_v30, %v4803_v25  ;;  %v13004_v31 = vcombine.low %v4799_v30, %v4803_v25  ;;  %v4843_v20 = vld [vmem:[#allocation20 + $0x178] sm:$0xff] }
 0xf75   :  { %8256 = vmatpush1.bf16.msra.mxu0 %v13494_v4  ;;  %v14066_v4 = vpack.c.bf16 %v4575_v19, %v4575_v19  ;;  %v4854_v19 = vld [vmem:[#allocation20 + $0x1d0] sm:$0xff] }
 0xf76   :  { %8461 = vmatpush1.bf16.msra.mxu1 %v13496_v5  ;;  %8257 = vmatprep.subr.bf16.mxu0 %v13503_v24  ;;  %v4807_v5 = vld [vmem:[#allocation20 + $0x58] sm:$0xff] }
 0xf77   :  { %8462 = vmatprep.subr.bf16.mxu1 %v13505_v0  ;;  %v4811_v24 = vld [vmem:[#allocation20 + $0x78] sm:$0xff]  ;;  %v19303_v0 = vsel %vm1044_vm5, %v14066_v4, %v4792_v44  ;;  %v4862_v4 = vld [vmem:[#allocation20 + $0x210] sm:$0xff] }
 0xf78   :  { %v13013_v37 = vcombine.high %v4807_v5, %v4811_v24  ;;  %v13012_v50 = vcombine.low %v4807_v5, %v4811_v24  ;;  %v4863_v5 = vld [vmem:[#allocation20 + $0x218] sm:$0xff] }
 0xf79   :  { %8258 = vmatpush1.bf16.msra.mxu0 %v13502_v52  ;;  %v4815_v52 = vld [vmem:[#allocation20 + $0x98] sm:$0xff] }
 0xf7a   :  { %8463 = vmatpush1.bf16.msra.mxu1 %v13504_v57  ;;  %8268 = vmatprep.subr.bf16.mxu0 %v13511_v21  ;;  %v4819_v57 = vld [vmem:[#allocation20 + $0xb8] sm:$0xff]  ;;  %v13010_v21 = vcombine.low %v4806_v35, %v4810_v39 }
 0xf7b   :  { %8473 = vmatprep.subr.bf16.mxu1 %v13513_v42  ;;  %v13019_v42 = vcombine.high %v4814_v7, %v4818_v27  ;;  %v13021_v36 = vcombine.high %v4815_v52, %v4819_v57  ;;  %v4867_v24 = vld [vmem:[#allocation20 + $0x238] sm:$0xff] }
 0xf7c   :  { %8260 = vmatmul.mubr.bf16.vlgmr.msra.gmra.mrb[220].mxu0 %v19294_v14  ;;  %v13069_v27 = vcombine.high %v4863_v5, %v4867_v24 }
 0xf7d   :  { %8465 = vmatmul.mubr.bf16.vlgmr.msra.gmra.mrb[196].mxu1 %v19294_v14  ;;  %8269 = vmatpush1.bf16.msra.mxu0 %v13510_v28  ;;  %v13020_v28 = vcombine.low %v4815_v52, %v4819_v57  ;;  %v4874_v52 = vld [vmem:[#allocation20 + $0x270] sm:$0xff]  ;;  %v4871_v57 = vld [vmem:[#allocation20 + $0x258] sm:$0xff] }
 0xf7e   :  { %8474 = vmatpush1.bf16.msra.mxu1 %v13512_v48  ;;  %8270 = vmatprep.subr.bf16.mxu0 %v13519_v46  ;;  %v13029_v48 = vcombine.high %v4823_v23, %v4827_v16  ;;  %v4830_v46 = vld [vmem:[#allocation20 + $0x110] sm:$0xff]  ;;  %v4879_v16 = vld [vmem:[#allocation20 + $0x298] sm:$0xff] }
 0xf7f   :  { %8475 = vmatprep.subr.bf16.mxu1 %v13521_v47  ;;  %8300 = vmatprep.mubr.bf16.mxu0 %v15827_v15  ;;  %v4834_v47 = vld [vmem:[#allocation20 + $0x130] sm:$0xff] }
 0xf80   :  { %8505 = vmatprep.mubr.bf16.mxu1 %v15827_v15  ;;  %v13035_v55 = vcombine.high %v4830_v46, %v4834_v47  ;;  %v13034_v62 = vcombine.low %v4830_v46, %v4834_v47  ;;  %v4882_v23 = vld [vmem:[#allocation20 + $0x2b0] sm:$0xff] }
 0xf81   :  { %8271 = vmatpush1.bf16.msra.mxu0 %v13518_v10  ;;  %v13037_v10 = vcombine.high %v4831_v11, %v4835_v3  ;;  %v4886_v47 = vld [vmem:[#allocation20 + $0x2d0] sm:$0xff]  ;;  %v4887_v3 = vld [vmem:[#allocation20 + $0x2d8] sm:$0xff] }
 0xf82   :  { %8476 = vmatpush1.bf16.msra.mxu1 %v13520_v51  ;;  %8272 = vmatprep.subr.bf16.mxu0 %v13527_v22  ;;  %v4838_v51 = vld [vmem:[#allocation20 + $0x150] sm:$0xff] }
 0xf83   :  { %8477 = vmatprep.subr.bf16.mxu1 %v13529_v8  ;;  %v4842_v22 = vld [vmem:[#allocation20 + $0x170] sm:$0xff]  ;;  %v4839_v8 = vld [vmem:[#allocation20 + $0x158] sm:$0xff] }
 0xf84   :  { %v13043_v41 = vcombine.high %v4838_v51, %v4842_v22  ;;  %v13045_v40 = vcombine.high %v4839_v8, %v4843_v20  ;;  %v13042_v61 = vcombine.low %v4838_v51, %v4842_v22  ;;  %v13044_v2 = vcombine.low %v4839_v8, %v4843_v20  ;;  %v4890_v11 = vld [vmem:[#allocation20 + $0x2f0] sm:$0xff]  ;;  %v4895_v20 = vld [vmem:[#allocation20 + $0x318] sm:$0xff] }
 0xf85   :  { %8273 = vmatpush1.bf16.msra.mxu0 %v13526_v9  ;;  %v4846_v9 = vld [vmem:[#allocation20 + $0x190] sm:$0xff] }
 0xf86   :  { %8478 = vmatpush1.bf16.msra.mxu1 %v13528_v34  ;;  %8274 = vmatprep.subr.bf16.mxu0 %v13535_v18  ;;  %v4850_v34 = vld [vmem:[#allocation20 + $0x1b0] sm:$0xff]  ;;  %v4847_v18 = vld [vmem:[#allocation20 + $0x198] sm:$0xff] }
 0xf87   :  { %8479 = vmatprep.subr.bf16.mxu1 %v13537_v43  ;;  %v4851_v43 = vld [vmem:[#allocation20 + $0x1b8] sm:$0xff]  ;;  %v13051_v30 = vcombine.high %v4846_v9, %v4850_v34  ;;  %v4894_v22 = vld [vmem:[#allocation20 + $0x310] sm:$0xff] }
 0xf88   :  { %v13053_v25 = vcombine.high %v4847_v18, %v4851_v43  ;;  %v13052_v44 = vcombine.low %v4847_v18, %v4851_v43  ;;  %v4898_v8 = vld [vmem:[#allocation20 + $0x330] sm:$0xff]  ;;  %v4903_v43 = vld [vmem:[#allocation20 + $0x358] sm:$0xff] }
 0xf89   :  { %8275 = vmatpush1.bf16.msra.mxu0 %v13534_v12  ;;  %v4858_v12 = vld [vmem:[#allocation20 + $0x1f0] sm:$0xff] }
 0xf8a   :  { %8480 = vmatpush1.bf16.msra.mxu1 %v13536_v54  ;;  %8514 = vmatprep.subr.bf16.mxu0 %v13003_v45  ;;  %v4855_v54 = vld [vmem:[#allocation20 + $0x1d8] sm:$0xff]  ;;  %v13059_v35 = vcombine.high %v4854_v19, %v4858_v12  ;;  %v4906_v18 = vld [vmem:[#allocation20 + $0x370] sm:$0xff] }
 0xf8b   :  { %8719 = vmatprep.subr.bf16.mxu1 %v13005_v56  ;;  %v4859_v45 = vld [vmem:[#allocation20 + $0x1f8] sm:$0xff]  ;;  %v13050_v56 = vcombine.low %v4846_v9, %v4850_v34  ;;  %v4902_v34 = vld [vmem:[#allocation20 + $0x350] sm:$0xff] }
 0xf8c   :  { %13542 = vmatmul.mubr.msk.bf16.vlgmr.msra.gmra.mrb[220].mxu0 %vm1095_vm6, %v19303_v0  ;;  %v13061_v39 = vcombine.high %v4855_v54, %v4859_v45 }
 0xf8d   :  { %13543 = vmatmul.mubr.msk.bf16.vlgmr.msra.gmra.mrb[196].mxu1 %vm1095_vm6, %v19303_v0  ;;  %8515 = vmatpush1.bf16.msra.mxu0 %v13002_v6  ;;  %v4866_v6 = vld [vmem:[#allocation20 + $0x230] sm:$0xff] }
 0xf8e   :  { %8546 = vmatprep.mubr.bf16.mxu0 %v19227_v38  ;;  %8720 = vmatpush1.bf16.msra.mxu1 %v13004_v31  ;;  %v13058_v31 = vcombine.low %v4854_v19, %v4858_v12  ;;  %v13067_v7 = vcombine.high %v4862_v4, %v4866_v6  ;;  %v4910_v12 = vld [vmem:[#allocation20 + $0x390] sm:$0xff] }
 0xf8f   :  { %8751 = vmatprep.mubr.bf16.mxu1 %v19227_v38  ;;  %8516 = vmatprep.subr.bf16.mxu0 %v13011_v63  ;;  %v13026_v38 = vcombine.low %v4822_v53, %v4826_v29  ;;  %v13060_v63 = vcombine.low %v4855_v54, %v4859_v45  ;;  %v4878_v29 = vld [vmem:[#allocation20 + $0x290] sm:$0xff]  ;;  %v4911_v45 = vld [vmem:[#allocation20 + $0x398] sm:$0xff] }
 0xf90   :  { %8721 = vmatprep.subr.bf16.mxu1 %v13013_v37  ;;  %v4870_v37 = vld [vmem:[#allocation20 + $0x250] sm:$0xff] }
 0xf91   :  { %8517 = vmatpush1.bf16.msra.mxu0 %v13010_v21  ;;  %v4875_v21 = vld [vmem:[#allocation20 + $0x278] sm:$0xff]  ;;  %v4914_v54 = vld [vmem:[#allocation20 + $0x3b0] sm:$0xff] }
 0xf92   :  { %8722 = vmatpush1.bf16.msra.mxu1 %v13012_v50  ;;  %8518 = vmatprep.subr.bf16.mxu0 %v13019_v42  ;;  %v13066_v50 = vcombine.low %v4862_v4, %v4866_v6  ;;  %v13068_v42 = vcombine.low %v4863_v5, %v4867_v24  ;;  %v13077_v53 = vcombine.high %v4871_v57, %v4875_v21  ;;  %v4918_v6 = vld [vmem:[#allocation20 + $0x3d0] sm:$0xff]  ;;  %v4919_v24 = vld [vmem:[#allocation20 + $0x3d8] sm:$0xff] }
 0xf93   :  { %8723 = vmatprep.subr.bf16.mxu1 %v13021_v36  ;;  %v13075_v36 = vcombine.high %v4870_v37, %v4874_v52  ;;  %v4922_v5 = vld [vmem:[#allocation20 + $0x3f0] sm:$0xff] }
 0xf95   :  { %8519 = vmatpush1.bf16.msra.mxu0 %v13018_v13  ;;  %v4883_v13 = vld [vmem:[#allocation20 + $0x2b8] sm:$0xff] }
 0xf96   :  { %8724 = vmatpush1.bf16.msra.mxu1 %v13020_v28  ;;  %8520 = vmatprep.subr.bf16.mxu0 %v13027_v17  ;;  %v13074_v28 = vcombine.low %v4870_v37, %v4874_v52  ;;  %v13076_v17 = vcombine.low %v4871_v57, %v4875_v21  ;;  %v13085_v46 = vcombine.high %v4879_v16, %v4883_v13  ;;  %v4926_v52 = vld [vmem:[#allocation20 + $0x410] sm:$0xff]  ;;  %v4927_v21 = vld [vmem:[#allocation20 + $0x418] sm:$0xff] }
 0xf97   :  { %8725 = vmatprep.subr.bf16.mxu1 %v13029_v48  ;;  %v13083_v48 = vcombine.high %v4878_v29, %v4882_v23  ;;  %v4930_v57 = vld [vmem:[#allocation20 + $0x430] sm:$0xff] }
 0xf99   :  { %8521 = vmatpush1.bf16.msra.mxu0 %v13026_v38  ;;  %v4891_v38 = vld [vmem:[#allocation20 + $0x2f8] sm:$0xff] }
 0xf9a   :  { %8726 = vmatpush1.bf16.msra.mxu1 %v13028_v1  ;;  %8522 = vmatprep.subr.bf16.mxu0 %v13035_v55  ;;  %v13082_v1 = vcombine.low %v4878_v29, %v4882_v23  ;;  %v13084_v55 = vcombine.low %v4879_v16, %v4883_v13  ;;  %v13093_v51 = vcombine.high %v4887_v3, %v4891_v38  ;;  %v4934_v23 = vld [vmem:[#allocation20 + $0x450] sm:$0xff] }
 0xf9b   :  { %8727 = vmatprep.subr.bf16.mxu1 %v13037_v10  ;;  %v13091_v10 = vcombine.high %v4886_v47, %v4890_v11  ;;  %v4938_v16 = vld [vmem:[#allocation20 + $0x470] sm:$0xff]  ;;  %v13130_v13 = vcombine.low %v4926_v52, %v4930_v57 }
 0xf9d   :  { %8523 = vmatpush1.bf16.msra.mxu0 %v13034_v62  ;;  %v4899_v62 = vld [vmem:[#allocation20 + $0x338] sm:$0xff] }
 0xf9e   :  { %8728 = vmatpush1.bf16.msra.mxu1 %v13036_v58  ;;  %8524 = vmatprep.subr.bf16.mxu0 %v13043_v41  ;;  %v13090_v58 = vcombine.low %v4886_v47, %v4890_v11  ;;  %v13092_v41 = vcombine.low %v4887_v3, %v4891_v38  ;;  %v13101_v9 = vcombine.high %v4895_v20, %v4899_v62  ;;  %v4942_v47 = vld [vmem:[#allocation20 + $0x490] sm:$0xff]  ;;  %v4943_v38 = vld [vmem:[#allocation20 + $0x498] sm:$0xff] }
 0xf9f   :  { %8729 = vmatprep.subr.bf16.mxu1 %v13045_v40  ;;  %v13099_v40 = vcombine.high %v4894_v22, %v4898_v8  ;;  %v4946_v11 = vld [vmem:[#allocation20 + $0x4b0] sm:$0xff] }
 0xfa1   :  { %8525 = vmatpush1.bf16.msra.mxu0 %v13042_v61  ;;  %v4907_v61 = vld [vmem:[#allocation20 + $0x378] sm:$0xff] }
 0xfa2   :  { %8730 = vmatpush1.bf16.msra.mxu1 %v13044_v2  ;;  %8526 = vmatprep.subr.bf16.mxu0 %v13051_v30  ;;  %v13098_v2 = vcombine.low %v4894_v22, %v4898_v8  ;;  %v13100_v30 = vcombine.low %v4895_v20, %v4899_v62  ;;  %v13109_v19 = vcombine.high %v4903_v43, %v4907_v61  ;;  %v4950_v8 = vld [vmem:[#allocation20 + $0x4d0] sm:$0xff]  ;;  %v4951_v62 = vld [vmem:[#allocation20 + $0x4d8] sm:$0xff] }
 0xfa3   :  { %8731 = vmatprep.subr.bf16.mxu1 %v13053_v25  ;;  %v13107_v25 = vcombine.high %v4902_v34, %v4906_v18  ;;  %v4954_v20 = vld [vmem:[#allocation20 + $0x4f0] sm:$0xff] }
 0xfa5   :  { %8527 = vmatpush1.bf16.msra.mxu0 %v13050_v56  ;;  %v4915_v56 = vld [vmem:[#allocation20 + $0x3b8] sm:$0xff] }
 0xfa6   :  { %8732 = vmatpush1.bf16.msra.mxu1 %v13052_v44  ;;  %8528 = vmatprep.subr.bf16.mxu0 %v13059_v35  ;;  %v13106_v44 = vcombine.low %v4902_v34, %v4906_v18  ;;  %v13108_v35 = vcombine.low %v4903_v43, %v4907_v61  ;;  %v13117_v4 = vcombine.high %v4911_v45, %v4915_v56  ;;  %v4958_v34 = vld [vmem:[#allocation20 + $0x510] sm:$0xff]  ;;  %v4959_v43 = vld [vmem:[#allocation20 + $0x518] sm:$0xff] }
 0xfa7   :  { %8733 = vmatprep.subr.bf16.mxu1 %v13061_v39  ;;  %v13115_v39 = vcombine.high %v4910_v12, %v4914_v54  ;;  %v4962_v18 = vld [vmem:[#allocation20 + $0x530] sm:$0xff]  ;;  %v4963_v61 = vld [vmem:[#allocation20 + $0x538] sm:$0xff] }
 0xfa9   :  { %8529 = vmatpush1.bf16.msra.mxu0 %v13058_v31  ;;  %v4923_v31 = vld [vmem:[#allocation20 + $0x3f8] sm:$0xff] }
 0xfaa   :  { %8734 = vmatpush1.bf16.msra.mxu1 %v13060_v63  ;;  %8530 = vmatprep.subr.bf16.mxu0 %v13067_v7  ;;  %v13114_v63 = vcombine.low %v4910_v12, %v4914_v54  ;;  %v13116_v7 = vcombine.low %v4911_v45, %v4915_v56  ;;  %v13125_v37 = vcombine.high %v4919_v24, %v4923_v31  ;;  %v4970_v12 = vld [vmem:[#allocation20 + $0x570] sm:$0xff]  ;;  %v4967_v54 = vld [vmem:[#allocation20 + $0x558] sm:$0xff] }
 0xfab   :  { %8735 = vmatprep.subr.bf16.mxu1 %v13069_v27  ;;  %v13123_v27 = vcombine.high %v4918_v6, %v4922_v5  ;;  %v4971_v45 = vld [vmem:[#allocation20 + $0x578] sm:$0xff]  ;;  %v13162_v56 = vcombine.low %v4958_v34, %v4962_v18 }
 0xfad   :  { %8531 = vmatpush1.bf16.msra.mxu0 %v13066_v50  ;;  %v4931_v50 = vld [vmem:[#allocation20 + $0x438] sm:$0xff] }
 0xfae   :  { %8736 = vmatpush1.bf16.msra.mxu1 %v13068_v42  ;;  %8532 = vmatprep.subr.bf16.mxu0 %v13075_v36  ;;  %v13122_v42 = vcombine.low %v4918_v6, %v4922_v5  ;;  %v13124_v36 = vcombine.low %v4919_v24, %v4923_v31  ;;  %v13133_v29 = vcombine.high %v4927_v21, %v4931_v50  ;;  %v4978_v6 = vld [vmem:[#allocation20 + $0x5b0] sm:$0xff]  ;;  %v4975_v5 = vld [vmem:[#allocation20 + $0x598] sm:$0xff] }
 0xfaf   :  { %8737 = vmatprep.subr.bf16.mxu1 %v13077_v53  ;;  %v13131_v53 = vcombine.high %v4926_v52, %v4930_v57  ;;  %v4979_v24 = vld [vmem:[#allocation20 + $0x5b8] sm:$0xff]  ;;  %v4986_v52 = vld [vmem:[#allocation20 + $0x5f0] sm:$0xff] }
 0xfb0   :  { %v4983_v57 = vld [vmem:[#allocation20 + $0x5d8] sm:$0xff] }
 0xfb1   :  { %8533 = vmatpush1.bf16.msra.mxu0 %v13074_v28  ;;  %v4935_v28 = vld [vmem:[#allocation20 + $0x458] sm:$0xff] }
 0xfb2   :  { %8738 = vmatpush1.bf16.msra.mxu1 %v13076_v17  ;;  %8534 = vmatprep.subr.bf16.mxu0 %v13083_v48  ;;  %v4939_v17 = vld [vmem:[#allocation20 + $0x478] sm:$0xff]  ;;  %v13132_v48 = vcombine.low %v4927_v21, %v4931_v50 }
 0xfb3   :  { %8739 = vmatprep.subr.bf16.mxu1 %v13085_v46  ;;  %v13139_v46 = vcombine.high %v4934_v23, %v4938_v16  ;;  %v13141_v3 = vcombine.high %v4935_v28, %v4939_v17  ;;  %v4987_v21 = vld [vmem:[#allocation20 + $0x5f8] sm:$0xff] }
 0xfb5   :  { %8535 = vmatpush1.bf16.msra.mxu0 %v13082_v1  ;;  %v4947_v1 = vld [vmem:[#allocation20 + $0x4b8] sm:$0xff] }
 0xfb6   :  { %8740 = vmatpush1.bf16.msra.mxu1 %v13084_v55  ;;  %8536 = vmatprep.subr.bf16.mxu0 %v13091_v10  ;;  %v13138_v55 = vcombine.low %v4934_v23, %v4938_v16  ;;  %v13140_v10 = vcombine.low %v4935_v28, %v4939_v17  ;;  %v13149_v22 = vcombine.high %v4943_v38, %v4947_v1  ;;  %v4994_v23 = vld [vmem:[#allocation20 + $0x630] sm:$0xff]  ;;  %v4991_v16 = vld [vmem:[#allocation20 + $0x618] sm:$0xff] }
 0xfb7   :  { %8741 = vmatprep.subr.bf16.mxu1 %v13093_v51  ;;  %v13147_v51 = vcombine.high %v4942_v47, %v4946_v11  ;;  %v13188_v17 = vcombine.low %v4983_v57, %v4987_v21 }
 0xfb9   :  { %8537 = vmatpush1.bf16.msra.mxu0 %v13090_v58  ;;  %v4955_v58 = vld [vmem:[#allocation20 + $0x4f8] sm:$0xff] }
 0xfba   :  { %8742 = vmatpush1.bf16.msra.mxu1 %v13092_v41  ;;  %8538 = vmatprep.subr.bf16.mxu0 %v13099_v40  ;;  %v13146_v41 = vcombine.low %v4942_v47, %v4946_v11  ;;  %v13155_v40 = vcombine.high %v4950_v8, %v4954_v20  ;;  %v4998_v47 = vld [vmem:[#allocation20 + $0x650] sm:$0xff] }
 0xfbb   :  { %8743 = vmatprep.subr.bf16.mxu1 %v13101_v9  ;;  %v13157_v9 = vcombine.high %v4951_v62, %v4955_v58  ;;  %v5002_v11 = vld [vmem:[#allocation20 + $0x670] sm:$0xff] }
 0xfbd   :  { %8539 = vmatpush1.bf16.msra.mxu0 %v13098_v2  ;;  %v13156_v2 = vcombine.low %v4951_v62, %v4955_v58  ;;  %v5011_v62 = vld [vmem:[#allocation20 + $0x6b8] sm:$0xff]  ;;  %v13202_v58 = vcombine.low %v4998_v47, %v5002_v11 }
 0xfbe   :  { %8744 = vmatpush1.bf16.msra.mxu1 %v13100_v30  ;;  %8540 = vmatprep.subr.bf16.mxu0 %v13107_v25  ;;  %v13163_v30 = vcombine.high %v4958_v34, %v4962_v18  ;;  %v13165_v25 = vcombine.high %v4959_v43, %v4963_v61  ;;  %v5018_v34 = vld [vmem:[#allocation20 + $0x6f0] sm:$0xff]  ;;  %v5015_v18 = vld [vmem:[#allocation20 + $0x6d8] sm:$0xff] }
 0xfbf   :  { %8745 = vmatprep.subr.bf16.mxu1 %v13109_v19  ;;  %v4966_v19 = vld [vmem:[#allocation20 + $0x550] sm:$0xff] }
 0xfc0   :  { %v13170_v31 = vcombine.low %v4966_v19, %v4970_v12 }
 0xfc1   :  { %8541 = vmatpush1.bf16.msra.mxu0 %v13106_v44  ;;  %v13164_v44 = vcombine.low %v4959_v43, %v4963_v61  ;;  %v5019_v43 = vld [vmem:[#allocation20 + $0x6f8] sm:$0xff] }
 0xfc2   :  { %8746 = vmatpush1.bf16.msra.mxu1 %v13108_v35  ;;  %8542 = vmatprep.subr.bf16.mxu0 %v13115_v39  ;;  %v13171_v35 = vcombine.high %v4966_v19, %v4970_v12  ;;  %v13173_v39 = vcombine.high %v4967_v54, %v4971_v45  ;;  %v5026_v19 = vld [vmem:[#allocation20 + $0x730] sm:$0xff]  ;;  %v5023_v12 = vld [vmem:[#allocation20 + $0x718] sm:$0xff] }
 0xfc3   :  { %8747 = vmatprep.subr.bf16.mxu1 %v13117_v4  ;;  %v4974_v4 = vld [vmem:[#allocation20 + $0x590] sm:$0xff] }
 0xfc4   :  { %v13178_v50 = vcombine.low %v4974_v4, %v4978_v6 }
 0xfc5   :  { %8543 = vmatpush1.bf16.msra.mxu0 %v13114_v63  ;;  %v13172_v63 = vcombine.low %v4967_v54, %v4971_v45  ;;  %v5027_v54 = vld [vmem:[#allocation20 + $0x738] sm:$0xff] }
 0xfc6   :  { %8748 = vmatpush1.bf16.msra.mxu1 %v13116_v7  ;;  %8544 = vmatprep.subr.bf16.mxu0 %v13123_v27  ;;  %v13179_v7 = vcombine.high %v4974_v4, %v4978_v6  ;;  %v13181_v27 = vcombine.high %v4975_v5, %v4979_v24  ;;  %v5034_v4 = vld [vmem:[#allocation20 + $0x770] sm:$0xff]  ;;  %v5031_v6 = vld [vmem:[#allocation20 + $0x758] sm:$0xff] }
 0xfc7   :  { %8749 = vmatprep.subr.bf16.mxu1 %v13125_v37  ;;  %v4982_v37 = vld [vmem:[#allocation20 + $0x5d0] sm:$0xff] }
 0xfc8   :  { %v13186_v28 = vcombine.low %v4982_v37, %v4986_v52 }
 0xfc9   :  { %8545 = vmatpush1.bf16.msra.mxu0 %v13122_v42  ;;  %v13180_v42 = vcombine.low %v4975_v5, %v4979_v24  ;;  %v5035_v5 = vld [vmem:[#allocation20 + $0x778] sm:$0xff] }
 0xfca   :  { %8750 = vmatpush1.bf16.msra.mxu1 %v13124_v36  ;;  %8555 = vmatprep.subr.bf16.mxu0 %v13131_v53  ;;  %v13187_v36 = vcombine.high %v4982_v37, %v4986_v52  ;;  %v13189_v53 = vcombine.high %v4983_v57, %v4987_v21  ;;  %v5042_v37 = vld [vmem:[#allocation20 + $0x7b0] sm:$0xff]  ;;  %v5039_v52 = vld [vmem:[#allocation20 + $0x798] sm:$0xff] }
 0xfcb   :  { %8760 = vmatprep.subr.bf16.mxu1 %v13133_v29  ;;  %v4990_v29 = vld [vmem:[#allocation20 + $0x610] sm:$0xff]  ;;  %v5043_v57 = vld [vmem:[#allocation20 + $0x7b8] sm:$0xff] }
 0xfcc   :  { %8547 = vmatmul.mubr.bf16.vlgmr.msra.gmra.mrb[224].mxu0 %v19230_v26 }
 0xfcd   :  { %8752 = vmatmul.mubr.bf16.vlgmr.msra.gmra.mrb[200].mxu1 %v19230_v26  ;;  %8556 = vmatpush1.bf16.msra.mxu0 %v13130_v13  ;;  %v13148_v26 = vcombine.low %v4943_v38, %v4947_v1  ;;  %v4995_v13 = vld [vmem:[#allocation20 + $0x638] sm:$0xff]  ;;  %v13194_v1 = vcombine.low %v4990_v29, %v4994_v23 }
 0xfce   :  { %8587 = vmatprep.mubr.bf16.mxu0 %v19247_v60  ;;  %8761 = vmatpush1.bf16.msra.mxu1 %v13132_v48  ;;  %v13195_v48 = vcombine.high %v4990_v29, %v4994_v23  ;;  %v5003_v38 = vld [vmem:[#allocation20 + $0x678] sm:$0xff]  ;;  %v5050_v29 = vld [vmem:[#allocation20 + $0x7f0] sm:$0xff] }
 0xfcf   :  { %8792 = vmatprep.mubr.bf16.mxu1 %v19247_v60  ;;  %8557 = vmatprep.subr.bf16.mxu0 %v13139_v46  ;;  %v13154_v60 = vcombine.low %v4950_v8, %v4954_v20  ;;  %v13197_v46 = vcombine.high %v4991_v16, %v4995_v13  ;;  %v5010_v8 = vld [vmem:[#allocation20 + $0x6b0] sm:$0xff]  ;;  %v5007_v20 = vld [vmem:[#allocation20 + $0x698] sm:$0xff] }
 0xfd0   :  { %8762 = vmatprep.subr.bf16.mxu1 %v13141_v3  ;;  %v4999_v3 = vld [vmem:[#allocation20 + $0x658] sm:$0xff] }
 0xfd1   :  { %8558 = vmatpush1.bf16.msra.mxu0 %v13138_v55  ;;  %v13196_v55 = vcombine.low %v4991_v16, %v4995_v13  ;;  %v5047_v23 = vld [vmem:[#allocation20 + $0x7d8] sm:$0xff] }
 0xfd2   :  { %8763 = vmatpush1.bf16.msra.mxu1 %v13140_v10  ;;  %8559 = vmatprep.subr.bf16.mxu0 %v13147_v51  ;;  %v13203_v10 = vcombine.high %v4998_v47, %v5002_v11  ;;  %v13205_v51 = vcombine.high %v4999_v3, %v5003_v38  ;;  %v5051_v16 = vld [vmem:[#allocation20 + $0x7f8] sm:$0xff]  ;;  %v5058_v47 = vld [vmem:[#allocation20 + $0x830] sm:$0xff] }
 0xfd3   :  { %8764 = vmatprep.subr.bf16.mxu1 %v13149_v22  ;;  %v5006_v22 = vld [vmem:[#allocation20 + $0x690] sm:$0xff]  ;;  %v5055_v11 = vld [vmem:[#allocation20 + $0x818] sm:$0xff] }
 0xfd4   :  { %v13210_v61 = vcombine.low %v5006_v22, %v5010_v8 }
 0xfd5   :  { %8560 = vmatpush1.bf16.msra.mxu0 %v13146_v41  ;;  %v13204_v41 = vcombine.low %v4999_v3, %v5003_v38  ;;  %v5059_v3 = vld [vmem:[#allocation20 + $0x838] sm:$0xff] }
 0xfd6   :  { %8765 = vmatpush1.bf16.msra.mxu1 %v13148_v26  ;;  %8561 = vmatprep.subr.bf16.mxu0 %v13155_v40  ;;  %v13211_v26 = vcombine.high %v5006_v22, %v5010_v8  ;;  %v13213_v40 = vcombine.high %v5007_v20, %v5011_v62  ;;  %v5066_v22 = vld [vmem:[#allocation20 + $0x870] sm:$0xff] }
 0xfd7   :  { %8766 = vmatprep.subr.bf16.mxu1 %v13157_v9  ;;  %v5014_v9 = vld [vmem:[#allocation20 + $0x6d0] sm:$0xff] }
 0xfd8   :  { %v13218_v45 = vcombine.low %v5014_v9, %v5018_v34 }
 0xfd9   :  { %8562 = vmatpush1.bf16.msra.mxu0 %v13154_v60  ;;  %v13212_v60 = vcombine.low %v5007_v20, %v5011_v62  ;;  %v5063_v20 = vld [vmem:[#allocation20 + $0x858] sm:$0xff] }
 0xfda   :  { %8767 = vmatpush1.bf16.msra.mxu1 %v13156_v2  ;;  %8563 = vmatprep.subr.bf16.mxu0 %v13163_v30  ;;  %v13219_v2 = vcombine.high %v5014_v9, %v5018_v34  ;;  %v13221_v30 = vcombine.high %v5015_v18, %v5019_v43  ;;  %v5067_v62 = vld [vmem:[#allocation20 + $0x878] sm:$0xff] }
 0xfdb   :  { %8768 = vmatprep.subr.bf16.mxu1 %v13165_v25  ;;  %v5022_v25 = vld [vmem:[#allocation20 + $0x710] sm:$0xff]  ;;  %v13269_v9 = vcombine.high %v5063_v20, %v5067_v62  ;;  %v5071_v34 = vld [vmem:[#allocation20 + $0x898] sm:$0xff] }
 0xfdc   :  { %v13226_v24 = vcombine.low %v5022_v25, %v5026_v19 }
 0xfdd   :  { %8564 = vmatpush1.bf16.msra.mxu0 %v13162_v56  ;;  %v13220_v56 = vcombine.low %v5015_v18, %v5019_v43  ;;  %v5075_v18 = vld [vmem:[#allocation20 + $0x8b8] sm:$0xff] }
 0xfde   :  { %8769 = vmatpush1.bf16.msra.mxu1 %v13164_v44  ;;  %8565 = vmatprep.subr.bf16.mxu0 %v13171_v35  ;;  %v13227_v44 = vcombine.high %v5022_v25, %v5026_v19  ;;  %v13229_v35 = vcombine.high %v5023_v12, %v5027_v54  ;;  %v5082_v25 = vld [vmem:[#allocation20 + $0x8f0] sm:$0xff]  ;;  %v5079_v19 = vld [vmem:[#allocation20 + $0x8d8] sm:$0xff] }
 0xfdf   :  { %8770 = vmatprep.subr.bf16.mxu1 %v13173_v39  ;;  %v5030_v39 = vld [vmem:[#allocation20 + $0x750] sm:$0xff] }
 0xfe0   :  { %v13234_v21 = vcombine.low %v5030_v39, %v5034_v4 }
 0xfe1   :  { %8566 = vmatpush1.bf16.msra.mxu0 %v13170_v31  ;;  %v13228_v31 = vcombine.low %v5023_v12, %v5027_v54  ;;  %v5083_v12 = vld [vmem:[#allocation20 + $0x8f8] sm:$0xff] }
 0xfe2   :  { %8771 = vmatpush1.bf16.msra.mxu1 %v13172_v63  ;;  %8567 = vmatprep.subr.bf16.mxu0 %v13179_v7  ;;  %v13235_v63 = vcombine.high %v5030_v39, %v5034_v4  ;;  %v13237_v7 = vcombine.high %v5031_v6, %v5035_v5  ;;  %v5087_v39 = vld [vmem:[#allocation20 + $0x918] sm:$0xff] }
 0xfe3   :  { %8772 = vmatprep.subr.bf16.mxu1 %v13181_v27  ;;  %v5038_v27 = vld [vmem:[#allocation20 + $0x790] sm:$0xff]  ;;  %v5091_v4 = vld [vmem:[#allocation20 + $0x938] sm:$0xff] }
 0xfe4   :  { %v13242_v13 = vcombine.low %v5038_v27, %v5042_v37 }
 0xfe5   :  { %8568 = vmatpush1.bf16.msra.mxu0 %v13178_v50  ;;  %v13236_v50 = vcombine.low %v5031_v6, %v5035_v5  ;;  %v13284_v6 = vcombine.low %v5079_v19, %v5083_v12 }
 0xfe6   :  { %8773 = vmatpush1.bf16.msra.mxu1 %v13180_v42  ;;  %8569 = vmatprep.subr.bf16.mxu0 %v13187_v36  ;;  %v13243_v42 = vcombine.high %v5038_v27, %v5042_v37  ;;  %v13245_v36 = vcombine.high %v5039_v52, %v5043_v57  ;;  %v5099_v27 = vld [vmem:[#allocation20 + $0x978] sm:$0xff] }
 0xfe7   :  { %8774 = vmatprep.subr.bf16.mxu1 %v13189_v53  ;;  %v5046_v53 = vld [vmem:[#allocation20 + $0x7d0] sm:$0xff] }
 0xfe8   :  { %v13250_v38 = vcombine.low %v5046_v53, %v5050_v29 }
 0xfe9   :  { %8570 = vmatpush1.bf16.msra.mxu0 %v13186_v28  ;;  %v13244_v28 = vcombine.low %v5039_v52, %v5043_v57  ;;  %v13292_v52 = vcombine.low %v5087_v39, %v5091_v4 }
 0xfea   :  { %8775 = vmatpush1.bf16.msra.mxu1 %v13188_v17  ;;  %8571 = vmatprep.subr.bf16.mxu0 %v13195_v48  ;;  %v13251_v17 = vcombine.high %v5046_v53, %v5050_v29  ;;  %v13253_v48 = vcombine.high %v5047_v23, %v5051_v16  ;;  %v5107_v53 = vld [vmem:[#allocation20 + $0x9b8] sm:$0xff] }
 0xfeb   :  { %8776 = vmatprep.subr.bf16.mxu1 %v13197_v46  ;;  %v5054_v46 = vld [vmem:[#allocation20 + $0x810] sm:$0xff] }
 0xfec   :  { %v13258_v8 = vcombine.low %v5054_v46, %v5058_v47 }
 0xfed   :  { %8572 = vmatpush1.bf16.msra.mxu0 %v13194_v1  ;;  %v13252_v1 = vcombine.low %v5047_v23, %v5051_v16 }
 0xfee   :  { %8777 = vmatpush1.bf16.msra.mxu1 %v13196_v55  ;;  %8573 = vmatprep.subr.bf16.mxu0 %v13203_v10  ;;  %v13259_v55 = vcombine.high %v5054_v46, %v5058_v47  ;;  %v13261_v10 = vcombine.high %v5055_v11, %v5059_v3  ;;  %v5115_v46 = vld [vmem:[#allocation20 + $0x9f8] sm:$0xff] }
 0xfef   :  { %8778 = vmatprep.subr.bf16.mxu1 %v13205_v51  ;;  %v5062_v51 = vld [vmem:[#allocation20 + $0x850] sm:$0xff] }
 0xff0   :  { %v13266_v43 = vcombine.low %v5062_v51, %v5066_v22 }
 0xff1   :  { %8574 = vmatpush1.bf16.msra.mxu0 %v13202_v58  ;;  %v13260_v58 = vcombine.low %v5055_v11, %v5059_v3 }
 0xff2   :  { %8779 = vmatpush1.bf16.msra.mxu1 %v13204_v41  ;;  %8575 = vmatprep.subr.bf16.mxu0 %v13211_v26  ;;  %v13267_v41 = vcombine.high %v5062_v51, %v5066_v22  ;;  %v5070_v26 = vld [vmem:[#allocation20 + $0x890] sm:$0xff]  ;;  %v5123_v51 = vld [vmem:[#allocation20 + $0xa38] sm:$0xff] }
 0xff3   :  { %8780 = vmatprep.subr.bf16.mxu1 %v13213_v40  ;;  %v5074_v40 = vld [vmem:[#allocation20 + $0x8b0] sm:$0xff] }
 0xff4   :  { %v13274_v54 = vcombine.low %v5070_v26, %v5074_v40 }
 0xff5   :  { %8576 = vmatpush1.bf16.msra.mxu0 %v13210_v61  ;;  %v13268_v61 = vcombine.low %v5063_v20, %v5067_v62 }
 0xff6   :  { %8781 = vmatpush1.bf16.msra.mxu1 %v13212_v60  ;;  %8577 = vmatprep.subr.bf16.mxu0 %v13219_v2  ;;  %v13275_v60 = vcombine.high %v5070_v26, %v5074_v40  ;;  %v13277_v2 = vcombine.high %v5071_v34, %v5075_v18  ;;  %v5127_v26 = vld [vmem:[#allocation20 + $0xa58] sm:$0xff] }
 0xff7   :  { %8782 = vmatprep.subr.bf16.mxu1 %v13221_v30  ;;  %v5078_v30 = vld [vmem:[#allocation20 + $0x8d0] sm:$0xff]  ;;  %v5131_v40 = vld [vmem:[#allocation20 + $0xa78] sm:$0xff] }
 0xff9   :  { %8578 = vmatpush1.bf16.msra.mxu0 %v13218_v45  ;;  %v13283_v45 = vcombine.high %v5078_v30, %v5082_v25 }
 0xffa   :  { %8783 = vmatpush1.bf16.msra.mxu1 %v13220_v56  ;;  %8579 = vmatprep.subr.bf16.mxu0 %v13227_v44  ;;  %v13285_v56 = vcombine.high %v5079_v19, %v5083_v12  ;;  %v5086_v44 = vld [vmem:[#allocation20 + $0x910] sm:$0xff]  ;;  %v13332_v19 = vcombine.low %v5127_v26, %v5131_v40 }
 0xffb   :  { %8784 = vmatprep.subr.bf16.mxu1 %v13229_v35  ;;  %v5090_v35 = vld [vmem:[#allocation20 + $0x930] sm:$0xff] }
 0xffc   :  { %v13291_v5 = vcombine.high %v5086_v44, %v5090_v35  ;;  %v13290_v37 = vcombine.low %v5086_v44, %v5090_v35  ;;  %v5147_v44 = vld [vmem:[#allocation20 + $0xaf8] sm:$0xff] }
 0xffd   :  { %8580 = vmatpush1.bf16.msra.mxu0 %v13226_v24  ;;  %v13293_v24 = vcombine.high %v5087_v39, %v5091_v4 }
 0xffe   :  { %8785 = vmatpush1.bf16.msra.mxu1 %v13228_v31  ;;  %8581 = vmatprep.subr.bf16.mxu0 %v13235_v63  ;;  %v5094_v31 = vld [vmem:[#allocation20 + $0x950] sm:$0xff] }
 0xfff   :  { %8786 = vmatprep.subr.bf16.mxu1 %v13237_v7  ;;  %v5098_v63 = vld [vmem:[#allocation20 + $0x970] sm:$0xff]  ;;  %v5095_v7 = vld [vmem:[#allocation20 + $0x958] sm:$0xff] }
0x1000   :  { %v13299_v57 = vcombine.high %v5094_v31, %v5098_v63  ;;  %v13298_v29 = vcombine.low %v5094_v31, %v5098_v63  ;;  %v13300_v23 = vcombine.low %v5095_v7, %v5099_v27  ;;  %v5155_v31 = vld [vmem:[#allocation20 + $0xb38] sm:$0xff] }
0x1001   :  { %8582 = vmatpush1.bf16.msra.mxu0 %v13234_v21  ;;  %v13301_v21 = vcombine.high %v5095_v7, %v5099_v27 }
0x1002   :  { %8787 = vmatpush1.bf16.msra.mxu1 %v13236_v50  ;;  %8583 = vmatprep.subr.bf16.mxu0 %v13243_v42  ;;  %v5102_v50 = vld [vmem:[#allocation20 + $0x990] sm:$0xff] }
0x1003   :  { %8788 = vmatprep.subr.bf16.mxu1 %v13245_v36  ;;  %v5106_v42 = vld [vmem:[#allocation20 + $0x9b0] sm:$0xff]  ;;  %v5103_v36 = vld [vmem:[#allocation20 + $0x998] sm:$0xff] }
0x1004   :  { %v13307_v16 = vcombine.high %v5102_v50, %v5106_v42  ;;  %v13306_v47 = vcombine.low %v5102_v50, %v5106_v42  ;;  %v13308_v11 = vcombine.low %v5103_v36, %v5107_v53  ;;  %v5163_v50 = vld [vmem:[#allocation20 + $0xb78] sm:$0xff] }
0x1005   :  { %8584 = vmatpush1.bf16.msra.mxu0 %v13242_v13  ;;  %v13309_v13 = vcombine.high %v5103_v36, %v5107_v53 }
0x1006   :  { %8789 = vmatpush1.bf16.msra.mxu1 %v13244_v28  ;;  %8585 = vmatprep.subr.bf16.mxu0 %v13251_v17  ;;  %v5110_v28 = vld [vmem:[#allocation20 + $0x9d0] sm:$0xff] }
0x1007   :  { %8790 = vmatprep.subr.bf16.mxu1 %v13253_v48  ;;  %v5114_v17 = vld [vmem:[#allocation20 + $0x9f0] sm:$0xff]  ;;  %v5111_v48 = vld [vmem:[#allocation20 + $0x9d8] sm:$0xff] }
0x1008   :  { %v13315_v3 = vcombine.high %v5110_v28, %v5114_v17  ;;  %v13314_v22 = vcombine.low %v5110_v28, %v5114_v17  ;;  %v5171_v28 = vld [vmem:[#allocation20 + $0xbb8] sm:$0xff] }
0x1009   :  { %8586 = vmatpush1.bf16.msra.mxu0 %v13250_v38  ;;  %v13317_v38 = vcombine.high %v5111_v48, %v5115_v46 }
0x100a   :  { %8791 = vmatpush1.bf16.msra.mxu1 %v13252_v1  ;;  %8596 = vmatprep.subr.bf16.mxu0 %v13259_v55  ;;  %v5118_v1 = vld [vmem:[#allocation20 + $0xa10] sm:$0xff] }
0x100b   :  { %8801 = vmatprep.subr.bf16.mxu1 %v13261_v10  ;;  %v5122_v55 = vld [vmem:[#allocation20 + $0xa30] sm:$0xff]  ;;  %v5119_v10 = vld [vmem:[#allocation20 + $0xa18] sm:$0xff] }
0x100c   :  { %8588 = vmatmul.mubr.bf16.vlgmr.msra.gmra.mrb[224].mxu0 %v19263_v32  ;;  %v13323_v20 = vcombine.high %v5118_v1, %v5122_v55  ;;  %v13325_v62 = vcombine.high %v5119_v10, %v5123_v51 }
0x100d   :  { %8793 = vmatmul.mubr.bf16.vlgmr.msra.gmra.mrb[200].mxu1 %v19263_v32  ;;  %8597 = vmatpush1.bf16.msra.mxu0 %v13258_v8  ;;  %v13276_v32 = vcombine.low %v5071_v34, %v5075_v18  ;;  %v13316_v8 = vcombine.low %v5111_v48, %v5115_v46  ;;  %v13324_v34 = vcombine.low %v5119_v10, %v5123_v51 }
0x100e   :  { %8628 = vmatprep.mubr.bf16.mxu0 %v19260_v49  ;;  %8802 = vmatpush1.bf16.msra.mxu1 %v13260_v58  ;;  %v5126_v58 = vld [vmem:[#allocation20 + $0xa50] sm:$0xff] }
0x100f   :  { %8833 = vmatprep.mubr.bf16.mxu1 %v19260_v49  ;;  %8598 = vmatprep.subr.bf16.mxu0 %v13267_v41  ;;  %v13282_v49 = vcombine.low %v5078_v30, %v5082_v25  ;;  %v5130_v41 = vld [vmem:[#allocation20 + $0xa70] sm:$0xff]  ;;  %v5139_v30 = vld [vmem:[#allocation20 + $0xab8] sm:$0xff] }
0x1010   :  { %8803 = vmatprep.subr.bf16.mxu1 %v13269_v9  ;;  %v13322_v9 = vcombine.low %v5118_v1, %v5122_v55  ;;  %v13331_v18 = vcombine.high %v5126_v58, %v5130_v41  ;;  %v13330_v25 = vcombine.low %v5126_v58, %v5130_v41  ;;  %v5179_v1 = vld [vmem:[#allocation20 + $0xbf8] sm:$0xff] }
0x1011   :  { %8599 = vmatpush1.bf16.msra.mxu0 %v13266_v43  ;;  %v13333_v43 = vcombine.high %v5127_v26, %v5131_v40  ;;  %v5187_v58 = vld [vmem:[#allocation20 + $0xc38] sm:$0xff] }
0x1012   :  { %8804 = vmatpush1.bf16.msra.mxu1 %v13268_v61  ;;  %8600 = vmatprep.subr.bf16.mxu0 %v13275_v60  ;;  %v5134_v61 = vld [vmem:[#allocation20 + $0xa90] sm:$0xff] }
0x1013   :  { %8805 = vmatprep.subr.bf16.mxu1 %v13277_v2  ;;  %v5138_v60 = vld [vmem:[#allocation20 + $0xab0] sm:$0xff]  ;;  %v5135_v2 = vld [vmem:[#allocation20 + $0xa98] sm:$0xff] }
0x1014   :  { %v13339_v12 = vcombine.high %v5134_v61, %v5138_v60  ;;  %v13338_v35 = vcombine.low %v5134_v61, %v5138_v60  ;;  %v13340_v39 = vcombine.low %v5135_v2, %v5139_v30  ;;  %v5191_v61 = vld [vmem:[#allocation20 + $0xc58] sm:$0xff] }
0x1015   :  { %8601 = vmatpush1.bf16.msra.mxu0 %v13274_v54  ;;  %v13341_v54 = vcombine.high %v5135_v2, %v5139_v30  ;;  %v5195_v60 = vld [vmem:[#allocation20 + $0xc78] sm:$0xff] }
0x1016   :  { %8806 = vmatpush1.bf16.msra.mxu1 %v13276_v32  ;;  %8602 = vmatprep.subr.bf16.mxu0 %v13283_v45  ;;  %v5142_v32 = vld [vmem:[#allocation20 + $0xad0] sm:$0xff] }
0x1017   :  { %8807 = vmatprep.subr.bf16.mxu1 %v13285_v56  ;;  %v5146_v45 = vld [vmem:[#allocation20 + $0xaf0] sm:$0xff]  ;;  %v5143_v56 = vld [vmem:[#allocation20 + $0xad8] sm:$0xff] }
0x1018   :  { %v13347_v4 = vcombine.high %v5142_v32, %v5146_v45  ;;  %v13346_v63 = vcombine.low %v5142_v32, %v5146_v45  ;;  %v13348_v7 = vcombine.low %v5143_v56, %v5147_v44  ;;  %v5203_v32 = vld [vmem:[#allocation20 + $0xcb8] sm:$0xff] }
0x1019   :  { %8603 = vmatpush1.bf16.msra.mxu0 %v13282_v49  ;;  %v13349_v49 = vcombine.high %v5143_v56, %v5147_v44  ;;  %v13396_v56 = vcombine.low %v5191_v61, %v5195_v60 }
0x101a   :  { %8808 = vmatpush1.bf16.msra.mxu1 %v13284_v6  ;;  %8604 = vmatprep.subr.bf16.mxu0 %v13291_v5  ;;  %v5150_v6 = vld [vmem:[#allocation20 + $0xb10] sm:$0xff] }
0x101b   :  { %8809 = vmatprep.subr.bf16.mxu1 %v13293_v24  ;;  %v5154_v5 = vld [vmem:[#allocation20 + $0xb30] sm:$0xff]  ;;  %v5151_v24 = vld [vmem:[#allocation20 + $0xb18] sm:$0xff] }
0x101c   :  { %v13355_v27 = vcombine.high %v5150_v6, %v5154_v5  ;;  %v13354_v42 = vcombine.low %v5150_v6, %v5154_v5  ;;  %v13356_v36 = vcombine.low %v5151_v24, %v5155_v31  ;;  %v5211_v6 = vld [vmem:[#allocation20 + $0xcf8] sm:$0xff] }
0x101d   :  { %8605 = vmatpush1.bf16.msra.mxu0 %v13290_v37  ;;  %v13357_v37 = vcombine.high %v5151_v24, %v5155_v31 }
0x101e   :  { %8810 = vmatpush1.bf16.msra.mxu1 %v13292_v52  ;;  %8606 = vmatprep.subr.bf16.mxu0 %v13299_v57  ;;  %v5158_v52 = vld [vmem:[#allocation20 + $0xb50] sm:$0xff] }
0x101f   :  { %8811 = vmatprep.subr.bf16.mxu1 %v13301_v21  ;;  %v5162_v57 = vld [vmem:[#allocation20 + $0xb70] sm:$0xff]  ;;  %v5159_v21 = vld [vmem:[#allocation20 + $0xb58] sm:$0xff] }
0x1020   :  { %v13363_v53 = vcombine.high %v5158_v52, %v5162_v57  ;;  %v13362_v17 = vcombine.low %v5158_v52, %v5162_v57  ;;  %v13364_v48 = vcombine.low %v5159_v21, %v5163_v50 }
0x1021   :  { %8607 = vmatpush1.bf16.msra.mxu0 %v13298_v29  ;;  %v13365_v29 = vcombine.high %v5159_v21, %v5163_v50  ;;  %v5222_v50 = vld [vmem:[#allocation20 + $0xd50] sm:$0xff] }
0x1022   :  { %8812 = vmatpush1.bf16.msra.mxu1 %v13300_v23  ;;  %8608 = vmatprep.subr.bf16.mxu0 %v13307_v16  ;;  %v5166_v23 = vld [vmem:[#allocation20 + $0xb90] sm:$0xff] }
0x1023   :  { %8813 = vmatprep.subr.bf16.mxu1 %v13309_v13  ;;  %v5170_v16 = vld [vmem:[#allocation20 + $0xbb0] sm:$0xff]  ;;  %v5167_v13 = vld [vmem:[#allocation20 + $0xb98] sm:$0xff] }
0x1024   :  { %v13371_v46 = vcombine.high %v5166_v23, %v5170_v16  ;;  %v13370_v55 = vcombine.low %v5166_v23, %v5170_v16  ;;  %v13372_v10 = vcombine.low %v5167_v13, %v5171_v28 }
0x1025   :  { %8609 = vmatpush1.bf16.msra.mxu0 %v13306_v47  ;;  %v13373_v47 = vcombine.high %v5167_v13, %v5171_v28  ;;  %v5230_v28 = vld [vmem:[#allocation20 + $0xd90] sm:$0xff] }
0x1026   :  { %8814 = vmatpush1.bf16.msra.mxu1 %v13308_v11  ;;  %8610 = vmatprep.subr.bf16.mxu0 %v13315_v3  ;;  %v5174_v11 = vld [vmem:[#allocation20 + $0xbd0] sm:$0xff] }
0x1027   :  { %8815 = vmatprep.subr.bf16.mxu1 %v13317_v38  ;;  %v5178_v3 = vld [vmem:[#allocation20 + $0xbf0] sm:$0xff]  ;;  %v5175_v38 = vld [vmem:[#allocation20 + $0xbd8] sm:$0xff] }
0x1028   :  { %v13379_v51 = vcombine.high %v5174_v11, %v5178_v3  ;;  %v13378_v41 = vcombine.low %v5174_v11, %v5178_v3  ;;  %v13380_v26 = vcombine.low %v5175_v38, %v5179_v1 }
0x1029   :  { %8611 = vmatpush1.bf16.msra.mxu0 %v13314_v22  ;;  %v13381_v22 = vcombine.high %v5175_v38, %v5179_v1 }
0x102a   :  { %8816 = vmatpush1.bf16.msra.mxu1 %v13316_v8  ;;  %8612 = vmatprep.subr.bf16.mxu0 %v13323_v20  ;;  %v5182_v8 = vld [vmem:[#allocation20 + $0xc10] sm:$0xff] }
0x102b   :  { %8817 = vmatprep.subr.bf16.mxu1 %v13325_v62  ;;  %v5186_v20 = vld [vmem:[#allocation20 + $0xc30] sm:$0xff]  ;;  %v5183_v62 = vld [vmem:[#allocation20 + $0xc18] sm:$0xff] }
0x102c   :  { %v13387_v40 = vcombine.high %v5182_v8, %v5186_v20  ;;  %v13388_v2 = vcombine.low %v5183_v62, %v5187_v58 }
0x102d   :  { %8613 = vmatpush1.bf16.msra.mxu0 %v13322_v9  ;;  %v13389_v9 = vcombine.high %v5183_v62, %v5187_v58 }
0x102e   :  { %8818 = vmatpush1.bf16.msra.mxu1 %v13324_v34  ;;  %8614 = vmatprep.subr.bf16.mxu0 %v13331_v18  ;;  %v5190_v34 = vld [vmem:[#allocation20 + $0xc50] sm:$0xff] }
0x102f   :  { %8819 = vmatprep.subr.bf16.mxu1 %v13333_v43  ;;  %v5194_v18 = vld [vmem:[#allocation20 + $0xc70] sm:$0xff]  ;;  %v13386_v43 = vcombine.low %v5182_v8, %v5186_v20  ;;  %v5239_v8 = vld [vmem:[#allocation20 + $0xdd8] sm:$0xff] }
0x1030   :  { %v13395_v30 = vcombine.high %v5190_v34, %v5194_v18  ;;  %v13394_v45 = vcombine.low %v5190_v34, %v5194_v18  ;;  %v5243_v20 = vld [vmem:[#allocation20 + $0xdf8] sm:$0xff] }
0x1031   :  { %8615 = vmatpush1.bf16.msra.mxu0 %v13330_v25  ;;  %v5198_v25 = vld [vmem:[#allocation20 + $0xc90] sm:$0xff] }
0x1032   :  { %8820 = vmatpush1.bf16.msra.mxu1 %v13332_v19  ;;  %8616 = vmatprep.subr.bf16.mxu0 %v13339_v12  ;;  %v5202_v19 = vld [vmem:[#allocation20 + $0xcb0] sm:$0xff]  ;;  %v13397_v12 = vcombine.high %v5191_v61, %v5195_v60 }
0x1033   :  { %8821 = vmatprep.subr.bf16.mxu1 %v13341_v54  ;;  %v5199_v54 = vld [vmem:[#allocation20 + $0xc98] sm:$0xff]  ;;  %v13403_v44 = vcombine.high %v5198_v25, %v5202_v19  ;;  %v13402_v5 = vcombine.low %v5198_v25, %v5202_v19  ;;  %v5246_v61 = vld [vmem:[#allocation20 + $0xe10] sm:$0xff]  ;;  %v13444_v19 = vcombine.low %v5239_v8, %v5243_v20 }
0x1034   :  { %v5250_v60 = vld [vmem:[#allocation20 + $0xe30] sm:$0xff] }
0x1035   :  { %8617 = vmatpush1.bf16.msra.mxu0 %v13338_v35  ;;  %v13405_v35 = vcombine.high %v5199_v54, %v5203_v32 }
0x1036   :  { %8822 = vmatpush1.bf16.msra.mxu1 %v13340_v39  ;;  %8618 = vmatprep.subr.bf16.mxu0 %v13347_v4  ;;  %v5206_v39 = vld [vmem:[#allocation20 + $0xcd0] sm:$0xff] }
0x1037   :  { %8823 = vmatprep.subr.bf16.mxu1 %v13349_v49  ;;  %v5210_v4 = vld [vmem:[#allocation20 + $0xcf0] sm:$0xff]  ;;  %v5207_v49 = vld [vmem:[#allocation20 + $0xcd8] sm:$0xff] }
0x1038   :  { %v13411_v24 = vcombine.high %v5206_v39, %v5210_v4  ;;  %v13413_v31 = vcombine.high %v5207_v49, %v5211_v6  ;;  %v13412_v52 = vcombine.low %v5207_v49, %v5211_v6  ;;  %v5262_v6 = vld [vmem:[#allocation20 + $0xe90] sm:$0xff] }
0x1039   :  { %8619 = vmatpush1.bf16.msra.mxu0 %v13346_v63  ;;  %v5214_v63 = vld [vmem:[#allocation20 + $0xd10] sm:$0xff] }
0x103a   :  { %8824 = vmatpush1.bf16.msra.mxu1 %v13348_v7  ;;  %8620 = vmatprep.subr.bf16.mxu0 %v13355_v27  ;;  %v5218_v7 = vld [vmem:[#allocation20 + $0xd30] sm:$0xff]  ;;  %v5215_v27 = vld [vmem:[#allocation20 + $0xd18] sm:$0xff] }
0x103b   :  { %8825 = vmatprep.subr.bf16.mxu1 %v13357_v37  ;;  %v5219_v37 = vld [vmem:[#allocation20 + $0xd38] sm:$0xff]  ;;  %v13419_v57 = vcombine.high %v5214_v63, %v5218_v7 }
0x103c   :  { %v13421_v21 = vcombine.high %v5215_v27, %v5219_v37  ;;  %v13420_v23 = vcombine.low %v5215_v27, %v5219_v37  ;;  %v5270_v37 = vld [vmem:[#allocation20 + $0xed0] sm:$0xff] }
0x103d   :  { %8621 = vmatpush1.bf16.msra.mxu0 %v13354_v42  ;;  %v5226_v42 = vld [vmem:[#allocation20 + $0xd70] sm:$0xff] }
0x103e   :  { %8826 = vmatpush1.bf16.msra.mxu1 %v13356_v36  ;;  %8622 = vmatprep.subr.bf16.mxu0 %v13363_v53  ;;  %v5223_v36 = vld [vmem:[#allocation20 + $0xd58] sm:$0xff]  ;;  %v13427_v16 = vcombine.high %v5222_v50, %v5226_v42 }
0x103f   :  { %8827 = vmatprep.subr.bf16.mxu1 %v13365_v29  ;;  %v5227_v53 = vld [vmem:[#allocation20 + $0xd78] sm:$0xff]  ;;  %v13418_v29 = vcombine.low %v5214_v63, %v5218_v7 }
0x1040   :  { %v13429_v13 = vcombine.high %v5223_v36, %v5227_v53  ;;  %v13428_v11 = vcombine.low %v5223_v36, %v5227_v53  ;;  %v5278_v53 = vld [vmem:[#allocation20 + $0xf10] sm:$0xff] }
0x1041   :  { %8623 = vmatpush1.bf16.msra.mxu0 %v13362_v17  ;;  %v5234_v17 = vld [vmem:[#allocation20 + $0xdb0] sm:$0xff] }
0x1042   :  { %8828 = vmatpush1.bf16.msra.mxu1 %v13364_v48  ;;  %8624 = vmatprep.subr.bf16.mxu0 %v13371_v46  ;;  %v5231_v48 = vld [vmem:[#allocation20 + $0xd98] sm:$0xff]  ;;  %v13435_v3 = vcombine.high %v5230_v28, %v5234_v17 }
0x1043   :  { %8829 = vmatprep.subr.bf16.mxu1 %v13373_v47  ;;  %v5235_v46 = vld [vmem:[#allocation20 + $0xdb8] sm:$0xff]  ;;  %v13426_v47 = vcombine.low %v5222_v50, %v5226_v42 }
0x1044   :  { %v13437_v1 = vcombine.high %v5231_v48, %v5235_v46 }
0x1045   :  { %8625 = vmatpush1.bf16.msra.mxu0 %v13370_v55  ;;  %v5238_v55 = vld [vmem:[#allocation20 + $0xdd0] sm:$0xff] }
0x1046   :  { %8830 = vmatpush1.bf16.msra.mxu1 %v13372_v10  ;;  %8626 = vmatprep.subr.bf16.mxu0 %v13379_v51  ;;  %v5242_v10 = vld [vmem:[#allocation20 + $0xdf0] sm:$0xff] }
0x1047   :  { %8831 = vmatprep.subr.bf16.mxu1 %v13381_v22  ;;  %v13443_v34 = vcombine.high %v5238_v55, %v5242_v10  ;;  %v13442_v25 = vcombine.low %v5238_v55, %v5242_v10 }
0x1049   :  { %8627 = vmatpush1.bf16.msra.mxu0 %v13378_v41  ;;  %v13434_v41 = vcombine.low %v5230_v28, %v5234_v17 }
0x104a   :  { %8832 = vmatpush1.bf16.msra.mxu1 %v13380_v26  ;;  %8637 = vmatprep.subr.bf16.mxu0 %v13387_v40 }
0x104b   :  { %8842 = vmatprep.subr.bf16.mxu1 %v13389_v9  ;;  %v13436_v9 = vcombine.low %v5231_v48, %v5235_v46  ;;  %v5286_v46 = vld [vmem:[#allocation20 + $0xf50] sm:$0xff] }
0x104c   :  { %8629 = vmatmul.mubr.bf16.vlgmr.msra.gmra.mrb[224].mxu0 %v19278_v33 }
0x104d   :  { %8834 = vmatmul.mubr.bf16.vlgmr.msra.gmra.mrb[200].mxu1 %v19278_v33  ;;  %8638 = vmatpush1.bf16.msra.mxu0 %v13386_v43  ;;  %v13404_v33 = vcombine.low %v5199_v54, %v5203_v32  ;;  %v13445_v43 = vcombine.high %v5239_v8, %v5243_v20  ;;  %v5254_v32 = vld [vmem:[#allocation20 + $0xe50] sm:$0xff] }
0x104e   :  { %8669 = vmatprep.mubr.bf16.mxu0 %v19284_v59  ;;  %8843 = vmatpush1.bf16.msra.mxu1 %v13388_v2  ;;  %v5247_v2 = vld [vmem:[#allocation20 + $0xe18] sm:$0xff]  ;;  %v5294_v20 = vld [vmem:[#allocation20 + $0xf90] sm:$0xff] }
0x104f   :  { %8874 = vmatprep.mubr.bf16.mxu1 %v19284_v59  ;;  %8639 = vmatprep.subr.bf16.mxu0 %v13395_v30  ;;  %v13410_v59 = vcombine.low %v5206_v39, %v5210_v4  ;;  %v5251_v30 = vld [vmem:[#allocation20 + $0xe38] sm:$0xff] }
0x1050   :  { %8844 = vmatprep.subr.bf16.mxu1 %v13397_v12  ;;  %v13451_v12 = vcombine.high %v5246_v61, %v5250_v60  ;;  %v13453_v54 = vcombine.high %v5247_v2, %v5251_v30  ;;  %v13452_v39 = vcombine.low %v5247_v2, %v5251_v30  ;;  %v5307_v2 = vld [vmem:[#allocation20 + $0xff8] sm:$0xff] }
0x1051   :  { %8640 = vmatpush1.bf16.msra.mxu0 %v13394_v45  ;;  %v5258_v45 = vld [vmem:[#allocation20 + $0xe70] sm:$0xff] }
0x1052   :  { %8845 = vmatpush1.bf16.msra.mxu1 %v13396_v56  ;;  %8641 = vmatprep.subr.bf16.mxu0 %v13403_v44  ;;  %v5255_v56 = vld [vmem:[#allocation20 + $0xe58] sm:$0xff]  ;;  %v13459_v4 = vcombine.high %v5254_v32, %v5258_v45 }
0x1053   :  { %8846 = vmatprep.subr.bf16.mxu1 %v13405_v35  ;;  %v5259_v44 = vld [vmem:[#allocation20 + $0xe78] sm:$0xff]  ;;  %v13450_v35 = vcombine.low %v5246_v61, %v5250_v60  ;;  %v5306_v61 = vld [vmem:[#allocation20 + $0xff0] sm:$0xff] }
0x1054   :  { %v13461_v49 = vcombine.high %v5255_v56, %v5259_v44  ;;  %v13460_v63 = vcombine.low %v5255_v56, %v5259_v44  ;;  %v5303_v60 = vld [vmem:[#allocation20 + $0xfd8] sm:$0xff] }
0x1055   :  { %8642 = vmatpush1.bf16.msra.mxu0 %v13402_v5  ;;  %v5266_v5 = vld [vmem:[#allocation20 + $0xeb0] sm:$0xff]  ;;  %v5315_v56 = vld [vmem:[#allocation20 + $0x1038] sm:$0xff] }
0x1056   :  { %8847 = vmatpush1.bf16.msra.mxu1 %v13404_v33  ;;  %8643 = vmatprep.subr.bf16.mxu0 %v13411_v24  ;;  %v5263_v33 = vld [vmem:[#allocation20 + $0xe98] sm:$0xff]  ;;  %v13467_v7 = vcombine.high %v5262_v6, %v5266_v5 }
0x1057   :  { %8848 = vmatprep.subr.bf16.mxu1 %v13413_v31  ;;  %v5267_v24 = vld [vmem:[#allocation20 + $0xeb8] sm:$0xff]  ;;  %v13458_v31 = vcombine.low %v5254_v32, %v5258_v45  ;;  %v5314_v32 = vld [vmem:[#allocation20 + $0x1030] sm:$0xff] }
0x1058   :  { %v13469_v27 = vcombine.high %v5263_v33, %v5267_v24  ;;  %v13468_v50 = vcombine.low %v5263_v33, %v5267_v24  ;;  %v5311_v45 = vld [vmem:[#allocation20 + $0x1018] sm:$0xff] }
0x1059   :  { %8644 = vmatpush1.bf16.msra.mxu0 %v13410_v59  ;;  %v5274_v59 = vld [vmem:[#allocation20 + $0xef0] sm:$0xff]  ;;  %v5319_v33 = vld [vmem:[#allocation20 + $0x1058] sm:$0xff] }
0x105a   :  { %8849 = vmatpush1.bf16.msra.mxu1 %v13412_v52  ;;  %8645 = vmatprep.subr.bf16.mxu0 %v13419_v57  ;;  %v5271_v52 = vld [vmem:[#allocation20 + $0xed8] sm:$0xff]  ;;  %v13475_v42 = vcombine.high %v5270_v37, %v5274_v59 }
0x105b   :  { %8850 = vmatprep.subr.bf16.mxu1 %v13421_v21  ;;  %v5275_v57 = vld [vmem:[#allocation20 + $0xef8] sm:$0xff]  ;;  %v13466_v21 = vcombine.low %v5262_v6, %v5266_v5  ;;  %v5322_v6 = vld [vmem:[#allocation20 + $0x1070] sm:$0xff]  ;;  %v5342_v5 = vlaneseq }
0x105c   :  { %v13477_v36 = vcombine.high %v5271_v52, %v5275_v57  ;;  %v13476_v28 = vcombine.low %v5271_v52, %v5275_v57  ;;  %v5323_v24 = vld [vmem:[#allocation20 + $0x1078] sm:$0xff] }
0x105d   :  { %8646 = vmatpush1.bf16.msra.mxu0 %v13418_v29  ;;  %v5282_v29 = vld [vmem:[#allocation20 + $0xf30] sm:$0xff]  ;;  %v19331_v52 = vshrl.u32 %v5342_v5, 7  ;;  %v5327_v57 = vld [vmem:[#allocation20 + $0x1098] sm:$0xff] }
0x105e   :  { %8851 = vmatpush1.bf16.msra.mxu1 %v13420_v23  ;;  %8647 = vmatprep.subr.bf16.mxu0 %v13427_v16  ;;  %v5279_v23 = vld [vmem:[#allocation20 + $0xf18] sm:$0xff]  ;;  %v13483_v17 = vcombine.high %v5278_v53, %v5282_v29 }
0x105f   :  { %v19323_v38 = vpop.f32.mrb[220].mxu0  ;;  %8852 = vmatprep.subr.bf16.mxu1 %v13429_v13  ;;  %v5283_v16 = vld [vmem:[#allocation20 + $0xf38] sm:$0xff]  ;;  %v13474_v13 = vcombine.low %v5270_v37, %v5274_v59  ;;  %v5326_v37 = vld [vmem:[#allocation20 + $0x1090] sm:$0xff] }
0x1060   :  { %v19325_v51 = vpop.f32.mrb[196].mxu1  ;;  %v19327_v22 = vpop.f32.mrb[221].mxu0  ;;  %v13485_v48 = vcombine.high %v5279_v23, %v5283_v16  ;;  %v13484_v55 = vcombine.low %v5279_v23, %v5283_v16  ;;  %v5330_v59 = vld [vmem:[#allocation20 + $0x10b0] sm:$0xff]  ;;  %v19337_v16 = vsub.s32 1, %v19331_v52  ;;  %v15006_v5 = vld [vmem:[#allocation23 + $0xe0] ss:$16 sps:$4 sm:$0xff]  }
0x1061   :  { %v19329_v62 = vpop.f32.mrb[197].mxu1  ;;  %v8306_v58 = vpop.f32.mrb[222].mxu0  ;;  %8648 = vmatpush1.bf16.msra.mxu0 %v13426_v47  ;;  %v5290_v47 = vld [vmem:[#allocation20 + $0xf70] sm:$0xff] }
0x1062   :  { %v8511_v26 = vpop.f32.mrb[198].mxu1  ;;  %8853 = vmatpush1.bf16.msra.mxu1 %v13428_v11  ;;  %v8307_v40 = vpop.f32.mrb[223].mxu0  ;;  %8649 = vmatprep.subr.bf16.mxu0 %v13435_v3  ;;  %v5287_v11 = vld [vmem:[#allocation20 + $0xf58] sm:$0xff]  ;;  %v13491_v10 = vcombine.high %v5286_v46, %v5290_v47  ;;  %v5298_v58 = vld [vmem:[#allocation20 + $0xfb0] sm:$0xff] }
0x1063   :  { %v8512_v18 = vpop.f32.mrb[199].mxu1  ;;  %8854 = vmatprep.subr.bf16.mxu1 %v13437_v1  ;;  %v5291_v3 = vld [vmem:[#allocation20 + $0xf78] sm:$0xff]  ;;  %v13482_v1 = vcombine.low %v5278_v53, %v5282_v29  ;;  %v13490_v40 = vcombine.low %v5286_v46, %v5290_v47  ;;  %v13498_v30 = vcombine.low %v5294_v20, %v5298_v58  ;;  %v5334_v29 = vld [vmem:[#allocation20 + $0x10d0] sm:$0xff] }
0x1064   :  { %v13493_v8 = vcombine.high %v5287_v11, %v5291_v3  ;;  %v5299_v26 = vld [vmem:[#allocation20 + $0xfb8] sm:$0xff]  ;;  %v5338_v23 = vld [vmem:[#allocation20 + $0x10f0] sm:$0xff] }
0x1065   :  { %8650 = vmatpush1.bf16.msra.mxu0 %v13434_v41  ;;  %v5295_v41 = vld [vmem:[#allocation20 + $0xf98] sm:$0xff]  ;;  %v13539_v46 = vcombine.high %v5334_v29, %v5338_v23 }
0x1066   :  { %8855 = vmatpush1.bf16.msra.mxu1 %v13436_v9  ;;  %8651 = vmatprep.subr.bf16.mxu0 %v13443_v34  ;;  %v13492_v9 = vcombine.low %v5287_v11, %v5291_v3  ;;  %v13499_v34 = vcombine.high %v5294_v20, %v5298_v58  ;;  %v13501_v18 = vcombine.high %v5295_v41, %v5299_v26  ;;  %v14967_v20 = vld [vmem:[#allocation23 + $0x8] ss:$16 sps:$4 sm:$0xff]   ;;  %v14972_v58 = vld [vmem:[#allocation23 + $0x24] ss:$16 sps:$4 sm:$0xff]  }
0x1067   :  { %8856 = vmatprep.subr.bf16.mxu1 %v13445_v43  ;;  %v5302_v43 = vld [vmem:[#allocation20 + $0xfd0] sm:$0xff]  ;;  %v13538_v3 = vcombine.low %v5334_v29, %v5338_v23  ;;  %v15030_v23 = vld [vmem:[#allocation23 + $0x160] ss:$16 sps:$4 sm:$0xff]  }
0x1068   :  { %v13506_v44 = vcombine.low %v5302_v43, %v5306_v61  ;;  %v15035_v29 = vld [vmem:[#allocation23 + $0x16c] ss:$16 sps:$4 sm:$0xff]  }
0x1069   :  { %8652 = vmatpush1.bf16.msra.mxu0 %v13442_v25  ;;  %v13500_v25 = vcombine.low %v5295_v41, %v5299_v26  ;;  %v14975_v26 = vld [vmem:[#allocation23 + $0x2c] ss:$16 sps:$4 sm:$0xff]  }
0x106a   :  { %8857 = vmatpush1.bf16.msra.mxu1 %v13444_v19  ;;  %8653 = vmatprep.subr.bf16.mxu0 %v13451_v12  ;;  %v13507_v19 = vcombine.high %v5302_v43, %v5306_v61  ;;  %v13509_v12 = vcombine.high %v5303_v60, %v5307_v2  ;;  %v14979_v43 = vld [vmem:[#allocation23 + $0x48] ss:$16 sps:$4 sm:$0xff]   ;;  %v14984_v61 = vld [vmem:[#allocation23 + $0x64] ss:$16 sps:$4 sm:$0xff]  }
0x106b   :  { %8858 = vmatprep.subr.bf16.mxu1 %v13453_v54  ;;  %v5310_v54 = vld [vmem:[#allocation20 + $0x1010] sm:$0xff] }
0x106d   :  { %8654 = vmatpush1.bf16.msra.mxu0 %v13450_v35  ;;  %v13508_v35 = vcombine.low %v5303_v60, %v5307_v2  ;;  %v14987_v60 = vld [vmem:[#allocation23 + $0x6c] ss:$16 sps:$4 sm:$0xff]   ;;  %v14985_v2 = vld [vmem:[#allocation23 + $0x68] ss:$16 sps:$4 sm:$0xff]  }
0x106e   :  { %8859 = vmatpush1.bf16.msra.mxu1 %v13452_v39  ;;  %8655 = vmatprep.subr.bf16.mxu0 %v13459_v4  ;;  %v13515_v39 = vcombine.high %v5310_v54, %v5314_v32  ;;  %v13517_v4 = vcombine.high %v5311_v45, %v5315_v56 }
0x106f   :  { %8860 = vmatprep.subr.bf16.mxu1 %v13461_v49  ;;  %v5318_v49 = vld [vmem:[#allocation20 + $0x1050] sm:$0xff] }
0x1071   :  { %8656 = vmatpush1.bf16.msra.mxu0 %v13458_v31  ;;  %v13514_v31 = vcombine.low %v5310_v54, %v5314_v32  ;;  %v14996_v54 = vld [vmem:[#allocation23 + $0xa4] ss:$16 sps:$4 sm:$0xff]   ;;  %v14999_v32 = vld [vmem:[#allocation23 + $0xac] ss:$16 sps:$4 sm:$0xff]  }
0x1072   :  { %8861 = vmatpush1.bf16.msra.mxu1 %v13460_v63  ;;  %8657 = vmatprep.subr.bf16.mxu0 %v13467_v7  ;;  %v13516_v63 = vcombine.low %v5311_v45, %v5315_v56  ;;  %v13523_v7 = vcombine.high %v5318_v49, %v5322_v6  ;;  %v14994_v45 = vld [vmem:[#allocation23 + $0xa0] ss:$16 sps:$4 sm:$0xff]   ;;  %v14997_v56 = vld [vmem:[#allocation23 + $0xa8] ss:$16 sps:$4 sm:$0xff]  }
0x1073   :  { %8862 = vmatprep.subr.bf16.mxu1 %v13469_v27  ;;  %v13525_v27 = vcombine.high %v5319_v33, %v5323_v24 }
0x1075   :  { %8658 = vmatpush1.bf16.msra.mxu0 %v13466_v21  ;;  %v5331_v21 = vld [vmem:[#allocation20 + $0x10b8] sm:$0xff] }
0x1076   :  { %8863 = vmatpush1.bf16.msra.mxu1 %v13468_v50  ;;  %8659 = vmatprep.subr.bf16.mxu0 %v13475_v42  ;;  %v13522_v50 = vcombine.low %v5318_v49, %v5322_v6  ;;  %v13524_v42 = vcombine.low %v5319_v33, %v5323_v24  ;;  %v13533_v53 = vcombine.high %v5327_v57, %v5331_v21  ;;  %v15008_v49 = vld [vmem:[#allocation23 + $0xe4] ss:$16 sps:$4 sm:$0xff]   ;;  %v15011_v6 = vld [vmem:[#allocation23 + $0xec] ss:$16 sps:$4 sm:$0xff]   ;;  %v15009_v33 = vld [vmem:[#allocation23 + $0xe8] ss:$16 sps:$4 sm:$0xff]  }
0x1077   :  { %8864 = vmatprep.subr.bf16.mxu1 %v13477_v36  ;;  %v13531_v36 = vcombine.high %v5326_v37, %v5330_v59  ;;  %v15014_v24 = vld [vmem:[#allocation23 + $0x104] ss:$16 sps:$4 sm:$0xff]  }
0x1079   :  { %8660 = vmatpush1.bf16.msra.mxu0 %v13474_v13  ;;  %v5335_v13 = vld [vmem:[#allocation20 + $0x10d8] sm:$0xff] }
0x107a   :  { %8865 = vmatpush1.bf16.msra.mxu1 %v13476_v28  ;;  %8661 = vmatprep.subr.bf16.mxu0 %v13483_v17  ;;  %v5339_v28 = vld [vmem:[#allocation20 + $0x10f8] sm:$0xff]  ;;  %v13530_v17 = vcombine.low %v5326_v37, %v5330_v59  ;;  %v15023_v37 = vld [vmem:[#allocation23 + $0x12c] ss:$16 sps:$4 sm:$0xff]  }
0x107b   :  { %8866 = vmatprep.subr.bf16.mxu1 %v13485_v48  ;;  %v13532_v48 = vcombine.low %v5327_v57, %v5331_v21  ;;  %v13541_v47 = vcombine.high %v5335_v13, %v5339_v28  ;;  %v15018_v59 = vld [vmem:[#allocation23 + $0x120] ss:$16 sps:$4 sm:$0xff]   ;;  %v15021_v57 = vld [vmem:[#allocation23 + $0x128] ss:$16 sps:$4 sm:$0xff]   ;;  %v15026_v21 = vld [vmem:[#allocation23 + $0x144] ss:$16 sps:$4 sm:$0xff]  }
0x107d   :  { %8662 = vmatpush1.bf16.msra.mxu0 %v13482_v1  ;;  %v13540_v1 = vcombine.low %v5335_v13, %v5339_v28  ;;  %v15033_v13 = vld [vmem:[#allocation23 + $0x168] ss:$16 sps:$4 sm:$0xff]   ;;  %v15038_v28 = vld [vmem:[#allocation23 + $0x184] ss:$16 sps:$4 sm:$0xff]  }
0x107e   :  { %8867 = vmatpush1.bf16.msra.mxu1 %v13484_v55  ;;  %8663 = vmatprep.subr.bf16.mxu0 %v13491_v10  ;;  %v14966_v55 = vld [vmem:[#allocation23 + $0x4] ss:$16 sps:$4 sm:$0xff]  }
0x107f   :  { %8868 = vmatprep.subr.bf16.mxu1 %v13493_v8  ;;  %v14964_v8 = vld [vmem:[#allocation23] ss:$16 sps:$4 sm:$0xff]  }
0x1081   :  { %8664 = vmatpush1.bf16.msra.mxu0 %v13490_v40  ;;  %v14970_v40 = vld [vmem:[#allocation23 + $0x20] ss:$16 sps:$4 sm:$0xff]  }
0x1082   :  { %8869 = vmatpush1.bf16.msra.mxu1 %v13492_v9  ;;  %8665 = vmatprep.subr.bf16.mxu0 %v13499_v34  ;;  %v14978_v9 = vld [vmem:[#allocation23 + $0x44] ss:$16 sps:$4 sm:$0xff]   ;;  %v14981_v34 = vld [vmem:[#allocation23 + $0x4c] ss:$16 sps:$4 sm:$0xff]  }
0x1083   :  { %8870 = vmatprep.subr.bf16.mxu1 %v13501_v18  ;;  %v14976_v18 = vld [vmem:[#allocation23 + $0x40] ss:$16 sps:$4 sm:$0xff]  }
0x1085   :  { %8666 = vmatpush1.bf16.msra.mxu0 %v13498_v30  ;;  %v14990_v30 = vld [vmem:[#allocation23 + $0x84] ss:$16 sps:$4 sm:$0xff]  }
0x1086   :  { %8871 = vmatpush1.bf16.msra.mxu1 %v13500_v25  ;;  %8667 = vmatprep.subr.bf16.mxu0 %v13507_v19  ;;  %v14993_v25 = vld [vmem:[#allocation23 + $0x8c] ss:$16 sps:$4 sm:$0xff]   ;;  %v14988_v19 = vld [vmem:[#allocation23 + $0x80] ss:$16 sps:$4 sm:$0xff]  }
0x1087   :  { %8872 = vmatprep.subr.bf16.mxu1 %v13509_v12  ;;  %v14991_v12 = vld [vmem:[#allocation23 + $0x88] ss:$16 sps:$4 sm:$0xff]  }
0x1089   :  { %8668 = vmatpush1.bf16.msra.mxu0 %v13506_v44  ;;  %v15002_v44 = vld [vmem:[#allocation23 + $0xc4] ss:$16 sps:$4 sm:$0xff]  }
0x108a   :  { %8873 = vmatpush1.bf16.msra.mxu1 %v13508_v35  ;;  %8678 = vmatprep.subr.bf16.mxu0 %v13515_v39  ;;  %v15005_v35 = vld [vmem:[#allocation23 + $0xcc] ss:$16 sps:$4 sm:$0xff]   ;;  %v15000_v39 = vld [vmem:[#allocation23 + $0xc0] ss:$16 sps:$4 sm:$0xff]  }
0x108b   :  { %8883 = vmatprep.subr.bf16.mxu1 %v13517_v4  ;;  %v15003_v4 = vld [vmem:[#allocation23 + $0xc8] ss:$16 sps:$4 sm:$0xff]  }
0x108c   :  { %8670 = vmatmul.mubr.bf16.vlgmr.msra.gmra.mrb[224].mxu0 %v19294_v14 }
0x108d   :  { %8875 = vmatmul.mubr.bf16.vlgmr.msra.gmra.mrb[200].mxu1 %v19294_v14  ;;  %8679 = vmatpush1.bf16.msra.mxu0 %v13514_v31  ;;  %v19340_v14 = vld [vmem:[#allocation22] sm:$0xff] }
0x108e   :  { %8884 = vmatpush1.bf16.msra.mxu1 %v13516_v63  ;;  %8680 = vmatprep.subr.bf16.mxu0 %v13523_v7  ;;  %v5349_v11 = vrot.slane %v19340_v14, %v19337_v16  ;;  %v15017_v31 = vld [vmem:[#allocation23 + $0x10c] ss:$16 sps:$4 sm:$0xff]   ;;  %v15012_v63 = vld [vmem:[#allocation23 + $0x100] ss:$16 sps:$4 sm:$0xff]   ;;  %v15015_v7 = vld [vmem:[#allocation23 + $0x108] ss:$16 sps:$4 sm:$0xff]  }
0x108f   :  { %8885 = vmatprep.subr.bf16.mxu1 %v13525_v27  ;;  %8710 = vmatprep.mubr.bf16.mxu0 %v15827_v15  ;;  %v15020_v27 = vld [vmem:[#allocation23 + $0x124] ss:$16 sps:$4 sm:$0xff]  }
0x1090   :  { %8915 = vmatprep.mubr.bf16.mxu1 %v15827_v15  ;;  %v14969_v15 = vld [vmem:[#allocation23 + $0xc] ss:$16 sps:$4 sm:$0xff]   ;;  %v14777_v10 = vadd.f32 %v19327_v22, %v5349_v11  ;;  %v14973_v22 = vld [vmem:[#allocation23 + $0x28] ss:$16 sps:$4 sm:$0xff]  }
0x1091   :  { %8681 = vmatpush1.bf16.msra.mxu0 %v13522_v50  ;;  %v15029_v50 = vld [vmem:[#allocation23 + $0x14c] ss:$16 sps:$4 sm:$0xff]  }
0x1092   :  { %8886 = vmatpush1.bf16.msra.mxu1 %v13524_v42  ;;  %8682 = vmatprep.subr.bf16.mxu0 %v13531_v36  ;;  %v8925_v41 = vpack.c.bf16 %v14777_v10, %v14777_v10  ;;  %v15024_v42 = vld [vmem:[#allocation23 + $0x140] ss:$16 sps:$4 sm:$0xff]   ;;  %v15027_v36 = vld [vmem:[#allocation23 + $0x148] ss:$16 sps:$4 sm:$0xff]   ;;  %v15047_v11 = vld [vmem:[#allocation23 + $0x1ac] ss:$16 sps:$4 sm:$0xff]  }
0x1093   :  { %8887 = vmatprep.subr.bf16.mxu1 %v13533_v53  ;;  %v15032_v53 = vld [vmem:[#allocation23 + $0x164] ss:$16 sps:$4 sm:$0xff]   ;;  %v15053_v10 = vld [vmem:[#allocation23 + $0x1cc] ss:$16 sps:$4 sm:$0xff]  }
0x1095   :  { %8683 = vmatpush1.bf16.msra.mxu0 %v13530_v17  ;;  %v15041_v17 = vld [vmem:[#allocation23 + $0x18c] ss:$16 sps:$4 sm:$0xff]  }
0x1096   :  { %8888 = vmatpush1.bf16.msra.mxu1 %v13532_v48  ;;  %8684 = vmatprep.subr.bf16.mxu0 %v13539_v46  ;;  %v15036_v48 = vld [vmem:[#allocation23 + $0x180] ss:$16 sps:$4 sm:$0xff]   ;;  %v15039_v46 = vld [vmem:[#allocation23 + $0x188] ss:$16 sps:$4 sm:$0xff]  }
0x1097   :  { %8889 = vmatprep.subr.bf16.mxu1 %v13541_v47  ;;  %v15044_v47 = vld [vmem:[#allocation23 + $0x1a4] ss:$16 sps:$4 sm:$0xff]  }
0x1099   :  { %8685 = vmatpush1.bf16.msra.mxu0 %v13538_v3  ;;  %v15042_v3 = vld [vmem:[#allocation23 + $0x1a0] ss:$16 sps:$4 sm:$0xff]  }
0x109a   :  { %8890 = vmatpush1.bf16.msra.mxu1 %v13540_v1  ;;  %10490 = vmatprep.subr.bf16.mxu0 %v14966_v55  ;;  %v19350_v1 = vsub.s32 0, %v19331_v52  ;;  %v15045_v55 = vld [vmem:[#allocation23 + $0x1a8] ss:$16 sps:$4 sm:$0xff]  }
0x109b   :  { %10654 = vmatprep.subr.bf16.mxu1 %v14969_v15  ;;  %v15050_v15 = vld [vmem:[#allocation23 + $0x1c4] ss:$16 sps:$4 sm:$0xff]  }
0x109c   :  { %13544 = vmatmul.mubr.msk.bf16.vlgmr.msra.gmra.mrb[224].mxu0 %vm1095_vm6, %v19303_v0 }
0x109d   :  { %13545 = vmatmul.mubr.msk.bf16.vlgmr.msra.gmra.mrb[200].mxu1 %vm1095_vm6, %v19303_v0  ;;  %10491 = vmatpush1.bf16.msra.mxu0 %v14964_v8  ;;  %v14982_v0 = vld [vmem:[#allocation23 + $0x60] ss:$16 sps:$4 sm:$0xff]   ;;  %v19353_v8 = vsub.s32 3, %v19331_v52 }
0x109e   :  { %10522 = vmatprep.mubr.bf16.mxu0 %v8925_v41  ;;  %10655 = vmatpush1.bf16.msra.mxu1 %v14967_v20  ;;  %v15048_v20 = vld [vmem:[#allocation23 + $0x1c0] ss:$16 sps:$4 sm:$0xff]  }
0x109f   :  { %10686 = vmatprep.mubr.bf16.mxu1 %v8925_v41  ;;  %10492 = vmatprep.subr.bf16.mxu0 %v14972_v58  ;;  %v5345_v58 = vrot.slane %v19340_v14, %v19350_v1  ;;  %v15051_v41 = vld [vmem:[#allocation23 + $0x1c8] ss:$16 sps:$4 sm:$0xff]  }
0x10a0   :  { %10656 = vmatprep.subr.bf16.mxu1 %v14975_v26  ;;  %v15056_v26 = vld [vmem:[#allocation23 + $0x1e4] ss:$16 sps:$4 sm:$0xff]  }
0x10a1   :  { %10493 = vmatpush1.bf16.msra.mxu0 %v14970_v40  ;;  %v15059_v40 = vld [vmem:[#allocation23 + $0x1ec] ss:$16 sps:$4 sm:$0xff]  }
0x10a2   :  { %10657 = vmatpush1.bf16.msra.mxu1 %v14973_v22  ;;  %10494 = vmatprep.subr.bf16.mxu0 %v14978_v9  ;;  %v5357_v22 = vrot.slane %v19340_v14, %v19353_v8  ;;  %v15054_v9 = vld [vmem:[#allocation23 + $0x1e0] ss:$16 sps:$4 sm:$0xff]  }
0x10a3   :  { %10658 = vmatprep.subr.bf16.mxu1 %v14981_v34  ;;  %v14776_v34 = vadd.f32 %v19323_v38, %v5345_v58  ;;  %v15066_v38 = vld [vmem:[#allocation23 + $0x220] ss:$16 sps:$4 sm:$0xff]   ;;  %v15129_v58 = vld [vmem:[#allocation23 + $0x368] ss:$16 sps:$4 sm:$0xff]  }
0x10a5   :  { %10495 = vmatpush1.bf16.msra.mxu0 %v14976_v18  ;;  %v15057_v18 = vld [vmem:[#allocation23 + $0x1e8] ss:$16 sps:$4 sm:$0xff]  }
0x10a6   :  { %10659 = vmatpush1.bf16.msra.mxu1 %v14979_v43  ;;  %10496 = vmatprep.subr.bf16.mxu0 %v14984_v61  ;;  %v15062_v43 = vld [vmem:[#allocation23 + $0x204] ss:$16 sps:$4 sm:$0xff]   ;;  %v15065_v61 = vld [vmem:[#allocation23 + $0x20c] ss:$16 sps:$4 sm:$0xff]  }
0x10a7   :  { %10660 = vmatprep.subr.bf16.mxu1 %v14987_v60  ;;  %v14779_v60 = vadd.f32 %v19329_v62, %v5357_v22  ;;  %v15077_v62 = vld [vmem:[#allocation23 + $0x24c] ss:$16 sps:$4 sm:$0xff]   ;;  %v15135_v22 = vld [vmem:[#allocation23 + $0x388] ss:$16 sps:$4 sm:$0xff]  }
0x10a9   :  { %10497 = vmatpush1.bf16.msra.mxu0 %v14982_v0  ;;  %v15060_v0 = vld [vmem:[#allocation23 + $0x200] ss:$16 sps:$4 sm:$0xff]  }
0x10aa   :  { %10661 = vmatpush1.bf16.msra.mxu1 %v14985_v2  ;;  %10498 = vmatprep.subr.bf16.mxu0 %v14990_v30  ;;  %v8924_v2 = vpack.c.bf16 %v14776_v34, %v14776_v34  ;;  %v15063_v30 = vld [vmem:[#allocation23 + $0x208] ss:$16 sps:$4 sm:$0xff]   ;;  %v15143_v34 = vld [vmem:[#allocation23 + $0x3ac] ss:$16 sps:$4 sm:$0xff]  }
0x10ab   :  { %10662 = vmatprep.subr.bf16.mxu1 %v14993_v25  ;;  %v15068_v25 = vld [vmem:[#allocation23 + $0x224] ss:$16 sps:$4 sm:$0xff]  }
0x10ad   :  { %10499 = vmatpush1.bf16.msra.mxu0 %v14988_v19  ;;  %v8927_v19 = vpack.c.bf16 %v14779_v60, %v14779_v60  ;;  %v15146_v60 = vld [vmem:[#allocation23 + $0x3c4] ss:$16 sps:$4 sm:$0xff]  }
0x10ae   :  { %10663 = vmatpush1.bf16.msra.mxu1 %v14991_v12  ;;  %10500 = vmatprep.subr.bf16.mxu0 %v14996_v54  ;;  %v15071_v12 = vld [vmem:[#allocation23 + $0x22c] ss:$16 sps:$4 sm:$0xff]   ;;  %v15069_v54 = vld [vmem:[#allocation23 + $0x228] ss:$16 sps:$4 sm:$0xff]  }
0x10af   :  { %10664 = vmatprep.subr.bf16.mxu1 %v14999_v32  ;;  %v15074_v32 = vld [vmem:[#allocation23 + $0x244] ss:$16 sps:$4 sm:$0xff]  }
0x10b1   :  { %10501 = vmatpush1.bf16.msra.mxu0 %v14994_v45  ;;  %v15072_v45 = vld [vmem:[#allocation23 + $0x240] ss:$16 sps:$4 sm:$0xff]  }
0x10b2   :  { %10665 = vmatpush1.bf16.msra.mxu1 %v14997_v56  ;;  %10502 = vmatprep.subr.bf16.mxu0 %v15002_v44  ;;  %v15075_v56 = vld [vmem:[#allocation23 + $0x248] ss:$16 sps:$4 sm:$0xff]   ;;  %v15080_v44 = vld [vmem:[#allocation23 + $0x264] ss:$16 sps:$4 sm:$0xff]  }
0x10b3   :  { %10666 = vmatprep.subr.bf16.mxu1 %v15005_v35  ;;  %v15083_v35 = vld [vmem:[#allocation23 + $0x26c] ss:$16 sps:$4 sm:$0xff]  }
0x10b5   :  { %10503 = vmatpush1.bf16.msra.mxu0 %v15000_v39  ;;  %v15078_v39 = vld [vmem:[#allocation23 + $0x260] ss:$16 sps:$4 sm:$0xff]  }
0x10b6   :  { %10667 = vmatpush1.bf16.msra.mxu1 %v15003_v4  ;;  %10504 = vmatprep.subr.bf16.mxu0 %v15008_v49  ;;  %v15081_v4 = vld [vmem:[#allocation23 + $0x268] ss:$16 sps:$4 sm:$0xff]   ;;  %v15086_v49 = vld [vmem:[#allocation23 + $0x284] ss:$16 sps:$4 sm:$0xff]  }
0x10b7   :  { %10668 = vmatprep.subr.bf16.mxu1 %v15011_v6  ;;  %v15089_v6 = vld [vmem:[#allocation23 + $0x28c] ss:$16 sps:$4 sm:$0xff]  }
0x10b9   :  { %10505 = vmatpush1.bf16.msra.mxu0 %v15006_v5  ;;  %v15084_v5 = vld [vmem:[#allocation23 + $0x280] ss:$16 sps:$4 sm:$0xff]  }
0x10ba   :  { %10669 = vmatpush1.bf16.msra.mxu1 %v15009_v33  ;;  %10506 = vmatprep.subr.bf16.mxu0 %v15014_v24  ;;  %v15087_v33 = vld [vmem:[#allocation23 + $0x288] ss:$16 sps:$4 sm:$0xff]   ;;  %v15092_v24 = vld [vmem:[#allocation23 + $0x2a4] ss:$16 sps:$4 sm:$0xff]  }
0x10bb   :  { %10670 = vmatprep.subr.bf16.mxu1 %v15017_v31  ;;  %v15095_v31 = vld [vmem:[#allocation23 + $0x2ac] ss:$16 sps:$4 sm:$0xff]  }
0x10bd   :  { %10507 = vmatpush1.bf16.msra.mxu0 %v15012_v63  ;;  %v15090_v63 = vld [vmem:[#allocation23 + $0x2a0] ss:$16 sps:$4 sm:$0xff]  }
0x10be   :  { %10671 = vmatpush1.bf16.msra.mxu1 %v15015_v7  ;;  %10508 = vmatprep.subr.bf16.mxu0 %v15020_v27  ;;  %v15093_v7 = vld [vmem:[#allocation23 + $0x2a8] ss:$16 sps:$4 sm:$0xff]   ;;  %v15098_v27 = vld [vmem:[#allocation23 + $0x2c4] ss:$16 sps:$4 sm:$0xff]  }
0x10bf   :  { %10672 = vmatprep.subr.bf16.mxu1 %v15023_v37  ;;  %v15101_v37 = vld [vmem:[#allocation23 + $0x2cc] ss:$16 sps:$4 sm:$0xff]  }
0x10c1   :  { %10509 = vmatpush1.bf16.msra.mxu0 %v15018_v59  ;;  %v15096_v59 = vld [vmem:[#allocation23 + $0x2c0] ss:$16 sps:$4 sm:$0xff]  }
0x10c2   :  { %10673 = vmatpush1.bf16.msra.mxu1 %v15021_v57  ;;  %10510 = vmatprep.subr.bf16.mxu0 %v15026_v21  ;;  %v15099_v57 = vld [vmem:[#allocation23 + $0x2c8] ss:$16 sps:$4 sm:$0xff]   ;;  %v15104_v21 = vld [vmem:[#allocation23 + $0x2e4] ss:$16 sps:$4 sm:$0xff]  }
0x10c3   :  { %10674 = vmatprep.subr.bf16.mxu1 %v15029_v50  ;;  %v15107_v50 = vld [vmem:[#allocation23 + $0x2ec] ss:$16 sps:$4 sm:$0xff]  }
0x10c5   :  { %10511 = vmatpush1.bf16.msra.mxu0 %v15024_v42  ;;  %v15102_v42 = vld [vmem:[#allocation23 + $0x2e0] ss:$16 sps:$4 sm:$0xff]  }
0x10c6   :  { %10675 = vmatpush1.bf16.msra.mxu1 %v15027_v36  ;;  %10512 = vmatprep.subr.bf16.mxu0 %v15032_v53  ;;  %v15105_v36 = vld [vmem:[#allocation23 + $0x2e8] ss:$16 sps:$4 sm:$0xff]   ;;  %v15110_v53 = vld [vmem:[#allocation23 + $0x304] ss:$16 sps:$4 sm:$0xff]  }
0x10c7   :  { %10676 = vmatprep.subr.bf16.mxu1 %v15035_v29  ;;  %v15113_v29 = vld [vmem:[#allocation23 + $0x30c] ss:$16 sps:$4 sm:$0xff]  }
0x10c9   :  { %10513 = vmatpush1.bf16.msra.mxu0 %v15030_v23  ;;  %v15108_v23 = vld [vmem:[#allocation23 + $0x300] ss:$16 sps:$4 sm:$0xff]  }
0x10ca   :  { %10677 = vmatpush1.bf16.msra.mxu1 %v15033_v13  ;;  %10514 = vmatprep.subr.bf16.mxu0 %v15038_v28  ;;  %v15111_v13 = vld [vmem:[#allocation23 + $0x308] ss:$16 sps:$4 sm:$0xff]   ;;  %v15116_v28 = vld [vmem:[#allocation23 + $0x324] ss:$16 sps:$4 sm:$0xff]  }
0x10cb   :  { %10678 = vmatprep.subr.bf16.mxu1 %v15041_v17  ;;  %v15119_v17 = vld [vmem:[#allocation23 + $0x32c] ss:$16 sps:$4 sm:$0xff]  }
0x10cd   :  { %10515 = vmatpush1.bf16.msra.mxu0 %v15036_v48  ;;  %v15114_v48 = vld [vmem:[#allocation23 + $0x320] ss:$16 sps:$4 sm:$0xff]  }
0x10ce   :  { %10679 = vmatpush1.bf16.msra.mxu1 %v15039_v46  ;;  %10516 = vmatprep.subr.bf16.mxu0 %v15044_v47  ;;  %v15117_v46 = vld [vmem:[#allocation23 + $0x328] ss:$16 sps:$4 sm:$0xff]   ;;  %v15122_v47 = vld [vmem:[#allocation23 + $0x344] ss:$16 sps:$4 sm:$0xff]  }
0x10cf   :  { %10680 = vmatprep.subr.bf16.mxu1 %v15047_v11  ;;  %v15125_v11 = vld [vmem:[#allocation23 + $0x34c] ss:$16 sps:$4 sm:$0xff]  }
0x10d1   :  { %10517 = vmatpush1.bf16.msra.mxu0 %v15042_v3  ;;  %v15120_v3 = vld [vmem:[#allocation23 + $0x340] ss:$16 sps:$4 sm:$0xff]  }
0x10d2   :  { %10681 = vmatpush1.bf16.msra.mxu1 %v15045_v55  ;;  %10518 = vmatprep.subr.bf16.mxu0 %v15050_v15  ;;  %v15123_v55 = vld [vmem:[#allocation23 + $0x348] ss:$16 sps:$4 sm:$0xff]   ;;  %v15128_v15 = vld [vmem:[#allocation23 + $0x364] ss:$16 sps:$4 sm:$0xff]  }
0x10d3   :  { %10682 = vmatprep.subr.bf16.mxu1 %v15053_v10  ;;  %v15131_v10 = vld [vmem:[#allocation23 + $0x36c] ss:$16 sps:$4 sm:$0xff]  }
0x10d5   :  { %10519 = vmatpush1.bf16.msra.mxu0 %v15048_v20  ;;  %v15126_v20 = vld [vmem:[#allocation23 + $0x360] ss:$16 sps:$4 sm:$0xff]  }
0x10d6   :  { %10683 = vmatpush1.bf16.msra.mxu1 %v15051_v41  ;;  %10520 = vmatprep.subr.bf16.mxu0 %v15056_v26  ;;  %v15134_v41 = vld [vmem:[#allocation23 + $0x384] ss:$16 sps:$4 sm:$0xff]   ;;  %v15137_v26 = vld [vmem:[#allocation23 + $0x38c] ss:$16 sps:$4 sm:$0xff]  }
0x10d7   :  { %10684 = vmatprep.subr.bf16.mxu1 %v15059_v40  ;;  %v15132_v40 = vld [vmem:[#allocation23 + $0x380] ss:$16 sps:$4 sm:$0xff]  }
0x10d9   :  { %10521 = vmatpush1.bf16.msra.mxu0 %v15054_v9  ;;  %v15140_v9 = vld [vmem:[#allocation23 + $0x3a4] ss:$16 sps:$4 sm:$0xff]  }
0x10da   :  { %10685 = vmatpush1.bf16.msra.mxu1 %v15057_v18  ;;  %10531 = vmatprep.subr.bf16.mxu0 %v15062_v43  ;;  %v15138_v18 = vld [vmem:[#allocation23 + $0x3a0] ss:$16 sps:$4 sm:$0xff]   ;;  %v19362_v43 = vsub.s32 2, %v19331_v52 }
0x10db   :  { %10695 = vmatprep.subr.bf16.mxu1 %v15065_v61  ;;  %v15141_v61 = vld [vmem:[#allocation23 + $0x3a8] ss:$16 sps:$4 sm:$0xff]  }
0x10dc   :  { %10523 = vmatmul.mubr.bf16.vlgmr.msra.gmra.mrb[228].mxu0 %v8924_v2 }
0x10dd   :  { %10687 = vmatmul.mubr.bf16.vlgmr.msra.gmra.mrb[204].mxu1 %v8924_v2  ;;  %10532 = vmatpush1.bf16.msra.mxu0 %v15060_v0  ;;  %v15149_v0 = vld [vmem:[#allocation23 + $0x3cc] ss:$16 sps:$4 sm:$0xff]   ;;  %v15144_v2 = vld [vmem:[#allocation23 + $0x3c0] ss:$16 sps:$4 sm:$0xff]  }
0x10de   :  { %10563 = vmatprep.mubr.bf16.mxu0 %v8927_v19  ;;  %10696 = vmatpush1.bf16.msra.mxu1 %v15063_v30  ;;  %v5353_v30 = vrot.slane %v19340_v14, %v19362_v43 }
0x10df   :  { %10727 = vmatprep.mubr.bf16.mxu1 %v8927_v19  ;;  %10533 = vmatprep.subr.bf16.mxu0 %v15068_v25  ;;  %v15147_v25 = vld [vmem:[#allocation23 + $0x3c8] ss:$16 sps:$4 sm:$0xff]   ;;  %v15152_v19 = vld [vmem:[#allocation23 + $0x3e4] ss:$16 sps:$4 sm:$0xff]  }
0x10e0   :  { %10697 = vmatprep.subr.bf16.mxu1 %v15071_v12  ;;  %v15155_v12 = vld [vmem:[#allocation23 + $0x3ec] ss:$16 sps:$4 sm:$0xff]  }
0x10e1   :  { %10534 = vmatpush1.bf16.msra.mxu0 %v15066_v38  ;;  %v15150_v38 = vld [vmem:[#allocation23 + $0x3e0] ss:$16 sps:$4 sm:$0xff]  }
0x10e2   :  { %10698 = vmatpush1.bf16.msra.mxu1 %v15069_v54  ;;  %10535 = vmatprep.subr.bf16.mxu0 %v15074_v32  ;;  %v14778_v54 = vadd.f32 %v19325_v51, %v5353_v30  ;;  %v15153_v32 = vld [vmem:[#allocation23 + $0x3e8] ss:$16 sps:$4 sm:$0xff]   ;;  %v15228_v30 = vld [vmem:[#allocation23 + $0x580] ss:$16 sps:$4 sm:$0xff]  }
0x10e3   :  { %10699 = vmatprep.subr.bf16.mxu1 %v15077_v62  ;;  %v15158_v62 = vld [vmem:[#allocation23 + $0x404] ss:$16 sps:$4 sm:$0xff]   ;;  %v15165_v51 = vld [vmem:[#allocation23 + $0x428] ss:$16 sps:$4 sm:$0xff]  }
0x10e5   :  { %10536 = vmatpush1.bf16.msra.mxu0 %v15072_v45  ;;  %v15161_v45 = vld [vmem:[#allocation23 + $0x40c] ss:$16 sps:$4 sm:$0xff]  }
0x10e6   :  { %10700 = vmatpush1.bf16.msra.mxu1 %v15075_v56  ;;  %10537 = vmatprep.subr.bf16.mxu0 %v15080_v44  ;;  %v15156_v56 = vld [vmem:[#allocation23 + $0x400] ss:$16 sps:$4 sm:$0xff]   ;;  %v8926_v44 = vpack.c.bf16 %v14778_v54, %v14778_v54  ;;  %v15237_v54 = vld [vmem:[#allocation23 + $0x5a8] ss:$16 sps:$4 sm:$0xff]  }
0x10e7   :  { %10701 = vmatprep.subr.bf16.mxu1 %v15083_v35  ;;  %v15159_v35 = vld [vmem:[#allocation23 + $0x408] ss:$16 sps:$4 sm:$0xff]  }
0x10e9   :  { %10538 = vmatpush1.bf16.msra.mxu0 %v15078_v39  ;;  %v15164_v39 = vld [vmem:[#allocation23 + $0x424] ss:$16 sps:$4 sm:$0xff]  }
0x10ea   :  { %10702 = vmatpush1.bf16.msra.mxu1 %v15081_v4  ;;  %10539 = vmatprep.subr.bf16.mxu0 %v15086_v49  ;;  %v15167_v4 = vld [vmem:[#allocation23 + $0x42c] ss:$16 sps:$4 sm:$0xff]   ;;  %v15162_v49 = vld [vmem:[#allocation23 + $0x420] ss:$16 sps:$4 sm:$0xff]  }
0x10eb   :  { %10703 = vmatprep.subr.bf16.mxu1 %v15089_v6  ;;  %v15170_v6 = vld [vmem:[#allocation23 + $0x444] ss:$16 sps:$4 sm:$0xff]  }
0x10ed   :  { %10540 = vmatpush1.bf16.msra.mxu0 %v15084_v5  ;;  %v15173_v5 = vld [vmem:[#allocation23 + $0x44c] ss:$16 sps:$4 sm:$0xff]  }
0x10ee   :  { %10704 = vmatpush1.bf16.msra.mxu1 %v15087_v33  ;;  %10541 = vmatprep.subr.bf16.mxu0 %v15092_v24  ;;  %v15168_v33 = vld [vmem:[#allocation23 + $0x440] ss:$16 sps:$4 sm:$0xff]   ;;  %v15171_v24 = vld [vmem:[#allocation23 + $0x448] ss:$16 sps:$4 sm:$0xff]  }
0x10ef   :  { %10705 = vmatprep.subr.bf16.mxu1 %v15095_v31  ;;  %v15176_v31 = vld [vmem:[#allocation23 + $0x464] ss:$16 sps:$4 sm:$0xff]  }
0x10f1   :  { %10542 = vmatpush1.bf16.msra.mxu0 %v15090_v63  ;;  %v15179_v63 = vld [vmem:[#allocation23 + $0x46c] ss:$16 sps:$4 sm:$0xff]  }
0x10f2   :  { %10706 = vmatpush1.bf16.msra.mxu1 %v15093_v7  ;;  %10543 = vmatprep.subr.bf16.mxu0 %v15098_v27  ;;  %v15174_v7 = vld [vmem:[#allocation23 + $0x460] ss:$16 sps:$4 sm:$0xff]   ;;  %v15177_v27 = vld [vmem:[#allocation23 + $0x468] ss:$16 sps:$4 sm:$0xff]  }
0x10f3   :  { %10707 = vmatprep.subr.bf16.mxu1 %v15101_v37  ;;  %v15182_v37 = vld [vmem:[#allocation23 + $0x484] ss:$16 sps:$4 sm:$0xff]  }
0x10f5   :  { %10544 = vmatpush1.bf16.msra.mxu0 %v15096_v59  ;;  %v15185_v59 = vld [vmem:[#allocation23 + $0x48c] ss:$16 sps:$4 sm:$0xff]  }
0x10f6   :  { %10708 = vmatpush1.bf16.msra.mxu1 %v15099_v57  ;;  %10545 = vmatprep.subr.bf16.mxu0 %v15104_v21  ;;  %v15180_v57 = vld [vmem:[#allocation23 + $0x480] ss:$16 sps:$4 sm:$0xff]   ;;  %v15183_v21 = vld [vmem:[#allocation23 + $0x488] ss:$16 sps:$4 sm:$0xff]  }
0x10f7   :  { %10709 = vmatprep.subr.bf16.mxu1 %v15107_v50  ;;  %v15188_v50 = vld [vmem:[#allocation23 + $0x4a4] ss:$16 sps:$4 sm:$0xff]  }
0x10f9   :  { %10546 = vmatpush1.bf16.msra.mxu0 %v15102_v42  ;;  %v15191_v42 = vld [vmem:[#allocation23 + $0x4ac] ss:$16 sps:$4 sm:$0xff]  }
0x10fa   :  { %10710 = vmatpush1.bf16.msra.mxu1 %v15105_v36  ;;  %10547 = vmatprep.subr.bf16.mxu0 %v15110_v53  ;;  %v15186_v36 = vld [vmem:[#allocation23 + $0x4a0] ss:$16 sps:$4 sm:$0xff]   ;;  %v15189_v53 = vld [vmem:[#allocation23 + $0x4a8] ss:$16 sps:$4 sm:$0xff]  }
0x10fb   :  { %10711 = vmatprep.subr.bf16.mxu1 %v15113_v29  ;;  %v15194_v29 = vld [vmem:[#allocation23 + $0x4c4] ss:$16 sps:$4 sm:$0xff]  }
0x10fd   :  { %10548 = vmatpush1.bf16.msra.mxu0 %v15108_v23  ;;  %v15197_v23 = vld [vmem:[#allocation23 + $0x4cc] ss:$16 sps:$4 sm:$0xff]  }
0x10fe   :  { %10712 = vmatpush1.bf16.msra.mxu1 %v15111_v13  ;;  %10549 = vmatprep.subr.bf16.mxu0 %v15116_v28  ;;  %v15192_v13 = vld [vmem:[#allocation23 + $0x4c0] ss:$16 sps:$4 sm:$0xff]   ;;  %v15195_v28 = vld [vmem:[#allocation23 + $0x4c8] ss:$16 sps:$4 sm:$0xff]  }
0x10ff   :  { %10713 = vmatprep.subr.bf16.mxu1 %v15119_v17  ;;  %v15200_v17 = vld [vmem:[#allocation23 + $0x4e4] ss:$16 sps:$4 sm:$0xff]  }
0x1101   :  { %10550 = vmatpush1.bf16.msra.mxu0 %v15114_v48  ;;  %v15203_v48 = vld [vmem:[#allocation23 + $0x4ec] ss:$16 sps:$4 sm:$0xff]  }
0x1102   :  { %10714 = vmatpush1.bf16.msra.mxu1 %v15117_v46  ;;  %10551 = vmatprep.subr.bf16.mxu0 %v15122_v47  ;;  %v15198_v46 = vld [vmem:[#allocation23 + $0x4e0] ss:$16 sps:$4 sm:$0xff]   ;;  %v15201_v47 = vld [vmem:[#allocation23 + $0x4e8] ss:$16 sps:$4 sm:$0xff]  }
0x1103   :  { %10715 = vmatprep.subr.bf16.mxu1 %v15125_v11  ;;  %v15206_v11 = vld [vmem:[#allocation23 + $0x504] ss:$16 sps:$4 sm:$0xff]  }
0x1105   :  { %10552 = vmatpush1.bf16.msra.mxu0 %v15120_v3  ;;  %v15209_v3 = vld [vmem:[#allocation23 + $0x50c] ss:$16 sps:$4 sm:$0xff]  }
0x1106   :  { %10716 = vmatpush1.bf16.msra.mxu1 %v15123_v55  ;;  %10553 = vmatprep.subr.bf16.mxu0 %v15128_v15  ;;  %v15204_v55 = vld [vmem:[#allocation23 + $0x500] ss:$16 sps:$4 sm:$0xff]   ;;  %v15207_v15 = vld [vmem:[#allocation23 + $0x508] ss:$16 sps:$4 sm:$0xff]  }
0x1107   :  { %10717 = vmatprep.subr.bf16.mxu1 %v15131_v10  ;;  %v15212_v10 = vld [vmem:[#allocation23 + $0x524] ss:$16 sps:$4 sm:$0xff]  }
0x1109   :  { %10554 = vmatpush1.bf16.msra.mxu0 %v15126_v20  ;;  %v15215_v20 = vld [vmem:[#allocation23 + $0x52c] ss:$16 sps:$4 sm:$0xff]  }
0x110a   :  { %10718 = vmatpush1.bf16.msra.mxu1 %v15129_v58  ;;  %10555 = vmatprep.subr.bf16.mxu0 %v15134_v41  ;;  %v15210_v58 = vld [vmem:[#allocation23 + $0x520] ss:$16 sps:$4 sm:$0xff]   ;;  %v15213_v41 = vld [vmem:[#allocation23 + $0x528] ss:$16 sps:$4 sm:$0xff]  }
0x110b   :  { %10719 = vmatprep.subr.bf16.mxu1 %v15137_v26  ;;  %v15218_v26 = vld [vmem:[#allocation23 + $0x544] ss:$16 sps:$4 sm:$0xff]  }
0x110d   :  { %10556 = vmatpush1.bf16.msra.mxu0 %v15132_v40  ;;  %v15221_v40 = vld [vmem:[#allocation23 + $0x54c] ss:$16 sps:$4 sm:$0xff]  }
0x110e   :  { %10720 = vmatpush1.bf16.msra.mxu1 %v15135_v22  ;;  %10557 = vmatprep.subr.bf16.mxu0 %v15140_v9  ;;  %v15216_v22 = vld [vmem:[#allocation23 + $0x540] ss:$16 sps:$4 sm:$0xff]   ;;  %v15219_v9 = vld [vmem:[#allocation23 + $0x548] ss:$16 sps:$4 sm:$0xff]  }
0x110f   :  { %10721 = vmatprep.subr.bf16.mxu1 %v15143_v34  ;;  %v15224_v34 = vld [vmem:[#allocation23 + $0x564] ss:$16 sps:$4 sm:$0xff]  }
0x1111   :  { %10558 = vmatpush1.bf16.msra.mxu0 %v15138_v18  ;;  %v15227_v18 = vld [vmem:[#allocation23 + $0x56c] ss:$16 sps:$4 sm:$0xff]  }
0x1112   :  { %10722 = vmatpush1.bf16.msra.mxu1 %v15141_v61  ;;  %10559 = vmatprep.subr.bf16.mxu0 %v15146_v60  ;;  %v15222_v61 = vld [vmem:[#allocation23 + $0x560] ss:$16 sps:$4 sm:$0xff]   ;;  %v15225_v60 = vld [vmem:[#allocation23 + $0x568] ss:$16 sps:$4 sm:$0xff]  }
0x1113   :  { %10723 = vmatprep.subr.bf16.mxu1 %v15149_v0  ;;  %v15230_v0 = vld [vmem:[#allocation23 + $0x584] ss:$16 sps:$4 sm:$0xff]  }
0x1115   :  { %10560 = vmatpush1.bf16.msra.mxu0 %v15144_v2  ;;  %v15233_v2 = vld [vmem:[#allocation23 + $0x58c] ss:$16 sps:$4 sm:$0xff]  }
0x1116   :  { %10724 = vmatpush1.bf16.msra.mxu1 %v15147_v25  ;;  %10561 = vmatprep.subr.bf16.mxu0 %v15152_v19  ;;  %v15231_v25 = vld [vmem:[#allocation23 + $0x588] ss:$16 sps:$4 sm:$0xff]   ;;  %v15236_v19 = vld [vmem:[#allocation23 + $0x5a4] ss:$16 sps:$4 sm:$0xff]  }
0x1117   :  { %10725 = vmatprep.subr.bf16.mxu1 %v15155_v12  ;;  %v15239_v12 = vld [vmem:[#allocation23 + $0x5ac] ss:$16 sps:$4 sm:$0xff]  }
0x1119   :  { %10562 = vmatpush1.bf16.msra.mxu0 %v15150_v38  ;;  %v15234_v38 = vld [vmem:[#allocation23 + $0x5a0] ss:$16 sps:$4 sm:$0xff]  }
0x111a   :  { %10726 = vmatpush1.bf16.msra.mxu1 %v15153_v32  ;;  %10572 = vmatprep.subr.bf16.mxu0 %v15158_v62  ;;  %v15242_v32 = vld [vmem:[#allocation23 + $0x5c4] ss:$16 sps:$4 sm:$0xff]   ;;  %v15245_v62 = vld [vmem:[#allocation23 + $0x5cc] ss:$16 sps:$4 sm:$0xff]  }
0x111b   :  { %10736 = vmatprep.subr.bf16.mxu1 %v15161_v45  ;;  %v15240_v45 = vld [vmem:[#allocation23 + $0x5c0] ss:$16 sps:$4 sm:$0xff]  }
0x111c   :  { %10564 = vmatmul.mubr.bf16.vlgmr.msra.gmra.mrb[228].mxu0 %v8926_v44 }
0x111d   :  { %10728 = vmatmul.mubr.bf16.vlgmr.msra.gmra.mrb[204].mxu1 %v8926_v44  ;;  %10573 = vmatpush1.bf16.msra.mxu0 %v15156_v56  ;;  %v15243_v56 = vld [vmem:[#allocation23 + $0x5c8] ss:$16 sps:$4 sm:$0xff]   ;;  %v15248_v44 = vld [vmem:[#allocation23 + $0x5e4] ss:$16 sps:$4 sm:$0xff]  }
0x111e   :  { %10737 = vmatpush1.bf16.msra.mxu1 %v15159_v35  ;;  %10574 = vmatprep.subr.bf16.mxu0 %v15164_v39  ;;  %v15251_v35 = vld [vmem:[#allocation23 + $0x5ec] ss:$16 sps:$4 sm:$0xff]   ;;  %v15246_v39 = vld [vmem:[#allocation23 + $0x5e0] ss:$16 sps:$4 sm:$0xff]  }
0x111f   :  { %10738 = vmatprep.subr.bf16.mxu1 %v15167_v4  ;;  %v15249_v4 = vld [vmem:[#allocation23 + $0x5e8] ss:$16 sps:$4 sm:$0xff]  }
0x1121   :  { %10575 = vmatpush1.bf16.msra.mxu0 %v15162_v49  ;;  %v15254_v49 = vld [vmem:[#allocation23 + $0x604] ss:$16 sps:$4 sm:$0xff]  }
0x1122   :  { %10739 = vmatpush1.bf16.msra.mxu1 %v15165_v51  ;;  %10576 = vmatprep.subr.bf16.mxu0 %v15170_v6  ;;  %v15257_v51 = vld [vmem:[#allocation23 + $0x60c] ss:$16 sps:$4 sm:$0xff]   ;;  %v5360_v6 = vsub.s32 4, %v19331_v52 }
0x1123   :  { %10740 = vmatprep.subr.bf16.mxu1 %v15173_v5  ;;  %v5364_v5 = vsub.s32 5, %v19331_v52 }
0x1125   :  { %10577 = vmatpush1.bf16.msra.mxu0 %v15168_v33  ;;  %v5372_v33 = vsub.s32 7, %v19331_v52 }
0x1126   :  { %10741 = vmatpush1.bf16.msra.mxu1 %v15171_v24  ;;  %10578 = vmatprep.subr.bf16.mxu0 %v15176_v31  ;;  %v5361_v24 = vrot.slane %v19340_v14, %v5360_v6  ;;  %v5365_v31 = vrot.slane %v19340_v14, %v5364_v5 }
0x1127   :  { %10742 = vmatprep.subr.bf16.mxu1 %v15179_v63  ;;  %v5373_v63 = vrot.slane %v19340_v14, %v5372_v33  ;;  %v15263_v14 = vld [vmem:[#allocation23 + $0x62c] ss:$16 sps:$4 sm:$0xff]  }
0x1129   :  { %10579 = vmatpush1.bf16.msra.mxu0 %v15174_v7 }
0x112a   :  { %10743 = vmatpush1.bf16.msra.mxu1 %v15177_v27  ;;  %10580 = vmatprep.subr.bf16.mxu0 %v15182_v37 }
0x112b   :  { %10744 = vmatprep.subr.bf16.mxu1 %v15185_v59 }
0x112d   :  { %10581 = vmatpush1.bf16.msra.mxu0 %v15180_v57 }
0x112e   :  { %10745 = vmatpush1.bf16.msra.mxu1 %v15183_v21  ;;  %10582 = vmatprep.subr.bf16.mxu0 %v15188_v50 }
0x112f   :  { %10746 = vmatprep.subr.bf16.mxu1 %v15191_v42 }
0x1131   :  { %10583 = vmatpush1.bf16.msra.mxu0 %v15186_v36 }
0x1132   :  { %10747 = vmatpush1.bf16.msra.mxu1 %v15189_v53  ;;  %10584 = vmatprep.subr.bf16.mxu0 %v15194_v29 }
0x1133   :  { %10748 = vmatprep.subr.bf16.mxu1 %v15197_v23 }
0x1135   :  { %10585 = vmatpush1.bf16.msra.mxu0 %v15192_v13  ;;  %v15252_v13 = vld [vmem:[#allocation23 + $0x600] ss:$16 sps:$4 sm:$0xff]  }
0x1136   :  { %10749 = vmatpush1.bf16.msra.mxu1 %v15195_v28  ;;  %10586 = vmatprep.subr.bf16.mxu0 %v15200_v17  ;;  %v15255_v28 = vld [vmem:[#allocation23 + $0x608] ss:$16 sps:$4 sm:$0xff]  }
0x1137   :  { %10750 = vmatprep.subr.bf16.mxu1 %v15203_v48  ;;  %v15260_v48 = vld [vmem:[#allocation23 + $0x624] ss:$16 sps:$4 sm:$0xff]  }
0x1139   :  { %10587 = vmatpush1.bf16.msra.mxu0 %v15198_v46 }
0x113a   :  { %10751 = vmatpush1.bf16.msra.mxu1 %v15201_v47  ;;  %10588 = vmatprep.subr.bf16.mxu0 %v15206_v11  ;;  %v15258_v47 = vld [vmem:[#allocation23 + $0x620] ss:$16 sps:$4 sm:$0xff]   ;;  %v15261_v11 = vld [vmem:[#allocation23 + $0x628] ss:$16 sps:$4 sm:$0xff]  }
0x113b   :  { %10752 = vmatprep.subr.bf16.mxu1 %v15209_v3  ;;  %v15266_v3 = vld [vmem:[#allocation23 + $0x644] ss:$16 sps:$4 sm:$0xff]  }
0x113d   :  { %10589 = vmatpush1.bf16.msra.mxu0 %v15204_v55  ;;  %v15269_v55 = vld [vmem:[#allocation23 + $0x64c] ss:$16 sps:$4 sm:$0xff]  }
0x113e   :  { %10753 = vmatpush1.bf16.msra.mxu1 %v15207_v15  ;;  %10590 = vmatprep.subr.bf16.mxu0 %v15212_v10  ;;  %v15264_v15 = vld [vmem:[#allocation23 + $0x640] ss:$16 sps:$4 sm:$0xff]   ;;  %v15267_v10 = vld [vmem:[#allocation23 + $0x648] ss:$16 sps:$4 sm:$0xff]  }
0x113f   :  { %10754 = vmatprep.subr.bf16.mxu1 %v15215_v20  ;;  %v15272_v20 = vld [vmem:[#allocation23 + $0x664] ss:$16 sps:$4 sm:$0xff]  }
0x1141   :  { %10591 = vmatpush1.bf16.msra.mxu0 %v15210_v58  ;;  %v15275_v58 = vld [vmem:[#allocation23 + $0x66c] ss:$16 sps:$4 sm:$0xff]  }
0x1142   :  { %10755 = vmatpush1.bf16.msra.mxu1 %v15213_v41  ;;  %10592 = vmatprep.subr.bf16.mxu0 %v15218_v26  ;;  %v15270_v41 = vld [vmem:[#allocation23 + $0x660] ss:$16 sps:$4 sm:$0xff]   ;;  %v15273_v26 = vld [vmem:[#allocation23 + $0x668] ss:$16 sps:$4 sm:$0xff]  }
0x1143   :  { %10756 = vmatprep.subr.bf16.mxu1 %v15221_v40  ;;  %v15278_v40 = vld [vmem:[#allocation23 + $0x684] ss:$16 sps:$4 sm:$0xff]  }
0x1145   :  { %10593 = vmatpush1.bf16.msra.mxu0 %v15216_v22  ;;  %v15281_v22 = vld [vmem:[#allocation23 + $0x68c] ss:$16 sps:$4 sm:$0xff]  }
0x1146   :  { %10757 = vmatpush1.bf16.msra.mxu1 %v15219_v9  ;;  %10594 = vmatprep.subr.bf16.mxu0 %v15224_v34  ;;  %v15276_v9 = vld [vmem:[#allocation23 + $0x680] ss:$16 sps:$4 sm:$0xff]   ;;  %v15279_v34 = vld [vmem:[#allocation23 + $0x688] ss:$16 sps:$4 sm:$0xff]  }
0x1147   :  { %10758 = vmatprep.subr.bf16.mxu1 %v15227_v18  ;;  %v15284_v18 = vld [vmem:[#allocation23 + $0x6a4] ss:$16 sps:$4 sm:$0xff]  }
0x1149   :  { %10595 = vmatpush1.bf16.msra.mxu0 %v15222_v61  ;;  %v15287_v61 = vld [vmem:[#allocation23 + $0x6ac] ss:$16 sps:$4 sm:$0xff]  }
0x114a   :  { %10759 = vmatpush1.bf16.msra.mxu1 %v15225_v60  ;;  %10596 = vmatprep.subr.bf16.mxu0 %v15230_v0  ;;  %v15282_v60 = vld [vmem:[#allocation23 + $0x6a0] ss:$16 sps:$4 sm:$0xff]   ;;  %v15285_v0 = vld [vmem:[#allocation23 + $0x6a8] ss:$16 sps:$4 sm:$0xff]  }
0x114b   :  { %10760 = vmatprep.subr.bf16.mxu1 %v15233_v2  ;;  %v15290_v2 = vld [vmem:[#allocation23 + $0x6c4] ss:$16 sps:$4 sm:$0xff]  }
0x114d   :  { %10597 = vmatpush1.bf16.msra.mxu0 %v15228_v30  ;;  %v15293_v30 = vld [vmem:[#allocation23 + $0x6cc] ss:$16 sps:$4 sm:$0xff]  }
0x114e   :  { %10761 = vmatpush1.bf16.msra.mxu1 %v15231_v25  ;;  %10598 = vmatprep.subr.bf16.mxu0 %v15236_v19  ;;  %v15288_v25 = vld [vmem:[#allocation23 + $0x6c0] ss:$16 sps:$4 sm:$0xff]   ;;  %v15291_v19 = vld [vmem:[#allocation23 + $0x6c8] ss:$16 sps:$4 sm:$0xff]  }
0x114f   :  { %10762 = vmatprep.subr.bf16.mxu1 %v15239_v12  ;;  %v15296_v12 = vld [vmem:[#allocation23 + $0x6e4] ss:$16 sps:$4 sm:$0xff]  }
0x1151   :  { %10599 = vmatpush1.bf16.msra.mxu0 %v15234_v38  ;;  %v15299_v38 = vld [vmem:[#allocation23 + $0x6ec] ss:$16 sps:$4 sm:$0xff]  }
0x1152   :  { %10763 = vmatpush1.bf16.msra.mxu1 %v15237_v54  ;;  %10600 = vmatprep.subr.bf16.mxu0 %v15242_v32  ;;  %v15294_v54 = vld [vmem:[#allocation23 + $0x6e0] ss:$16 sps:$4 sm:$0xff]   ;;  %v15297_v32 = vld [vmem:[#allocation23 + $0x6e8] ss:$16 sps:$4 sm:$0xff]  }
0x1153   :  { %10764 = vmatprep.subr.bf16.mxu1 %v15245_v62  ;;  %v15302_v62 = vld [vmem:[#allocation23 + $0x704] ss:$16 sps:$4 sm:$0xff]  }
0x1155   :  { %10601 = vmatpush1.bf16.msra.mxu0 %v15240_v45  ;;  %v15305_v45 = vld [vmem:[#allocation23 + $0x70c] ss:$16 sps:$4 sm:$0xff]  }
0x1156   :  { %10765 = vmatpush1.bf16.msra.mxu1 %v15243_v56  ;;  %10602 = vmatprep.subr.bf16.mxu0 %v15248_v44  ;;  %v15300_v56 = vld [vmem:[#allocation23 + $0x700] ss:$16 sps:$4 sm:$0xff]   ;;  %v15303_v44 = vld [vmem:[#allocation23 + $0x708] ss:$16 sps:$4 sm:$0xff]  }
0x1157   :  { %10766 = vmatprep.subr.bf16.mxu1 %v15251_v35  ;;  %v15308_v35 = vld [vmem:[#allocation23 + $0x724] ss:$16 sps:$4 sm:$0xff]  }
0x1159   :  { %10603 = vmatpush1.bf16.msra.mxu0 %v15246_v39  ;;  %v15311_v39 = vld [vmem:[#allocation23 + $0x72c] ss:$16 sps:$4 sm:$0xff]  }
0x115a   :  { %10767 = vmatpush1.bf16.msra.mxu1 %v15249_v4  ;;  %10613 = vmatprep.subr.bf16.mxu0 %v15254_v49  ;;  %v15306_v4 = vld [vmem:[#allocation23 + $0x720] ss:$16 sps:$4 sm:$0xff]   ;;  %v15309_v49 = vld [vmem:[#allocation23 + $0x728] ss:$16 sps:$4 sm:$0xff]  }
0x115b   :  { %10777 = vmatprep.subr.bf16.mxu1 %v15257_v51  ;;  %v15314_v51 = vld [vmem:[#allocation23 + $0x744] ss:$16 sps:$4 sm:$0xff]  }
0x116f   :  { %v8712_v7 = vpop.f32.mrb[224].mxu0 }
0x1170   :  { %v14780_v27 = vadd.f32 %v8712_v7, %v5361_v24  ;;  %v19379_v37 = vpop.f32.mrb[200].mxu1  ;;  %v8714_v59 = vpop.f32.mrb[225].mxu0  ;;  %v15317_v24 = vld [vmem:[#allocation23 + $0x74c] ss:$16 sps:$4 sm:$0xff]   ;;  %v15320_v7 = vld [vmem:[#allocation23 + $0x764] ss:$16 sps:$4 sm:$0xff]  }
0x1171   :  { %v14781_v57 = vadd.f32 %v8714_v59, %v5365_v31  ;;  %v8919_v21 = vpop.f32.mrb[201].mxu1  ;;  %v8716_v50 = vpop.f32.mrb[226].mxu0  ;;  %v15312_v31 = vld [vmem:[#allocation23 + $0x740] ss:$16 sps:$4 sm:$0xff]  }
0x1172   :  { %v14783_v42 = vadd.f32 %v8919_v21, %v5373_v63  ;;  %v8921_v36 = vpop.f32.mrb[202].mxu1  ;;  %v8717_v53 = vpop.f32.mrb[227].mxu0  ;;  %v8928_v17 = vpack.c.bf16 %v14780_v27, %v14780_v27  ;;  %v15315_v63 = vld [vmem:[#allocation23 + $0x748] ss:$16 sps:$4 sm:$0xff]   ;;  %v15323_v27 = vld [vmem:[#allocation23 + $0x76c] ss:$16 sps:$4 sm:$0xff]  }
0x1173   :  { %v8929_v29 = vpack.c.bf16 %v14781_v57, %v14781_v57  ;;  %v8922_v23 = vpop.f32.mrb[203].mxu1  ;;  %v15318_v59 = vld [vmem:[#allocation23 + $0x760] ss:$16 sps:$4 sm:$0xff]   ;;  %v15321_v57 = vld [vmem:[#allocation23 + $0x768] ss:$16 sps:$4 sm:$0xff]  }
0x1174   :  { %v8931_v46 = vpack.c.bf16 %v14783_v42, %v14783_v42  ;;  %v15326_v21 = vld [vmem:[#allocation23 + $0x784] ss:$16 sps:$4 sm:$0xff]   ;;  %v15329_v50 = vld [vmem:[#allocation23 + $0x78c] ss:$16 sps:$4 sm:$0xff]   ;;  %v15324_v42 = vld [vmem:[#allocation23 + $0x780] ss:$16 sps:$4 sm:$0xff]  }
0x1175   :  { %10604 = vmatprep.mubr.bf16.mxu0 %v8929_v29  ;;  %10768 = vmatprep.mubr.bf16.mxu1 %v8929_v29  ;;  %v15327_v36 = vld [vmem:[#allocation23 + $0x788] ss:$16 sps:$4 sm:$0xff]   ;;  %v15332_v53 = vld [vmem:[#allocation23 + $0x7a4] ss:$16 sps:$4 sm:$0xff]   ;;  %v15335_v29 = vld [vmem:[#allocation23 + $0x7ac] ss:$16 sps:$4 sm:$0xff]  }
0x1176   :  { %10605 = vmatmul.mubr.bf16.vlgmr.msra.gmra.mrb[228].mxu0 %v8928_v17  ;;  %10769 = vmatmul.mubr.bf16.vlgmr.msra.gmra.mrb[204].mxu1 %v8928_v17  ;;  %v15330_v23 = vld [vmem:[#allocation23 + $0x7a0] ss:$16 sps:$4 sm:$0xff]   ;;  %v15338_v17 = vld [vmem:[#allocation23 + $0x7c4] ss:$16 sps:$4 sm:$0xff]  }
0x1177   :  { %10614 = vmatpush1.bf16.msra.mxu0 %v15252_v13  ;;  %10778 = vmatpush1.bf16.msra.mxu1 %v15255_v28  ;;  %v15333_v13 = vld [vmem:[#allocation23 + $0x7a8] ss:$16 sps:$4 sm:$0xff]   ;;  %v5368_v28 = vsub.s32 6, %v19331_v52 }
0x1178   :  { %10645 = vmatprep.mubr.bf16.mxu0 %v8931_v46  ;;  %10809 = vmatprep.mubr.bf16.mxu1 %v8931_v46  ;;  %v15339_v46 = vld [vmem:[#allocation23 + $0x7c8] ss:$16 sps:$4 sm:$0xff]  }
0x1179   :  { %10615 = vmatprep.subr.bf16.mxu0 %v15260_v48  ;;  %10779 = vmatprep.subr.bf16.mxu1 %v15263_v14  ;;  %v15341_v48 = vld [vmem:[#allocation23 + $0x7cc] ss:$16 sps:$4 sm:$0xff]   ;;  %v15336_v14 = vld [vmem:[#allocation23 + $0x7c0] ss:$16 sps:$4 sm:$0xff]  }
0x117b   :  { %10616 = vmatpush1.bf16.msra.mxu0 %v15258_v47  ;;  %10780 = vmatpush1.bf16.msra.mxu1 %v15261_v11  ;;  %v15357_v47 = vld [vmem:[#allocation22] sm:$0xff] }
0x117c   :  { %10617 = vmatprep.subr.bf16.mxu0 %v15266_v3  ;;  %10781 = vmatprep.subr.bf16.mxu1 %v15269_v55  ;;  %v5369_v11 = vrot.slane %v15357_v47, %v5368_v28  ;;  %v15344_v3 = vld [vmem:[#allocation23 + $0x7e4] ss:$16 sps:$4 sm:$0xff]   ;;  %v15347_v55 = vld [vmem:[#allocation23 + $0x7ec] ss:$16 sps:$4 sm:$0xff]  }
0x117d   :  { %v10878_v47 = vld [vmem:[#allocation26 + $0x1a0] sm:$0xff] }
0x117f   :  { %10618 = vmatpush1.bf16.msra.mxu0 %v15264_v15  ;;  %10782 = vmatpush1.bf16.msra.mxu1 %v15267_v10  ;;  %v10826_v15 = vld [vmem:[#allocation26] sm:$0xff] }
0x1180   :  { %10619 = vmatprep.subr.bf16.mxu0 %v15272_v20  ;;  %10783 = vmatprep.subr.bf16.mxu1 %v15275_v58  ;;  %v10830_v10 = vld [vmem:[#allocation26 + $0x20] sm:$0xff]  ;;  %v10827_v20 = vld [vmem:[#allocation26 + $0x8] sm:$0xff] }
0x1181   :  { %v10831_v58 = vld [vmem:[#allocation26 + $0x28] sm:$0xff] }
0x1183   :  { %10620 = vmatpush1.bf16.msra.mxu0 %v15270_v41  ;;  %10784 = vmatpush1.bf16.msra.mxu1 %v15273_v26  ;;  %v15342_v41 = vld [vmem:[#allocation23 + $0x7e0] ss:$16 sps:$4 sm:$0xff]   ;;  %v15345_v26 = vld [vmem:[#allocation23 + $0x7e8] ss:$16 sps:$4 sm:$0xff]  }
0x1184   :  { %10621 = vmatprep.subr.bf16.mxu0 %v15278_v40  ;;  %10785 = vmatprep.subr.bf16.mxu1 %v15281_v22  ;;  %v14782_v40 = vadd.f32 %v19379_v37, %v5369_v11  ;;  %v13803_v22 = vcombine.high %v10826_v15, %v10830_v10  ;;  %v10843_v37 = vld [vmem:[#allocation26 + $0x88] sm:$0xff] }
0x1185   :  { %v10875_v11 = vld [vmem:[#allocation26 + $0x188] sm:$0xff] }
0x1187   :  { %10622 = vmatpush1.bf16.msra.mxu0 %v15276_v9  ;;  %10786 = vmatpush1.bf16.msra.mxu1 %v15279_v34  ;;  %v13805_v9 = vcombine.high %v10827_v20, %v10831_v58  ;;  %v10834_v34 = vld [vmem:[#allocation26 + $0x40] sm:$0xff] }
0x1188   :  { %10623 = vmatprep.subr.bf16.mxu0 %v15284_v18  ;;  %10787 = vmatprep.subr.bf16.mxu1 %v15287_v61  ;;  %v10838_v18 = vld [vmem:[#allocation26 + $0x60] sm:$0xff]  ;;  %v10835_v61 = vld [vmem:[#allocation26 + $0x48] sm:$0xff] }
0x118b   :  { %10624 = vmatpush1.bf16.msra.mxu0 %v15282_v60  ;;  %10788 = vmatpush1.bf16.msra.mxu1 %v15285_v0  ;;  %v10839_v60 = vld [vmem:[#allocation26 + $0x68] sm:$0xff]  ;;  %v13802_v0 = vcombine.low %v10826_v15, %v10830_v10 }
0x118c   :  { %10625 = vmatprep.subr.bf16.mxu0 %v15290_v2  ;;  %10789 = vmatprep.subr.bf16.mxu1 %v15293_v30  ;;  %v13804_v2 = vcombine.low %v10827_v20, %v10831_v58  ;;  %v8930_v30 = vpack.c.bf16 %v14782_v40, %v14782_v40  ;;  %v10882_v58 = vld [vmem:[#allocation26 + $0x1c0] sm:$0xff]  ;;  %v10887_v40 = vld [vmem:[#allocation26 + $0x1e8] sm:$0xff] }
0x118f   :  { %10626 = vmatpush1.bf16.msra.mxu0 %v15288_v25  ;;  %10790 = vmatpush1.bf16.msra.mxu1 %v15291_v19  ;;  %v13811_v25 = vcombine.high %v10834_v34, %v10838_v18  ;;  %v13813_v19 = vcombine.high %v10835_v61, %v10839_v60 }
0x1190   :  { %10627 = vmatprep.subr.bf16.mxu0 %v15296_v12  ;;  %10791 = vmatprep.subr.bf16.mxu1 %v15299_v38  ;;  %v10842_v12 = vld [vmem:[#allocation26 + $0x80] sm:$0xff] }
0x1191   :  { %v10846_v38 = vld [vmem:[#allocation26 + $0xa0] sm:$0xff] }
0x1193   :  { %10628 = vmatpush1.bf16.msra.mxu0 %v15294_v54  ;;  %10792 = vmatpush1.bf16.msra.mxu1 %v15297_v32  ;;  %v10847_v54 = vld [vmem:[#allocation26 + $0xa8] sm:$0xff]  ;;  %v13810_v32 = vcombine.low %v10834_v34, %v10838_v18 }
0x1194   :  { %10629 = vmatprep.subr.bf16.mxu0 %v15302_v62  ;;  %10793 = vmatprep.subr.bf16.mxu1 %v15305_v45  ;;  %v13812_v62 = vcombine.low %v10835_v61, %v10839_v60  ;;  %v13819_v45 = vcombine.high %v10842_v12, %v10846_v38  ;;  %v10890_v61 = vld [vmem:[#allocation26 + $0x200] sm:$0xff] }
0x1195   :  { %v10894_v60 = vld [vmem:[#allocation26 + $0x220] sm:$0xff] }
0x1197   :  { %10630 = vmatpush1.bf16.msra.mxu0 %v15300_v56  ;;  %10794 = vmatpush1.bf16.msra.mxu1 %v15303_v44  ;;  %v13821_v56 = vcombine.high %v10843_v37, %v10847_v54  ;;  %v10850_v44 = vld [vmem:[#allocation26 + $0xc0] sm:$0xff] }
0x1198   :  { %10631 = vmatprep.subr.bf16.mxu0 %v15308_v35  ;;  %10795 = vmatprep.subr.bf16.mxu1 %v15311_v39  ;;  %v10854_v35 = vld [vmem:[#allocation26 + $0xe0] sm:$0xff]  ;;  %v10851_v39 = vld [vmem:[#allocation26 + $0xc8] sm:$0xff] }
0x119b   :  { %10632 = vmatpush1.bf16.msra.mxu0 %v15306_v4  ;;  %10796 = vmatpush1.bf16.msra.mxu1 %v15309_v49  ;;  %v10855_v4 = vld [vmem:[#allocation26 + $0xe8] sm:$0xff]  ;;  %v13818_v49 = vcombine.low %v10842_v12, %v10846_v38  ;;  %v10898_v38 = vld [vmem:[#allocation26 + $0x240] sm:$0xff] }
0x119c   :  { %10633 = vmatprep.subr.bf16.mxu0 %v15314_v51  ;;  %10797 = vmatprep.subr.bf16.mxu1 %v15317_v24  ;;  %v13820_v51 = vcombine.low %v10843_v37, %v10847_v54  ;;  %v13827_v24 = vcombine.high %v10850_v44, %v10854_v35  ;;  %v10902_v37 = vld [vmem:[#allocation26 + $0x260] sm:$0xff]  ;;  %v10899_v54 = vld [vmem:[#allocation26 + $0x248] sm:$0xff] }
0x119f   :  { %10634 = vmatpush1.bf16.msra.mxu0 %v15312_v31  ;;  %10798 = vmatpush1.bf16.msra.mxu1 %v15315_v63  ;;  %v13829_v31 = vcombine.high %v10851_v39, %v10855_v4  ;;  %v10858_v63 = vld [vmem:[#allocation26 + $0x100] sm:$0xff] }
0x11a0   :  { %10635 = vmatprep.subr.bf16.mxu0 %v15320_v7  ;;  %10799 = vmatprep.subr.bf16.mxu1 %v15323_v27  ;;  %v10862_v7 = vld [vmem:[#allocation26 + $0x120] sm:$0xff]  ;;  %v10859_v27 = vld [vmem:[#allocation26 + $0x108] sm:$0xff] }
0x11a3   :  { %10636 = vmatpush1.bf16.msra.mxu0 %v15318_v59  ;;  %10800 = vmatpush1.bf16.msra.mxu1 %v15321_v57  ;;  %v10863_v59 = vld [vmem:[#allocation26 + $0x128] sm:$0xff]  ;;  %v13826_v57 = vcombine.low %v10850_v44, %v10854_v35  ;;  %v10906_v35 = vld [vmem:[#allocation26 + $0x280] sm:$0xff] }
0x11a4   :  { %10637 = vmatprep.subr.bf16.mxu0 %v15326_v21  ;;  %10801 = vmatprep.subr.bf16.mxu1 %v15329_v50  ;;  %v13828_v21 = vcombine.low %v10851_v39, %v10855_v4  ;;  %v13835_v50 = vcombine.high %v10858_v63, %v10862_v7  ;;  %v10910_v39 = vld [vmem:[#allocation26 + $0x2a0] sm:$0xff]  ;;  %v10907_v4 = vld [vmem:[#allocation26 + $0x288] sm:$0xff] }
0x11a7   :  { %10638 = vmatpush1.bf16.msra.mxu0 %v15324_v42  ;;  %10802 = vmatpush1.bf16.msra.mxu1 %v15327_v36  ;;  %v13837_v42 = vcombine.high %v10859_v27, %v10863_v59  ;;  %v10866_v36 = vld [vmem:[#allocation26 + $0x140] sm:$0xff] }
0x11a8   :  { %10639 = vmatprep.subr.bf16.mxu0 %v15332_v53  ;;  %10803 = vmatprep.subr.bf16.mxu1 %v15335_v29  ;;  %v10870_v53 = vld [vmem:[#allocation26 + $0x160] sm:$0xff]  ;;  %v10867_v29 = vld [vmem:[#allocation26 + $0x148] sm:$0xff] }
0x11ab   :  { %10640 = vmatpush1.bf16.msra.mxu0 %v15330_v23  ;;  %10804 = vmatpush1.bf16.msra.mxu1 %v15333_v13  ;;  %v10871_v23 = vld [vmem:[#allocation26 + $0x168] sm:$0xff]  ;;  %v13834_v13 = vcombine.low %v10858_v63, %v10862_v7  ;;  %v10914_v7 = vld [vmem:[#allocation26 + $0x2c0] sm:$0xff] }
0x11ac   :  { %10641 = vmatprep.subr.bf16.mxu0 %v15338_v17  ;;  %10805 = vmatprep.subr.bf16.mxu1 %v15341_v48  ;;  %v13836_v17 = vcombine.low %v10859_v27, %v10863_v59  ;;  %v13843_v48 = vcombine.high %v10866_v36, %v10870_v53  ;;  %v13844_v15 = vcombine.low %v10867_v29, %v10871_v23  ;;  %v10918_v27 = vld [vmem:[#allocation26 + $0x2e0] sm:$0xff]  ;;  %v10915_v59 = vld [vmem:[#allocation26 + $0x2c8] sm:$0xff] }
0x11af   :  { %10642 = vmatpush1.bf16.msra.mxu0 %v15336_v14  ;;  %10806 = vmatpush1.bf16.msra.mxu1 %v15339_v46  ;;  %v13845_v14 = vcombine.high %v10867_v29, %v10871_v23  ;;  %v10874_v46 = vld [vmem:[#allocation26 + $0x180] sm:$0xff]  ;;  %v10923_v23 = vld [vmem:[#allocation26 + $0x308] sm:$0xff] }
0x11b0   :  { %10643 = vmatprep.subr.bf16.mxu0 %v15344_v3  ;;  %10807 = vmatprep.subr.bf16.mxu1 %v15347_v55  ;;  %v10879_v3 = vld [vmem:[#allocation26 + $0x1a8] sm:$0xff]  ;;  %v13842_v55 = vcombine.low %v10866_v36, %v10870_v53  ;;  %v13851_v10 = vcombine.high %v10874_v46, %v10878_v47  ;;  %v10922_v53 = vld [vmem:[#allocation26 + $0x300] sm:$0xff] }
0x11b1   :  { %v13853_v20 = vcombine.high %v10875_v11, %v10879_v3  ;;  %v10926_v29 = vld [vmem:[#allocation26 + $0x320] sm:$0xff] }
0x11b3   :  { %10644 = vmatpush1.bf16.msra.mxu0 %v15342_v41  ;;  %10808 = vmatpush1.bf16.msra.mxu1 %v15345_v26  ;;  %v10886_v41 = vld [vmem:[#allocation26 + $0x1e0] sm:$0xff]  ;;  %v10883_v26 = vld [vmem:[#allocation26 + $0x1c8] sm:$0xff] }
0x11b4   :  { %12404 = vmatprep.subr.bf16.mxu0 %v13803_v22  ;;  %12486 = vmatprep.subr.bf16.mxu1 %v13805_v9  ;;  %v13850_v22 = vcombine.low %v10874_v46, %v10878_v47  ;;  %v13852_v9 = vcombine.low %v10875_v11, %v10879_v3  ;;  %v13859_v34 = vcombine.high %v10882_v58, %v10886_v41  ;;  %v10930_v47 = vld [vmem:[#allocation26 + $0x340] sm:$0xff]  ;;  %v10931_v3 = vld [vmem:[#allocation26 + $0x348] sm:$0xff] }
0x11b5   :  { %v13861_v18 = vcombine.high %v10883_v26, %v10887_v40  ;;  %v10934_v11 = vld [vmem:[#allocation26 + $0x360] sm:$0xff] }
0x11b6   :  { %10646 = vmatmul.mubr.bf16.vlgmr.msra.gmra.mrb[228].mxu0 %v8930_v30  ;;  %10810 = vmatmul.mubr.bf16.vlgmr.msra.gmra.mrb[204].mxu1 %v8930_v30  ;;  %v13858_v30 = vcombine.low %v10882_v58, %v10886_v41  ;;  %v13906_v41 = vcombine.low %v10930_v47, %v10934_v11 }
0x11b7   :  { %12405 = vmatpush1.bf16.msra.mxu0 %v13802_v0  ;;  %12487 = vmatpush1.bf16.msra.mxu1 %v13804_v2  ;;  %v10891_v0 = vld [vmem:[#allocation26 + $0x208] sm:$0xff] }
0x11b8   :  { %12406 = vmatprep.subr.bf16.mxu0 %v13811_v25  ;;  %12488 = vmatprep.subr.bf16.mxu1 %v13813_v19  ;;  %v10895_v2 = vld [vmem:[#allocation26 + $0x228] sm:$0xff]  ;;  %v13860_v25 = vcombine.low %v10883_v26, %v10887_v40  ;;  %v13867_v19 = vcombine.high %v10890_v61, %v10894_v60  ;;  %v10938_v40 = vld [vmem:[#allocation26 + $0x380] sm:$0xff] }
0x11b9   :  { %v13869_v12 = vcombine.high %v10891_v0, %v10895_v2 }
0x11bb   :  { %12407 = vmatpush1.bf16.msra.mxu0 %v13810_v32  ;;  %12489 = vmatpush1.bf16.msra.mxu1 %v13812_v62  ;;  %v10903_v32 = vld [vmem:[#allocation26 + $0x268] sm:$0xff]  ;;  %v13866_v62 = vcombine.low %v10890_v61, %v10894_v60  ;;  %v10946_v60 = vld [vmem:[#allocation26 + $0x3c0] sm:$0xff] }
0x11bc   :  { %12408 = vmatprep.subr.bf16.mxu0 %v13819_v45  ;;  %12490 = vmatprep.subr.bf16.mxu1 %v13821_v56  ;;  %v13868_v45 = vcombine.low %v10891_v0, %v10895_v2  ;;  %v13875_v56 = vcombine.high %v10898_v38, %v10902_v37  ;;  %v13877_v44 = vcombine.high %v10899_v54, %v10903_v32  ;;  %v10943_v61 = vld [vmem:[#allocation26 + $0x3a8] sm:$0xff]  ;;  %v10950_v0 = vld [vmem:[#allocation26 + $0x3e0] sm:$0xff] }
0x11bf   :  { %12409 = vmatpush1.bf16.msra.mxu0 %v13818_v49  ;;  %12491 = vmatpush1.bf16.msra.mxu1 %v13820_v51  ;;  %v10911_v49 = vld [vmem:[#allocation26 + $0x2a8] sm:$0xff]  ;;  %v13874_v51 = vcombine.low %v10898_v38, %v10902_v37  ;;  %v10954_v37 = vld [vmem:[#allocation26 + $0x400] sm:$0xff] }
0x11c0   :  { %12410 = vmatprep.subr.bf16.mxu0 %v13827_v24  ;;  %12492 = vmatprep.subr.bf16.mxu1 %v13829_v31  ;;  %v13876_v24 = vcombine.low %v10899_v54, %v10903_v32  ;;  %v13883_v31 = vcombine.high %v10906_v35, %v10910_v39  ;;  %v13885_v63 = vcombine.high %v10907_v4, %v10911_v49  ;;  %v10958_v54 = vld [vmem:[#allocation26 + $0x420] sm:$0xff]  ;;  %v10955_v32 = vld [vmem:[#allocation26 + $0x408] sm:$0xff] }
0x11c3   :  { %12411 = vmatpush1.bf16.msra.mxu0 %v13826_v57  ;;  %12493 = vmatpush1.bf16.msra.mxu1 %v13828_v21  ;;  %v10919_v57 = vld [vmem:[#allocation26 + $0x2e8] sm:$0xff]  ;;  %v13882_v21 = vcombine.low %v10906_v35, %v10910_v39  ;;  %v13931_v35 = vcombine.high %v10954_v37, %v10958_v54 }
0x11c4   :  { %12412 = vmatprep.subr.bf16.mxu0 %v13835_v50  ;;  %12494 = vmatprep.subr.bf16.mxu1 %v13837_v42  ;;  %v13884_v50 = vcombine.low %v10907_v4, %v10911_v49  ;;  %v13891_v42 = vcombine.high %v10914_v7, %v10918_v27  ;;  %v13893_v36 = vcombine.high %v10915_v59, %v10919_v57  ;;  %v19385_v49 = vld [vmem:[#allocation25] sm:$0xf] }
0x11c7   :  { %12413 = vmatpush1.bf16.msra.mxu0 %v13834_v13  ;;  %12495 = vmatpush1.bf16.msra.mxu1 %v13836_v17  ;;  %v10927_v13 = vld [vmem:[#allocation26 + $0x328] sm:$0xff]  ;;  %v13890_v17 = vcombine.low %v10914_v7, %v10918_v27 }
0x11c8   :  { %12414 = vmatprep.subr.bf16.mxu0 %v13843_v48  ;;  %12496 = vmatprep.subr.bf16.mxu1 %v13845_v14  ;;  %v13892_v48 = vcombine.low %v10915_v59, %v10919_v57  ;;  %v13899_v14 = vcombine.high %v10922_v53, %v10926_v29  ;;  %v13901_v46 = vcombine.high %v10923_v23, %v10927_v13 }
0x11cb   :  { %12415 = vmatpush1.bf16.msra.mxu0 %v13842_v55  ;;  %12497 = vmatpush1.bf16.msra.mxu1 %v13844_v15  ;;  %v10935_v55 = vld [vmem:[#allocation26 + $0x368] sm:$0xff]  ;;  %v13898_v15 = vcombine.low %v10922_v53, %v10926_v29 }
0x11cc   :  { %12416 = vmatprep.subr.bf16.mxu0 %v13851_v10  ;;  %12498 = vmatprep.subr.bf16.mxu1 %v13853_v20  ;;  %v13900_v10 = vcombine.low %v10923_v23, %v10927_v13  ;;  %v13907_v20 = vcombine.high %v10930_v47, %v10934_v11  ;;  %v13909_v58 = vcombine.high %v10931_v3, %v10935_v55  ;;  %v10967_v47 = vld [vmem:[#allocation26 + $0x468] sm:$0xff] }
0x11cd   :  { %v13908_v26 = vcombine.low %v10931_v3, %v10935_v55  ;;  %v10970_v55 = vld [vmem:[#allocation26 + $0x480] sm:$0xff] }
0x11cf   :  { %12417 = vmatpush1.bf16.msra.mxu0 %v13850_v22  ;;  %12499 = vmatpush1.bf16.msra.mxu1 %v13852_v9  ;;  %v10942_v22 = vld [vmem:[#allocation26 + $0x3a0] sm:$0xff]  ;;  %v10939_v9 = vld [vmem:[#allocation26 + $0x388] sm:$0xff] }
0x11d0   :  { %12418 = vmatprep.subr.bf16.mxu0 %v13859_v34  ;;  %12500 = vmatprep.subr.bf16.mxu1 %v13861_v18  ;;  %v13914_v34 = vcombine.low %v10938_v40, %v10942_v22  ;;  %v13915_v18 = vcombine.high %v10938_v40, %v10942_v22  ;;  %v13916_v2 = vcombine.low %v10939_v9, %v10943_v61 }
0x11d3   :  { %12419 = vmatpush1.bf16.msra.mxu0 %v13858_v30  ;;  %12501 = vmatpush1.bf16.msra.mxu1 %v13860_v25  ;;  %v13917_v30 = vcombine.high %v10939_v9, %v10943_v61  ;;  %v13923_v25 = vcombine.high %v10946_v60, %v10950_v0  ;;  %v10982_v61 = vld [vmem:[#allocation26 + $0x4e0] sm:$0xff] }
0x11d4   :  { %12420 = vmatprep.subr.bf16.mxu0 %v13867_v19  ;;  %12502 = vmatprep.subr.bf16.mxu1 %v13869_v12  ;;  %v10947_v19 = vld [vmem:[#allocation26 + $0x3c8] sm:$0xff] }
0x11d5   :  { %v10951_v12 = vld [vmem:[#allocation26 + $0x3e8] sm:$0xff] }
0x11d6   :  { %v13925_v38 = vcombine.high %v10947_v19, %v10951_v12 }
0x11d7   :  { %12421 = vmatpush1.bf16.msra.mxu0 %v13866_v62  ;;  %12503 = vmatpush1.bf16.msra.mxu1 %v13868_v45  ;;  %v13922_v62 = vcombine.low %v10946_v60, %v10950_v0  ;;  %v13930_v45 = vcombine.low %v10954_v37, %v10958_v54  ;;  %v10979_v60 = vld [vmem:[#allocation26 + $0x4c8] sm:$0xff] }
0x11d8   :  { %12422 = vmatprep.subr.bf16.mxu0 %v13875_v56  ;;  %12504 = vmatprep.subr.bf16.mxu1 %v13877_v44  ;;  %v10959_v56 = vld [vmem:[#allocation26 + $0x428] sm:$0xff]  ;;  %v13924_v44 = vcombine.low %v10947_v19, %v10951_v12  ;;  %v10986_v12 = vld [vmem:[#allocation26 + $0x500] sm:$0xff] }
0x11d9   :  { %v13932_v39 = vcombine.low %v10955_v32, %v10959_v56  ;;  %v13933_v4 = vcombine.high %v10955_v32, %v10959_v56  ;;  %v10983_v0 = vld [vmem:[#allocation26 + $0x4e8] sm:$0xff] }
0x11da   :  { %v13957_v19 = vcombine.high %v10979_v60, %v10983_v0  ;;  %v10987_v37 = vld [vmem:[#allocation26 + $0x508] sm:$0xff] }
0x11db   :  { %12423 = vmatpush1.bf16.msra.mxu0 %v13874_v51  ;;  %12505 = vmatpush1.bf16.msra.mxu1 %v13876_v24  ;;  %v9193_v51 = vrot.slane %v19385_v49, %v19350_v1  ;;  %v9197_v24 = vrot.slane %v19385_v49, %v19337_v16  ;;  %v10991_v54 = vld [vmem:[#allocation26 + $0x528] sm:$0xff] }
0x11dc   :  { %12424 = vmatprep.subr.bf16.mxu0 %v13883_v31  ;;  %12506 = vmatprep.subr.bf16.mxu1 %v13885_v63  ;;  %v9205_v31 = vrot.slane %v19385_v49, %v19353_v8  ;;  %v13965_v56 = vcombine.high %v10987_v37, %v10991_v54 }
0x11df   :  { %12425 = vmatpush1.bf16.msra.mxu0 %v13882_v21  ;;  %12507 = vmatpush1.bf16.msra.mxu1 %v13884_v50 }
0x11e0   :  { %12426 = vmatprep.subr.bf16.mxu0 %v13891_v42  ;;  %12508 = vmatprep.subr.bf16.mxu1 %v13893_v36 }
0x11e3   :  { %12427 = vmatpush1.bf16.msra.mxu0 %v13890_v17  ;;  %12509 = vmatpush1.bf16.msra.mxu1 %v13892_v48  ;;  %v10962_v17 = vld [vmem:[#allocation26 + $0x440] sm:$0xff] }
0x11e4   :  { %12428 = vmatprep.subr.bf16.mxu0 %v13899_v14  ;;  %12510 = vmatprep.subr.bf16.mxu1 %v13901_v46  ;;  %v10966_v14 = vld [vmem:[#allocation26 + $0x460] sm:$0xff]  ;;  %v10963_v46 = vld [vmem:[#allocation26 + $0x448] sm:$0xff] }
0x11e5   :  { %v13938_v40 = vcombine.low %v10962_v17, %v10966_v14  ;;  %v13940_v22 = vcombine.low %v10963_v46, %v10967_v47 }
0x11e7   :  { %12429 = vmatpush1.bf16.msra.mxu0 %v13898_v15  ;;  %12511 = vmatpush1.bf16.msra.mxu1 %v13900_v10  ;;  %v13939_v15 = vcombine.high %v10962_v17, %v10966_v14  ;;  %v13941_v10 = vcombine.high %v10963_v46, %v10967_v47  ;;  %v11015_v17 = vld [vmem:[#allocation26 + $0x5e8] sm:$0xff] }
0x11e8   :  { %12430 = vmatprep.subr.bf16.mxu0 %v13907_v20  ;;  %12512 = vmatprep.subr.bf16.mxu1 %v13909_v58  ;;  %v10974_v20 = vld [vmem:[#allocation26 + $0x4a0] sm:$0xff]  ;;  %v10971_v58 = vld [vmem:[#allocation26 + $0x488] sm:$0xff] }
0x11e9   :  { %v13947_v9 = vcombine.high %v10970_v55, %v10974_v20 }
0x11eb   :  { %12431 = vmatpush1.bf16.msra.mxu0 %v13906_v41  ;;  %12513 = vmatpush1.bf16.msra.mxu1 %v13908_v26  ;;  %v10975_v41 = vld [vmem:[#allocation26 + $0x4a8] sm:$0xff] }
0x11ec   :  { %12432 = vmatprep.subr.bf16.mxu0 %v13915_v18  ;;  %12514 = vmatprep.subr.bf16.mxu1 %v13917_v30  ;;  %v10978_v18 = vld [vmem:[#allocation26 + $0x4c0] sm:$0xff]  ;;  %v13948_v30 = vcombine.low %v10971_v58, %v10975_v41 }
0x11ed   :  { %v13954_v32 = vcombine.low %v10978_v18, %v10982_v61 }
0x11ef   :  { %12433 = vmatpush1.bf16.msra.mxu0 %v13914_v34  ;;  %12515 = vmatpush1.bf16.msra.mxu1 %v13916_v2  ;;  %v13949_v34 = vcombine.high %v10971_v58, %v10975_v41  ;;  %v13946_v2 = vcombine.low %v10970_v55, %v10974_v20  ;;  %v11018_v55 = vld [vmem:[#allocation26 + $0x600] sm:$0xff]  ;;  %v11023_v20 = vld [vmem:[#allocation26 + $0x628] sm:$0xff] }
0x11f0   :  { %12434 = vmatprep.subr.bf16.mxu0 %v13923_v25  ;;  %12516 = vmatprep.subr.bf16.mxu1 %v13925_v38  ;;  %v13955_v25 = vcombine.high %v10978_v18, %v10982_v61  ;;  %v10990_v38 = vld [vmem:[#allocation26 + $0x520] sm:$0xff]  ;;  %v11027_v18 = vld [vmem:[#allocation26 + $0x648] sm:$0xff] }
0x11f1   :  { %v11031_v61 = vld [vmem:[#allocation26 + $0x668] sm:$0xff] }
0x11f3   :  { %12435 = vmatpush1.bf16.msra.mxu0 %v13922_v62  ;;  %12517 = vmatpush1.bf16.msra.mxu1 %v13924_v44  ;;  %v13956_v62 = vcombine.low %v10979_v60, %v10983_v0  ;;  %v10994_v44 = vld [vmem:[#allocation26 + $0x540] sm:$0xff] }
0x11f4   :  { %12445 = vmatprep.subr.bf16.mxu0 %v13931_v35  ;;  %12527 = vmatprep.subr.bf16.mxu1 %v13933_v4  ;;  %v10998_v35 = vld [vmem:[#allocation26 + $0x560] sm:$0xff]  ;;  %v10999_v4 = vld [vmem:[#allocation26 + $0x568] sm:$0xff] }
0x1289   :  { %v10647_v63 = vpop.f32.mrb[228].mxu0  ;;  %v19393_v7 = vpop.f32.mrb[204].mxu1 }
0x128a   :  { %v14784_v27 = vadd.f32 %v10647_v63, %v9193_v51  ;;  %v10649_v59 = vpop.f32.mrb[229].mxu0  ;;  %v10813_v57 = vpop.f32.mrb[205].mxu1  ;;  %v13962_v51 = vcombine.low %v10986_v12, %v10990_v38 }
0x128b   :  { %v14785_v21 = vadd.f32 %v10649_v59, %v9197_v24  ;;  %v14787_v50 = vadd.f32 %v10813_v57, %v9205_v31  ;;  %v10651_v42 = vpop.f32.mrb[230].mxu0  ;;  %v10815_v36 = vpop.f32.mrb[206].mxu1  ;;  %v13964_v24 = vcombine.low %v10987_v37, %v10991_v54  ;;  %v13971_v31 = vcombine.high %v10994_v44, %v10998_v35  ;;  %v11006_v59 = vld [vmem:[#allocation26 + $0x5a0] sm:$0xff]  ;;  %v11003_v57 = vld [vmem:[#allocation26 + $0x588] sm:$0xff] }
0x128c   :  { %v10818_v53 = vmax.f32 %v14784_v27, 0.0  ;;  %v10652_v29 = vpop.f32.mrb[231].mxu0  ;;  %v10816_v23 = vpop.f32.mrb[207].mxu1  ;;  %v11002_v27 = vld [vmem:[#allocation26 + $0x580] sm:$0xff]  ;;  %v14004_v54 = vcombine.low %v11027_v18, %v11031_v61 }
0x128d   :  { %v10819_v13 = vmax.f32 %v14785_v21, 0.0  ;;  %v10821_v48 = vmax.f32 %v14787_v50, 0.0  ;;  %v11007_v21 = vld [vmem:[#allocation26 + $0x5a8] sm:$0xff]  ;;  %v13970_v50 = vcombine.low %v10994_v44, %v10998_v35  ;;  %v13979_v36 = vcombine.high %v11002_v27, %v11006_v59  ;;  %v11010_v29 = vld [vmem:[#allocation26 + $0x5c0] sm:$0xff] }
0x128e   :  { %v19397_v3 = vpack.c.bf16 %v10818_v53, %v10818_v53  ;;  %v13981_v53 = vcombine.high %v11003_v57, %v11007_v21  ;;  %v11014_v23 = vld [vmem:[#allocation26 + $0x5e0] sm:$0xff]  ;;  %v13980_v14 = vcombine.low %v11003_v57, %v11007_v21  ;;  %v11043_v44 = vld [vmem:[#allocation26 + $0x6c8] sm:$0xff] }
0x128f   :  { %v19395_v11 = vpack.c.bf16 %v10819_v13, %v10819_v13  ;;  %v19401_v26 = vpack.c.bf16 %v10821_v48, %v10821_v48  ;;  %v11011_v13 = vld [vmem:[#allocation26 + $0x5c8] sm:$0xff]  ;;  %v13978_v48 = vcombine.low %v11002_v27, %v11006_v59  ;;  %v13987_v46 = vcombine.high %v11010_v29, %v11014_v23 }
0x1290   :  { %v13989_v47 = vcombine.high %v11011_v13, %v11015_v17  ;;  %v13986_v58 = vcombine.low %v11010_v29, %v11014_v23  ;;  %v13988_v41 = vcombine.low %v11011_v13, %v11015_v17  ;;  %v11047_v35 = vld [vmem:[#allocation26 + $0x6e8] sm:$0xff] }
0x1291   :  { %12436 = vmatprep.mubr.bf16.mxu0 %v19395_v11  ;;  %12518 = vmatprep.mubr.bf16.mxu1 %v19395_v11  ;;  %v11051_v27 = vld [vmem:[#allocation26 + $0x708] sm:$0xff]  ;;  %v14020_v21 = vcombine.low %v11043_v44, %v11047_v35 }
0x1292   :  { %12437 = vmatmul.mubr.bf16.vlgmr.msra.gmra.mrb[232].mxu0 %v19397_v3  ;;  %12519 = vmatmul.mubr.bf16.vlgmr.msra.gmra.mrb[208].mxu1 %v19397_v3  ;;  %v11055_v59 = vld [vmem:[#allocation26 + $0x728] sm:$0xff] }
0x1293   :  { %12446 = vmatpush1.bf16.msra.mxu0 %v13930_v45  ;;  %12528 = vmatpush1.bf16.msra.mxu1 %v13932_v39  ;;  %v13963_v45 = vcombine.high %v10986_v12, %v10990_v38  ;;  %v10995_v39 = vld [vmem:[#allocation26 + $0x548] sm:$0xff]  ;;  %v14028_v17 = vcombine.low %v11051_v27, %v11055_v59 }
0x1294   :  { %12477 = vmatprep.mubr.bf16.mxu0 %v19401_v26  ;;  %12559 = vmatprep.mubr.bf16.mxu1 %v19401_v26  ;;  %v13973_v63 = vcombine.high %v10995_v39, %v10999_v4  ;;  %v13972_v42 = vcombine.low %v10995_v39, %v10999_v4  ;;  %v11035_v12 = vld [vmem:[#allocation26 + $0x688] sm:$0xff] }
0x1295   :  { %12447 = vmatprep.subr.bf16.mxu0 %v13939_v15  ;;  %12529 = vmatprep.subr.bf16.mxu1 %v13941_v10  ;;  %v11022_v15 = vld [vmem:[#allocation26 + $0x620] sm:$0xff]  ;;  %v11019_v10 = vld [vmem:[#allocation26 + $0x608] sm:$0xff] }
0x1296   :  { %v13994_v60 = vcombine.low %v11018_v55, %v11022_v15  ;;  %v13996_v0 = vcombine.low %v11019_v10, %v11023_v20  ;;  %v11039_v38 = vld [vmem:[#allocation26 + $0x6a8] sm:$0xff] }
0x1297   :  { %12448 = vmatpush1.bf16.msra.mxu0 %v13938_v40  ;;  %12530 = vmatpush1.bf16.msra.mxu1 %v13940_v22  ;;  %v13995_v40 = vcombine.high %v11018_v55, %v11022_v15  ;;  %v13997_v22 = vcombine.high %v11019_v10, %v11023_v20  ;;  %v14012_v4 = vcombine.low %v11035_v12, %v11039_v38  ;;  %v11059_v29 = vld [vmem:[#allocation26 + $0x748] sm:$0xff] }
0x1298   :  { %12449 = vmatprep.subr.bf16.mxu0 %v13947_v9  ;;  %12531 = vmatprep.subr.bf16.mxu1 %v13949_v34  ;;  %v11026_v9 = vld [vmem:[#allocation26 + $0x640] sm:$0xff]  ;;  %v11063_v23 = vld [vmem:[#allocation26 + $0x768] sm:$0xff] }
0x1299   :  { %v11030_v34 = vld [vmem:[#allocation26 + $0x660] sm:$0xff]  ;;  %v11067_v55 = vld [vmem:[#allocation26 + $0x788] sm:$0xff]  ;;  %v14036_v20 = vcombine.low %v11059_v29, %v11063_v23 }
0x129a   :  { %v14002_v37 = vcombine.low %v11026_v9, %v11030_v34  ;;  %v11071_v15 = vld [vmem:[#allocation26 + $0x7a8] sm:$0xff] }
0x129b   :  { %12450 = vmatpush1.bf16.msra.mxu0 %v13946_v2  ;;  %12532 = vmatpush1.bf16.msra.mxu1 %v13948_v30  ;;  %v14003_v2 = vcombine.high %v11026_v9, %v11030_v34  ;;  %v14005_v30 = vcombine.high %v11027_v18, %v11031_v61  ;;  %v11078_v9 = vld [vmem:[#allocation26 + $0x7e0] sm:$0xff]  ;;  %v11075_v34 = vld [vmem:[#allocation26 + $0x7c8] sm:$0xff] }
0x129c   :  { %12451 = vmatprep.subr.bf16.mxu0 %v13955_v25  ;;  %12533 = vmatprep.subr.bf16.mxu1 %v13957_v19  ;;  %v11034_v25 = vld [vmem:[#allocation26 + $0x680] sm:$0xff]  ;;  %v11079_v18 = vld [vmem:[#allocation26 + $0x7e8] sm:$0xff] }
0x129d   :  { %v11038_v19 = vld [vmem:[#allocation26 + $0x6a0] sm:$0xff] }
0x129e   :  { %v14010_v39 = vcombine.low %v11034_v25, %v11038_v19 }
0x129f   :  { %12452 = vmatpush1.bf16.msra.mxu0 %v13954_v32  ;;  %12534 = vmatpush1.bf16.msra.mxu1 %v13956_v62  ;;  %v14011_v32 = vcombine.high %v11034_v25, %v11038_v19  ;;  %v14013_v62 = vcombine.high %v11035_v12, %v11039_v38  ;;  %v10828_v25 = vld [vmem:[#allocation26 + $0x10] sm:$0xff]  ;;  %v10829_v19 = vld [vmem:[#allocation26 + $0x18] sm:$0xff] }
0x12a0   :  { %12453 = vmatprep.subr.bf16.mxu0 %v13963_v45  ;;  %12535 = vmatprep.subr.bf16.mxu1 %v13965_v56  ;;  %v11042_v45 = vld [vmem:[#allocation26 + $0x6c0] sm:$0xff]  ;;  %v10833_v12 = vld [vmem:[#allocation26 + $0x38] sm:$0xff] }
0x12a1   :  { %v11046_v56 = vld [vmem:[#allocation26 + $0x6e0] sm:$0xff] }
0x12a2   :  { %v14018_v57 = vcombine.low %v11042_v45, %v11046_v56 }
0x12a3   :  { %12454 = vmatpush1.bf16.msra.mxu0 %v13962_v51  ;;  %12536 = vmatpush1.bf16.msra.mxu1 %v13964_v24  ;;  %v14019_v51 = vcombine.high %v11042_v45, %v11046_v56  ;;  %v14021_v24 = vcombine.high %v11043_v44, %v11047_v35  ;;  %v10836_v45 = vld [vmem:[#allocation26 + $0x50] sm:$0xff]  ;;  %v10841_v44 = vld [vmem:[#allocation26 + $0x78] sm:$0xff] }
0x12a4   :  { %12455 = vmatprep.subr.bf16.mxu0 %v13971_v31  ;;  %12537 = vmatprep.subr.bf16.mxu1 %v13973_v63  ;;  %v11050_v31 = vld [vmem:[#allocation26 + $0x700] sm:$0xff]  ;;  %v10840_v56 = vld [vmem:[#allocation26 + $0x70] sm:$0xff] }
0x12a5   :  { %v11054_v63 = vld [vmem:[#allocation26 + $0x720] sm:$0xff] }
0x12a6   :  { %v14026_v13 = vcombine.low %v11050_v31, %v11054_v63 }
0x12a7   :  { %12456 = vmatpush1.bf16.msra.mxu0 %v13970_v50  ;;  %12538 = vmatpush1.bf16.msra.mxu1 %v13972_v42  ;;  %v14027_v50 = vcombine.high %v11050_v31, %v11054_v63  ;;  %v14029_v42 = vcombine.high %v11051_v27, %v11055_v59  ;;  %v10844_v31 = vld [vmem:[#allocation26 + $0x90] sm:$0xff]  ;;  %v10845_v27 = vld [vmem:[#allocation26 + $0x98] sm:$0xff] }
0x12a8   :  { %12457 = vmatprep.subr.bf16.mxu0 %v13979_v36  ;;  %12539 = vmatprep.subr.bf16.mxu1 %v13981_v53  ;;  %v11058_v36 = vld [vmem:[#allocation26 + $0x740] sm:$0xff]  ;;  %v10848_v63 = vld [vmem:[#allocation26 + $0xb0] sm:$0xff]  ;;  %v10849_v59 = vld [vmem:[#allocation26 + $0xb8] sm:$0xff] }
0x12a9   :  { %v11062_v53 = vld [vmem:[#allocation26 + $0x760] sm:$0xff] }
0x12aa   :  { %v14034_v10 = vcombine.low %v11058_v36, %v11062_v53 }
0x12ab   :  { %12458 = vmatpush1.bf16.msra.mxu0 %v13978_v48  ;;  %12540 = vmatpush1.bf16.msra.mxu1 %v13980_v14  ;;  %v14035_v48 = vcombine.high %v11058_v36, %v11062_v53  ;;  %v14037_v14 = vcombine.high %v11059_v29, %v11063_v23  ;;  %v10852_v36 = vld [vmem:[#allocation26 + $0xd0] sm:$0xff]  ;;  %v10853_v29 = vld [vmem:[#allocation26 + $0xd8] sm:$0xff] }
0x12ac   :  { %12459 = vmatprep.subr.bf16.mxu0 %v13987_v46  ;;  %12541 = vmatprep.subr.bf16.mxu1 %v13989_v47  ;;  %v11066_v46 = vld [vmem:[#allocation26 + $0x780] sm:$0xff]  ;;  %v10856_v53 = vld [vmem:[#allocation26 + $0xf0] sm:$0xff]  ;;  %v10857_v23 = vld [vmem:[#allocation26 + $0xf8] sm:$0xff] }
0x12ad   :  { %v11070_v47 = vld [vmem:[#allocation26 + $0x7a0] sm:$0xff] }
0x12ae   :  { %v14042_v61 = vcombine.low %v11066_v46, %v11070_v47 }
0x12af   :  { %12460 = vmatpush1.bf16.msra.mxu0 %v13986_v58  ;;  %12542 = vmatpush1.bf16.msra.mxu1 %v13988_v41  ;;  %v9201_v58 = vrot.slane %v19385_v49, %v19362_v43  ;;  %v14043_v41 = vcombine.high %v11066_v46, %v11070_v47  ;;  %v10832_v49 = vld [vmem:[#allocation26 + $0x30] sm:$0xff] }
0x12b0   :  { %12461 = vmatprep.subr.bf16.mxu0 %v13995_v40  ;;  %12543 = vmatprep.subr.bf16.mxu1 %v13997_v22  ;;  %v14045_v40 = vcombine.high %v11067_v55, %v11071_v15  ;;  %v11074_v22 = vld [vmem:[#allocation26 + $0x7c0] sm:$0xff]  ;;  %v13806_v35 = vcombine.low %v10828_v25, %v10832_v49  ;;  %v10860_v46 = vld [vmem:[#allocation26 + $0x110] sm:$0xff] }
0x12b1   :  { %v14050_v38 = vcombine.low %v11074_v22, %v11078_v9  ;;  %v10864_v47 = vld [vmem:[#allocation26 + $0x130] sm:$0xff] }
0x12b3   :  { %12462 = vmatpush1.bf16.msra.mxu0 %v13994_v60  ;;  %12544 = vmatpush1.bf16.msra.mxu1 %v13996_v0  ;;  %v14044_v60 = vcombine.low %v11067_v55, %v11071_v15  ;;  %v14786_v0 = vadd.f32 %v19393_v7, %v9201_v58  ;;  %v10837_v7 = vld [vmem:[#allocation26 + $0x58] sm:$0xff]  ;;  %v13830_v15 = vcombine.low %v10852_v36, %v10856_v53 }
0x12b4   :  { %12463 = vmatprep.subr.bf16.mxu0 %v14003_v2  ;;  %12545 = vmatprep.subr.bf16.mxu1 %v14005_v30  ;;  %v14051_v2 = vcombine.high %v11074_v22, %v11078_v9  ;;  %v14053_v30 = vcombine.high %v11075_v34, %v11079_v18  ;;  %v10865_v55 = vld [vmem:[#allocation26 + $0x138] sm:$0xff] }
0x12b5   :  { %v10869_v22 = vld [vmem:[#allocation26 + $0x158] sm:$0xff] }
0x12b6   :  { %v10873_v9 = vld [vmem:[#allocation26 + $0x178] sm:$0xff] }
0x12b7   :  { %12464 = vmatpush1.bf16.msra.mxu0 %v14002_v37  ;;  %12546 = vmatpush1.bf16.msra.mxu1 %v14004_v54  ;;  %v14052_v37 = vcombine.low %v11075_v34, %v11079_v18  ;;  %v10820_v54 = vmax.f32 %v14786_v0, 0.0  ;;  %v13838_v34 = vcombine.low %v10860_v46, %v10864_v47  ;;  %v10876_v0 = vld [vmem:[#allocation26 + $0x190] sm:$0xff] }
0x12b8   :  { %12465 = vmatprep.subr.bf16.mxu0 %v14011_v32  ;;  %12547 = vmatprep.subr.bf16.mxu1 %v14013_v62  ;;  %v13807_v32 = vcombine.high %v10828_v25, %v10832_v49  ;;  %v13809_v62 = vcombine.high %v10829_v19, %v10833_v12  ;;  %v10881_v25 = vld [vmem:[#allocation26 + $0x1b8] sm:$0xff] }
0x12bb   :  { %12466 = vmatpush1.bf16.msra.mxu0 %v14010_v39  ;;  %12548 = vmatpush1.bf16.msra.mxu1 %v14012_v4  ;;  %v19410_v39 = vpack.c.bf16 %v10820_v54, %v10820_v54  ;;  %v13808_v4 = vcombine.low %v10829_v19, %v10833_v12  ;;  %v13848_v19 = vcombine.low %v10869_v22, %v10873_v9  ;;  %v10888_v54 = vld [vmem:[#allocation26 + $0x1f0] sm:$0xff] }
0x12bc   :  { %12467 = vmatprep.subr.bf16.mxu0 %v14019_v51  ;;  %12549 = vmatprep.subr.bf16.mxu1 %v14021_v24  ;;  %v13815_v51 = vcombine.high %v10836_v45, %v10840_v56  ;;  %v13817_v24 = vcombine.high %v10837_v7, %v10841_v44 }
0x12bf   :  { %12468 = vmatpush1.bf16.msra.mxu0 %v14018_v57  ;;  %12550 = vmatpush1.bf16.msra.mxu1 %v14020_v21  ;;  %v13814_v57 = vcombine.low %v10836_v45, %v10840_v56  ;;  %v13816_v21 = vcombine.low %v10837_v7, %v10841_v44 }
0x12c0   :  { %12469 = vmatprep.subr.bf16.mxu0 %v14027_v50  ;;  %12551 = vmatprep.subr.bf16.mxu1 %v14029_v42  ;;  %v13823_v50 = vcombine.high %v10844_v31, %v10848_v63  ;;  %v13825_v42 = vcombine.high %v10845_v27, %v10849_v59 }
0x12c3   :  { %12470 = vmatpush1.bf16.msra.mxu0 %v14026_v13  ;;  %12552 = vmatpush1.bf16.msra.mxu1 %v14028_v17  ;;  %v13822_v13 = vcombine.low %v10844_v31, %v10848_v63  ;;  %v13824_v17 = vcombine.low %v10845_v27, %v10849_v59 }
0x12c4   :  { %12471 = vmatprep.subr.bf16.mxu0 %v14035_v48  ;;  %12553 = vmatprep.subr.bf16.mxu1 %v14037_v14  ;;  %v13831_v48 = vcombine.high %v10852_v36, %v10856_v53  ;;  %v13833_v14 = vcombine.high %v10853_v29, %v10857_v23 }
0x12c7   :  { %12472 = vmatpush1.bf16.msra.mxu0 %v14034_v10  ;;  %12554 = vmatpush1.bf16.msra.mxu1 %v14036_v20  ;;  %v13832_v10 = vcombine.low %v10853_v29, %v10857_v23  ;;  %v13839_v20 = vcombine.high %v10860_v46, %v10864_v47 }
0x12c8   :  { %12473 = vmatprep.subr.bf16.mxu0 %v14043_v41  ;;  %12555 = vmatprep.subr.bf16.mxu1 %v14045_v40  ;;  %v10868_v41 = vld [vmem:[#allocation26 + $0x150] sm:$0xff] }
0x12c9   :  { %v10872_v40 = vld [vmem:[#allocation26 + $0x170] sm:$0xff] }
0x12ca   :  { %v13846_v49 = vcombine.low %v10868_v41, %v10872_v40 }
0x12cb   :  { %12474 = vmatpush1.bf16.msra.mxu0 %v14042_v61  ;;  %12556 = vmatpush1.bf16.msra.mxu1 %v14044_v60  ;;  %v13847_v61 = vcombine.high %v10868_v41, %v10872_v40  ;;  %v13849_v60 = vcombine.high %v10869_v22, %v10873_v9 }
0x12cc   :  { %12475 = vmatprep.subr.bf16.mxu0 %v14051_v2  ;;  %12557 = vmatprep.subr.bf16.mxu1 %v14053_v30  ;;  %v10880_v2 = vld [vmem:[#allocation26 + $0x1b0] sm:$0xff]  ;;  %v10877_v30 = vld [vmem:[#allocation26 + $0x198] sm:$0xff] }
0x12cd   :  { %v13855_v12 = vcombine.high %v10876_v0, %v10880_v2  ;;  %v13854_v45 = vcombine.low %v10876_v0, %v10880_v2  ;;  %v13856_v56 = vcombine.low %v10877_v30, %v10881_v25 }
0x12cf   :  { %12476 = vmatpush1.bf16.msra.mxu0 %v14050_v38  ;;  %12558 = vmatpush1.bf16.msra.mxu1 %v14052_v37  ;;  %v13857_v38 = vcombine.high %v10877_v30, %v10881_v25  ;;  %v10884_v37 = vld [vmem:[#allocation26 + $0x1d0] sm:$0xff] }
0x12d0   :  { %12568 = vmatprep.subr.bf16.mxu0 %v13807_v32  ;;  %12650 = vmatprep.subr.bf16.mxu1 %v13809_v62  ;;  %v10885_v32 = vld [vmem:[#allocation26 + $0x1d8] sm:$0xff]  ;;  %v13863_v7 = vcombine.high %v10884_v37, %v10888_v54  ;;  %v13862_v31 = vcombine.low %v10884_v37, %v10888_v54 }
0x12d1   :  { %v10889_v62 = vld [vmem:[#allocation26 + $0x1f8] sm:$0xff] }
0x12d2   :  { %12478 = vmatmul.mubr.bf16.vlgmr.msra.gmra.mrb[232].mxu0 %v19410_v39  ;;  %12560 = vmatmul.mubr.bf16.vlgmr.msra.gmra.mrb[208].mxu1 %v19410_v39  ;;  %v13865_v44 = vcombine.high %v10885_v32, %v10889_v62  ;;  %v13864_v63 = vcombine.low %v10885_v32, %v10889_v62 }
0x12d3   :  { %12569 = vmatpush1.bf16.msra.mxu0 %v13806_v35  ;;  %12600 = vmatprep.mubr.bf16.mxu0 %v19395_v11  ;;  %v10892_v35 = vld [vmem:[#allocation26 + $0x210] sm:$0xff] }
0x12d4   :  { %12651 = vmatpush1.bf16.msra.mxu1 %v13808_v4  ;;  %12682 = vmatprep.mubr.bf16.mxu1 %v19395_v11  ;;  %v10861_v11 = vld [vmem:[#allocation26 + $0x118] sm:$0xff]  ;;  %v10896_v4 = vld [vmem:[#allocation26 + $0x230] sm:$0xff] }
0x12d5   :  { %12570 = vmatprep.subr.bf16.mxu0 %v13815_v51  ;;  %12652 = vmatprep.subr.bf16.mxu1 %v13817_v24  ;;  %v13841_v58 = vcombine.high %v10861_v11, %v10865_v55  ;;  %v13840_v18 = vcombine.low %v10861_v11, %v10865_v55  ;;  %v10893_v51 = vld [vmem:[#allocation26 + $0x218] sm:$0xff]  ;;  %v13871_v27 = vcombine.high %v10892_v35, %v10896_v4 }
0x12d6   :  { %v10897_v24 = vld [vmem:[#allocation26 + $0x238] sm:$0xff]  ;;  %v13870_v36 = vcombine.low %v10892_v35, %v10896_v4 }
0x12d7   :  { %12571 = vmatpush1.bf16.msra.mxu0 %v13814_v57  ;;  %v13873_v59 = vcombine.high %v10893_v51, %v10897_v24  ;;  %v10900_v57 = vld [vmem:[#allocation26 + $0x250] sm:$0xff]  ;;  %v13872_v53 = vcombine.low %v10893_v51, %v10897_v24 }
0x12d8   :  { %12653 = vmatpush1.bf16.msra.mxu1 %v13816_v21  ;;  %12572 = vmatprep.subr.bf16.mxu0 %v13823_v50  ;;  %v10904_v21 = vld [vmem:[#allocation26 + $0x270] sm:$0xff]  ;;  %v10901_v50 = vld [vmem:[#allocation26 + $0x258] sm:$0xff] }
0x12d9   :  { %12654 = vmatprep.subr.bf16.mxu1 %v13825_v42  ;;  %v10905_v42 = vld [vmem:[#allocation26 + $0x278] sm:$0xff]  ;;  %v13879_v29 = vcombine.high %v10900_v57, %v10904_v21  ;;  %v13878_v46 = vcombine.low %v10900_v57, %v10904_v21 }
0x12da   :  { %v13881_v23 = vcombine.high %v10901_v50, %v10905_v42  ;;  %v13880_v47 = vcombine.low %v10901_v50, %v10905_v42 }
0x12db   :  { %12573 = vmatpush1.bf16.msra.mxu0 %v13822_v13  ;;  %v10908_v13 = vld [vmem:[#allocation26 + $0x290] sm:$0xff] }
0x12dc   :  { %12655 = vmatpush1.bf16.msra.mxu1 %v13824_v17  ;;  %12574 = vmatprep.subr.bf16.mxu0 %v13831_v48  ;;  %v10912_v17 = vld [vmem:[#allocation26 + $0x2b0] sm:$0xff]  ;;  %v10909_v48 = vld [vmem:[#allocation26 + $0x298] sm:$0xff] }
0x12dd   :  { %12656 = vmatprep.subr.bf16.mxu1 %v13833_v14  ;;  %v10913_v14 = vld [vmem:[#allocation26 + $0x2b8] sm:$0xff]  ;;  %v13887_v11 = vcombine.high %v10908_v13, %v10912_v17  ;;  %v13886_v41 = vcombine.low %v10908_v13, %v10912_v17 }
0x12de   :  { %v13889_v55 = vcombine.high %v10909_v48, %v10913_v14  ;;  %v13888_v40 = vcombine.low %v10909_v48, %v10913_v14 }
0x12df   :  { %12575 = vmatpush1.bf16.msra.mxu0 %v13830_v15  ;;  %v10916_v15 = vld [vmem:[#allocation26 + $0x2d0] sm:$0xff] }
0x12e0   :  { %12657 = vmatpush1.bf16.msra.mxu1 %v13832_v10  ;;  %12576 = vmatprep.subr.bf16.mxu0 %v13839_v20  ;;  %v10920_v10 = vld [vmem:[#allocation26 + $0x2f0] sm:$0xff]  ;;  %v10917_v20 = vld [vmem:[#allocation26 + $0x2d8] sm:$0xff] }
0x12e1   :  { %12658 = vmatprep.subr.bf16.mxu1 %v13841_v58  ;;  %v10921_v58 = vld [vmem:[#allocation26 + $0x2f8] sm:$0xff]  ;;  %v13895_v22 = vcombine.high %v10916_v15, %v10920_v10  ;;  %v13894_v0 = vcombine.low %v10916_v15, %v10920_v10 }
0x12e2   :  { %v13897_v9 = vcombine.high %v10917_v20, %v10921_v58  ;;  %v13896_v2 = vcombine.low %v10917_v20, %v10921_v58  ;;  %v10969_v15 = vld [vmem:[#allocation26 + $0x478] sm:$0xff]  ;;  %v10972_v58 = vld [vmem:[#allocation26 + $0x490] sm:$0xff] }
0x12e3   :  { %12577 = vmatpush1.bf16.msra.mxu0 %v13838_v34  ;;  %v10924_v34 = vld [vmem:[#allocation26 + $0x310] sm:$0xff] }
0x12e4   :  { %12659 = vmatpush1.bf16.msra.mxu1 %v13840_v18  ;;  %12578 = vmatprep.subr.bf16.mxu0 %v13847_v61  ;;  %v10928_v18 = vld [vmem:[#allocation26 + $0x330] sm:$0xff]  ;;  %v10925_v61 = vld [vmem:[#allocation26 + $0x318] sm:$0xff] }
0x12e5   :  { %12660 = vmatprep.subr.bf16.mxu1 %v13849_v60  ;;  %v10929_v60 = vld [vmem:[#allocation26 + $0x338] sm:$0xff]  ;;  %v13903_v30 = vcombine.high %v10924_v34, %v10928_v18  ;;  %v13902_v37 = vcombine.low %v10924_v34, %v10928_v18 }
0x12e6   :  { %v13905_v25 = vcombine.high %v10925_v61, %v10929_v60  ;;  %v13904_v54 = vcombine.low %v10925_v61, %v10929_v60 }
0x12e7   :  { %12579 = vmatpush1.bf16.msra.mxu0 %v13846_v49  ;;  %v10932_v49 = vld [vmem:[#allocation26 + $0x350] sm:$0xff] }
0x12e8   :  { %12661 = vmatpush1.bf16.msra.mxu1 %v13848_v19  ;;  %12580 = vmatprep.subr.bf16.mxu0 %v13855_v12  ;;  %v10936_v19 = vld [vmem:[#allocation26 + $0x370] sm:$0xff]  ;;  %v10933_v12 = vld [vmem:[#allocation26 + $0x358] sm:$0xff] }
0x12e9   :  { %12662 = vmatprep.subr.bf16.mxu1 %v13857_v38  ;;  %v10937_v38 = vld [vmem:[#allocation26 + $0x378] sm:$0xff]  ;;  %v13911_v32 = vcombine.high %v10932_v49, %v10936_v19  ;;  %v13910_v35 = vcombine.low %v10932_v49, %v10936_v19 }
0x12ea   :  { %v13913_v62 = vcombine.high %v10933_v12, %v10937_v38  ;;  %v13912_v4 = vcombine.low %v10933_v12, %v10937_v38  ;;  %v10988_v38 = vld [vmem:[#allocation26 + $0x510] sm:$0xff] }
0x12eb   :  { %12581 = vmatpush1.bf16.msra.mxu0 %v13854_v45  ;;  %v10940_v45 = vld [vmem:[#allocation26 + $0x390] sm:$0xff] }
0x12ec   :  { %12663 = vmatpush1.bf16.msra.mxu1 %v13856_v56  ;;  %12582 = vmatprep.subr.bf16.mxu0 %v13863_v7  ;;  %v10944_v56 = vld [vmem:[#allocation26 + $0x3b0] sm:$0xff]  ;;  %v10941_v7 = vld [vmem:[#allocation26 + $0x398] sm:$0xff] }
0x12ed   :  { %12664 = vmatprep.subr.bf16.mxu1 %v13865_v44  ;;  %v10945_v44 = vld [vmem:[#allocation26 + $0x3b8] sm:$0xff]  ;;  %v13919_v51 = vcombine.high %v10940_v45, %v10944_v56  ;;  %v13918_v57 = vcombine.low %v10940_v45, %v10944_v56 }
0x12ee   :  { %v13921_v24 = vcombine.high %v10941_v7, %v10945_v44  ;;  %v13920_v21 = vcombine.low %v10941_v7, %v10945_v44  ;;  %v10996_v7 = vld [vmem:[#allocation26 + $0x550] sm:$0xff] }
0x12ef   :  { %12583 = vmatpush1.bf16.msra.mxu0 %v13862_v31  ;;  %v10948_v31 = vld [vmem:[#allocation26 + $0x3d0] sm:$0xff] }
0x12f0   :  { %12665 = vmatpush1.bf16.msra.mxu1 %v13864_v63  ;;  %12584 = vmatprep.subr.bf16.mxu0 %v13871_v27  ;;  %v10952_v63 = vld [vmem:[#allocation26 + $0x3f0] sm:$0xff]  ;;  %v10949_v27 = vld [vmem:[#allocation26 + $0x3d8] sm:$0xff] }
0x12f1   :  { %12666 = vmatprep.subr.bf16.mxu1 %v13873_v59  ;;  %v10953_v59 = vld [vmem:[#allocation26 + $0x3f8] sm:$0xff]  ;;  %v13927_v50 = vcombine.high %v10948_v31, %v10952_v63  ;;  %v13926_v13 = vcombine.low %v10948_v31, %v10952_v63  ;;  %v11000_v44 = vld [vmem:[#allocation26 + $0x570] sm:$0xff] }
0x12f2   :  { %v13929_v42 = vcombine.high %v10949_v27, %v10953_v59  ;;  %v13928_v17 = vcombine.low %v10949_v27, %v10953_v59  ;;  %v13975_v31 = vcombine.high %v10996_v7, %v11000_v44  ;;  %v11004_v27 = vld [vmem:[#allocation26 + $0x590] sm:$0xff] }
0x12f3   :  { %12585 = vmatpush1.bf16.msra.mxu0 %v13870_v36  ;;  %v10956_v36 = vld [vmem:[#allocation26 + $0x410] sm:$0xff] }
0x12f4   :  { %12667 = vmatpush1.bf16.msra.mxu1 %v13872_v53  ;;  %12586 = vmatprep.subr.bf16.mxu0 %v13879_v29  ;;  %v10960_v53 = vld [vmem:[#allocation26 + $0x430] sm:$0xff]  ;;  %v10957_v29 = vld [vmem:[#allocation26 + $0x418] sm:$0xff] }
0x12f5   :  { %12668 = vmatprep.subr.bf16.mxu1 %v13881_v23  ;;  %v10961_v23 = vld [vmem:[#allocation26 + $0x438] sm:$0xff]  ;;  %v13935_v48 = vcombine.high %v10956_v36, %v10960_v53  ;;  %v11008_v59 = vld [vmem:[#allocation26 + $0x5b0] sm:$0xff] }
0x12f6   :  { %v13937_v14 = vcombine.high %v10957_v29, %v10961_v23  ;;  %v13936_v10 = vcombine.low %v10957_v29, %v10961_v23  ;;  %v11012_v29 = vld [vmem:[#allocation26 + $0x5d0] sm:$0xff] }
0x12f7   :  { %12587 = vmatpush1.bf16.msra.mxu0 %v13878_v46  ;;  %v10964_v46 = vld [vmem:[#allocation26 + $0x450] sm:$0xff] }
0x12f8   :  { %12669 = vmatpush1.bf16.msra.mxu1 %v13880_v47  ;;  %12588 = vmatprep.subr.bf16.mxu0 %v13887_v11  ;;  %v10968_v47 = vld [vmem:[#allocation26 + $0x470] sm:$0xff]  ;;  %v13934_v11 = vcombine.low %v10956_v36, %v10960_v53  ;;  %v13983_v36 = vcombine.high %v11004_v27, %v11008_v59 }
0x12f9   :  { %12670 = vmatprep.subr.bf16.mxu1 %v13889_v55  ;;  %v10965_v55 = vld [vmem:[#allocation26 + $0x458] sm:$0xff]  ;;  %v13943_v20 = vcombine.high %v10964_v46, %v10968_v47  ;;  %v13942_v34 = vcombine.low %v10964_v46, %v10968_v47  ;;  %v11016_v23 = vld [vmem:[#allocation26 + $0x5f0] sm:$0xff] }
0x12fa   :  { %v13944_v18 = vcombine.low %v10965_v55, %v10969_v15  ;;  %v13991_v46 = vcombine.high %v11012_v29, %v11016_v23 }
0x12fb   :  { %12589 = vmatpush1.bf16.msra.mxu0 %v13886_v41  ;;  %v10976_v41 = vld [vmem:[#allocation26 + $0x4b0] sm:$0xff] }
0x12fc   :  { %12671 = vmatpush1.bf16.msra.mxu1 %v13888_v40  ;;  %12590 = vmatprep.subr.bf16.mxu0 %v13895_v22  ;;  %v13945_v40 = vcombine.high %v10965_v55, %v10969_v15  ;;  %v10973_v22 = vld [vmem:[#allocation26 + $0x498] sm:$0xff]  ;;  %v13951_v61 = vcombine.high %v10972_v58, %v10976_v41  ;;  %v13950_v49 = vcombine.low %v10972_v58, %v10976_v41  ;;  %v11024_v55 = vld [vmem:[#allocation26 + $0x630] sm:$0xff] }
0x12fd   :  { %12672 = vmatprep.subr.bf16.mxu1 %v13897_v9  ;;  %v10977_v9 = vld [vmem:[#allocation26 + $0x4b8] sm:$0xff] }
0x12fe   :  { %v13953_v60 = vcombine.high %v10973_v22, %v10977_v9  ;;  %v11021_v15 = vld [vmem:[#allocation26 + $0x618] sm:$0xff] }
0x12ff   :  { %12591 = vmatpush1.bf16.msra.mxu0 %v13894_v0  ;;  %v10980_v0 = vld [vmem:[#allocation26 + $0x4d0] sm:$0xff] }
0x1300   :  { %12673 = vmatpush1.bf16.msra.mxu1 %v13896_v2  ;;  %12592 = vmatprep.subr.bf16.mxu0 %v13903_v30  ;;  %v10984_v2 = vld [vmem:[#allocation26 + $0x4f0] sm:$0xff]  ;;  %v10981_v30 = vld [vmem:[#allocation26 + $0x4d8] sm:$0xff] }
0x1301   :  { %12674 = vmatprep.subr.bf16.mxu1 %v13905_v25  ;;  %v10985_v25 = vld [vmem:[#allocation26 + $0x4f8] sm:$0xff]  ;;  %v13959_v19 = vcombine.high %v10980_v0, %v10984_v2 }
0x1302   :  { %v13961_v12 = vcombine.high %v10981_v30, %v10985_v25 }
0x1303   :  { %12593 = vmatpush1.bf16.msra.mxu0 %v13902_v37  ;;  %v10992_v37 = vld [vmem:[#allocation26 + $0x530] sm:$0xff] }
0x1304   :  { %12675 = vmatpush1.bf16.msra.mxu1 %v13904_v54  ;;  %12594 = vmatprep.subr.bf16.mxu0 %v13911_v32  ;;  %v10989_v54 = vld [vmem:[#allocation26 + $0x518] sm:$0xff]  ;;  %v13967_v45 = vcombine.high %v10988_v38, %v10992_v37 }
0x1305   :  { %12676 = vmatprep.subr.bf16.mxu1 %v13913_v62  ;;  %v10993_v32 = vld [vmem:[#allocation26 + $0x538] sm:$0xff]  ;;  %v13960_v62 = vcombine.low %v10981_v30, %v10985_v25  ;;  %v11036_v30 = vld [vmem:[#allocation26 + $0x690] sm:$0xff] }
0x1306   :  { %v13969_v56 = vcombine.high %v10989_v54, %v10993_v32  ;;  %v11040_v25 = vld [vmem:[#allocation26 + $0x6b0] sm:$0xff] }
0x1307   :  { %12595 = vmatpush1.bf16.msra.mxu0 %v13910_v35  ;;  %v10997_v35 = vld [vmem:[#allocation26 + $0x558] sm:$0xff] }
0x1308   :  { %12677 = vmatpush1.bf16.msra.mxu1 %v13912_v4  ;;  %12596 = vmatprep.subr.bf16.mxu0 %v13919_v51  ;;  %v11001_v4 = vld [vmem:[#allocation26 + $0x578] sm:$0xff]  ;;  %v13966_v51 = vcombine.low %v10988_v38, %v10992_v37  ;;  %v14015_v38 = vcombine.high %v11036_v30, %v11040_v25 }
0x1309   :  { %12678 = vmatprep.subr.bf16.mxu1 %v13921_v24  ;;  %v13968_v24 = vcombine.low %v10989_v54, %v10993_v32  ;;  %v13977_v63 = vcombine.high %v10997_v35, %v11001_v4  ;;  %v11044_v54 = vld [vmem:[#allocation26 + $0x6d0] sm:$0xff] }
0x130a   :  { %v11048_v32 = vld [vmem:[#allocation26 + $0x6f0] sm:$0xff] }
0x130b   :  { %12597 = vmatpush1.bf16.msra.mxu0 %v13918_v57  ;;  %v11005_v57 = vld [vmem:[#allocation26 + $0x598] sm:$0xff] }
0x130c   :  { %12679 = vmatpush1.bf16.msra.mxu1 %v13920_v21  ;;  %12598 = vmatprep.subr.bf16.mxu0 %v13927_v50  ;;  %v11009_v21 = vld [vmem:[#allocation26 + $0x5b8] sm:$0xff]  ;;  %v13974_v50 = vcombine.low %v10996_v7, %v11000_v44  ;;  %v14023_v7 = vcombine.high %v11044_v54, %v11048_v32 }
0x130d   :  { %12680 = vmatprep.subr.bf16.mxu1 %v13929_v42  ;;  %v13976_v42 = vcombine.low %v10997_v35, %v11001_v4  ;;  %v13985_v53 = vcombine.high %v11005_v57, %v11009_v21  ;;  %v11052_v35 = vld [vmem:[#allocation26 + $0x710] sm:$0xff] }
0x130e   :  { %v11056_v4 = vld [vmem:[#allocation26 + $0x730] sm:$0xff] }
0x130f   :  { %12599 = vmatpush1.bf16.msra.mxu0 %v13926_v13  ;;  %v11013_v13 = vld [vmem:[#allocation26 + $0x5d8] sm:$0xff] }
0x1310   :  { %12681 = vmatpush1.bf16.msra.mxu1 %v13928_v17  ;;  %12609 = vmatprep.subr.bf16.mxu0 %v13935_v48  ;;  %v11017_v17 = vld [vmem:[#allocation26 + $0x5f8] sm:$0xff]  ;;  %v13982_v48 = vcombine.low %v11004_v27, %v11008_v59  ;;  %v14031_v27 = vcombine.high %v11052_v35, %v11056_v4 }
0x1311   :  { %12691 = vmatprep.subr.bf16.mxu1 %v13937_v14  ;;  %v13984_v14 = vcombine.low %v11005_v57, %v11009_v21  ;;  %v13993_v47 = vcombine.high %v11013_v13, %v11017_v17  ;;  %v13992_v58 = vcombine.low %v11013_v13, %v11017_v17  ;;  %v11060_v57 = vld [vmem:[#allocation26 + $0x750] sm:$0xff] }
0x1312   :  { %12601 = vmatmul.mubr.bf16.vlgmr.msra.gmra.mrb[236].mxu0 %v19397_v3  ;;  %v11064_v21 = vld [vmem:[#allocation26 + $0x770] sm:$0xff] }
0x1313   :  { %12683 = vmatmul.mubr.bf16.vlgmr.msra.gmra.mrb[212].mxu1 %v19397_v3  ;;  %12610 = vmatpush1.bf16.msra.mxu0 %v13934_v11  ;;  %v13952_v3 = vcombine.low %v10973_v22, %v10977_v9  ;;  %v11020_v11 = vld [vmem:[#allocation26 + $0x610] sm:$0xff] }
0x1314   :  { %12641 = vmatprep.mubr.bf16.mxu0 %v19401_v26  ;;  %12692 = vmatpush1.bf16.msra.mxu1 %v13936_v10  ;;  %v11025_v10 = vld [vmem:[#allocation26 + $0x638] sm:$0xff]  ;;  %v13999_v41 = vcombine.high %v11020_v11, %v11024_v55  ;;  %v11028_v22 = vld [vmem:[#allocation26 + $0x650] sm:$0xff] }
0x1315   :  { %12723 = vmatprep.mubr.bf16.mxu1 %v19401_v26  ;;  %12611 = vmatprep.subr.bf16.mxu0 %v13943_v20  ;;  %v13958_v26 = vcombine.low %v10980_v0, %v10984_v2  ;;  %v13990_v20 = vcombine.low %v11012_v29, %v11016_v23  ;;  %v11032_v9 = vld [vmem:[#allocation26 + $0x670] sm:$0xff]  ;;  %v14039_v29 = vcombine.high %v11060_v57, %v11064_v21 }
0x1316   :  { %12693 = vmatprep.subr.bf16.mxu1 %v13945_v40  ;;  %v14001_v40 = vcombine.high %v11021_v15, %v11025_v10  ;;  %v14007_v0 = vcombine.high %v11028_v22, %v11032_v9  ;;  %v11068_v13 = vld [vmem:[#allocation26 + $0x790] sm:$0xff] }
0x1317   :  { %12612 = vmatpush1.bf16.msra.mxu0 %v13942_v34  ;;  %v11029_v34 = vld [vmem:[#allocation26 + $0x658] sm:$0xff]  ;;  %v11072_v17 = vld [vmem:[#allocation26 + $0x7b0] sm:$0xff] }
0x1318   :  { %12694 = vmatpush1.bf16.msra.mxu1 %v13944_v18  ;;  %12613 = vmatprep.subr.bf16.mxu0 %v13951_v61  ;;  %v11033_v18 = vld [vmem:[#allocation26 + $0x678] sm:$0xff]  ;;  %v13998_v61 = vcombine.low %v11020_v11, %v11024_v55  ;;  %v14047_v11 = vcombine.high %v11068_v13, %v11072_v17 }
0x1319   :  { %12695 = vmatprep.subr.bf16.mxu1 %v13953_v60  ;;  %v14000_v60 = vcombine.low %v11021_v15, %v11025_v10  ;;  %v14009_v2 = vcombine.high %v11029_v34, %v11033_v18  ;;  %v11076_v15 = vld [vmem:[#allocation26 + $0x7d0] sm:$0xff] }
0x131a   :  { %v11080_v10 = vld [vmem:[#allocation26 + $0x7f0] sm:$0xff] }
0x131b   :  { %12614 = vmatpush1.bf16.msra.mxu0 %v13950_v49  ;;  %v11037_v49 = vld [vmem:[#allocation26 + $0x698] sm:$0xff] }
0x131c   :  { %12696 = vmatpush1.bf16.msra.mxu1 %v13952_v3  ;;  %12615 = vmatprep.subr.bf16.mxu0 %v13959_v19  ;;  %v11041_v3 = vld [vmem:[#allocation26 + $0x6b8] sm:$0xff]  ;;  %v14006_v19 = vcombine.low %v11028_v22, %v11032_v9  ;;  %v14055_v22 = vcombine.high %v11076_v15, %v11080_v10 }
0x131d   :  { %12697 = vmatprep.subr.bf16.mxu1 %v13961_v12  ;;  %v14008_v12 = vcombine.low %v11029_v34, %v11033_v18  ;;  %v14017_v37 = vcombine.high %v11037_v49, %v11041_v3  ;;  %v14054_v34 = vcombine.low %v11076_v15, %v11080_v10 }
0x131f   :  { %12616 = vmatpush1.bf16.msra.mxu0 %v13958_v26  ;;  %v11045_v26 = vld [vmem:[#allocation26 + $0x6d8] sm:$0xff] }
0x1320   :  { %12698 = vmatpush1.bf16.msra.mxu1 %v13960_v62  ;;  %12617 = vmatprep.subr.bf16.mxu0 %v13967_v45  ;;  %v11049_v62 = vld [vmem:[#allocation26 + $0x6f8] sm:$0xff]  ;;  %v14014_v45 = vcombine.low %v11036_v30, %v11040_v25 }
0x1321   :  { %12699 = vmatprep.subr.bf16.mxu1 %v13969_v56  ;;  %v14016_v56 = vcombine.low %v11037_v49, %v11041_v3  ;;  %v14025_v44 = vcombine.high %v11045_v26, %v11049_v62 }
0x1323   :  { %12618 = vmatpush1.bf16.msra.mxu0 %v13966_v51  ;;  %v11053_v51 = vld [vmem:[#allocation26 + $0x718] sm:$0xff] }
0x1324   :  { %12700 = vmatpush1.bf16.msra.mxu1 %v13968_v24  ;;  %12619 = vmatprep.subr.bf16.mxu0 %v13975_v31  ;;  %v11057_v24 = vld [vmem:[#allocation26 + $0x738] sm:$0xff]  ;;  %v14022_v31 = vcombine.low %v11044_v54, %v11048_v32 }
0x1325   :  { %12701 = vmatprep.subr.bf16.mxu1 %v13977_v63  ;;  %v14024_v63 = vcombine.low %v11045_v26, %v11049_v62  ;;  %v14033_v59 = vcombine.high %v11053_v51, %v11057_v24 }
0x1327   :  { %12620 = vmatpush1.bf16.msra.mxu0 %v13974_v50  ;;  %v11061_v50 = vld [vmem:[#allocation26 + $0x758] sm:$0xff] }
0x1328   :  { %12702 = vmatpush1.bf16.msra.mxu1 %v13976_v42  ;;  %12621 = vmatprep.subr.bf16.mxu0 %v13983_v36  ;;  %v11065_v42 = vld [vmem:[#allocation26 + $0x778] sm:$0xff]  ;;  %v14030_v36 = vcombine.low %v11052_v35, %v11056_v4 }
0x1329   :  { %12703 = vmatprep.subr.bf16.mxu1 %v13985_v53  ;;  %v14032_v53 = vcombine.low %v11053_v51, %v11057_v24  ;;  %v14041_v23 = vcombine.high %v11061_v50, %v11065_v42 }
0x132b   :  { %12622 = vmatpush1.bf16.msra.mxu0 %v13982_v48  ;;  %v11069_v48 = vld [vmem:[#allocation26 + $0x798] sm:$0xff] }
0x132c   :  { %12704 = vmatpush1.bf16.msra.mxu1 %v13984_v14  ;;  %12623 = vmatprep.subr.bf16.mxu0 %v13991_v46  ;;  %v11073_v14 = vld [vmem:[#allocation26 + $0x7b8] sm:$0xff]  ;;  %v14038_v46 = vcombine.low %v11060_v57, %v11064_v21 }
0x132d   :  { %12705 = vmatprep.subr.bf16.mxu1 %v13993_v47  ;;  %v14040_v47 = vcombine.low %v11061_v50, %v11065_v42  ;;  %v14049_v55 = vcombine.high %v11069_v48, %v11073_v14 }
0x132f   :  { %12624 = vmatpush1.bf16.msra.mxu0 %v13990_v20  ;;  %v11077_v20 = vld [vmem:[#allocation26 + $0x7d8] sm:$0xff] }
0x1330   :  { %12706 = vmatpush1.bf16.msra.mxu1 %v13992_v58  ;;  %12625 = vmatprep.subr.bf16.mxu0 %v13999_v41  ;;  %v11081_v58 = vld [vmem:[#allocation26 + $0x7f8] sm:$0xff]  ;;  %v14046_v41 = vcombine.low %v11068_v13, %v11072_v17 }
0x1331   :  { %12707 = vmatprep.subr.bf16.mxu1 %v14001_v40  ;;  %v14048_v40 = vcombine.low %v11069_v48, %v11073_v14  ;;  %v14057_v9 = vcombine.high %v11077_v20, %v11081_v58  ;;  %v14056_v18 = vcombine.low %v11077_v20, %v11081_v58 }
0x1333   :  { %12626 = vmatpush1.bf16.msra.mxu0 %v13998_v61  ;;  %v11082_v61 = vld [vmem:[#allocation28] sm:$0xff] }
0x1334   :  { %12708 = vmatpush1.bf16.msra.mxu1 %v14000_v60  ;;  %12627 = vmatprep.subr.bf16.mxu0 %v14007_v0  ;;  %v11087_v60 = vrot.slane %v11082_v61, %v19350_v1  ;;  %v11095_v0 = vrot.slane %v11082_v61, %v19362_v43  ;;  %v11099_v30 = vrot.slane %v11082_v61, %v19353_v8 }
0x1335   :  { %12709 = vmatprep.subr.bf16.mxu1 %v14009_v2  ;;  %v11091_v2 = vrot.slane %v11082_v61, %v19337_v16 }
0x1337   :  { %12628 = vmatpush1.bf16.msra.mxu0 %v14006_v19 }
0x1338   :  { %12710 = vmatpush1.bf16.msra.mxu1 %v14008_v12  ;;  %12629 = vmatprep.subr.bf16.mxu0 %v14015_v38 }
0x1339   :  { %12711 = vmatprep.subr.bf16.mxu1 %v14017_v37 }
0x133b   :  { %12630 = vmatpush1.bf16.msra.mxu0 %v14014_v45 }
0x133c   :  { %12712 = vmatpush1.bf16.msra.mxu1 %v14016_v56  ;;  %12631 = vmatprep.subr.bf16.mxu0 %v14023_v7 }
0x133d   :  { %12713 = vmatprep.subr.bf16.mxu1 %v14025_v44 }
0x133f   :  { %12632 = vmatpush1.bf16.msra.mxu0 %v14022_v31 }
0x1340   :  { %12714 = vmatpush1.bf16.msra.mxu1 %v14024_v63  ;;  %12633 = vmatprep.subr.bf16.mxu0 %v14031_v27 }
0x1341   :  { %12715 = vmatprep.subr.bf16.mxu1 %v14033_v59 }
0x1343   :  { %12634 = vmatpush1.bf16.msra.mxu0 %v14030_v36 }
0x1344   :  { %12716 = vmatpush1.bf16.msra.mxu1 %v14032_v53  ;;  %12635 = vmatprep.subr.bf16.mxu0 %v14039_v29 }
0x1345   :  { %12717 = vmatprep.subr.bf16.mxu1 %v14041_v23 }
0x1347   :  { %12636 = vmatpush1.bf16.msra.mxu0 %v14038_v46 }
0x1348   :  { %12718 = vmatpush1.bf16.msra.mxu1 %v14040_v47  ;;  %12637 = vmatprep.subr.bf16.mxu0 %v14047_v11 }
0x1349   :  { %12719 = vmatprep.subr.bf16.mxu1 %v14049_v55 }
0x134b   :  { %12638 = vmatpush1.bf16.msra.mxu0 %v14046_v41 }
0x134c   :  { %12720 = vmatpush1.bf16.msra.mxu1 %v14048_v40  ;;  %12639 = vmatprep.subr.bf16.mxu0 %v14055_v22 }
0x134d   :  { %12721 = vmatprep.subr.bf16.mxu1 %v14057_v9 }
0x134f   :  { %12640 = vmatpush1.bf16.msra.mxu0 %v14054_v34 }
0x1350   :  { %12722 = vmatpush1.bf16.msra.mxu1 %v14056_v18 }
0x1352   :  { %12642 = vmatmul.mubr.bf16.vlgmr.msra.gmra.mrb[236].mxu0 %v19410_v39 }
0x1353   :  { %12724 = vmatmul.mubr.bf16.vlgmr.msra.gmra.mrb[212].mxu1 %v19410_v39 }
0x13a5   :  { %v12479_v25 = vpop.f32.mrb[232].mxu0  ;;  %v12561_v49 = vpop.f32.mrb[208].mxu1 }
0x13a6   :  { %v14788_v3 = vadd.f32 %v12479_v25, %v11087_v60  ;;  %v14790_v19 = vadd.f32 %v12561_v49, %v11095_v0  ;;  %v12481_v12 = vpop.f32.mrb[233].mxu0  ;;  %v12563_v38 = vpop.f32.mrb[209].mxu1 }
0x13a7   :  { %v14789_v37 = vadd.f32 %v12481_v12, %v11091_v2  ;;  %v14791_v54 = vadd.f32 %v12563_v38, %v11099_v30  ;;  %v12483_v32 = vpop.f32.mrb[234].mxu0  ;;  %v12565_v26 = vpop.f32.mrb[210].mxu1 }
0x13a8   :  { %12732 = vst [vmem:[#allocation29] sm:$0xff] %v14788_v3  ;;  %12734 = vst [vmem:[#allocation29 + $0x10] sm:$0xff] %v14790_v19  ;;  %v12484_v39 = vpop.f32.mrb[235].mxu0  ;;  %v12566_v1 = vpop.f32.mrb[211].mxu1 }
0x13a9   :  { %12733 = vst [vmem:[#allocation29 + $0x8] sm:$0xff] %v14789_v37  ;;  %12735 = vst [vmem:[#allocation29 + $0x18] sm:$0xff] %v14791_v54 }
0x13aa   :  { %15743 = shalt.err (!%p15740_p0)
}
0x13ab   :  { %s19847_s30 = sld [smem:[#allocation84_spill]] }
0x13b1   :  { %s15744_s13 = scalar_lea.hbm %s19847_s30, 512 }
0x13b2   :  { %p15745_p1 = scmp.ne.s32.totalorder %s19847_s30, %s15744_s13  ;;  %p15748_p2 = scmp.lt.u32.totalorder %s15744_s13, %s19847_s30 }
0x13b4   :  { %p15750_p3 = pnand %p15748_p2, %p15745_p1 }
0x13b6   :  { %15753 = shalt.err (!%p15750_p3)
}
0x13b7   :  { %12749 = dma.vmem_to_hbm [thread:$0]  %s12747_s20, 512, %s19847_s30, [#allocation4]   ;;  %v11103_v16 = vrot.slane %v11082_v61, %v5360_v6  ;;  %v11111_v8 = vrot.slane %v11082_v61, %v5368_v28  ;;  %v11107_v43 = vrot.slane %v11082_v61, %v5364_v5  ;;  %v11115_v62 = vrot.slane %v11082_v61, %v5372_v33 }
0x13b8   :  { %s15829_s11 = smov [#allocation30]  }
0x13b9   :  { %s12756_s7 = sshll.u32 %s15829_s11, 4  ;;  %s12757_s7 = int_to_ptr.vmem [resolvable:$true] %s12756_s7 }
0x13ba   :  { %s15754_s24 = scalar_lea.vmem %s12757_s7, 512  ;;  %p15759_p5 = scmp.lt.s32.totalorder %s12757_s7, %s12757_s7 }
0x13bb   :  { %p15755_p4 = scmp.ne.s32.totalorder %s12757_s7, %s15754_s24  ;;  %p15760_p6 = scmp.lt.s32.totalorder %s15754_s24, %s15754_s24 }
0x13bd   :  { %p15761_p7 = por %p15760_p6, %p15759_p5 }
0x13bf   :  { %p15762_p8 = pnand %p15761_p7, %p15755_p4 }
0x1425   :  { %v12643_v45 = vpop.f32.mrb[236].mxu0 }
0x1426   :  { %v14792_v56 = vadd.f32 %v12643_v45, %v11103_v16  ;;  %v12725_v7 = vpop.f32.mrb[212].mxu1  ;;  %v12645_v44 = vpop.f32.mrb[237].mxu0 }
0x1427   :  { %v14794_v35 = vadd.f32 %v12725_v7, %v11111_v8  ;;  %v14793_v4 = vadd.f32 %v12645_v44, %v11107_v43  ;;  %v12727_v51 = vpop.f32.mrb[213].mxu1  ;;  %v12647_v24 = vpop.f32.mrb[238].mxu0 }
0x1428   :  { %12736 = vst [vmem:[#allocation30] sm:$0xff] %v14792_v56  ;;  %v14795_v6 = vadd.f32 %v12727_v51, %v11115_v62  ;;  %v12729_v31 = vpop.f32.mrb[214].mxu1  ;;  %v12648_v28 = vpop.f32.mrb[239].mxu0 }
0x1429   :  { %12738 = vst [vmem:[#allocation30 + $0x10] sm:$0xff] %v14794_v35  ;;  %12737 = vst [vmem:[#allocation30 + $0x8] sm:$0xff] %v14793_v4  ;;  %v12730_v5 = vpop.f32.mrb[215].mxu1 }
0x142a   :  { %12739 = vst [vmem:[#allocation30 + $0x18] sm:$0xff] %v14795_v6 }
0x142b   :  { %15765 = shalt.err (!%p15762_p8)
}
0x142c   :  { %s19848_s10 = sld [smem:[#allocation85_spill]] }
0x1432   :  { %s15766_s27 = scalar_lea.hbm %s19848_s10, 512 }
0x1433   :  { %p15767_p9 = scmp.ne.s32.totalorder %s19848_s10, %s15766_s27  ;;  %p15770_p10 = scmp.lt.u32.totalorder %s15766_s27, %s19848_s10 }
0x1435   :  { %p15772_p11 = pnand %p15770_p10, %p15767_p9 }
0x1437   :  { %15775 = shalt.err (!%p15772_p11)
}
0x1438   :  { %12759 = dma.vmem_to_hbm [thread:$0]  %s12757_s7, 512, %s19848_s10, [#allocation31]  }
0x1439   :  { %15794 = dma.done.wait [#allocation4], 512  }
0x143a   :  { %15795 = vsyncadd [#allocation4], 4294966784 }
0x143b   :  { %15796 = dma.done.wait [#allocation31], 512  }
0x143c   :  { %15797 = vsyncadd [#allocation31], 4294966784 }
0x143d   :  { %12766 = vsyncpa [#allocation3], 1 }
0x143e   :  { %12767 = vsyncpa [#allocation6], 1 }
0x143f   :  { %12768 = vsyncpa [#allocation9], 1 }
0x1440   :  { %12769 = vsyncpa [#allocation12], 1 }
0x1441   :  { %12770 = vsyncpa [#allocation15], 1 }
0x1442   :  { %12771 = vsyncpa [#allocation18], 1 }
0x1443   :  { %12772 = vsyncpa [#allocation21], 1 }
0x1444   :  { %12773 = vsyncpa [#allocation24], 1 }
0x1445   :  { %12774 = vsyncpa [#allocation27], 1 }
0x1446   :  { %12775 = vsyncpa [#allocation4], 1 }
0x1447   :  { %12776 = vsyncpa [#allocation31], 1 }

</bundles_post_ra>
